<compile_context>
chip_gen: v6e
topology: v6e:2x2x1
jax: 0.10.0
libtpu: 0.0.40
codegen_flags: <defaults>
</compile_context>

<pallas_src>
import functools

import jax
import jax.numpy as jnp
from jax import lax
from jax.experimental import pallas as pl
from jax.experimental.pallas import tpu as pltpu

# ---- model hyper-params (consistent with the reference module) ----
VOCAB_SIZE = 50
VOCAB_PAD = 64          # embedding rows padded to a sublane multiple
EMBED_DIM = 128
HIDDEN_DIM = 128
NUM_LAYERS = 2
OUTPUT_DIM = 3          # number of sentiment classes
PAD_IDX = 1             # vocab['<pad>'] in the reference
BATCH = 8
SEQ = 8
FC_PAD = 128            # lane-dense padded width of the FC output


# ---------------------------------------------------------------------------
# Fused Pallas kernel: embedding gather -> skewed 2-layer LSTM -> FC (padded)
# ---------------------------------------------------------------------------
def fused_lstm_kernel(ids_ref, emb_ref, w0_ref, b0_ref, w1_ref, b1_ref,
                      fcw_ref, fcb_ref, out_ref, *,
                      seq_len, batch, hidden_dim):
    """Whole forward in one kernel invocation (grid=(1,)).

    ids_ref:  (B, T)        int32 token ids, scalar-prefetched into SMEM
    emb_ref:  (VOCAB_PAD,E) f32   embedding table resident in VMEM
    w0_ref:   (E+H, 4H)     bf16  [W_ih0 ; W_hh0], gate cols in (i,f,o,g) order
    b0_ref:   (1, 4H)       f32   b_ih0 + b_hh0, same gate order
    w1_ref:   (2H, 4H)      bf16  [W_ih1 ; W_hh1]
    b1_ref:   (1, 4H)       f32
    fcw_ref:  (H, 128)      bf16  FC weights zero-padded to 128 lanes
    fcb_ref:  (1, 128)      f32   FC bias zero-padded
    out_ref:  (B, 128)      f32   padded logits (real logits = [:, :OUTPUT_DIM])
    """
    T, B, H = seq_len, batch, hidden_dim

    def gather_x(t):
        # In-kernel embedding gather for timestep t: B dynamic row reads from
        # the VMEM-resident table, indexed by SMEM scalars. Cast to bf16 for
        # the MXU; gate math stays f32 via the f32 accumulate.
        rows = [emb_ref[pl.ds(ids_ref[b, t], 1), :] for b in range(B)]
        return jnp.concatenate(rows, axis=0).astype(jnp.bfloat16)   # (B, E)

    def cell(inp_cat, w_ref, b_ref, c_prev):
        # inp_cat: (B, 256) bf16 = [x_or_h_below ; h_prev] -> one MXU pass.
        gates = jnp.dot(inp_cat, w_ref[...],
                        preferred_element_type=jnp.float32) + b_ref[...]
        # Gate columns are (i, f, o, g): one contiguous sigmoid slab + tanh.
        sig = jax.nn.sigmoid(gates[:, :3 * H])
        i_g = sig[:, 0 * H:1 * H]
        f_g = sig[:, 1 * H:2 * H]
        o_g = sig[:, 2 * H:3 * H]
        g_g = jnp.tanh(gates[:, 3 * H:4 * H])
        c_new = f_g * c_prev + i_g * g_g
        h_new = o_g * jnp.tanh(c_new)
        return h_new.astype(jnp.bfloat16), c_new

    zeros_h = jnp.zeros((B, H), jnp.bfloat16)
    zeros_c = jnp.zeros((B, H), jnp.float32)

    # ---- prologue: layer-0 step 0
    h0, c0 = cell(jnp.concatenate([gather_x(0), zeros_h], axis=-1),
                  w0_ref, b0_ref, zeros_c)

    # ---- steady state (1-step skew): layer-1 step t-1 + layer-0 step t.
    # Both chains only depend on the carry, so the scheduler can overlap them.
    def body(t, carry):
        h0, c0, h1, c1 = carry
        h1n, c1n = cell(jnp.concatenate([h0, h1], axis=-1),
                        w1_ref, b1_ref, c1)
        h0n, c0n = cell(jnp.concatenate([gather_x(t), h0], axis=-1),
                        w0_ref, b0_ref, c0)
        return (h0n, c0n, h1n, c1n)

    h0, c0, h1, c1 = lax.fori_loop(1, T, body, (h0, c0, zeros_h, zeros_c),
                                   unroll=True)

    # ---- epilogue: final layer-1 step consuming h0_{T-1}
    h1, _ = cell(jnp.concatenate([h0, h1], axis=-1), w1_ref, b1_ref, c1)

    # ---- fused FC head on the final hidden state (lane-dense 128-wide store).
    out_ref[...] = (jnp.dot(h1, fcw_ref[...],
                            preferred_element_type=jnp.float32)
                    + fcb_ref[...]).astype(out_ref.dtype)


def fused_forward(token_ids, p):
    """token_ids: (B, T) int32 -> padded logits (B, 128) f32."""
    B, T = token_ids.shape
    H = HIDDEN_DIM
    kernel = functools.partial(fused_lstm_kernel, seq_len=T, batch=B,
                               hidden_dim=H)
    # grid=(1,): no per-step pipeline overhead; all weights (~0.6 MiB bf16) and
    # the embedding table stay resident in VMEM for the whole forward.
    return pl.pallas_call(
        kernel,
        out_shape=jax.ShapeDtypeStruct((B, FC_PAD), jnp.float32),
        grid_spec=pltpu.PrefetchScalarGridSpec(
            num_scalar_prefetch=1,            # token ids -> SMEM
            grid=(1,),
            in_specs=[
                pl.BlockSpec((VOCAB_PAD, EMBED_DIM), lambda i, ids: (0, 0)),
                pl.BlockSpec((EMBED_DIM + H, 4 * H), lambda i, ids: (0, 0)),
                pl.BlockSpec((1, 4 * H), lambda i, ids: (0, 0)),
                pl.BlockSpec((2 * H, 4 * H), lambda i, ids: (0, 0)),
                pl.BlockSpec((1, 4 * H), lambda i, ids: (0, 0)),
                pl.BlockSpec((H, FC_PAD), lambda i, ids: (0, 0)),
                pl.BlockSpec((1, FC_PAD), lambda i, ids: (0, 0)),
            ],
            out_specs=pl.BlockSpec((B, FC_PAD), lambda i, ids: (0, 0)),
        ),
        compiler_params=pltpu.CompilerParams(
            dimension_semantics=("arbitrary",)),
    )(token_ids, p["emb_pad"], p["w0"], p["b0"], p["w1"], p["b1"],
      p["fc_w_pad"], p["fc_b_pad"])


# ---------------------------------------------------------------------------
# Parameter prep (PyTorch-compatible init, gate order repacked to i,f,o,g,
# input/hidden weights concatenated along K, matmul operands cast to bf16)
# ---------------------------------------------------------------------------
def _reorder_gates(w):
    """Rows/entries in PyTorch gate order (i, f, g, o) -> (i, f, o, g)."""
    i, f, g, o = jnp.split(w, 4, axis=0)
    return jnp.concatenate([i, f, o, g], axis=0)


def init_params(key):
    ks = jax.random.split(key, 1 + 4 * NUM_LAYERS + 2)
    k = iter(ks)
    bound = 1.0 / jnp.sqrt(HIDDEN_DIM)

    emb = jax.random.normal(next(k), (VOCAB_SIZE, EMBED_DIM), jnp.float32)
    emb = emb.at[PAD_IDX].set(0.0)   # padding_idx row is zero at init
    emb_pad = jnp.zeros((VOCAB_PAD, EMBED_DIM), jnp.float32)
    p = {"emb_pad": emb_pad.at[:VOCAB_SIZE].set(emb)}

    for layer in range(NUM_LAYERS):
        in_dim = EMBED_DIM if layer == 0 else HIDDEN_DIM
        w_ih = jax.random.uniform(next(k), (4 * HIDDEN_DIM, in_dim),
                                  jnp.float32, -bound, bound)
        w_hh = jax.random.uniform(next(k), (4 * HIDDEN_DIM, HIDDEN_DIM),
                                  jnp.float32, -bound, bound)
        b_ih = jax.random.uniform(next(k), (4 * HIDDEN_DIM,),
                                  jnp.float32, -bound, bound)
        b_hh = jax.random.uniform(next(k), (4 * HIDDEN_DIM,),
                                  jnp.float32, -bound, bound)
        # [W_ih ; W_hh] stacked along K -> one (256, 4H) bf16 operand per layer.
        w_cat = jnp.concatenate([_reorder_gates(w_ih).T,
                                 _reorder_gates(w_hh).T], axis=0)
        p[f"w{layer}"] = w_cat.astype(jnp.bfloat16)               # (in+H, 4H)
        p[f"b{layer}"] = _reorder_gates(b_ih + b_hh).reshape(1, 4 * HIDDEN_DIM)

    fc_w = jax.random.uniform(next(k), (OUTPUT_DIM, HIDDEN_DIM),
                              jnp.float32, -bound, bound)
    fc_b = jax.random.uniform(next(k), (OUTPUT_DIM,),
                              jnp.float32, -bound, bound)
    # Zero-pad FC to a lane-dense 128-wide output; slice logits[:, :3] outside.
    p["fc_w_pad"] = (jnp.zeros((HIDDEN_DIM, FC_PAD), jnp.float32)
                     .at[:, :OUTPUT_DIM].set(fc_w.T)).astype(jnp.bfloat16)
    p["fc_b_pad"] = jnp.zeros((1, FC_PAD),
                              jnp.float32).at[0, :OUTPUT_DIM].set(fc_b)
    return p


@jax.jit
def lstm_model_forward(params, token_ids):
    """token_ids: (B, T) int32 -> logits (B, OUTPUT_DIM) f32."""
    # Embedding gather, both LSTM layers and the FC head all run inside the
    # single Pallas kernel; only the final logit slice happens in plain JAX.
    logits_pad = fused_forward(token_ids, params)                 # (B, 128)
    # TODO(synk): nn.Dropout / inter-layer LSTM dropout are training-only; this
    # implements the eval/inference forward (identity), and the final hidden
    # state is the unconditional last timestep (== out[:, -1, :]) as in the
    # reference (no length-masked "last valid token" handling).
    return logits_pad[:, :OUTPUT_DIM]


if __name__ == "__main__":
    key = jax.random.PRNGKey(0)
    pkey, xkey = jax.random.split(key)
    params = init_params(pkey)
    token_ids = jax.random.randint(xkey, (BATCH, SEQ), 0, VOCAB_SIZE,
                                   dtype=jnp.int32)
    logits = lstm_model_forward(params, token_ids)
    jax.block_until_ready(logits)
    assert logits.shape == (BATCH, OUTPUT_DIM)
    assert logits.dtype == jnp.float32
    assert bool(jnp.all(jnp.isfinite(logits)))
    print("KERNEL_OK")
</pallas_src>

<mosaic_0001>
module attributes {stable_mosaic.version = 11 : i64} {
  func.func @fused_lstm_kernel(%arg0: i32, %arg1: memref<8x8xi32, #tpu.memory_space<smem>>, %arg2: memref<64x128xf32, #tpu.memory_space<vmem>>, %arg3: memref<256x512xbf16, #tpu.memory_space<vmem>>, %arg4: memref<1x512xf32, #tpu.memory_space<vmem>>, %arg5: memref<256x512xbf16, #tpu.memory_space<vmem>>, %arg6: memref<1x512xf32, #tpu.memory_space<vmem>>, %arg7: memref<128x128xbf16, #tpu.memory_space<vmem>>, %arg8: memref<1x128xf32, #tpu.memory_space<vmem>>, %arg9: memref<8x128xf32, #tpu.memory_space<vmem>>) attributes {dimension_semantics = [#tpu.dimension_semantics<arbitrary>], iteration_bounds = array<i64: 1>, scalar_prefetch = 1 : i64, scratch_operands = 0 : i64, tpu.core_type = #tpu.core_type<tc>, window_params = [{pipeline_mode = #tpu.pipeline_mode<synchronous>, transform_indices = @transform_0, window_bounds = array<i64: 64, 128>}, {pipeline_mode = #tpu.pipeline_mode<synchronous>, transform_indices = @transform_1, window_bounds = array<i64: 256, 512>}, {pipeline_mode = #tpu.pipeline_mode<synchronous>, transform_indices = @transform_2, window_bounds = array<i64: 1, 512>}, {pipeline_mode = #tpu.pipeline_mode<synchronous>, transform_indices = @transform_3, window_bounds = array<i64: 256, 512>}, {pipeline_mode = #tpu.pipeline_mode<synchronous>, transform_indices = @transform_4, window_bounds = array<i64: 1, 512>}, {pipeline_mode = #tpu.pipeline_mode<synchronous>, transform_indices = @transform_5, window_bounds = array<i64: 128, 128>}, {pipeline_mode = #tpu.pipeline_mode<synchronous>, transform_indices = @transform_6, window_bounds = array<i64: 1, 128>}, {pipeline_mode = #tpu.pipeline_mode<synchronous>, transform_indices = @transform_7, window_bounds = array<i64: 8, 128>}]} {
    %cst = arith.constant 0.000000e+00 : bf16
    %0 = vector.broadcast %cst : bf16 to vector<8x128xbf16>
    %cst_0 = arith.constant 0.000000e+00 : f32
    %1 = vector.broadcast %cst_0 : f32 to vector<8x128xf32>
    %c0 = arith.constant 0 : index
    %c0_1 = arith.constant 0 : index
    %2 = memref.load %arg1[%c0, %c0_1] : memref<8x8xi32, #tpu.memory_space<smem>>
    %3 = arith.index_cast %2 : i32 to index
    %c0_2 = arith.constant 0 : index
    %4 = vector.load %arg2[%3, %c0_2] : memref<64x128xf32, #tpu.memory_space<vmem>>, vector<1x128xf32>
    %c1 = arith.constant 1 : index
    %c0_3 = arith.constant 0 : index
    %5 = memref.load %arg1[%c1, %c0_3] : memref<8x8xi32, #tpu.memory_space<smem>>
    %6 = arith.index_cast %5 : i32 to index
    %c0_4 = arith.constant 0 : index
    %7 = vector.load %arg2[%6, %c0_4] : memref<64x128xf32, #tpu.memory_space<vmem>>, vector<1x128xf32>
    %c2 = arith.constant 2 : index
    %c0_5 = arith.constant 0 : index
    %8 = memref.load %arg1[%c2, %c0_5] : memref<8x8xi32, #tpu.memory_space<smem>>
    %9 = arith.index_cast %8 : i32 to index
    %c0_6 = arith.constant 0 : index
    %10 = vector.load %arg2[%9, %c0_6] : memref<64x128xf32, #tpu.memory_space<vmem>>, vector<1x128xf32>
    %c3 = arith.constant 3 : index
    %c0_7 = arith.constant 0 : index
    %11 = memref.load %arg1[%c3, %c0_7] : memref<8x8xi32, #tpu.memory_space<smem>>
    %12 = arith.index_cast %11 : i32 to index
    %c0_8 = arith.constant 0 : index
    %13 = vector.load %arg2[%12, %c0_8] : memref<64x128xf32, #tpu.memory_space<vmem>>, vector<1x128xf32>
    %c4 = arith.constant 4 : index
    %c0_9 = arith.constant 0 : index
    %14 = memref.load %arg1[%c4, %c0_9] : memref<8x8xi32, #tpu.memory_space<smem>>
    %15 = arith.index_cast %14 : i32 to index
    %c0_10 = arith.constant 0 : index
    %16 = vector.load %arg2[%15, %c0_10] : memref<64x128xf32, #tpu.memory_space<vmem>>, vector<1x128xf32>
    %c5 = arith.constant 5 : index
    %c0_11 = arith.constant 0 : index
    %17 = memref.load %arg1[%c5, %c0_11] : memref<8x8xi32, #tpu.memory_space<smem>>
    %18 = arith.index_cast %17 : i32 to index
    %c0_12 = arith.constant 0 : index
    %19 = vector.load %arg2[%18, %c0_12] : memref<64x128xf32, #tpu.memory_space<vmem>>, vector<1x128xf32>
    %c6 = arith.constant 6 : index
    %c0_13 = arith.constant 0 : index
    %20 = memref.load %arg1[%c6, %c0_13] : memref<8x8xi32, #tpu.memory_space<smem>>
    %21 = arith.index_cast %20 : i32 to index
    %c0_14 = arith.constant 0 : index
    %22 = vector.load %arg2[%21, %c0_14] : memref<64x128xf32, #tpu.memory_space<vmem>>, vector<1x128xf32>
    %c7 = arith.constant 7 : index
    %c0_15 = arith.constant 0 : index
    %23 = memref.load %arg1[%c7, %c0_15] : memref<8x8xi32, #tpu.memory_space<smem>>
    %24 = arith.index_cast %23 : i32 to index
    %c0_16 = arith.constant 0 : index
    %25 = vector.load %arg2[%24, %c0_16] : memref<64x128xf32, #tpu.memory_space<vmem>>, vector<1x128xf32>
    %26 = tpu.concatenate %4, %7, %10, %13, %16, %19, %22, %25 in 0 : vector<1x128xf32>, vector<1x128xf32>, vector<1x128xf32>, vector<1x128xf32>, vector<1x128xf32>, vector<1x128xf32>, vector<1x128xf32>, vector<1x128xf32> -> vector<8x128xf32>
    %27 = arith.truncf %26 : vector<8x128xf32> to vector<8x128xbf16>
    %28 = tpu.concatenate %27, %0 in 1 : vector<8x128xbf16>, vector<8x128xbf16> -> vector<8x256xbf16>
    %c0_17 = arith.constant 0 : index
    %c0_18 = arith.constant 0 : index
    %29 = vector.load %arg3[%c0_17, %c0_18] : memref<256x512xbf16, #tpu.memory_space<vmem>>, vector<256x512xbf16>
    %cst_19 = arith.constant dense<0.000000e+00> : vector<8x512xf32>
    %30 = tpu.matmul %28, %29, %cst_19 {dimension_numbers = #tpu.dot_dimension_numbers<[1], [0], [0], [1], [0, 0, 1, 1], [], []>} : vector<8x256xbf16>, vector<256x512xbf16>, vector<8x512xf32> -> vector<8x512xf32>
    %c0_20 = arith.constant 0 : index
    %c0_21 = arith.constant 0 : index
    %31 = vector.load %arg4[%c0_20, %c0_21] : memref<1x512xf32, #tpu.memory_space<vmem>>, vector<1x512xf32>
    %32 = vector.broadcast %31 : vector<1x512xf32> to vector<8x512xf32>
    %33 = arith.addf %30, %32 : vector<8x512xf32>
    %34 = vector.extract_strided_slice %33 {offsets = [0, 0], sizes = [8, 384], strides = [1, 1]} : vector<8x512xf32> to vector<8x384xf32>
    %35 = arith.negf %34 : vector<8x384xf32>
    %36 = math.exp %35 : vector<8x384xf32>
    %cst_22 = arith.constant 1.000000e+00 : f32
    %37 = vector.broadcast %cst_22 : f32 to vector<8x384xf32>
    %38 = arith.addf %37, %36 : vector<8x384xf32>
    %39 = arith.divf %37, %38 : vector<8x384xf32>
    %40 = vector.extract_strided_slice %39 {offsets = [0, 0], sizes = [8, 128], strides = [1, 1]} : vector<8x384xf32> to vector<8x128xf32>
    %41 = vector.extract_strided_slice %39 {offsets = [0, 128], sizes = [8, 128], strides = [1, 1]} : vector<8x384xf32> to vector<8x128xf32>
    %42 = vector.extract_strided_slice %39 {offsets = [0, 256], sizes = [8, 128], strides = [1, 1]} : vector<8x384xf32> to vector<8x128xf32>
    %43 = vector.extract_strided_slice %33 {offsets = [0, 384], sizes = [8, 128], strides = [1, 1]} : vector<8x512xf32> to vector<8x128xf32>
    %44 = math.tanh %43 : vector<8x128xf32>
    %45 = arith.mulf %41, %1 : vector<8x128xf32>
    %46 = arith.mulf %40, %44 : vector<8x128xf32>
    %47 = arith.addf %45, %46 : vector<8x128xf32>
    %48 = math.tanh %47 : vector<8x128xf32>
    %49 = arith.mulf %42, %48 : vector<8x128xf32>
    %50 = arith.truncf %49 : vector<8x128xf32> to vector<8x128xbf16>
    %c1_i32 = arith.constant 1 : i32
    %51 = tpu.concatenate %50, %0 in 1 : vector<8x128xbf16>, vector<8x128xbf16> -> vector<8x256xbf16>
    %c0_23 = arith.constant 0 : index
    %c0_24 = arith.constant 0 : index
    %52 = vector.load %arg5[%c0_23, %c0_24] : memref<256x512xbf16, #tpu.memory_space<vmem>>, vector<256x512xbf16>
    %cst_25 = arith.constant dense<0.000000e+00> : vector<8x512xf32>
    %53 = tpu.matmul %51, %52, %cst_25 {dimension_numbers = #tpu.dot_dimension_numbers<[1], [0], [0], [1], [0, 0, 1, 1], [], []>} : vector<8x256xbf16>, vector<256x512xbf16>, vector<8x512xf32> -> vector<8x512xf32>
    %c0_26 = arith.constant 0 : index
    %c0_27 = arith.constant 0 : index
    %54 = vector.load %arg6[%c0_26, %c0_27] : memref<1x512xf32, #tpu.memory_space<vmem>>, vector<1x512xf32>
    %55 = vector.broadcast %54 : vector<1x512xf32> to vector<8x512xf32>
    %56 = arith.addf %53, %55 : vector<8x512xf32>
    %57 = vector.extract_strided_slice %56 {offsets = [0, 0], sizes = [8, 384], strides = [1, 1]} : vector<8x512xf32> to vector<8x384xf32>
    %58 = arith.negf %57 : vector<8x384xf32>
    %59 = math.exp %58 : vector<8x384xf32>
    %cst_28 = arith.constant 1.000000e+00 : f32
    %60 = vector.broadcast %cst_28 : f32 to vector<8x384xf32>
    %61 = arith.addf %60, %59 : vector<8x384xf32>
    %62 = arith.divf %60, %61 : vector<8x384xf32>
    %63 = vector.extract_strided_slice %62 {offsets = [0, 0], sizes = [8, 128], strides = [1, 1]} : vector<8x384xf32> to vector<8x128xf32>
    %64 = vector.extract_strided_slice %62 {offsets = [0, 128], sizes = [8, 128], strides = [1, 1]} : vector<8x384xf32> to vector<8x128xf32>
    %65 = vector.extract_strided_slice %62 {offsets = [0, 256], sizes = [8, 128], strides = [1, 1]} : vector<8x384xf32> to vector<8x128xf32>
    %66 = vector.extract_strided_slice %56 {offsets = [0, 384], sizes = [8, 128], strides = [1, 1]} : vector<8x512xf32> to vector<8x128xf32>
    %67 = math.tanh %66 : vector<8x128xf32>
    %68 = arith.mulf %64, %1 : vector<8x128xf32>
    %69 = arith.mulf %63, %67 : vector<8x128xf32>
    %70 = arith.addf %68, %69 : vector<8x128xf32>
    %71 = math.tanh %70 : vector<8x128xf32>
    %72 = arith.mulf %65, %71 : vector<8x128xf32>
    %73 = arith.truncf %72 : vector<8x128xf32> to vector<8x128xbf16>
    %c0_29 = arith.constant 0 : index
    %74 = arith.index_cast %c1_i32 : i32 to index
    %75 = memref.load %arg1[%c0_29, %74] : memref<8x8xi32, #tpu.memory_space<smem>>
    %76 = arith.index_cast %75 : i32 to index
    %c0_30 = arith.constant 0 : index
    %77 = vector.load %arg2[%76, %c0_30] : memref<64x128xf32, #tpu.memory_space<vmem>>, vector<1x128xf32>
    %c1_31 = arith.constant 1 : index
    %78 = arith.index_cast %c1_i32 : i32 to index
    %79 = memref.load %arg1[%c1_31, %78] : memref<8x8xi32, #tpu.memory_space<smem>>
    %80 = arith.index_cast %79 : i32 to index
    %c0_32 = arith.constant 0 : index
    %81 = vector.load %arg2[%80, %c0_32] : memref<64x128xf32, #tpu.memory_space<vmem>>, vector<1x128xf32>
    %c2_33 = arith.constant 2 : index
    %82 = arith.index_cast %c1_i32 : i32 to index
    %83 = memref.load %arg1[%c2_33, %82] : memref<8x8xi32, #tpu.memory_space<smem>>
    %84 = arith.index_cast %83 : i32 to index
    %c0_34 = arith.constant 0 : index
    %85 = vector.load %arg2[%84, %c0_34] : memref<64x128xf32, #tpu.memory_space<vmem>>, vector<1x128xf32>
    %c3_35 = arith.constant 3 : index
    %86 = arith.index_cast %c1_i32 : i32 to index
    %87 = memref.load %arg1[%c3_35, %86] : memref<8x8xi32, #tpu.memory_space<smem>>
    %88 = arith.index_cast %87 : i32 to index
    %c0_36 = arith.constant 0 : index
    %89 = vector.load %arg2[%88, %c0_36] : memref<64x128xf32, #tpu.memory_space<vmem>>, vector<1x128xf32>
    %c4_37 = arith.constant 4 : index
    %90 = arith.index_cast %c1_i32 : i32 to index
    %91 = memref.load %arg1[%c4_37, %90] : memref<8x8xi32, #tpu.memory_space<smem>>
    %92 = arith.index_cast %91 : i32 to index
    %c0_38 = arith.constant 0 : index
    %93 = vector.load %arg2[%92, %c0_38] : memref<64x128xf32, #tpu.memory_space<vmem>>, vector<1x128xf32>
    %c5_39 = arith.constant 5 : index
    %94 = arith.index_cast %c1_i32 : i32 to index
    %95 = memref.load %arg1[%c5_39, %94] : memref<8x8xi32, #tpu.memory_space<smem>>
    %96 = arith.index_cast %95 : i32 to index
    %c0_40 = arith.constant 0 : index
    %97 = vector.load %arg2[%96, %c0_40] : memref<64x128xf32, #tpu.memory_space<vmem>>, vector<1x128xf32>
    %c6_41 = arith.constant 6 : index
    %98 = arith.index_cast %c1_i32 : i32 to index
    %99 = memref.load %arg1[%c6_41, %98] : memref<8x8xi32, #tpu.memory_space<smem>>
    %100 = arith.index_cast %99 : i32 to index
    %c0_42 = arith.constant 0 : index
    %101 = vector.load %arg2[%100, %c0_42] : memref<64x128xf32, #tpu.memory_space<vmem>>, vector<1x128xf32>
    %c7_43 = arith.constant 7 : index
    %102 = arith.index_cast %c1_i32 : i32 to index
    %103 = memref.load %arg1[%c7_43, %102] : memref<8x8xi32, #tpu.memory_space<smem>>
    %104 = arith.index_cast %103 : i32 to index
    %c0_44 = arith.constant 0 : index
    %105 = vector.load %arg2[%104, %c0_44] : memref<64x128xf32, #tpu.memory_space<vmem>>, vector<1x128xf32>
    %106 = tpu.concatenate %77, %81, %85, %89, %93, %97, %101, %105 in 0 : vector<1x128xf32>, vector<1x128xf32>, vector<1x128xf32>, vector<1x128xf32>, vector<1x128xf32>, vector<1x128xf32>, vector<1x128xf32>, vector<1x128xf32> -> vector<8x128xf32>
    %107 = arith.truncf %106 : vector<8x128xf32> to vector<8x128xbf16>
    %108 = tpu.concatenate %107, %50 in 1 : vector<8x128xbf16>, vector<8x128xbf16> -> vector<8x256xbf16>
    %c0_45 = arith.constant 0 : index
    %c0_46 = arith.constant 0 : index
    %109 = vector.load %arg3[%c0_45, %c0_46] : memref<256x512xbf16, #tpu.memory_space<vmem>>, vector<256x512xbf16>
    %cst_47 = arith.constant dense<0.000000e+00> : vector<8x512xf32>
    %110 = tpu.matmul %108, %109, %cst_47 {dimension_numbers = #tpu.dot_dimension_numbers<[1], [0], [0], [1], [0, 0, 1, 1], [], []>} : vector<8x256xbf16>, vector<256x512xbf16>, vector<8x512xf32> -> vector<8x512xf32>
    %c0_48 = arith.constant 0 : index
    %c0_49 = arith.constant 0 : index
    %111 = vector.load %arg4[%c0_48, %c0_49] : memref<1x512xf32, #tpu.memory_space<vmem>>, vector<1x512xf32>
    %112 = vector.broadcast %111 : vector<1x512xf32> to vector<8x512xf32>
    %113 = arith.addf %110, %112 : vector<8x512xf32>
    %114 = vector.extract_strided_slice %113 {offsets = [0, 0], sizes = [8, 384], strides = [1, 1]} : vector<8x512xf32> to vector<8x384xf32>
    %115 = arith.negf %114 : vector<8x384xf32>
    %116 = math.exp %115 : vector<8x384xf32>
    %cst_50 = arith.constant 1.000000e+00 : f32
    %117 = vector.broadcast %cst_50 : f32 to vector<8x384xf32>
    %118 = arith.addf %117, %116 : vector<8x384xf32>
    %119 = arith.divf %117, %118 : vector<8x384xf32>
    %120 = vector.extract_strided_slice %119 {offsets = [0, 0], sizes = [8, 128], strides = [1, 1]} : vector<8x384xf32> to vector<8x128xf32>
    %121 = vector.extract_strided_slice %119 {offsets = [0, 128], sizes = [8, 128], strides = [1, 1]} : vector<8x384xf32> to vector<8x128xf32>
    %122 = vector.extract_strided_slice %119 {offsets = [0, 256], sizes = [8, 128], strides = [1, 1]} : vector<8x384xf32> to vector<8x128xf32>
    %123 = vector.extract_strided_slice %113 {offsets = [0, 384], sizes = [8, 128], strides = [1, 1]} : vector<8x512xf32> to vector<8x128xf32>
    %124 = math.tanh %123 : vector<8x128xf32>
    %125 = arith.mulf %121, %47 : vector<8x128xf32>
    %126 = arith.mulf %120, %124 : vector<8x128xf32>
    %127 = arith.addf %125, %126 : vector<8x128xf32>
    %128 = math.tanh %127 : vector<8x128xf32>
    %129 = arith.mulf %122, %128 : vector<8x128xf32>
    %130 = arith.truncf %129 : vector<8x128xf32> to vector<8x128xbf16>
    %c2_i32 = arith.constant 2 : i32
    %131 = tpu.concatenate %130, %73 in 1 : vector<8x128xbf16>, vector<8x128xbf16> -> vector<8x256xbf16>
    %c0_51 = arith.constant 0 : index
    %c0_52 = arith.constant 0 : index
    %132 = vector.load %arg5[%c0_51, %c0_52] : memref<256x512xbf16, #tpu.memory_space<vmem>>, vector<256x512xbf16>
    %cst_53 = arith.constant dense<0.000000e+00> : vector<8x512xf32>
    %133 = tpu.matmul %131, %132, %cst_53 {dimension_numbers = #tpu.dot_dimension_numbers<[1], [0], [0], [1], [0, 0, 1, 1], [], []>} : vector<8x256xbf16>, vector<256x512xbf16>, vector<8x512xf32> -> vector<8x512xf32>
    %c0_54 = arith.constant 0 : index
    %c0_55 = arith.constant 0 : index
    %134 = vector.load %arg6[%c0_54, %c0_55] : memref<1x512xf32, #tpu.memory_space<vmem>>, vector<1x512xf32>
    %135 = vector.broadcast %134 : vector<1x512xf32> to vector<8x512xf32>
    %136 = arith.addf %133, %135 : vector<8x512xf32>
    %137 = vector.extract_strided_slice %136 {offsets = [0, 0], sizes = [8, 384], strides = [1, 1]} : vector<8x512xf32> to vector<8x384xf32>
    %138 = arith.negf %137 : vector<8x384xf32>
    %139 = math.exp %138 : vector<8x384xf32>
    %cst_56 = arith.constant 1.000000e+00 : f32
    %140 = vector.broadcast %cst_56 : f32 to vector<8x384xf32>
    %141 = arith.addf %140, %139 : vector<8x384xf32>
    %142 = arith.divf %140, %141 : vector<8x384xf32>
    %143 = vector.extract_strided_slice %142 {offsets = [0, 0], sizes = [8, 128], strides = [1, 1]} : vector<8x384xf32> to vector<8x128xf32>
    %144 = vector.extract_strided_slice %142 {offsets = [0, 128], sizes = [8, 128], strides = [1, 1]} : vector<8x384xf32> to vector<8x128xf32>
    %145 = vector.extract_strided_slice %142 {offsets = [0, 256], sizes = [8, 128], strides = [1, 1]} : vector<8x384xf32> to vector<8x128xf32>
    %146 = vector.extract_strided_slice %136 {offsets = [0, 384], sizes = [8, 128], strides = [1, 1]} : vector<8x512xf32> to vector<8x128xf32>
    %147 = math.tanh %146 : vector<8x128xf32>
    %148 = arith.mulf %144, %70 : vector<8x128xf32>
    %149 = arith.mulf %143, %147 : vector<8x128xf32>
    %150 = arith.addf %148, %149 : vector<8x128xf32>
    %151 = math.tanh %150 : vector<8x128xf32>
    %152 = arith.mulf %145, %151 : vector<8x128xf32>
    %153 = arith.truncf %152 : vector<8x128xf32> to vector<8x128xbf16>
    %c0_57 = arith.constant 0 : index
    %154 = arith.index_cast %c2_i32 : i32 to index
    %155 = memref.load %arg1[%c0_57, %154] : memref<8x8xi32, #tpu.memory_space<smem>>
    %156 = arith.index_cast %155 : i32 to index
    %c0_58 = arith.constant 0 : index
    %157 = vector.load %arg2[%156, %c0_58] : memref<64x128xf32, #tpu.memory_space<vmem>>, vector<1x128xf32>
    %c1_59 = arith.constant 1 : index
    %158 = arith.index_cast %c2_i32 : i32 to index
    %159 = memref.load %arg1[%c1_59, %158] : memref<8x8xi32, #tpu.memory_space<smem>>
    %160 = arith.index_cast %159 : i32 to index
    %c0_60 = arith.constant 0 : index
    %161 = vector.load %arg2[%160, %c0_60] : memref<64x128xf32, #tpu.memory_space<vmem>>, vector<1x128xf32>
    %c2_61 = arith.constant 2 : index
    %162 = arith.index_cast %c2_i32 : i32 to index
    %163 = memref.load %arg1[%c2_61, %162] : memref<8x8xi32, #tpu.memory_space<smem>>
    %164 = arith.index_cast %163 : i32 to index
    %c0_62 = arith.constant 0 : index
    %165 = vector.load %arg2[%164, %c0_62] : memref<64x128xf32, #tpu.memory_space<vmem>>, vector<1x128xf32>
    %c3_63 = arith.constant 3 : index
    %166 = arith.index_cast %c2_i32 : i32 to index
    %167 = memref.load %arg1[%c3_63, %166] : memref<8x8xi32, #tpu.memory_space<smem>>
    %168 = arith.index_cast %167 : i32 to index
    %c0_64 = arith.constant 0 : index
    %169 = vector.load %arg2[%168, %c0_64] : memref<64x128xf32, #tpu.memory_space<vmem>>, vector<1x128xf32>
    %c4_65 = arith.constant 4 : index
    %170 = arith.index_cast %c2_i32 : i32 to index
    %171 = memref.load %arg1[%c4_65, %170] : memref<8x8xi32, #tpu.memory_space<smem>>
    %172 = arith.index_cast %171 : i32 to index
    %c0_66 = arith.constant 0 : index
    %173 = vector.load %arg2[%172, %c0_66] : memref<64x128xf32, #tpu.memory_space<vmem>>, vector<1x128xf32>
    %c5_67 = arith.constant 5 : index
    %174 = arith.index_cast %c2_i32 : i32 to index
    %175 = memref.load %arg1[%c5_67, %174] : memref<8x8xi32, #tpu.memory_space<smem>>
    %176 = arith.index_cast %175 : i32 to index
    %c0_68 = arith.constant 0 : index
    %177 = vector.load %arg2[%176, %c0_68] : memref<64x128xf32, #tpu.memory_space<vmem>>, vector<1x128xf32>
    %c6_69 = arith.constant 6 : index
    %178 = arith.index_cast %c2_i32 : i32 to index
    %179 = memref.load %arg1[%c6_69, %178] : memref<8x8xi32, #tpu.memory_space<smem>>
    %180 = arith.index_cast %179 : i32 to index
    %c0_70 = arith.constant 0 : index
    %181 = vector.load %arg2[%180, %c0_70] : memref<64x128xf32, #tpu.memory_space<vmem>>, vector<1x128xf32>
    %c7_71 = arith.constant 7 : index
    %182 = arith.index_cast %c2_i32 : i32 to index
    %183 = memref.load %arg1[%c7_71, %182] : memref<8x8xi32, #tpu.memory_space<smem>>
    %184 = arith.index_cast %183 : i32 to index
    %c0_72 = arith.constant 0 : index
    %185 = vector.load %arg2[%184, %c0_72] : memref<64x128xf32, #tpu.memory_space<vmem>>, vector<1x128xf32>
    %186 = tpu.concatenate %157, %161, %165, %169, %173, %177, %181, %185 in 0 : vector<1x128xf32>, vector<1x128xf32>, vector<1x128xf32>, vector<1x128xf32>, vector<1x128xf32>, vector<1x128xf32>, vector<1x128xf32>, vector<1x128xf32> -> vector<8x128xf32>
    %187 = arith.truncf %186 : vector<8x128xf32> to vector<8x128xbf16>
    %188 = tpu.concatenate %187, %130 in 1 : vector<8x128xbf16>, vector<8x128xbf16> -> vector<8x256xbf16>
    %c0_73 = arith.constant 0 : index
    %c0_74 = arith.constant 0 : index
    %189 = vector.load %arg3[%c0_73, %c0_74] : memref<256x512xbf16, #tpu.memory_space<vmem>>, vector<256x512xbf16>
    %cst_75 = arith.constant dense<0.000000e+00> : vector<8x512xf32>
    %190 = tpu.matmul %188, %189, %cst_75 {dimension_numbers = #tpu.dot_dimension_numbers<[1], [0], [0], [1], [0, 0, 1, 1], [], []>} : vector<8x256xbf16>, vector<256x512xbf16>, vector<8x512xf32> -> vector<8x512xf32>
    %c0_76 = arith.constant 0 : index
    %c0_77 = arith.constant 0 : index
    %191 = vector.load %arg4[%c0_76, %c0_77] : memref<1x512xf32, #tpu.memory_space<vmem>>, vector<1x512xf32>
    %192 = vector.broadcast %191 : vector<1x512xf32> to vector<8x512xf32>
    %193 = arith.addf %190, %192 : vector<8x512xf32>
    %194 = vector.extract_strided_slice %193 {offsets = [0, 0], sizes = [8, 384], strides = [1, 1]} : vector<8x512xf32> to vector<8x384xf32>
    %195 = arith.negf %194 : vector<8x384xf32>
    %196 = math.exp %195 : vector<8x384xf32>
    %cst_78 = arith.constant 1.000000e+00 : f32
    %197 = vector.broadcast %cst_78 : f32 to vector<8x384xf32>
    %198 = arith.addf %197, %196 : vector<8x384xf32>
    %199 = arith.divf %197, %198 : vector<8x384xf32>
    %200 = vector.extract_strided_slice %199 {offsets = [0, 0], sizes = [8, 128], strides = [1, 1]} : vector<8x384xf32> to vector<8x128xf32>
    %201 = vector.extract_strided_slice %199 {offsets = [0, 128], sizes = [8, 128], strides = [1, 1]} : vector<8x384xf32> to vector<8x128xf32>
    %202 = vector.extract_strided_slice %199 {offsets = [0, 256], sizes = [8, 128], strides = [1, 1]} : vector<8x384xf32> to vector<8x128xf32>
    %203 = vector.extract_strided_slice %193 {offsets = [0, 384], sizes = [8, 128], strides = [1, 1]} : vector<8x512xf32> to vector<8x128xf32>
    %204 = math.tanh %203 : vector<8x128xf32>
    %205 = arith.mulf %201, %127 : vector<8x128xf32>
    %206 = arith.mulf %200, %204 : vector<8x128xf32>
    %207 = arith.addf %205, %206 : vector<8x128xf32>
    %208 = math.tanh %207 : vector<8x128xf32>
    %209 = arith.mulf %202, %208 : vector<8x128xf32>
    %210 = arith.truncf %209 : vector<8x128xf32> to vector<8x128xbf16>
    %c3_i32 = arith.constant 3 : i32
    %211 = tpu.concatenate %210, %153 in 1 : vector<8x128xbf16>, vector<8x128xbf16> -> vector<8x256xbf16>
    %c0_79 = arith.constant 0 : index
    %c0_80 = arith.constant 0 : index
    %212 = vector.load %arg5[%c0_79, %c0_80] : memref<256x512xbf16, #tpu.memory_space<vmem>>, vector<256x512xbf16>
    %cst_81 = arith.constant dense<0.000000e+00> : vector<8x512xf32>
    %213 = tpu.matmul %211, %212, %cst_81 {dimension_numbers = #tpu.dot_dimension_numbers<[1], [0], [0], [1], [0, 0, 1, 1], [], []>} : vector<8x256xbf16>, vector<256x512xbf16>, vector<8x512xf32> -> vector<8x512xf32>
    %c0_82 = arith.constant 0 : index
    %c0_83 = arith.constant 0 : index
    %214 = vector.load %arg6[%c0_82, %c0_83] : memref<1x512xf32, #tpu.memory_space<vmem>>, vector<1x512xf32>
    %215 = vector.broadcast %214 : vector<1x512xf32> to vector<8x512xf32>
    %216 = arith.addf %213, %215 : vector<8x512xf32>
    %217 = vector.extract_strided_slice %216 {offsets = [0, 0], sizes = [8, 384], strides = [1, 1]} : vector<8x512xf32> to vector<8x384xf32>
    %218 = arith.negf %217 : vector<8x384xf32>
    %219 = math.exp %218 : vector<8x384xf32>
    %cst_84 = arith.constant 1.000000e+00 : f32
    %220 = vector.broadcast %cst_84 : f32 to vector<8x384xf32>
    %221 = arith.addf %220, %219 : vector<8x384xf32>
    %222 = arith.divf %220, %221 : vector<8x384xf32>
    %223 = vector.extract_strided_slice %222 {offsets = [0, 0], sizes = [8, 128], strides = [1, 1]} : vector<8x384xf32> to vector<8x128xf32>
    %224 = vector.extract_strided_slice %222 {offsets = [0, 128], sizes = [8, 128], strides = [1, 1]} : vector<8x384xf32> to vector<8x128xf32>
    %225 = vector.extract_strided_slice %222 {offsets = [0, 256], sizes = [8, 128], strides = [1, 1]} : vector<8x384xf32> to vector<8x128xf32>
    %226 = vector.extract_strided_slice %216 {offsets = [0, 384], sizes = [8, 128], strides = [1, 1]} : vector<8x512xf32> to vector<8x128xf32>
    %227 = math.tanh %226 : vector<8x128xf32>
    %228 = arith.mulf %224, %150 : vector<8x128xf32>
    %229 = arith.mulf %223, %227 : vector<8x128xf32>
    %230 = arith.addf %228, %229 : vector<8x128xf32>
    %231 = math.tanh %230 : vector<8x128xf32>
    %232 = arith.mulf %225, %231 : vector<8x128xf32>
    %233 = arith.truncf %232 : vector<8x128xf32> to vector<8x128xbf16>
    %c0_85 = arith.constant 0 : index
    %234 = arith.index_cast %c3_i32 : i32 to index
    %235 = memref.load %arg1[%c0_85, %234] : memref<8x8xi32, #tpu.memory_space<smem>>
    %236 = arith.index_cast %235 : i32 to index
    %c0_86 = arith.constant 0 : index
    %237 = vector.load %arg2[%236, %c0_86] : memref<64x128xf32, #tpu.memory_space<vmem>>, vector<1x128xf32>
    %c1_87 = arith.constant 1 : index
    %238 = arith.index_cast %c3_i32 : i32 to index
    %239 = memref.load %arg1[%c1_87, %238] : memref<8x8xi32, #tpu.memory_space<smem>>
    %240 = arith.index_cast %239 : i32 to index
    %c0_88 = arith.constant 0 : index
    %241 = vector.load %arg2[%240, %c0_88] : memref<64x128xf32, #tpu.memory_space<vmem>>, vector<1x128xf32>
    %c2_89 = arith.constant 2 : index
    %242 = arith.index_cast %c3_i32 : i32 to index
    %243 = memref.load %arg1[%c2_89, %242] : memref<8x8xi32, #tpu.memory_space<smem>>
    %244 = arith.index_cast %243 : i32 to index
    %c0_90 = arith.constant 0 : index
    %245 = vector.load %arg2[%244, %c0_90] : memref<64x128xf32, #tpu.memory_space<vmem>>, vector<1x128xf32>
    %c3_91 = arith.constant 3 : index
    %246 = arith.index_cast %c3_i32 : i32 to index
    %247 = memref.load %arg1[%c3_91, %246] : memref<8x8xi32, #tpu.memory_space<smem>>
    %248 = arith.index_cast %247 : i32 to index
    %c0_92 = arith.constant 0 : index
    %249 = vector.load %arg2[%248, %c0_92] : memref<64x128xf32, #tpu.memory_space<vmem>>, vector<1x128xf32>
    %c4_93 = arith.constant 4 : index
    %250 = arith.index_cast %c3_i32 : i32 to index
    %251 = memref.load %arg1[%c4_93, %250] : memref<8x8xi32, #tpu.memory_space<smem>>
    %252 = arith.index_cast %251 : i32 to index
    %c0_94 = arith.constant 0 : index
    %253 = vector.load %arg2[%252, %c0_94] : memref<64x128xf32, #tpu.memory_space<vmem>>, vector<1x128xf32>
    %c5_95 = arith.constant 5 : index
    %254 = arith.index_cast %c3_i32 : i32 to index
    %255 = memref.load %arg1[%c5_95, %254] : memref<8x8xi32, #tpu.memory_space<smem>>
    %256 = arith.index_cast %255 : i32 to index
    %c0_96 = arith.constant 0 : index
    %257 = vector.load %arg2[%256, %c0_96] : memref<64x128xf32, #tpu.memory_space<vmem>>, vector<1x128xf32>
    %c6_97 = arith.constant 6 : index
    %258 = arith.index_cast %c3_i32 : i32 to index
    %259 = memref.load %arg1[%c6_97, %258] : memref<8x8xi32, #tpu.memory_space<smem>>
    %260 = arith.index_cast %259 : i32 to index
    %c0_98 = arith.constant 0 : index
    %261 = vector.load %arg2[%260, %c0_98] : memref<64x128xf32, #tpu.memory_space<vmem>>, vector<1x128xf32>
    %c7_99 = arith.constant 7 : index
    %262 = arith.index_cast %c3_i32 : i32 to index
    %263 = memref.load %arg1[%c7_99, %262] : memref<8x8xi32, #tpu.memory_space<smem>>
    %264 = arith.index_cast %263 : i32 to index
    %c0_100 = arith.constant 0 : index
    %265 = vector.load %arg2[%264, %c0_100] : memref<64x128xf32, #tpu.memory_space<vmem>>, vector<1x128xf32>
    %266 = tpu.concatenate %237, %241, %245, %249, %253, %257, %261, %265 in 0 : vector<1x128xf32>, vector<1x128xf32>, vector<1x128xf32>, vector<1x128xf32>, vector<1x128xf32>, vector<1x128xf32>, vector<1x128xf32>, vector<1x128xf32> -> vector<8x128xf32>
    %267 = arith.truncf %266 : vector<8x128xf32> to vector<8x128xbf16>
    %268 = tpu.concatenate %267, %210 in 1 : vector<8x128xbf16>, vector<8x128xbf16> -> vector<8x256xbf16>
    %c0_101 = arith.constant 0 : index
    %c0_102 = arith.constant 0 : index
    %269 = vector.load %arg3[%c0_101, %c0_102] : memref<256x512xbf16, #tpu.memory_space<vmem>>, vector<256x512xbf16>
    %cst_103 = arith.constant dense<0.000000e+00> : vector<8x512xf32>
    %270 = tpu.matmul %268, %269, %cst_103 {dimension_numbers = #tpu.dot_dimension_numbers<[1], [0], [0], [1], [0, 0, 1, 1], [], []>} : vector<8x256xbf16>, vector<256x512xbf16>, vector<8x512xf32> -> vector<8x512xf32>
    %c0_104 = arith.constant 0 : index
    %c0_105 = arith.constant 0 : index
    %271 = vector.load %arg4[%c0_104, %c0_105] : memref<1x512xf32, #tpu.memory_space<vmem>>, vector<1x512xf32>
    %272 = vector.broadcast %271 : vector<1x512xf32> to vector<8x512xf32>
    %273 = arith.addf %270, %272 : vector<8x512xf32>
    %274 = vector.extract_strided_slice %273 {offsets = [0, 0], sizes = [8, 384], strides = [1, 1]} : vector<8x512xf32> to vector<8x384xf32>
    %275 = arith.negf %274 : vector<8x384xf32>
    %276 = math.exp %275 : vector<8x384xf32>
    %cst_106 = arith.constant 1.000000e+00 : f32
    %277 = vector.broadcast %cst_106 : f32 to vector<8x384xf32>
    %278 = arith.addf %277, %276 : vector<8x384xf32>
    %279 = arith.divf %277, %278 : vector<8x384xf32>
    %280 = vector.extract_strided_slice %279 {offsets = [0, 0], sizes = [8, 128], strides = [1, 1]} : vector<8x384xf32> to vector<8x128xf32>
    %281 = vector.extract_strided_slice %279 {offsets = [0, 128], sizes = [8, 128], strides = [1, 1]} : vector<8x384xf32> to vector<8x128xf32>
    %282 = vector.extract_strided_slice %279 {offsets = [0, 256], sizes = [8, 128], strides = [1, 1]} : vector<8x384xf32> to vector<8x128xf32>
    %283 = vector.extract_strided_slice %273 {offsets = [0, 384], sizes = [8, 128], strides = [1, 1]} : vector<8x512xf32> to vector<8x128xf32>
    %284 = math.tanh %283 : vector<8x128xf32>
    %285 = arith.mulf %281, %207 : vector<8x128xf32>
    %286 = arith.mulf %280, %284 : vector<8x128xf32>
    %287 = arith.addf %285, %286 : vector<8x128xf32>
    %288 = math.tanh %287 : vector<8x128xf32>
    %289 = arith.mulf %282, %288 : vector<8x128xf32>
    %290 = arith.truncf %289 : vector<8x128xf32> to vector<8x128xbf16>
    %c4_i32 = arith.constant 4 : i32
    %291 = tpu.concatenate %290, %233 in 1 : vector<8x128xbf16>, vector<8x128xbf16> -> vector<8x256xbf16>
    %c0_107 = arith.constant 0 : index
    %c0_108 = arith.constant 0 : index
    %292 = vector.load %arg5[%c0_107, %c0_108] : memref<256x512xbf16, #tpu.memory_space<vmem>>, vector<256x512xbf16>
    %cst_109 = arith.constant dense<0.000000e+00> : vector<8x512xf32>
    %293 = tpu.matmul %291, %292, %cst_109 {dimension_numbers = #tpu.dot_dimension_numbers<[1], [0], [0], [1], [0, 0, 1, 1], [], []>} : vector<8x256xbf16>, vector<256x512xbf16>, vector<8x512xf32> -> vector<8x512xf32>
    %c0_110 = arith.constant 0 : index
    %c0_111 = arith.constant 0 : index
    %294 = vector.load %arg6[%c0_110, %c0_111] : memref<1x512xf32, #tpu.memory_space<vmem>>, vector<1x512xf32>
    %295 = vector.broadcast %294 : vector<1x512xf32> to vector<8x512xf32>
    %296 = arith.addf %293, %295 : vector<8x512xf32>
    %297 = vector.extract_strided_slice %296 {offsets = [0, 0], sizes = [8, 384], strides = [1, 1]} : vector<8x512xf32> to vector<8x384xf32>
    %298 = arith.negf %297 : vector<8x384xf32>
    %299 = math.exp %298 : vector<8x384xf32>
    %cst_112 = arith.constant 1.000000e+00 : f32
    %300 = vector.broadcast %cst_112 : f32 to vector<8x384xf32>
    %301 = arith.addf %300, %299 : vector<8x384xf32>
    %302 = arith.divf %300, %301 : vector<8x384xf32>
    %303 = vector.extract_strided_slice %302 {offsets = [0, 0], sizes = [8, 128], strides = [1, 1]} : vector<8x384xf32> to vector<8x128xf32>
    %304 = vector.extract_strided_slice %302 {offsets = [0, 128], sizes = [8, 128], strides = [1, 1]} : vector<8x384xf32> to vector<8x128xf32>
    %305 = vector.extract_strided_slice %302 {offsets = [0, 256], sizes = [8, 128], strides = [1, 1]} : vector<8x384xf32> to vector<8x128xf32>
    %306 = vector.extract_strided_slice %296 {offsets = [0, 384], sizes = [8, 128], strides = [1, 1]} : vector<8x512xf32> to vector<8x128xf32>
    %307 = math.tanh %306 : vector<8x128xf32>
    %308 = arith.mulf %304, %230 : vector<8x128xf32>
    %309 = arith.mulf %303, %307 : vector<8x128xf32>
    %310 = arith.addf %308, %309 : vector<8x128xf32>
    %311 = math.tanh %310 : vector<8x128xf32>
    %312 = arith.mulf %305, %311 : vector<8x128xf32>
    %313 = arith.truncf %312 : vector<8x128xf32> to vector<8x128xbf16>
    %c0_113 = arith.constant 0 : index
    %314 = arith.index_cast %c4_i32 : i32 to index
    %315 = memref.load %arg1[%c0_113, %314] : memref<8x8xi32, #tpu.memory_space<smem>>
    %316 = arith.index_cast %315 : i32 to index
    %c0_114 = arith.constant 0 : index
    %317 = vector.load %arg2[%316, %c0_114] : memref<64x128xf32, #tpu.memory_space<vmem>>, vector<1x128xf32>
    %c1_115 = arith.constant 1 : index
    %318 = arith.index_cast %c4_i32 : i32 to index
    %319 = memref.load %arg1[%c1_115, %318] : memref<8x8xi32, #tpu.memory_space<smem>>
    %320 = arith.index_cast %319 : i32 to index
    %c0_116 = arith.constant 0 : index
    %321 = vector.load %arg2[%320, %c0_116] : memref<64x128xf32, #tpu.memory_space<vmem>>, vector<1x128xf32>
    %c2_117 = arith.constant 2 : index
    %322 = arith.index_cast %c4_i32 : i32 to index
    %323 = memref.load %arg1[%c2_117, %322] : memref<8x8xi32, #tpu.memory_space<smem>>
    %324 = arith.index_cast %323 : i32 to index
    %c0_118 = arith.constant 0 : index
    %325 = vector.load %arg2[%324, %c0_118] : memref<64x128xf32, #tpu.memory_space<vmem>>, vector<1x128xf32>
    %c3_119 = arith.constant 3 : index
    %326 = arith.index_cast %c4_i32 : i32 to index
    %327 = memref.load %arg1[%c3_119, %326] : memref<8x8xi32, #tpu.memory_space<smem>>
    %328 = arith.index_cast %327 : i32 to index
    %c0_120 = arith.constant 0 : index
    %329 = vector.load %arg2[%328, %c0_120] : memref<64x128xf32, #tpu.memory_space<vmem>>, vector<1x128xf32>
    %c4_121 = arith.constant 4 : index
    %330 = arith.index_cast %c4_i32 : i32 to index
    %331 = memref.load %arg1[%c4_121, %330] : memref<8x8xi32, #tpu.memory_space<smem>>
    %332 = arith.index_cast %331 : i32 to index
    %c0_122 = arith.constant 0 : index
    %333 = vector.load %arg2[%332, %c0_122] : memref<64x128xf32, #tpu.memory_space<vmem>>, vector<1x128xf32>
    %c5_123 = arith.constant 5 : index
    %334 = arith.index_cast %c4_i32 : i32 to index
    %335 = memref.load %arg1[%c5_123, %334] : memref<8x8xi32, #tpu.memory_space<smem>>
    %336 = arith.index_cast %335 : i32 to index
    %c0_124 = arith.constant 0 : index
    %337 = vector.load %arg2[%336, %c0_124] : memref<64x128xf32, #tpu.memory_space<vmem>>, vector<1x128xf32>
    %c6_125 = arith.constant 6 : index
    %338 = arith.index_cast %c4_i32 : i32 to index
    %339 = memref.load %arg1[%c6_125, %338] : memref<8x8xi32, #tpu.memory_space<smem>>
    %340 = arith.index_cast %339 : i32 to index
    %c0_126 = arith.constant 0 : index
    %341 = vector.load %arg2[%340, %c0_126] : memref<64x128xf32, #tpu.memory_space<vmem>>, vector<1x128xf32>
    %c7_127 = arith.constant 7 : index
    %342 = arith.index_cast %c4_i32 : i32 to index
    %343 = memref.load %arg1[%c7_127, %342] : memref<8x8xi32, #tpu.memory_space<smem>>
    %344 = arith.index_cast %343 : i32 to index
    %c0_128 = arith.constant 0 : index
    %345 = vector.load %arg2[%344, %c0_128] : memref<64x128xf32, #tpu.memory_space<vmem>>, vector<1x128xf32>
    %346 = tpu.concatenate %317, %321, %325, %329, %333, %337, %341, %345 in 0 : vector<1x128xf32>, vector<1x128xf32>, vector<1x128xf32>, vector<1x128xf32>, vector<1x128xf32>, vector<1x128xf32>, vector<1x128xf32>, vector<1x128xf32> -> vector<8x128xf32>
    %347 = arith.truncf %346 : vector<8x128xf32> to vector<8x128xbf16>
    %348 = tpu.concatenate %347, %290 in 1 : vector<8x128xbf16>, vector<8x128xbf16> -> vector<8x256xbf16>
    %c0_129 = arith.constant 0 : index
    %c0_130 = arith.constant 0 : index
    %349 = vector.load %arg3[%c0_129, %c0_130] : memref<256x512xbf16, #tpu.memory_space<vmem>>, vector<256x512xbf16>
    %cst_131 = arith.constant dense<0.000000e+00> : vector<8x512xf32>
    %350 = tpu.matmul %348, %349, %cst_131 {dimension_numbers = #tpu.dot_dimension_numbers<[1], [0], [0], [1], [0, 0, 1, 1], [], []>} : vector<8x256xbf16>, vector<256x512xbf16>, vector<8x512xf32> -> vector<8x512xf32>
    %c0_132 = arith.constant 0 : index
    %c0_133 = arith.constant 0 : index
    %351 = vector.load %arg4[%c0_132, %c0_133] : memref<1x512xf32, #tpu.memory_space<vmem>>, vector<1x512xf32>
    %352 = vector.broadcast %351 : vector<1x512xf32> to vector<8x512xf32>
    %353 = arith.addf %350, %352 : vector<8x512xf32>
    %354 = vector.extract_strided_slice %353 {offsets = [0, 0], sizes = [8, 384], strides = [1, 1]} : vector<8x512xf32> to vector<8x384xf32>
    %355 = arith.negf %354 : vector<8x384xf32>
    %356 = math.exp %355 : vector<8x384xf32>
    %cst_134 = arith.constant 1.000000e+00 : f32
    %357 = vector.broadcast %cst_134 : f32 to vector<8x384xf32>
    %358 = arith.addf %357, %356 : vector<8x384xf32>
    %359 = arith.divf %357, %358 : vector<8x384xf32>
    %360 = vector.extract_strided_slice %359 {offsets = [0, 0], sizes = [8, 128], strides = [1, 1]} : vector<8x384xf32> to vector<8x128xf32>
    %361 = vector.extract_strided_slice %359 {offsets = [0, 128], sizes = [8, 128], strides = [1, 1]} : vector<8x384xf32> to vector<8x128xf32>
    %362 = vector.extract_strided_slice %359 {offsets = [0, 256], sizes = [8, 128], strides = [1, 1]} : vector<8x384xf32> to vector<8x128xf32>
    %363 = vector.extract_strided_slice %353 {offsets = [0, 384], sizes = [8, 128], strides = [1, 1]} : vector<8x512xf32> to vector<8x128xf32>
    %364 = math.tanh %363 : vector<8x128xf32>
    %365 = arith.mulf %361, %287 : vector<8x128xf32>
    %366 = arith.mulf %360, %364 : vector<8x128xf32>
    %367 = arith.addf %365, %366 : vector<8x128xf32>
    %368 = math.tanh %367 : vector<8x128xf32>
    %369 = arith.mulf %362, %368 : vector<8x128xf32>
    %370 = arith.truncf %369 : vector<8x128xf32> to vector<8x128xbf16>
    %c5_i32 = arith.constant 5 : i32
    %371 = tpu.concatenate %370, %313 in 1 : vector<8x128xbf16>, vector<8x128xbf16> -> vector<8x256xbf16>
    %c0_135 = arith.constant 0 : index
    %c0_136 = arith.constant 0 : index
    %372 = vector.load %arg5[%c0_135, %c0_136] : memref<256x512xbf16, #tpu.memory_space<vmem>>, vector<256x512xbf16>
    %cst_137 = arith.constant dense<0.000000e+00> : vector<8x512xf32>
    %373 = tpu.matmul %371, %372, %cst_137 {dimension_numbers = #tpu.dot_dimension_numbers<[1], [0], [0], [1], [0, 0, 1, 1], [], []>} : vector<8x256xbf16>, vector<256x512xbf16>, vector<8x512xf32> -> vector<8x512xf32>
    %c0_138 = arith.constant 0 : index
    %c0_139 = arith.constant 0 : index
    %374 = vector.load %arg6[%c0_138, %c0_139] : memref<1x512xf32, #tpu.memory_space<vmem>>, vector<1x512xf32>
    %375 = vector.broadcast %374 : vector<1x512xf32> to vector<8x512xf32>
    %376 = arith.addf %373, %375 : vector<8x512xf32>
    %377 = vector.extract_strided_slice %376 {offsets = [0, 0], sizes = [8, 384], strides = [1, 1]} : vector<8x512xf32> to vector<8x384xf32>
    %378 = arith.negf %377 : vector<8x384xf32>
    %379 = math.exp %378 : vector<8x384xf32>
    %cst_140 = arith.constant 1.000000e+00 : f32
    %380 = vector.broadcast %cst_140 : f32 to vector<8x384xf32>
    %381 = arith.addf %380, %379 : vector<8x384xf32>
    %382 = arith.divf %380, %381 : vector<8x384xf32>
    %383 = vector.extract_strided_slice %382 {offsets = [0, 0], sizes = [8, 128], strides = [1, 1]} : vector<8x384xf32> to vector<8x128xf32>
    %384 = vector.extract_strided_slice %382 {offsets = [0, 128], sizes = [8, 128], strides = [1, 1]} : vector<8x384xf32> to vector<8x128xf32>
    %385 = vector.extract_strided_slice %382 {offsets = [0, 256], sizes = [8, 128], strides = [1, 1]} : vector<8x384xf32> to vector<8x128xf32>
    %386 = vector.extract_strided_slice %376 {offsets = [0, 384], sizes = [8, 128], strides = [1, 1]} : vector<8x512xf32> to vector<8x128xf32>
    %387 = math.tanh %386 : vector<8x128xf32>
    %388 = arith.mulf %384, %310 : vector<8x128xf32>
    %389 = arith.mulf %383, %387 : vector<8x128xf32>
    %390 = arith.addf %388, %389 : vector<8x128xf32>
    %391 = math.tanh %390 : vector<8x128xf32>
    %392 = arith.mulf %385, %391 : vector<8x128xf32>
    %393 = arith.truncf %392 : vector<8x128xf32> to vector<8x128xbf16>
    %c0_141 = arith.constant 0 : index
    %394 = arith.index_cast %c5_i32 : i32 to index
    %395 = memref.load %arg1[%c0_141, %394] : memref<8x8xi32, #tpu.memory_space<smem>>
    %396 = arith.index_cast %395 : i32 to index
    %c0_142 = arith.constant 0 : index
    %397 = vector.load %arg2[%396, %c0_142] : memref<64x128xf32, #tpu.memory_space<vmem>>, vector<1x128xf32>
    %c1_143 = arith.constant 1 : index
    %398 = arith.index_cast %c5_i32 : i32 to index
    %399 = memref.load %arg1[%c1_143, %398] : memref<8x8xi32, #tpu.memory_space<smem>>
    %400 = arith.index_cast %399 : i32 to index
    %c0_144 = arith.constant 0 : index
    %401 = vector.load %arg2[%400, %c0_144] : memref<64x128xf32, #tpu.memory_space<vmem>>, vector<1x128xf32>
    %c2_145 = arith.constant 2 : index
    %402 = arith.index_cast %c5_i32 : i32 to index
    %403 = memref.load %arg1[%c2_145, %402] : memref<8x8xi32, #tpu.memory_space<smem>>
    %404 = arith.index_cast %403 : i32 to index
    %c0_146 = arith.constant 0 : index
    %405 = vector.load %arg2[%404, %c0_146] : memref<64x128xf32, #tpu.memory_space<vmem>>, vector<1x128xf32>
    %c3_147 = arith.constant 3 : index
    %406 = arith.index_cast %c5_i32 : i32 to index
    %407 = memref.load %arg1[%c3_147, %406] : memref<8x8xi32, #tpu.memory_space<smem>>
    %408 = arith.index_cast %407 : i32 to index
    %c0_148 = arith.constant 0 : index
    %409 = vector.load %arg2[%408, %c0_148] : memref<64x128xf32, #tpu.memory_space<vmem>>, vector<1x128xf32>
    %c4_149 = arith.constant 4 : index
    %410 = arith.index_cast %c5_i32 : i32 to index
    %411 = memref.load %arg1[%c4_149, %410] : memref<8x8xi32, #tpu.memory_space<smem>>
    %412 = arith.index_cast %411 : i32 to index
    %c0_150 = arith.constant 0 : index
    %413 = vector.load %arg2[%412, %c0_150] : memref<64x128xf32, #tpu.memory_space<vmem>>, vector<1x128xf32>
    %c5_151 = arith.constant 5 : index
    %414 = arith.index_cast %c5_i32 : i32 to index
    %415 = memref.load %arg1[%c5_151, %414] : memref<8x8xi32, #tpu.memory_space<smem>>
    %416 = arith.index_cast %415 : i32 to index
    %c0_152 = arith.constant 0 : index
    %417 = vector.load %arg2[%416, %c0_152] : memref<64x128xf32, #tpu.memory_space<vmem>>, vector<1x128xf32>
    %c6_153 = arith.constant 6 : index
    %418 = arith.index_cast %c5_i32 : i32 to index
    %419 = memref.load %arg1[%c6_153, %418] : memref<8x8xi32, #tpu.memory_space<smem>>
    %420 = arith.index_cast %419 : i32 to index
    %c0_154 = arith.constant 0 : index
    %421 = vector.load %arg2[%420, %c0_154] : memref<64x128xf32, #tpu.memory_space<vmem>>, vector<1x128xf32>
    %c7_155 = arith.constant 7 : index
    %422 = arith.index_cast %c5_i32 : i32 to index
    %423 = memref.load %arg1[%c7_155, %422] : memref<8x8xi32, #tpu.memory_space<smem>>
    %424 = arith.index_cast %423 : i32 to index
    %c0_156 = arith.constant 0 : index
    %425 = vector.load %arg2[%424, %c0_156] : memref<64x128xf32, #tpu.memory_space<vmem>>, vector<1x128xf32>
    %426 = tpu.concatenate %397, %401, %405, %409, %413, %417, %421, %425 in 0 : vector<1x128xf32>, vector<1x128xf32>, vector<1x128xf32>, vector<1x128xf32>, vector<1x128xf32>, vector<1x128xf32>, vector<1x128xf32>, vector<1x128xf32> -> vector<8x128xf32>
    %427 = arith.truncf %426 : vector<8x128xf32> to vector<8x128xbf16>
    %428 = tpu.concatenate %427, %370 in 1 : vector<8x128xbf16>, vector<8x128xbf16> -> vector<8x256xbf16>
    %c0_157 = arith.constant 0 : index
    %c0_158 = arith.constant 0 : index
    %429 = vector.load %arg3[%c0_157, %c0_158] : memref<256x512xbf16, #tpu.memory_space<vmem>>, vector<256x512xbf16>
    %cst_159 = arith.constant dense<0.000000e+00> : vector<8x512xf32>
    %430 = tpu.matmul %428, %429, %cst_159 {dimension_numbers = #tpu.dot_dimension_numbers<[1], [0], [0], [1], [0, 0, 1, 1], [], []>} : vector<8x256xbf16>, vector<256x512xbf16>, vector<8x512xf32> -> vector<8x512xf32>
    %c0_160 = arith.constant 0 : index
    %c0_161 = arith.constant 0 : index
    %431 = vector.load %arg4[%c0_160, %c0_161] : memref<1x512xf32, #tpu.memory_space<vmem>>, vector<1x512xf32>
    %432 = vector.broadcast %431 : vector<1x512xf32> to vector<8x512xf32>
    %433 = arith.addf %430, %432 : vector<8x512xf32>
    %434 = vector.extract_strided_slice %433 {offsets = [0, 0], sizes = [8, 384], strides = [1, 1]} : vector<8x512xf32> to vector<8x384xf32>
    %435 = arith.negf %434 : vector<8x384xf32>
    %436 = math.exp %435 : vector<8x384xf32>
    %cst_162 = arith.constant 1.000000e+00 : f32
    %437 = vector.broadcast %cst_162 : f32 to vector<8x384xf32>
    %438 = arith.addf %437, %436 : vector<8x384xf32>
    %439 = arith.divf %437, %438 : vector<8x384xf32>
    %440 = vector.extract_strided_slice %439 {offsets = [0, 0], sizes = [8, 128], strides = [1, 1]} : vector<8x384xf32> to vector<8x128xf32>
    %441 = vector.extract_strided_slice %439 {offsets = [0, 128], sizes = [8, 128], strides = [1, 1]} : vector<8x384xf32> to vector<8x128xf32>
    %442 = vector.extract_strided_slice %439 {offsets = [0, 256], sizes = [8, 128], strides = [1, 1]} : vector<8x384xf32> to vector<8x128xf32>
    %443 = vector.extract_strided_slice %433 {offsets = [0, 384], sizes = [8, 128], strides = [1, 1]} : vector<8x512xf32> to vector<8x128xf32>
    %444 = math.tanh %443 : vector<8x128xf32>
    %445 = arith.mulf %441, %367 : vector<8x128xf32>
    %446 = arith.mulf %440, %444 : vector<8x128xf32>
    %447 = arith.addf %445, %446 : vector<8x128xf32>
    %448 = math.tanh %447 : vector<8x128xf32>
    %449 = arith.mulf %442, %448 : vector<8x128xf32>
    %450 = arith.truncf %449 : vector<8x128xf32> to vector<8x128xbf16>
    %c6_i32 = arith.constant 6 : i32
    %451 = tpu.concatenate %450, %393 in 1 : vector<8x128xbf16>, vector<8x128xbf16> -> vector<8x256xbf16>
    %c0_163 = arith.constant 0 : index
    %c0_164 = arith.constant 0 : index
    %452 = vector.load %arg5[%c0_163, %c0_164] : memref<256x512xbf16, #tpu.memory_space<vmem>>, vector<256x512xbf16>
    %cst_165 = arith.constant dense<0.000000e+00> : vector<8x512xf32>
    %453 = tpu.matmul %451, %452, %cst_165 {dimension_numbers = #tpu.dot_dimension_numbers<[1], [0], [0], [1], [0, 0, 1, 1], [], []>} : vector<8x256xbf16>, vector<256x512xbf16>, vector<8x512xf32> -> vector<8x512xf32>
    %c0_166 = arith.constant 0 : index
    %c0_167 = arith.constant 0 : index
    %454 = vector.load %arg6[%c0_166, %c0_167] : memref<1x512xf32, #tpu.memory_space<vmem>>, vector<1x512xf32>
    %455 = vector.broadcast %454 : vector<1x512xf32> to vector<8x512xf32>
    %456 = arith.addf %453, %455 : vector<8x512xf32>
    %457 = vector.extract_strided_slice %456 {offsets = [0, 0], sizes = [8, 384], strides = [1, 1]} : vector<8x512xf32> to vector<8x384xf32>
    %458 = arith.negf %457 : vector<8x384xf32>
    %459 = math.exp %458 : vector<8x384xf32>
    %cst_168 = arith.constant 1.000000e+00 : f32
    %460 = vector.broadcast %cst_168 : f32 to vector<8x384xf32>
    %461 = arith.addf %460, %459 : vector<8x384xf32>
    %462 = arith.divf %460, %461 : vector<8x384xf32>
    %463 = vector.extract_strided_slice %462 {offsets = [0, 0], sizes = [8, 128], strides = [1, 1]} : vector<8x384xf32> to vector<8x128xf32>
    %464 = vector.extract_strided_slice %462 {offsets = [0, 128], sizes = [8, 128], strides = [1, 1]} : vector<8x384xf32> to vector<8x128xf32>
    %465 = vector.extract_strided_slice %462 {offsets = [0, 256], sizes = [8, 128], strides = [1, 1]} : vector<8x384xf32> to vector<8x128xf32>
    %466 = vector.extract_strided_slice %456 {offsets = [0, 384], sizes = [8, 128], strides = [1, 1]} : vector<8x512xf32> to vector<8x128xf32>
    %467 = math.tanh %466 : vector<8x128xf32>
    %468 = arith.mulf %464, %390 : vector<8x128xf32>
    %469 = arith.mulf %463, %467 : vector<8x128xf32>
    %470 = arith.addf %468, %469 : vector<8x128xf32>
    %471 = math.tanh %470 : vector<8x128xf32>
    %472 = arith.mulf %465, %471 : vector<8x128xf32>
    %473 = arith.truncf %472 : vector<8x128xf32> to vector<8x128xbf16>
    %c0_169 = arith.constant 0 : index
    %474 = arith.index_cast %c6_i32 : i32 to index
    %475 = memref.load %arg1[%c0_169, %474] : memref<8x8xi32, #tpu.memory_space<smem>>
    %476 = arith.index_cast %475 : i32 to index
    %c0_170 = arith.constant 0 : index
    %477 = vector.load %arg2[%476, %c0_170] : memref<64x128xf32, #tpu.memory_space<vmem>>, vector<1x128xf32>
    %c1_171 = arith.constant 1 : index
    %478 = arith.index_cast %c6_i32 : i32 to index
    %479 = memref.load %arg1[%c1_171, %478] : memref<8x8xi32, #tpu.memory_space<smem>>
    %480 = arith.index_cast %479 : i32 to index
    %c0_172 = arith.constant 0 : index
    %481 = vector.load %arg2[%480, %c0_172] : memref<64x128xf32, #tpu.memory_space<vmem>>, vector<1x128xf32>
    %c2_173 = arith.constant 2 : index
    %482 = arith.index_cast %c6_i32 : i32 to index
    %483 = memref.load %arg1[%c2_173, %482] : memref<8x8xi32, #tpu.memory_space<smem>>
    %484 = arith.index_cast %483 : i32 to index
    %c0_174 = arith.constant 0 : index
    %485 = vector.load %arg2[%484, %c0_174] : memref<64x128xf32, #tpu.memory_space<vmem>>, vector<1x128xf32>
    %c3_175 = arith.constant 3 : index
    %486 = arith.index_cast %c6_i32 : i32 to index
    %487 = memref.load %arg1[%c3_175, %486] : memref<8x8xi32, #tpu.memory_space<smem>>
    %488 = arith.index_cast %487 : i32 to index
    %c0_176 = arith.constant 0 : index
    %489 = vector.load %arg2[%488, %c0_176] : memref<64x128xf32, #tpu.memory_space<vmem>>, vector<1x128xf32>
    %c4_177 = arith.constant 4 : index
    %490 = arith.index_cast %c6_i32 : i32 to index
    %491 = memref.load %arg1[%c4_177, %490] : memref<8x8xi32, #tpu.memory_space<smem>>
    %492 = arith.index_cast %491 : i32 to index
    %c0_178 = arith.constant 0 : index
    %493 = vector.load %arg2[%492, %c0_178] : memref<64x128xf32, #tpu.memory_space<vmem>>, vector<1x128xf32>
    %c5_179 = arith.constant 5 : index
    %494 = arith.index_cast %c6_i32 : i32 to index
    %495 = memref.load %arg1[%c5_179, %494] : memref<8x8xi32, #tpu.memory_space<smem>>
    %496 = arith.index_cast %495 : i32 to index
    %c0_180 = arith.constant 0 : index
    %497 = vector.load %arg2[%496, %c0_180] : memref<64x128xf32, #tpu.memory_space<vmem>>, vector<1x128xf32>
    %c6_181 = arith.constant 6 : index
    %498 = arith.index_cast %c6_i32 : i32 to index
    %499 = memref.load %arg1[%c6_181, %498] : memref<8x8xi32, #tpu.memory_space<smem>>
    %500 = arith.index_cast %499 : i32 to index
    %c0_182 = arith.constant 0 : index
    %501 = vector.load %arg2[%500, %c0_182] : memref<64x128xf32, #tpu.memory_space<vmem>>, vector<1x128xf32>
    %c7_183 = arith.constant 7 : index
    %502 = arith.index_cast %c6_i32 : i32 to index
    %503 = memref.load %arg1[%c7_183, %502] : memref<8x8xi32, #tpu.memory_space<smem>>
    %504 = arith.index_cast %503 : i32 to index
    %c0_184 = arith.constant 0 : index
    %505 = vector.load %arg2[%504, %c0_184] : memref<64x128xf32, #tpu.memory_space<vmem>>, vector<1x128xf32>
    %506 = tpu.concatenate %477, %481, %485, %489, %493, %497, %501, %505 in 0 : vector<1x128xf32>, vector<1x128xf32>, vector<1x128xf32>, vector<1x128xf32>, vector<1x128xf32>, vector<1x128xf32>, vector<1x128xf32>, vector<1x128xf32> -> vector<8x128xf32>
    %507 = arith.truncf %506 : vector<8x128xf32> to vector<8x128xbf16>
    %508 = tpu.concatenate %507, %450 in 1 : vector<8x128xbf16>, vector<8x128xbf16> -> vector<8x256xbf16>
    %c0_185 = arith.constant 0 : index
    %c0_186 = arith.constant 0 : index
    %509 = vector.load %arg3[%c0_185, %c0_186] : memref<256x512xbf16, #tpu.memory_space<vmem>>, vector<256x512xbf16>
    %cst_187 = arith.constant dense<0.000000e+00> : vector<8x512xf32>
    %510 = tpu.matmul %508, %509, %cst_187 {dimension_numbers = #tpu.dot_dimension_numbers<[1], [0], [0], [1], [0, 0, 1, 1], [], []>} : vector<8x256xbf16>, vector<256x512xbf16>, vector<8x512xf32> -> vector<8x512xf32>
    %c0_188 = arith.constant 0 : index
    %c0_189 = arith.constant 0 : index
    %511 = vector.load %arg4[%c0_188, %c0_189] : memref<1x512xf32, #tpu.memory_space<vmem>>, vector<1x512xf32>
    %512 = vector.broadcast %511 : vector<1x512xf32> to vector<8x512xf32>
    %513 = arith.addf %510, %512 : vector<8x512xf32>
    %514 = vector.extract_strided_slice %513 {offsets = [0, 0], sizes = [8, 384], strides = [1, 1]} : vector<8x512xf32> to vector<8x384xf32>
    %515 = arith.negf %514 : vector<8x384xf32>
    %516 = math.exp %515 : vector<8x384xf32>
    %cst_190 = arith.constant 1.000000e+00 : f32
    %517 = vector.broadcast %cst_190 : f32 to vector<8x384xf32>
    %518 = arith.addf %517, %516 : vector<8x384xf32>
    %519 = arith.divf %517, %518 : vector<8x384xf32>
    %520 = vector.extract_strided_slice %519 {offsets = [0, 0], sizes = [8, 128], strides = [1, 1]} : vector<8x384xf32> to vector<8x128xf32>
    %521 = vector.extract_strided_slice %519 {offsets = [0, 128], sizes = [8, 128], strides = [1, 1]} : vector<8x384xf32> to vector<8x128xf32>
    %522 = vector.extract_strided_slice %519 {offsets = [0, 256], sizes = [8, 128], strides = [1, 1]} : vector<8x384xf32> to vector<8x128xf32>
    %523 = vector.extract_strided_slice %513 {offsets = [0, 384], sizes = [8, 128], strides = [1, 1]} : vector<8x512xf32> to vector<8x128xf32>
    %524 = math.tanh %523 : vector<8x128xf32>
    %525 = arith.mulf %521, %447 : vector<8x128xf32>
    %526 = arith.mulf %520, %524 : vector<8x128xf32>
    %527 = arith.addf %525, %526 : vector<8x128xf32>
    %528 = math.tanh %527 : vector<8x128xf32>
    %529 = arith.mulf %522, %528 : vector<8x128xf32>
    %530 = arith.truncf %529 : vector<8x128xf32> to vector<8x128xbf16>
    %c7_i32 = arith.constant 7 : i32
    %531 = tpu.concatenate %530, %473 in 1 : vector<8x128xbf16>, vector<8x128xbf16> -> vector<8x256xbf16>
    %c0_191 = arith.constant 0 : index
    %c0_192 = arith.constant 0 : index
    %532 = vector.load %arg5[%c0_191, %c0_192] : memref<256x512xbf16, #tpu.memory_space<vmem>>, vector<256x512xbf16>
    %cst_193 = arith.constant dense<0.000000e+00> : vector<8x512xf32>
    %533 = tpu.matmul %531, %532, %cst_193 {dimension_numbers = #tpu.dot_dimension_numbers<[1], [0], [0], [1], [0, 0, 1, 1], [], []>} : vector<8x256xbf16>, vector<256x512xbf16>, vector<8x512xf32> -> vector<8x512xf32>
    %c0_194 = arith.constant 0 : index
    %c0_195 = arith.constant 0 : index
    %534 = vector.load %arg6[%c0_194, %c0_195] : memref<1x512xf32, #tpu.memory_space<vmem>>, vector<1x512xf32>
    %535 = vector.broadcast %534 : vector<1x512xf32> to vector<8x512xf32>
    %536 = arith.addf %533, %535 : vector<8x512xf32>
    %537 = vector.extract_strided_slice %536 {offsets = [0, 0], sizes = [8, 384], strides = [1, 1]} : vector<8x512xf32> to vector<8x384xf32>
    %538 = arith.negf %537 : vector<8x384xf32>
    %539 = math.exp %538 : vector<8x384xf32>
    %cst_196 = arith.constant 1.000000e+00 : f32
    %540 = vector.broadcast %cst_196 : f32 to vector<8x384xf32>
    %541 = arith.addf %540, %539 : vector<8x384xf32>
    %542 = arith.divf %540, %541 : vector<8x384xf32>
    %543 = vector.extract_strided_slice %542 {offsets = [0, 0], sizes = [8, 128], strides = [1, 1]} : vector<8x384xf32> to vector<8x128xf32>
    %544 = vector.extract_strided_slice %542 {offsets = [0, 128], sizes = [8, 128], strides = [1, 1]} : vector<8x384xf32> to vector<8x128xf32>
    %545 = vector.extract_strided_slice %542 {offsets = [0, 256], sizes = [8, 128], strides = [1, 1]} : vector<8x384xf32> to vector<8x128xf32>
    %546 = vector.extract_strided_slice %536 {offsets = [0, 384], sizes = [8, 128], strides = [1, 1]} : vector<8x512xf32> to vector<8x128xf32>
    %547 = math.tanh %546 : vector<8x128xf32>
    %548 = arith.mulf %544, %470 : vector<8x128xf32>
    %549 = arith.mulf %543, %547 : vector<8x128xf32>
    %550 = arith.addf %548, %549 : vector<8x128xf32>
    %551 = math.tanh %550 : vector<8x128xf32>
    %552 = arith.mulf %545, %551 : vector<8x128xf32>
    %553 = arith.truncf %552 : vector<8x128xf32> to vector<8x128xbf16>
    %c0_197 = arith.constant 0 : index
    %554 = arith.index_cast %c7_i32 : i32 to index
    %555 = memref.load %arg1[%c0_197, %554] : memref<8x8xi32, #tpu.memory_space<smem>>
    %556 = arith.index_cast %555 : i32 to index
    %c0_198 = arith.constant 0 : index
    %557 = vector.load %arg2[%556, %c0_198] : memref<64x128xf32, #tpu.memory_space<vmem>>, vector<1x128xf32>
    %c1_199 = arith.constant 1 : index
    %558 = arith.index_cast %c7_i32 : i32 to index
    %559 = memref.load %arg1[%c1_199, %558] : memref<8x8xi32, #tpu.memory_space<smem>>
    %560 = arith.index_cast %559 : i32 to index
    %c0_200 = arith.constant 0 : index
    %561 = vector.load %arg2[%560, %c0_200] : memref<64x128xf32, #tpu.memory_space<vmem>>, vector<1x128xf32>
    %c2_201 = arith.constant 2 : index
    %562 = arith.index_cast %c7_i32 : i32 to index
    %563 = memref.load %arg1[%c2_201, %562] : memref<8x8xi32, #tpu.memory_space<smem>>
    %564 = arith.index_cast %563 : i32 to index
    %c0_202 = arith.constant 0 : index
    %565 = vector.load %arg2[%564, %c0_202] : memref<64x128xf32, #tpu.memory_space<vmem>>, vector<1x128xf32>
    %c3_203 = arith.constant 3 : index
    %566 = arith.index_cast %c7_i32 : i32 to index
    %567 = memref.load %arg1[%c3_203, %566] : memref<8x8xi32, #tpu.memory_space<smem>>
    %568 = arith.index_cast %567 : i32 to index
    %c0_204 = arith.constant 0 : index
    %569 = vector.load %arg2[%568, %c0_204] : memref<64x128xf32, #tpu.memory_space<vmem>>, vector<1x128xf32>
    %c4_205 = arith.constant 4 : index
    %570 = arith.index_cast %c7_i32 : i32 to index
    %571 = memref.load %arg1[%c4_205, %570] : memref<8x8xi32, #tpu.memory_space<smem>>
    %572 = arith.index_cast %571 : i32 to index
    %c0_206 = arith.constant 0 : index
    %573 = vector.load %arg2[%572, %c0_206] : memref<64x128xf32, #tpu.memory_space<vmem>>, vector<1x128xf32>
    %c5_207 = arith.constant 5 : index
    %574 = arith.index_cast %c7_i32 : i32 to index
    %575 = memref.load %arg1[%c5_207, %574] : memref<8x8xi32, #tpu.memory_space<smem>>
    %576 = arith.index_cast %575 : i32 to index
    %c0_208 = arith.constant 0 : index
    %577 = vector.load %arg2[%576, %c0_208] : memref<64x128xf32, #tpu.memory_space<vmem>>, vector<1x128xf32>
    %c6_209 = arith.constant 6 : index
    %578 = arith.index_cast %c7_i32 : i32 to index
    %579 = memref.load %arg1[%c6_209, %578] : memref<8x8xi32, #tpu.memory_space<smem>>
    %580 = arith.index_cast %579 : i32 to index
    %c0_210 = arith.constant 0 : index
    %581 = vector.load %arg2[%580, %c0_210] : memref<64x128xf32, #tpu.memory_space<vmem>>, vector<1x128xf32>
    %c7_211 = arith.constant 7 : index
    %582 = arith.index_cast %c7_i32 : i32 to index
    %583 = memref.load %arg1[%c7_211, %582] : memref<8x8xi32, #tpu.memory_space<smem>>
    %584 = arith.index_cast %583 : i32 to index
    %c0_212 = arith.constant 0 : index
    %585 = vector.load %arg2[%584, %c0_212] : memref<64x128xf32, #tpu.memory_space<vmem>>, vector<1x128xf32>
    %586 = tpu.concatenate %557, %561, %565, %569, %573, %577, %581, %585 in 0 : vector<1x128xf32>, vector<1x128xf32>, vector<1x128xf32>, vector<1x128xf32>, vector<1x128xf32>, vector<1x128xf32>, vector<1x128xf32>, vector<1x128xf32> -> vector<8x128xf32>
    %587 = arith.truncf %586 : vector<8x128xf32> to vector<8x128xbf16>
    %588 = tpu.concatenate %587, %530 in 1 : vector<8x128xbf16>, vector<8x128xbf16> -> vector<8x256xbf16>
    %c0_213 = arith.constant 0 : index
    %c0_214 = arith.constant 0 : index
    %589 = vector.load %arg3[%c0_213, %c0_214] : memref<256x512xbf16, #tpu.memory_space<vmem>>, vector<256x512xbf16>
    %cst_215 = arith.constant dense<0.000000e+00> : vector<8x512xf32>
    %590 = tpu.matmul %588, %589, %cst_215 {dimension_numbers = #tpu.dot_dimension_numbers<[1], [0], [0], [1], [0, 0, 1, 1], [], []>} : vector<8x256xbf16>, vector<256x512xbf16>, vector<8x512xf32> -> vector<8x512xf32>
    %c0_216 = arith.constant 0 : index
    %c0_217 = arith.constant 0 : index
    %591 = vector.load %arg4[%c0_216, %c0_217] : memref<1x512xf32, #tpu.memory_space<vmem>>, vector<1x512xf32>
    %592 = vector.broadcast %591 : vector<1x512xf32> to vector<8x512xf32>
    %593 = arith.addf %590, %592 : vector<8x512xf32>
    %594 = vector.extract_strided_slice %593 {offsets = [0, 0], sizes = [8, 384], strides = [1, 1]} : vector<8x512xf32> to vector<8x384xf32>
    %595 = arith.negf %594 : vector<8x384xf32>
    %596 = math.exp %595 : vector<8x384xf32>
    %cst_218 = arith.constant 1.000000e+00 : f32
    %597 = vector.broadcast %cst_218 : f32 to vector<8x384xf32>
    %598 = arith.addf %597, %596 : vector<8x384xf32>
    %599 = arith.divf %597, %598 : vector<8x384xf32>
    %600 = vector.extract_strided_slice %599 {offsets = [0, 0], sizes = [8, 128], strides = [1, 1]} : vector<8x384xf32> to vector<8x128xf32>
    %601 = vector.extract_strided_slice %599 {offsets = [0, 128], sizes = [8, 128], strides = [1, 1]} : vector<8x384xf32> to vector<8x128xf32>
    %602 = vector.extract_strided_slice %599 {offsets = [0, 256], sizes = [8, 128], strides = [1, 1]} : vector<8x384xf32> to vector<8x128xf32>
    %603 = vector.extract_strided_slice %593 {offsets = [0, 384], sizes = [8, 128], strides = [1, 1]} : vector<8x512xf32> to vector<8x128xf32>
    %604 = math.tanh %603 : vector<8x128xf32>
    %605 = arith.mulf %601, %527 : vector<8x128xf32>
    %606 = arith.mulf %600, %604 : vector<8x128xf32>
    %607 = arith.addf %605, %606 : vector<8x128xf32>
    %608 = math.tanh %607 : vector<8x128xf32>
    %609 = arith.mulf %602, %608 : vector<8x128xf32>
    %610 = arith.truncf %609 : vector<8x128xf32> to vector<8x128xbf16>
    %c7_i32_219 = arith.constant 7 : i32
    %611 = tpu.concatenate %610, %553 in 1 : vector<8x128xbf16>, vector<8x128xbf16> -> vector<8x256xbf16>
    %c0_220 = arith.constant 0 : index
    %c0_221 = arith.constant 0 : index
    %612 = vector.load %arg5[%c0_220, %c0_221] : memref<256x512xbf16, #tpu.memory_space<vmem>>, vector<256x512xbf16>
    %cst_222 = arith.constant dense<0.000000e+00> : vector<8x512xf32>
    %613 = tpu.matmul %611, %612, %cst_222 {dimension_numbers = #tpu.dot_dimension_numbers<[1], [0], [0], [1], [0, 0, 1, 1], [], []>} : vector<8x256xbf16>, vector<256x512xbf16>, vector<8x512xf32> -> vector<8x512xf32>
    %c0_223 = arith.constant 0 : index
    %c0_224 = arith.constant 0 : index
    %614 = vector.load %arg6[%c0_223, %c0_224] : memref<1x512xf32, #tpu.memory_space<vmem>>, vector<1x512xf32>
    %615 = vector.broadcast %614 : vector<1x512xf32> to vector<8x512xf32>
    %616 = arith.addf %613, %615 : vector<8x512xf32>
    %617 = vector.extract_strided_slice %616 {offsets = [0, 0], sizes = [8, 384], strides = [1, 1]} : vector<8x512xf32> to vector<8x384xf32>
    %618 = arith.negf %617 : vector<8x384xf32>
    %619 = math.exp %618 : vector<8x384xf32>
    %cst_225 = arith.constant 1.000000e+00 : f32
    %620 = vector.broadcast %cst_225 : f32 to vector<8x384xf32>
    %621 = arith.addf %620, %619 : vector<8x384xf32>
    %622 = arith.divf %620, %621 : vector<8x384xf32>
    %623 = vector.extract_strided_slice %622 {offsets = [0, 0], sizes = [8, 128], strides = [1, 1]} : vector<8x384xf32> to vector<8x128xf32>
    %624 = vector.extract_strided_slice %622 {offsets = [0, 128], sizes = [8, 128], strides = [1, 1]} : vector<8x384xf32> to vector<8x128xf32>
    %625 = vector.extract_strided_slice %622 {offsets = [0, 256], sizes = [8, 128], strides = [1, 1]} : vector<8x384xf32> to vector<8x128xf32>
    %626 = vector.extract_strided_slice %616 {offsets = [0, 384], sizes = [8, 128], strides = [1, 1]} : vector<8x512xf32> to vector<8x128xf32>
    %627 = math.tanh %626 : vector<8x128xf32>
    %628 = arith.mulf %624, %550 : vector<8x128xf32>
    %629 = arith.mulf %623, %627 : vector<8x128xf32>
    %630 = arith.addf %628, %629 : vector<8x128xf32>
    %631 = math.tanh %630 : vector<8x128xf32>
    %632 = arith.mulf %625, %631 : vector<8x128xf32>
    %633 = arith.truncf %632 : vector<8x128xf32> to vector<8x128xbf16>
    %c0_226 = arith.constant 0 : index
    %c0_227 = arith.constant 0 : index
    %634 = vector.load %arg7[%c0_226, %c0_227] : memref<128x128xbf16, #tpu.memory_space<vmem>>, vector<128x128xbf16>
    %cst_228 = arith.constant dense<0.000000e+00> : vector<8x128xf32>
    %635 = tpu.matmul %633, %634, %cst_228 {dimension_numbers = #tpu.dot_dimension_numbers<[1], [0], [0], [1], [0, 0, 1, 1], [], []>} : vector<8x128xbf16>, vector<128x128xbf16>, vector<8x128xf32> -> vector<8x128xf32>
    %c0_229 = arith.constant 0 : index
    %c0_230 = arith.constant 0 : index
    %636 = vector.load %arg8[%c0_229, %c0_230] : memref<1x128xf32, #tpu.memory_space<vmem>>, vector<1x128xf32>
    %637 = vector.broadcast %636 : vector<1x128xf32> to vector<8x128xf32>
    %638 = arith.addf %635, %637 : vector<8x128xf32>
    %c0_231 = arith.constant 0 : index
    %c0_232 = arith.constant 0 : index
    %639 = vector.load %arg9[%c0_231, %c0_232] : memref<8x128xf32, #tpu.memory_space<vmem>>, vector<8x128xf32>
    tpu.vector_store %arg9[%c0_231, %c0_232], %638 {strides = array<i32>} : memref<8x128xf32, #tpu.memory_space<vmem>>, vector<8x128xf32>,
    return
  }
  func.func @transform_0(%arg0: i32, %arg1: memref<8x8xi32, #tpu.memory_space<smem>>) -> (i32, i32) {
    %c0_i32 = arith.constant 0 : i32
    %c0_i32_0 = arith.constant 0 : i32
    %c0_i32_1 = arith.constant 0 : i32
    return %c0_i32, %c0_i32_0 : i32, i32
  }
  func.func @transform_1(%arg0: i32, %arg1: memref<8x8xi32, #tpu.memory_space<smem>>) -> (i32, i32) {
    %c0_i32 = arith.constant 0 : i32
    %c0_i32_0 = arith.constant 0 : i32
    %c0_i32_1 = arith.constant 0 : i32
    return %c0_i32, %c0_i32_0 : i32, i32
  }
  func.func @transform_2(%arg0: i32, %arg1: memref<8x8xi32, #tpu.memory_space<smem>>) -> (i32, i32) {
    %c0_i32 = arith.constant 0 : i32
    %c0_i32_0 = arith.constant 0 : i32
    %c0_i32_1 = arith.constant 0 : i32
    return %c0_i32, %c0_i32_0 : i32, i32
  }
  func.func @transform_3(%arg0: i32, %arg1: memref<8x8xi32, #tpu.memory_space<smem>>) -> (i32, i32) {
    %c0_i32 = arith.constant 0 : i32
    %c0_i32_0 = arith.constant 0 : i32
    %c0_i32_1 = arith.constant 0 : i32
    return %c0_i32, %c0_i32_0 : i32, i32
  }
  func.func @transform_4(%arg0: i32, %arg1: memref<8x8xi32, #tpu.memory_space<smem>>) -> (i32, i32) {
    %c0_i32 = arith.constant 0 : i32
    %c0_i32_0 = arith.constant 0 : i32
    %c0_i32_1 = arith.constant 0 : i32
    return %c0_i32, %c0_i32_0 : i32, i32
  }
  func.func @transform_5(%arg0: i32, %arg1: memref<8x8xi32, #tpu.memory_space<smem>>) -> (i32, i32) {
    %c0_i32 = arith.constant 0 : i32
    %c0_i32_0 = arith.constant 0 : i32
    %c0_i32_1 = arith.constant 0 : i32
    return %c0_i32, %c0_i32_0 : i32, i32
  }
  func.func @transform_6(%arg0: i32, %arg1: memref<8x8xi32, #tpu.memory_space<smem>>) -> (i32, i32) {
    %c0_i32 = arith.constant 0 : i32
    %c0_i32_0 = arith.constant 0 : i32
    %c0_i32_1 = arith.constant 0 : i32
    return %c0_i32, %c0_i32_0 : i32, i32
  }
  func.func @transform_7(%arg0: i32, %arg1: memref<8x8xi32, #tpu.memory_space<smem>>) -> (i32, i32) {
    %c0_i32 = arith.constant 0 : i32
    %c0_i32_0 = arith.constant 0 : i32
    %c0_i32_1 = arith.constant 0 : i32
    return %c0_i32, %c0_i32_0 : i32, i32
  }
}

</mosaic_0001>

<bundles_post_ra>
// kernel: lstm_model_forward.1
= control target key start
LH: loop header
LB: loop body
LE: loop exit
PB: predicated region body
PF: predicated region fallthrough
CT: control target
= control target key end

     0   :  { %s6562_s0 = inlined_call_operand.vmem [shape: s32[8,8], index: 0, kind: input, shape index: {}]   ;;  %s6563_s1 = inlined_call_operand.hbm [shape: f32[64,128], index: 1, kind: input, shape index: {}]   ;;  %s6564_s2 = inlined_call_operand.hbm [shape: bf16[256,512], index: 2, kind: input, shape index: {}]   ;;  %s6565_s3 = inlined_call_operand.hbm [shape: f32[1,512], index: 3, kind: input, shape index: {}]   ;;  %s6566_s4 = inlined_call_operand.hbm [shape: bf16[256,512], index: 4, kind: input, shape index: {}]   ;;  %s6567_s5 = inlined_call_operand.hbm [shape: f32[1,512], index: 5, kind: input, shape index: {}]   ;;  %s6568_s6 = inlined_call_operand.hbm [shape: bf16[128,128], index: 6, kind: input, shape index: {}]   ;;  %s6569_s7 = inlined_call_operand.vmem [shape: f32[1,128], index: 7, kind: input, shape index: {}]   ;;  %s6570_s8 = inlined_call_operand.vmem [shape: f32[8,128], index: 8, kind: output, shape index: {}]  }
   0x1   :  { %s13_s29 = sshll.u32 %s6562_s0, 4  ;;  %s14_s29 = int_to_ptr.vmem [resolvable:$true] %s13_s29 }
   0x2   :  { %s4256_s30 = scalar_lea.vmem %s14_s29, 128  ;;  %p4261_p1 = scmp.lt.s32.totalorder %s14_s29, %s14_s29 }
   0x3   :  { %p4257_p0 = scmp.ne.s32.totalorder %s14_s29, %s4256_s30  ;;  %p4262_p2 = scmp.lt.s32.totalorder %s4256_s30, %s4256_s30 }
   0x5   :  { %p4263_p3 = por %p4262_p2, %p4261_p1 }
   0x7   :  { %p4264_p4 = pnand %p4263_p3, %p4257_p0 }
   0x9   :  { %4267 = shalt.err (!%p4264_p4)  }
   0xa   :  { %s4398_s9 = smov [#allocation3]  }
   0xb   :  { %16 = dma.vmem_to_smem %s14_s29, 128, %s4398_s9, [#allocation2] }
   0xc   :  { %4388 = dma.done.wait [#allocation2], 128 }
   0xd   :  { %4389 = vsyncadd [#allocation2], 4294967168 }
   0xe   :  { %18 = sfence }
   0xf   :  { %19 = vsyncpa [#allocation5], 0 }
  0x10   :  { %20 = vsyncpa [#allocation7], 0 }
  0x11   :  { %21 = vsyncpa [#allocation10], 0 }
  0x12   :  { %22 = vsyncpa [#allocation13], 0  ;;  %s4399_s10 = smov [#allocation6]  }
  0x13   :  { %s40_s11 = sshll.u32 %s4399_s10, 4  ;;  %s41_s11 = int_to_ptr.vmem [resolvable:$true] %s40_s11 }
  0x14   :  { %s4276_s0 = scalar_lea.vmem %s41_s11, 8192  ;;  %p4281_p6 = scmp.lt.s32.totalorder %s41_s11, %s41_s11 }
  0x15   :  { %p4277_p5 = scmp.ne.s32.totalorder %s41_s11, %s4276_s0  ;;  %p4282_p7 = scmp.lt.s32.totalorder %s4276_s0, %s4276_s0 }
  0x17   :  { %p4283_p8 = por %p4282_p7, %p4281_p6 }
  0x19   :  { %p4284_p9 = pnand %p4283_p8, %p4277_p5 }
  0x1b   :  { %4287 = shalt.err (!%p4284_p9)
}
  0x1c   :  { %s4400_s12 = smov 256   ;;  %s4401_s13 = smov 16  }
  0x1d   :  { %46 = dma.hbm_to_vmem [thread:$0]  %s6564_s2, 8192, %s41_s11, [#allocation7], %s4400_s12, %s4400_s12, %s4401_s13  }
  0x1e   :  { %s4402_s16 = smov [#allocation9]   ;;  %s4403_s18 = smov [#allocation4]  }
  0x1f   :  { %s62_s17 = sshll.u32 %s4402_s16, 4  ;;  %s28_s19 = sshll.u32 %s4403_s18, 4  ;;  %s63_s17 = int_to_ptr.vmem [resolvable:$true] %s62_s17  ;;  %s29_s19 = int_to_ptr.vmem [resolvable:$true] %s28_s19 }
  0x20   :  { %s4296_s20 = scalar_lea.vmem %s63_s17, 8192  ;;  %p4301_p11 = scmp.lt.s32.totalorder %s63_s17, %s63_s17 }
  0x21   :  { %p4297_p10 = scmp.ne.s32.totalorder %s63_s17, %s4296_s20  ;;  %p4302_p12 = scmp.lt.s32.totalorder %s4296_s20, %s4296_s20 }
  0x23   :  { %p4303_p13 = por %p4302_p12, %p4301_p11 }
  0x25   :  { %p4304_p0 = pnand %p4303_p13, %p4297_p10 }
  0x27   :  { %4307 = shalt.err (!%p4304_p0)
}
  0x28   :  { %68 = dma.hbm_to_vmem [thread:$0]  %s6566_s4, 8192, %s63_s17, [#allocation10], %s4400_s12, %s4400_s12, %s4401_s13  }
  0x29   :  { %s4316_s23 = scalar_lea.vmem %s29_s19, 1024  ;;  %p4321_p2 = scmp.lt.s32.totalorder %s29_s19, %s29_s19 }
  0x2a   :  { %p4317_p1 = scmp.ne.s32.totalorder %s29_s19, %s4316_s23  ;;  %p4322_p3 = scmp.lt.s32.totalorder %s4316_s23, %s4316_s23 }
  0x2c   :  { %p4323_p4 = por %p4322_p3, %p4321_p2 }
  0x2e   :  { %p4324_p5 = pnand %p4323_p4, %p4317_p1 }
  0x30   :  { %4327 = shalt.err (!%p4324_p5)
}
  0x31   :  { %s4404_s2 = smov 128   ;;  %s4405_s24 = smov 8  }
  0x32   :  { %34 = dma.hbm_to_vmem [thread:$0]  %s6563_s1, 1024, %s29_s19, [#allocation5], %s4404_s2, %s4404_s2, %s4405_s24  }
  0x33   :  { %s4406_s27 = smov [#allocation8]   ;;  %s4407_s29 = smov [#allocation11]  }
  0x34   :  { %s53_s28 = sshll.u32 %s4406_s27, 4  ;;  %s75_s30 = sshll.u32 %s4407_s29, 4  ;;  %s54_s28 = int_to_ptr.vmem [resolvable:$true] %s53_s28  ;;  %s76_s30 = int_to_ptr.vmem [resolvable:$true] %s75_s30 }
  0x35   :  { %s4336_s4 = scalar_lea.vmem %s54_s28, 64  ;;  %p4341_p7 = scmp.lt.s32.totalorder %s54_s28, %s54_s28 }
  0x36   :  { %p4337_p6 = scmp.ne.s32.totalorder %s54_s28, %s4336_s4  ;;  %p4342_p8 = scmp.lt.s32.totalorder %s4336_s4, %s4336_s4 }
  0x38   :  { %p4343_p9 = por %p4342_p8, %p4341_p7 }
  0x3a   :  { %p4344_p10 = pnand %p4343_p9, %p4337_p6 }
  0x3c   :  { %4347 = shalt.err (!%p4344_p10)
}
  0x3d   :  { %56 = dma.hbm_to_vmem [thread:$0]  %s6565_s3, 64, %s54_s28, [#allocation7]  }
  0x3e   :  { %s4356_s11 = scalar_lea.vmem %s76_s30, 64  ;;  %p4361_p12 = scmp.lt.s32.totalorder %s76_s30, %s76_s30 }
  0x3f   :  { %p4357_p11 = scmp.ne.s32.totalorder %s76_s30, %s4356_s11  ;;  %p4362_p13 = scmp.lt.s32.totalorder %s4356_s11, %s4356_s11 }
  0x41   :  { %p4363_p0 = por %p4362_p13, %p4361_p12 }
  0x43   :  { %p4364_p1 = pnand %p4363_p0, %p4357_p11 }
  0x45   :  { %4367 = shalt.err (!%p4364_p1)
}
  0x46   :  { %78 = dma.hbm_to_vmem [thread:$0]  %s6567_s5, 64, %s76_s30, [#allocation10]  }
  0x47   :  { %s4408_s12 = smov [#allocation12]  }
  0x48   :  { %s84_s13 = sshll.u32 %s4408_s12, 4  ;;  %s85_s13 = int_to_ptr.vmem [resolvable:$true] %s84_s13 }
  0x49   :  { %s4376_s14 = scalar_lea.vmem %s85_s13, 1024  ;;  %p4381_p3 = scmp.lt.s32.totalorder %s85_s13, %s85_s13 }
  0x4a   :  { %p4377_p2 = scmp.ne.s32.totalorder %s85_s13, %s4376_s14  ;;  %p4382_p4 = scmp.lt.s32.totalorder %s4376_s14, %s4376_s14 }
  0x4c   :  { %p4383_p5 = por %p4382_p4, %p4381_p3 }
  0x4e   :  { %p4384_p6 = pnand %p4383_p5, %p4377_p2 }
  0x50   :  { %4387 = shalt.err (!%p4384_p6)
}
  0x51   :  { %s4409_s3 = smov 64   ;;  %s4410_s15 = smov 4  }
  0x52   :  { %90 = dma.hbm_to_vmem [thread:$0]  %s6568_s6, 1024, %s85_s13, [#allocation13], %s4409_s3, %s4409_s3, %s4410_s15  }
  0x53   :  { %4390 = dma.done.wait [#allocation5], 1024  }
  0x54   :  { %4391 = vsyncadd [#allocation5], 4294966272 }
  0x55   :  { %4392 = dma.done.wait [#allocation7], 8256  }
  0x56   :  { %4393 = vsyncadd [#allocation7], 4294959040 }
  0x57   :  { %4394 = dma.done.wait [#allocation10], 8256  }
  0x58   :  { %4395 = vsyncadd [#allocation10], 4294959040 }
  0x59   :  { %4396 = dma.done.wait [#allocation13], 1024  }
  0x5a   :  { %4397 = vsyncadd [#allocation13], 4294966272  ;;  %v6571_v0 = vmov 0   ;;  %v4482_v1 = vld [vmem:[#allocation6 + $0xe4] ss:$16 sps:$4 sm:$0xff]   ;;  %s4562_s5 = sld [smem:[#allocation3]] }
  0x5b   :  { %610 = vmatprep.mubr.bf16.mxu0 %v6571_v0  ;;  %651 = vmatprep.mubr.bf16.mxu1 %v6571_v0  ;;  %v4484_v2 = vld [vmem:[#allocation6 + $0xe0] ss:$16 sps:$4 sm:$0xff]   ;;  %v4487_v3 = vld [vmem:[#allocation6 + $0xc4] ss:$16 sps:$4 sm:$0xff]   ;;  %v4495_v6 = vld [vmem:[#allocation6 + $0xec] ss:$16 sps:$4 sm:$0xff]  }
  0x5c   :  { %578 = vmatprep.subr.bf16.mxu0 %v4482_v1  ;;  %v4490_v4 = vld [vmem:[#allocation6 + $0xc0] ss:$16 sps:$4 sm:$0xff]   ;;  %v4493_v5 = vld [vmem:[#allocation6 + $0xa4] ss:$16 sps:$4 sm:$0xff]   ;;  %v4497_v7 = vld [vmem:[#allocation6 + $0xe8] ss:$16 sps:$4 sm:$0xff]   ;;  %619 = vmatprep.subr.bf16.mxu1 %v4495_v6 }
  0x5d   :  { %579 = vmatpush1.bf16.msra.mxu0 %v4484_v2  ;;  %v4500_v8 = vld [vmem:[#allocation6 + $0xa0] ss:$16 sps:$4 sm:$0xff]   ;;  %v4504_v9 = vld [vmem:[#allocation6 + $0x84] ss:$16 sps:$4 sm:$0xff]   ;;  %620 = vmatpush1.bf16.msra.mxu1 %v4497_v7  ;;  %v4507_v10 = vld [vmem:[#allocation6 + $0xcc] ss:$16 sps:$4 sm:$0xff]  }
  0x5e   :  { %580 = vmatprep.subr.bf16.mxu0 %v4487_v3  ;;  %v4509_v11 = vld [vmem:[#allocation6 + $0xc8] ss:$16 sps:$4 sm:$0xff]   ;;  %621 = vmatprep.subr.bf16.mxu1 %v4507_v10  ;;  %v4513_v12 = vld [vmem:[#allocation6 + $0x80] ss:$16 sps:$4 sm:$0xff]   ;;  %v4515_v13 = vld [vmem:[#allocation6 + $0x64] ss:$16 sps:$4 sm:$0xff]  }
  0x5f   :  { %v4517_v14 = vld [vmem:[#allocation6 + $0xac] ss:$16 sps:$4 sm:$0xff]   ;;  %v4521_v15 = vld [vmem:[#allocation6 + $0xa8] ss:$16 sps:$4 sm:$0xff]   ;;  %v4527_v17 = vld [vmem:[#allocation6 + $0x60] ss:$16 sps:$4 sm:$0xff]  }
  0x60   :  { %v4524_v16 = vld [vmem:[#allocation6 + $0x8c] ss:$16 sps:$4 sm:$0xff]   ;;  %v4530_v18 = vld [vmem:[#allocation6 + $0x44] ss:$16 sps:$4 sm:$0xff]   ;;  %v4533_v19 = vld [vmem:[#allocation6 + $0x88] ss:$16 sps:$4 sm:$0xff]  }
  0x61   :  { %581 = vmatpush1.bf16.msra.mxu0 %v4490_v4  ;;  %622 = vmatpush1.bf16.msra.mxu1 %v4509_v11  ;;  %v4536_v20 = vld [vmem:[#allocation6 + $0x6c] ss:$16 sps:$4 sm:$0xff]   ;;  %v4539_v21 = vld [vmem:[#allocation6 + $0x40] ss:$16 sps:$4 sm:$0xff]   ;;  %v4541_v22 = vld [vmem:[#allocation6 + $0x24] ss:$16 sps:$4 sm:$0xff]  }
  0x62   :  { %582 = vmatprep.subr.bf16.mxu0 %v4493_v5  ;;  %623 = vmatprep.subr.bf16.mxu1 %v4517_v14  ;;  %v4545_v23 = vld [vmem:[#allocation6 + $0x68] ss:$16 sps:$4 sm:$0xff]   ;;  %v4548_v24 = vld [vmem:[#allocation6 + $0x4c] ss:$16 sps:$4 sm:$0xff]   ;;  %v4551_v25 = vld [vmem:[#allocation6 + $0x20] ss:$16 sps:$4 sm:$0xff]  }
  0x63   :  { %v4554_v26 = vld [vmem:[#allocation6 + $0x4] ss:$16 sps:$4 sm:$0xff]   ;;  %v4557_v27 = vld [vmem:[#allocation6 + $0x48] ss:$16 sps:$4 sm:$0xff]   ;;  %v4560_v28 = vld [vmem:[#allocation6 + $0x2c] ss:$16 sps:$4 sm:$0xff]  }
  0x64   :  { %s4564_s6 = sld [smem:[#allocation3 + $0x80]]  ;;  %v4567_v29 = vld [vmem:[#allocation6] ss:$16 sps:$4 sm:$0xff]   ;;  %v4569_v30 = vld [vmem:[#allocation6 + $0x1e4] ss:$16 sps:$4 sm:$0xff]   ;;  %vm157_vm0 = vcmask 1040384  }
  0x65   :  { %583 = vmatpush1.bf16.msra.mxu0 %v4500_v8  ;;  %624 = vmatpush1.bf16.msra.mxu1 %v4521_v15  ;;  %s4571_s18 = sld [smem:[#allocation3 + $0x100]]  ;;  %v4575_v31 = vld [vmem:[#allocation6 + $0x28] ss:$16 sps:$4 sm:$0xff]   ;;  %v4580_v32 = vld [vmem:[#allocation6 + $0xc] ss:$16 sps:$4 sm:$0xff]   ;;  %s113_s25 = scalar_lea.vmem [#allocation4], %s4562_s5 }
  0x66   :  { %584 = vmatprep.subr.bf16.mxu0 %v4504_v9  ;;  %625 = vmatprep.subr.bf16.mxu1 %v4524_v16  ;;  %s4577_s19 = sld [smem:[#allocation3 + $0x180]]  ;;  %v4585_v33 = vld [vmem:[#allocation6 + $0x1e0] ss:$16 sps:$4 sm:$0xff]   ;;  %v4588_v34 = vld [vmem:[#allocation6 + $0x1c4] ss:$16 sps:$4 sm:$0xff]   ;;  %vm159_vm1 = vcmask 1041408  }
  0x67   :  { %s4582_s20 = sld [smem:[#allocation3 + $0x200]]  ;;  %v4591_v35 = vld [vmem:[#allocation6 + $0x8] ss:$16 sps:$4 sm:$0xff]   ;;  %v4594_v36 = vld [vmem:[#allocation6 + $0x1ec] ss:$16 sps:$4 sm:$0xff]   ;;  %vm161_vm2 = vcmask 1042432  }
  0x68   :  { %s4596_s21 = sld [smem:[#allocation3 + $0x280]]  ;;  %v4599_v37 = vld [vmem:[#allocation6 + $0x1c0] ss:$16 sps:$4 sm:$0xff]   ;;  %v4601_v38 = vld [vmem:[#allocation6 + $0x1a4] ss:$16 sps:$4 sm:$0xff]   ;;  %vm163_vm3 = vcmask 1043456  }
  0x69   :  { %585 = vmatpush1.bf16.msra.mxu0 %v4513_v12  ;;  %626 = vmatpush1.bf16.msra.mxu1 %v4533_v19  ;;  %v4605_v39 = vld [vmem:[#allocation6 + $0x1e8] ss:$16 sps:$4 sm:$0xff]   ;;  %v4608_v40 = vld [vmem:[#allocation6 + $0x1cc] ss:$16 sps:$4 sm:$0xff]   ;;  %s4610_s22 = sld [smem:[#allocation3 + $0x300]]  ;;  %vm165_vm4 = vcmask 1044480  }
  0x6a   :  { %586 = vmatprep.subr.bf16.mxu0 %v4515_v13  ;;  %627 = vmatprep.subr.bf16.mxu1 %v4536_v20  ;;  %v4612_v41 = vld [vmem:[#allocation6 + $0x1a0] ss:$16 sps:$4 sm:$0xff]   ;;  %s4614_s23 = sld [smem:[#allocation3 + $0x380]]  ;;  %v4617_v42 = vld [vmem:[#allocation6 + $0x184] ss:$16 sps:$4 sm:$0xff]   ;;  %s116_s2 = scalar_lea.vmem [#allocation4], %s4564_s6 }
  0x6b   :  { %v117_v43 = vld [vmem:[%s116_s2] sm:$0x1]  ;;  %s119_s24 = scalar_lea.vmem [#allocation4], %s4571_s18  ;;  %v4623_v45 = vld [vmem:[#allocation6 + $0x1c8] ss:$16 sps:$4 sm:$0xff]   ;;  %vm167_vm5 = vcmask 1045504  }
  0x6c   :  { %v120_v44 = vld [vmem:[%s119_s24] sm:$0x1]  ;;  %s122_s26 = scalar_lea.vmem [#allocation4], %s4577_s19  ;;  %v4628_v48 = vld [vmem:[#allocation6 + $0x1ac] ss:$16 sps:$4 sm:$0xff]   ;;  %v137_v49 = vrot.slane %v117_v43, 7 }
  0x6d   :  { %587 = vmatpush1.bf16.msra.mxu0 %v4527_v17  ;;  %628 = vmatpush1.bf16.msra.mxu1 %v4545_v23  ;;  %v114_v46 = vld [vmem:[%s113_s25] sm:$0x1]  ;;  %v140_v50 = vrot.slane %v120_v44, 6  ;;  %s125_s27 = scalar_lea.vmem [#allocation4], %s4582_s20  ;;  %v4636_v55 = vld [vmem:[#allocation6 + $0x164] ss:$16 sps:$4 sm:$0xff]  }
  0x6e   :  { %588 = vmatprep.subr.bf16.mxu0 %v4530_v18  ;;  %629 = vmatprep.subr.bf16.mxu1 %v4548_v24  ;;  %v123_v47 = vld [vmem:[%s122_s26] sm:$0x1]  ;;  %v158_v54 = vsel %vm157_vm0, %v114_v46, %v137_v49  ;;  %7089 = vst [vmem:[#allocation20_spill] sm:$0xff] %v4636_v55  ;;  %v4639_v56 = vld [vmem:[#allocation6 + $0x1a8] ss:$16 sps:$4 sm:$0xff]   ;;  %s128_s28 = scalar_lea.vmem [#allocation4], %s4596_s21 }
  0x6f   :  { %v4631_v51 = vld [vmem:[#allocation6 + $0x180] ss:$16 sps:$4 sm:$0xff]   ;;  %v143_v53 = vrot.slane %v123_v47, 5  ;;  %v160_v57 = vsel %vm159_vm1, %v158_v54, %v140_v50  ;;  %v4643_v58 = vld [vmem:[#allocation6 + $0x18c] ss:$16 sps:$4 sm:$0xff]   ;;  %s131_s29 = scalar_lea.vmem [#allocation4], %s4610_s22 }
  0x70   :  { %7088 = vst [vmem:[#allocation19_spill] sm:$0xff] %v4631_v51  ;;  %v126_v52 = vld [vmem:[%s125_s27] sm:$0x1]  ;;  %v4651_v63 = vld [vmem:[#allocation6 + $0x144] ss:$16 sps:$4 sm:$0xff]   ;;  %s134_s30 = scalar_lea.vmem [#allocation4], %s4614_s23 }
  0x71   :  { %589 = vmatpush1.bf16.msra.mxu0 %v4539_v21  ;;  %630 = vmatpush1.bf16.msra.mxu1 %v4557_v27  ;;  %v129_v59 = vld [vmem:[%s128_s28] sm:$0x1]  ;;  %v146_v60 = vrot.slane %v126_v52, 4  ;;  %v162_v62 = vsel %vm161_vm2, %v160_v57, %v143_v53  ;;  %7091 = vst [vmem:[#allocation22_spill] sm:$0xff] %v4651_v63  ;;  %v4654_v43 = vld [vmem:[#allocation6 + $0x188] ss:$16 sps:$4 sm:$0xff]  }
  0x72   :  { %590 = vmatprep.subr.bf16.mxu0 %v4541_v22  ;;  %631 = vmatprep.subr.bf16.mxu1 %v4560_v28  ;;  %v4647_v61 = vld [vmem:[#allocation6 + $0x160] ss:$16 sps:$4 sm:$0xff]   ;;  %v4659_v46 = vld [vmem:[#allocation6 + $0x16c] ss:$16 sps:$4 sm:$0xff]   ;;  %v149_v49 = vrot.slane %v129_v59, 3  ;;  %vm169_vm6 = vcmask 1046528  }
  0x73   :  { %7090 = vst [vmem:[#allocation21_spill] sm:$0xff] %v4647_v61  ;;  %v4656_v44 = vld [vmem:[#allocation6 + $0x140] ss:$16 sps:$4 sm:$0xff]   ;;  %v4662_v50 = vld [vmem:[#allocation6 + $0x124] ss:$16 sps:$4 sm:$0xff]   ;;  %v164_v54 = vsel %vm163_vm3, %v162_v62, %v146_v60  ;;  %s3393_s4 = sld [smem:[#allocation3 + $0x81]] }
  0x74   :  { %7092 = vst [vmem:[#allocation23_spill] sm:$0xff] %v4656_v44  ;;  %v132_v47 = vld [vmem:[%s131_s29] sm:$0x1]  ;;  %7093 = vst [vmem:[#allocation24_spill] sm:$0xff] %v4662_v50  ;;  %v4664_v52 = vld [vmem:[#allocation6 + $0x168] ss:$16 sps:$4 sm:$0xff]   ;;  %v166_v59 = vsel %vm165_vm4, %v164_v54, %v149_v49 }
  0x75   :  { %591 = vmatpush1.bf16.msra.mxu0 %v4551_v25  ;;  %632 = vmatpush1.bf16.msra.mxu1 %v4575_v31  ;;  %7094 = vst [vmem:[#allocation25_spill] sm:$0xff] %v4664_v52  ;;  %v135_v53 = vld [vmem:[%s134_s30] sm:$0x1]  ;;  %v4669_v57 = vld [vmem:[#allocation6 + $0x14c] ss:$16 sps:$4 sm:$0xff]   ;;  %v152_v0 = vrot.slane %v132_v47, 2 }
  0x76   :  { %592 = vmatprep.subr.bf16.mxu0 %v4554_v26  ;;  %633 = vmatprep.subr.bf16.mxu1 %v4580_v32  ;;  %7095 = vst [vmem:[#allocation26_spill] sm:$0xff] %v4669_v57  ;;  %v4679_v60 = vld [vmem:[#allocation6 + $0x148] ss:$16 sps:$4 sm:$0xff]   ;;  %v155_v62 = vrot.slane %v135_v53, 1  ;;  %s3394_s9 = sld [smem:[#allocation3 + $0x101]]  ;;  %vm4413_vm7 = vmmov 0  }
  0x77   :  { %7098 = vst [vmem:[#allocation29_spill] sm:$0xff] %v4679_v60  ;;  %v168_v47 = vsel %vm167_vm5, %v166_v59, %v152_v0  ;;  %v4690_v49 = vld [vmem:[#allocation6 + $0x128] ss:$16 sps:$4 sm:$0xff]   ;;  %v4701_v0 = vld [vmem:[#allocation9 + $0xe0] ss:$16 sps:$4 sm:$0xff]   ;;  %s3392_s10 = sld [smem:[#allocation3 + $0x1]] }
  0x78   :  { %7101 = vst [vmem:[#allocation32_spill] sm:$0xff] %v4690_v49  ;;  %v4692_v54 = vld [vmem:[#allocation9 + $0xe4] ss:$16 sps:$4 sm:$0xff]   ;;  %v170_v53 = vsel %vm169_vm6, %v168_v47, %v155_v62  ;;  %7104 = vst [vmem:[#allocation35_spill] sm:$0xff] %v4701_v0  ;;  %v4713_v62 = vld [vmem:[#allocation9 + $0xc0] ss:$16 sps:$4 sm:$0xff]  }
  0x79   :  { %593 = vmatpush1.bf16.msra.mxu0 %v4567_v29  ;;  %634 = vmatpush1.bf16.msra.mxu1 %v4591_v35  ;;  %7102 = vst [vmem:[#allocation33_spill] sm:$0xff] %v4692_v54  ;;  %v171_v59 = vpack.c.bf16 %v170_v53, %v170_v53  ;;  %7108 = vst [vmem:[#allocation39_spill] sm:$0xff] %v4713_v62  ;;  %v4715_v47 = vld [vmem:[#allocation9 + $0xe8] ss:$16 sps:$4 sm:$0xff]   ;;  %v4718_v53 = vld [vmem:[#allocation9 + $0xcc] ss:$16 sps:$4 sm:$0xff]  }
  0x7a   :  { %594 = vmatprep.subr.bf16.mxu0 %v4569_v30  ;;  %635 = vmatprep.subr.bf16.mxu1 %v4594_v36  ;;  %7109 = vst [vmem:[#allocation40_spill] sm:$0xff] %v4715_v47  ;;  %7110 = vst [vmem:[#allocation41_spill] sm:$0xff] %v4718_v53  ;;  %s3395_s11 = sld [smem:[#allocation3 + $0x181]]  ;;  %s1202_s0 = scalar_lea.vmem [#allocation4], %s3393_s4 }
  0x7b   :  { %s3396_s1 = sld [smem:[#allocation3 + $0x201]] }
  0x7c   :  { %s3397_s12 = sld [smem:[#allocation3 + $0x281]]  ;;  %s1205_s13 = scalar_lea.vmem [#allocation4], %s3394_s9 }
  0x7d   :  { %595 = vmatpush2.bf16.msra.mxu0 %v4585_v33  ;;  %636 = vmatpush2.bf16.msra.mxu1 %v4605_v39  ;;  %s1199_s14 = scalar_lea.vmem [#allocation4], %s3392_s10  ;;  %s3398_s3 = sld [smem:[#allocation3 + $0x301]] }
  0x7e   :  { %596 = vmatprep.subr.bf16.mxu0 %v4588_v34  ;;  %637 = vmatprep.subr.bf16.mxu1 %v4608_v40  ;;  %s3399_s16 = sld [smem:[#allocation3 + $0x381]] }
  0x7f   :  { %s3407_s19 = sld [smem:[#allocation3 + $0x82]] }
  0x80   :  { %s1208_s15 = scalar_lea.vmem [#allocation4], %s3395_s11  ;;  %s5172_s20 = sld [smem:[#allocation3 + $0x102]] }
  0x81   :  { %597 = vmatpush2.bf16.msra.mxu0 %v4599_v37  ;;  %638 = vmatpush2.bf16.msra.mxu1 %v4623_v45  ;;  %s1211_s17 = scalar_lea.vmem [#allocation4], %s3396_s1  ;;  %s5177_s21 = sld [smem:[#allocation3 + $0x2]] }
  0x82   :  { %598 = vmatprep.subr.bf16.mxu0 %v4601_v38  ;;  %639 = vmatprep.subr.bf16.mxu1 %v4628_v48  ;;  %s1214_s5 = scalar_lea.vmem [#allocation4], %s3397_s12  ;;  %s5185_s22 = sld [smem:[#allocation3 + $0x182]] }
  0x83   :  { %s1217_s6 = scalar_lea.vmem [#allocation4], %s3398_s3  ;;  %s5196_s23 = sld [smem:[#allocation3 + $0x202]] }
  0x84   :  { %s1220_s18 = scalar_lea.vmem [#allocation4], %s3399_s16  ;;  %s5207_s24 = sld [smem:[#allocation3 + $0x282]] }
  0x85   :  { %599 = vmatpush2.bf16.msra.mxu0 %v4612_v41  ;;  %640 = vmatpush2.bf16.msra.mxu1 %v4639_v56  ;;  %s1469_s2 = scalar_lea.vmem [#allocation4], %s3407_s19  ;;  %s5220_s27 = sld [smem:[#allocation3 + $0x302]] }
  0x86   :  { %600 = vmatprep.subr.bf16.mxu0 %v4617_v42  ;;  %641 = vmatprep.subr.bf16.mxu1 %v4643_v58  ;;  %s1472_s25 = scalar_lea.vmem [#allocation4], %s5172_s20  ;;  %s5232_s29 = sld [smem:[#allocation3 + $0x382]] }
  0x87   :  { %s1466_s26 = scalar_lea.vmem [#allocation4], %s5177_s21  ;;  %s3421_s11 = sld [smem:[#allocation3 + $0x83]] }
  0x88   :  { %s1475_s28 = scalar_lea.vmem [#allocation4], %s5185_s22  ;;  %s3422_s1 = sld [smem:[#allocation3 + $0x103]] }
  0x89   :  { %601 = vmatpush2.bf16.msra.mxu0 %v4631_v51  ;;  %642 = vmatpush2.bf16.msra.mxu1 %v4654_v43  ;;  %v4677_v51 = vld [vmem:[#allocation6 + $0x104] ss:$16 sps:$4 sm:$0xff]   ;;  %s1478_s30 = scalar_lea.vmem [#allocation4], %s5196_s23  ;;  %s3423_s12 = sld [smem:[#allocation3 + $0x183]] }
  0x8a   :  { %602 = vmatprep.subr.bf16.mxu0 %v4636_v55  ;;  %v4673_v55 = vld [vmem:[#allocation6 + $0x120] ss:$16 sps:$4 sm:$0xff]   ;;  %643 = vmatprep.subr.bf16.mxu1 %v4659_v46  ;;  %7097 = vst [vmem:[#allocation28_spill] sm:$0xff] %v4677_v51  ;;  %s1481_s4 = scalar_lea.vmem [#allocation4], %s5207_s24  ;;  %s3425_s3 = sld [smem:[#allocation3 + $0x283]] }
  0x8b   :  { %7096 = vst [vmem:[#allocation27_spill] sm:$0xff] %v4673_v55  ;;  %s1484_s9 = scalar_lea.vmem [#allocation4], %s5220_s27  ;;  %s3435_s22 = sld [smem:[#allocation3 + $0x84]] }
  0x8c   :  { %s1487_s10 = scalar_lea.vmem [#allocation4], %s5232_s29  ;;  %s3436_s23 = sld [smem:[#allocation3 + $0x104]] }
  0x8d   :  { %603 = vmatpush2.bf16.msra.mxu0 %v4647_v61  ;;  %v4682_v61 = vld [vmem:[#allocation6 + $0x12c] ss:$16 sps:$4 sm:$0xff]   ;;  %644 = vmatpush2.bf16.msra.mxu1 %v4664_v52  ;;  %s3437_s24 = sld [smem:[#allocation3 + $0x184]] }
  0x8e   :  { %604 = vmatprep.subr.bf16.mxu0 %v4651_v63  ;;  %7099 = vst [vmem:[#allocation30_spill] sm:$0xff] %v4682_v61  ;;  %v4687_v63 = vld [vmem:[#allocation6 + $0x100] ss:$16 sps:$4 sm:$0xff]   ;;  %645 = vmatprep.subr.bf16.mxu1 %v4669_v57  ;;  %v4705_v57 = vld [vmem:[#allocation9 + $0xc4] ss:$16 sps:$4 sm:$0xff]   ;;  %s3439_s27 = sld [smem:[#allocation3 + $0x284]] }
  0x8f   :  { %7100 = vst [vmem:[#allocation31_spill] sm:$0xff] %v4687_v63  ;;  %7106 = vst [vmem:[#allocation37_spill] sm:$0xff] %v4705_v57 }
  0x90   :  { %s1748_s19 = scalar_lea.vmem [#allocation4], %s3425_s3  ;;  %s5915_s3 = sld [smem:[#allocation3 + $0x185]] }
  0x91   :  { %605 = vmatpush2.bf16.msra.mxu0 %v4656_v44  ;;  %v4696_v44 = vld [vmem:[#allocation6 + $0x10c] ss:$16 sps:$4 sm:$0xff]   ;;  %646 = vmatpush2.bf16.msra.mxu1 %v4679_v60 }
  0x92   :  { %606 = vmatprep.subr.bf16.mxu0 %v4662_v50  ;;  %7103 = vst [vmem:[#allocation34_spill] sm:$0xff] %v4696_v44  ;;  %647 = vmatprep.subr.bf16.mxu1 %v4682_v61  ;;  %v4703_v50 = vld [vmem:[#allocation6 + $0x108] ss:$16 sps:$4 sm:$0xff]  }
  0x93   :  { %7105 = vst [vmem:[#allocation36_spill] sm:$0xff] %v4703_v50 }
  0x95   :  { %607 = vmatpush2.bf16.msra.mxu0 %v4673_v55  ;;  %v4708_v55 = vld [vmem:[#allocation9 + $0xec] ss:$16 sps:$4 sm:$0xff]   ;;  %648 = vmatpush2.bf16.msra.mxu1 %v4690_v49 }
  0x96   :  { %608 = vmatprep.subr.bf16.mxu0 %v4677_v51  ;;  %7107 = vst [vmem:[#allocation38_spill] sm:$0xff] %v4708_v55  ;;  %649 = vmatprep.subr.bf16.mxu1 %v4696_v44  ;;  %v7111_v51 = vmov 0  }
  0x99   :  { %609 = vmatpush2.bf16.msra.mxu0 %v4687_v63  ;;  %650 = vmatpush2.bf16.msra.mxu1 %v4703_v50  ;;  %v4733_v50 = vld [vmem:[#allocation9 + $0xa0] ss:$16 sps:$4 sm:$0xff]  }
  0x9a   :  { %1091 = vmatprep.subr.bf16.mxu0 %v4692_v54  ;;  %1132 = vmatprep.subr.bf16.mxu1 %v4708_v55  ;;  %v4731_v54 = vld [vmem:[#allocation9 + $0xa4] ss:$16 sps:$4 sm:$0xff]   ;;  %7114 = vst [vmem:[#allocation44_spill] sm:$0xff] %v4733_v50  ;;  %v4878_v55 = vld [vmem:[#allocation9 + $0x120] ss:$16 sps:$4 sm:$0xff]  }
  0x9b   :  { %7113 = vst [vmem:[#allocation43_spill] sm:$0xff] %v4731_v54  ;;  %7163 = vst [vmem:[#allocation93_spill] sm:$0xff] %v4878_v55 }
  0x9c   :  { %611 = vmatmul.mubr.bf16.vlgmr.msra.gmra.mxu0 %v171_v59  ;;  %652 = vmatmul.mubr.bf16.vlgmr.msra.gmra.mxu1 %v171_v59  ;;  %v4738_v59 = vld [vmem:[#allocation9 + $0xa8] ss:$16 sps:$4 sm:$0xff]  }
  0x9d   :  { %1092 = vmatpush1.bf16.msra.mxu0 %v4701_v0  ;;  %1123 = vmatprep.mubr.bf16.mxu0 %v7111_v51  ;;  %v4728_v0 = vld [vmem:[#allocation9 + $0xc8] ss:$16 sps:$4 sm:$0xff]   ;;  %7116 = vst [vmem:[#allocation46_spill] sm:$0xff] %v4738_v59 }
  0x9e   :  { %1093 = vmatprep.subr.bf16.mxu0 %v4705_v57  ;;  %1133 = vmatpush1.bf16.msra.mxu1 %v4715_v47  ;;  %7112 = vst [vmem:[#allocation42_spill] sm:$0xff] %v4728_v0  ;;  %v4735_v57 = vld [vmem:[#allocation9 + $0xac] ss:$16 sps:$4 sm:$0xff]   ;;  %v4860_v47 = vld [vmem:[#allocation9 + $0x144] ss:$16 sps:$4 sm:$0xff]  }
  0x9f   :  { %1164 = vmatprep.mubr.bf16.mxu1 %v7111_v51  ;;  %1134 = vmatprep.subr.bf16.mxu1 %v4718_v53  ;;  %7115 = vst [vmem:[#allocation45_spill] sm:$0xff] %v4735_v57  ;;  %v4743_v51 = vld [vmem:[#allocation9 + $0x84] ss:$16 sps:$4 sm:$0xff]   ;;  %v4750_v53 = vld [vmem:[#allocation9 + $0x88] ss:$16 sps:$4 sm:$0xff]   ;;  %7157 = vst [vmem:[#allocation87_spill] sm:$0xff] %v4860_v47 }
  0xa0   :  { %7117 = vst [vmem:[#allocation47_spill] sm:$0xff] %v4743_v51  ;;  %7120 = vst [vmem:[#allocation50_spill] sm:$0xff] %v4750_v53 }
  0xa1   :  { %1094 = vmatpush1.bf16.msra.mxu0 %v4713_v62  ;;  %v4745_v62 = vld [vmem:[#allocation9 + $0x80] ss:$16 sps:$4 sm:$0xff]  }
  0xa2   :  { %1135 = vmatpush1.bf16.msra.mxu1 %v4728_v0  ;;  %1095 = vmatprep.subr.bf16.mxu0 %v4731_v54  ;;  %7118 = vst [vmem:[#allocation48_spill] sm:$0xff] %v4745_v62  ;;  %v4747_v0 = vld [vmem:[#allocation9 + $0x8c] ss:$16 sps:$4 sm:$0xff]   ;;  %v4762_v54 = vld [vmem:[#allocation9 + $0x68] ss:$16 sps:$4 sm:$0xff]  }
  0xa3   :  { %1136 = vmatprep.subr.bf16.mxu1 %v4735_v57  ;;  %7119 = vst [vmem:[#allocation49_spill] sm:$0xff] %v4747_v0  ;;  %v4757_v57 = vld [vmem:[#allocation9 + $0x60] ss:$16 sps:$4 sm:$0xff]   ;;  %7124 = vst [vmem:[#allocation54_spill] sm:$0xff] %v4762_v54 }
  0xa4   :  { %7122 = vst [vmem:[#allocation52_spill] sm:$0xff] %v4757_v57 }
  0xa5   :  { %1096 = vmatpush1.bf16.msra.mxu0 %v4733_v50  ;;  %v4755_v50 = vld [vmem:[#allocation9 + $0x64] ss:$16 sps:$4 sm:$0xff]  }
  0xa6   :  { %1137 = vmatpush1.bf16.msra.mxu1 %v4738_v59  ;;  %1097 = vmatprep.subr.bf16.mxu0 %v4743_v51  ;;  %7121 = vst [vmem:[#allocation51_spill] sm:$0xff] %v4755_v50  ;;  %v4759_v59 = vld [vmem:[#allocation9 + $0x6c] ss:$16 sps:$4 sm:$0xff]   ;;  %v4774_v51 = vld [vmem:[#allocation9 + $0x48] ss:$16 sps:$4 sm:$0xff]  }
  0xa7   :  { %1138 = vmatprep.subr.bf16.mxu1 %v4747_v0  ;;  %7123 = vst [vmem:[#allocation53_spill] sm:$0xff] %v4759_v59  ;;  %v4769_v0 = vld [vmem:[#allocation9 + $0x40] ss:$16 sps:$4 sm:$0xff]   ;;  %7128 = vst [vmem:[#allocation58_spill] sm:$0xff] %v4774_v51 }
  0xa8   :  { %7126 = vst [vmem:[#allocation56_spill] sm:$0xff] %v4769_v0 }
  0xa9   :  { %1098 = vmatpush1.bf16.msra.mxu0 %v4745_v62  ;;  %v4767_v62 = vld [vmem:[#allocation9 + $0x44] ss:$16 sps:$4 sm:$0xff]  }
  0xaa   :  { %1139 = vmatpush1.bf16.msra.mxu1 %v4750_v53  ;;  %1099 = vmatprep.subr.bf16.mxu0 %v4755_v50  ;;  %7125 = vst [vmem:[#allocation55_spill] sm:$0xff] %v4767_v62  ;;  %v4771_v53 = vld [vmem:[#allocation9 + $0x4c] ss:$16 sps:$4 sm:$0xff]   ;;  %v4786_v50 = vld [vmem:[#allocation9 + $0x28] ss:$16 sps:$4 sm:$0xff]  }
  0xab   :  { %1140 = vmatprep.subr.bf16.mxu1 %v4759_v59  ;;  %7127 = vst [vmem:[#allocation57_spill] sm:$0xff] %v4771_v53  ;;  %v4781_v59 = vld [vmem:[#allocation9 + $0x20] ss:$16 sps:$4 sm:$0xff]   ;;  %7132 = vst [vmem:[#allocation62_spill] sm:$0xff] %v4786_v50 }
  0xac   :  { %7130 = vst [vmem:[#allocation60_spill] sm:$0xff] %v4781_v59 }
  0xad   :  { %1100 = vmatpush1.bf16.msra.mxu0 %v4757_v57  ;;  %v4779_v57 = vld [vmem:[#allocation9 + $0x24] ss:$16 sps:$4 sm:$0xff]  }
  0xae   :  { %1141 = vmatpush1.bf16.msra.mxu1 %v4762_v54  ;;  %1101 = vmatprep.subr.bf16.mxu0 %v4767_v62  ;;  %7129 = vst [vmem:[#allocation59_spill] sm:$0xff] %v4779_v57  ;;  %v4783_v54 = vld [vmem:[#allocation9 + $0x2c] ss:$16 sps:$4 sm:$0xff]   ;;  %v4798_v62 = vld [vmem:[#allocation9 + $0x8] ss:$16 sps:$4 sm:$0xff]  }
  0xaf   :  { %1142 = vmatprep.subr.bf16.mxu1 %v4771_v53  ;;  %7131 = vst [vmem:[#allocation61_spill] sm:$0xff] %v4783_v54  ;;  %v4793_v53 = vld [vmem:[#allocation9] ss:$16 sps:$4 sm:$0xff]   ;;  %7136 = vst [vmem:[#allocation66_spill] sm:$0xff] %v4798_v62 }
  0xb0   :  { %7134 = vst [vmem:[#allocation64_spill] sm:$0xff] %v4793_v53 }
  0xb1   :  { %1102 = vmatpush1.bf16.msra.mxu0 %v4769_v0  ;;  %v4791_v0 = vld [vmem:[#allocation9 + $0x4] ss:$16 sps:$4 sm:$0xff]  }
  0xb2   :  { %1143 = vmatpush1.bf16.msra.mxu1 %v4774_v51  ;;  %1103 = vmatprep.subr.bf16.mxu0 %v4779_v57  ;;  %7133 = vst [vmem:[#allocation63_spill] sm:$0xff] %v4791_v0  ;;  %v4795_v51 = vld [vmem:[#allocation9 + $0xc] ss:$16 sps:$4 sm:$0xff]   ;;  %v4810_v57 = vld [vmem:[#allocation9 + $0x1e8] ss:$16 sps:$4 sm:$0xff]  }
  0xb3   :  { %1144 = vmatprep.subr.bf16.mxu1 %v4783_v54  ;;  %7135 = vst [vmem:[#allocation65_spill] sm:$0xff] %v4795_v51  ;;  %v4805_v54 = vld [vmem:[#allocation9 + $0x1e0] ss:$16 sps:$4 sm:$0xff]   ;;  %7140 = vst [vmem:[#allocation70_spill] sm:$0xff] %v4810_v57 }
  0xb4   :  { %7138 = vst [vmem:[#allocation68_spill] sm:$0xff] %v4805_v54 }
  0xb5   :  { %1104 = vmatpush1.bf16.msra.mxu0 %v4781_v59  ;;  %v4803_v59 = vld [vmem:[#allocation9 + $0x1e4] ss:$16 sps:$4 sm:$0xff]  }
  0xb6   :  { %1145 = vmatpush1.bf16.msra.mxu1 %v4786_v50  ;;  %1105 = vmatprep.subr.bf16.mxu0 %v4791_v0  ;;  %7137 = vst [vmem:[#allocation67_spill] sm:$0xff] %v4803_v59  ;;  %v4807_v50 = vld [vmem:[#allocation9 + $0x1ec] ss:$16 sps:$4 sm:$0xff]   ;;  %v4822_v0 = vld [vmem:[#allocation9 + $0x1c8] ss:$16 sps:$4 sm:$0xff]  }
  0xb7   :  { %1146 = vmatprep.subr.bf16.mxu1 %v4795_v51  ;;  %7139 = vst [vmem:[#allocation69_spill] sm:$0xff] %v4807_v50  ;;  %v4817_v51 = vld [vmem:[#allocation9 + $0x1c0] ss:$16 sps:$4 sm:$0xff]   ;;  %7144 = vst [vmem:[#allocation74_spill] sm:$0xff] %v4822_v0 }
  0xb8   :  { %7142 = vst [vmem:[#allocation72_spill] sm:$0xff] %v4817_v51 }
  0xb9   :  { %1106 = vmatpush1.bf16.msra.mxu0 %v4793_v53  ;;  %v4815_v53 = vld [vmem:[#allocation9 + $0x1c4] ss:$16 sps:$4 sm:$0xff]  }
  0xba   :  { %1147 = vmatpush1.bf16.msra.mxu1 %v4798_v62  ;;  %1107 = vmatprep.subr.bf16.mxu0 %v4803_v59  ;;  %7141 = vst [vmem:[#allocation71_spill] sm:$0xff] %v4815_v53  ;;  %v4819_v62 = vld [vmem:[#allocation9 + $0x1cc] ss:$16 sps:$4 sm:$0xff]   ;;  %v4834_v59 = vld [vmem:[#allocation9 + $0x1a8] ss:$16 sps:$4 sm:$0xff]  }
  0xbb   :  { %1148 = vmatprep.subr.bf16.mxu1 %v4807_v50  ;;  %7143 = vst [vmem:[#allocation73_spill] sm:$0xff] %v4819_v62  ;;  %v4829_v50 = vld [vmem:[#allocation9 + $0x1a0] ss:$16 sps:$4 sm:$0xff]   ;;  %7148 = vst [vmem:[#allocation78_spill] sm:$0xff] %v4834_v59 }
  0xbc   :  { %7146 = vst [vmem:[#allocation76_spill] sm:$0xff] %v4829_v50 }
  0xbd   :  { %1108 = vmatpush2.bf16.msra.mxu0 %v4805_v54  ;;  %v4827_v54 = vld [vmem:[#allocation9 + $0x1a4] ss:$16 sps:$4 sm:$0xff]  }
  0xbe   :  { %1149 = vmatpush2.bf16.msra.mxu1 %v4810_v57  ;;  %1109 = vmatprep.subr.bf16.mxu0 %v4815_v53  ;;  %7145 = vst [vmem:[#allocation75_spill] sm:$0xff] %v4827_v54  ;;  %v4831_v57 = vld [vmem:[#allocation9 + $0x1ac] ss:$16 sps:$4 sm:$0xff]   ;;  %v4846_v53 = vld [vmem:[#allocation9 + $0x188] ss:$16 sps:$4 sm:$0xff]  }
  0xbf   :  { %1150 = vmatprep.subr.bf16.mxu1 %v4819_v62  ;;  %7147 = vst [vmem:[#allocation77_spill] sm:$0xff] %v4831_v57  ;;  %v4841_v62 = vld [vmem:[#allocation9 + $0x180] ss:$16 sps:$4 sm:$0xff]   ;;  %7152 = vst [vmem:[#allocation82_spill] sm:$0xff] %v4846_v53 }
  0xc0   :  { %7150 = vst [vmem:[#allocation80_spill] sm:$0xff] %v4841_v62 }
  0xc1   :  { %1110 = vmatpush2.bf16.msra.mxu0 %v4817_v51  ;;  %v4839_v51 = vld [vmem:[#allocation9 + $0x184] ss:$16 sps:$4 sm:$0xff]  }
  0xc2   :  { %1151 = vmatpush2.bf16.msra.mxu1 %v4822_v0  ;;  %1111 = vmatprep.subr.bf16.mxu0 %v4827_v54  ;;  %7149 = vst [vmem:[#allocation79_spill] sm:$0xff] %v4839_v51  ;;  %v4843_v0 = vld [vmem:[#allocation9 + $0x18c] ss:$16 sps:$4 sm:$0xff]   ;;  %v4857_v54 = vld [vmem:[#allocation9 + $0x168] ss:$16 sps:$4 sm:$0xff]  }
  0xc3   :  { %1152 = vmatprep.subr.bf16.mxu1 %v4831_v57  ;;  %7151 = vst [vmem:[#allocation81_spill] sm:$0xff] %v4843_v0  ;;  %v4853_v57 = vld [vmem:[#allocation9 + $0x160] ss:$16 sps:$4 sm:$0xff]   ;;  %7156 = vst [vmem:[#allocation86_spill] sm:$0xff] %v4857_v54 }
  0xc4   :  { %7154 = vst [vmem:[#allocation84_spill] sm:$0xff] %v4853_v57 }
  0xc5   :  { %1112 = vmatpush2.bf16.msra.mxu0 %v4829_v50  ;;  %v4851_v50 = vld [vmem:[#allocation9 + $0x164] ss:$16 sps:$4 sm:$0xff]  }
  0xc6   :  { %1153 = vmatpush2.bf16.msra.mxu1 %v4834_v59  ;;  %1113 = vmatprep.subr.bf16.mxu0 %v4839_v51  ;;  %7153 = vst [vmem:[#allocation83_spill] sm:$0xff] %v4851_v50  ;;  %v4855_v59 = vld [vmem:[#allocation9 + $0x16c] ss:$16 sps:$4 sm:$0xff]  }
  0xc7   :  { %1154 = vmatprep.subr.bf16.mxu1 %v4843_v0  ;;  %7155 = vst [vmem:[#allocation85_spill] sm:$0xff] %v4855_v59  ;;  %v4862_v51 = vld [vmem:[#allocation9 + $0x14c] ss:$16 sps:$4 sm:$0xff]   ;;  %v4872_v0 = vld [vmem:[#allocation9 + $0x124] ss:$16 sps:$4 sm:$0xff]  }
  0xc8   :  { %7158 = vst [vmem:[#allocation88_spill] sm:$0xff] %v4862_v51  ;;  %7161 = vst [vmem:[#allocation91_spill] sm:$0xff] %v4872_v0 }
  0xc9   :  { %1114 = vmatpush2.bf16.msra.mxu0 %v4841_v62  ;;  %v4866_v62 = vld [vmem:[#allocation9 + $0x140] ss:$16 sps:$4 sm:$0xff]  }
  0xca   :  { %1155 = vmatpush2.bf16.msra.mxu1 %v4846_v53  ;;  %1115 = vmatprep.subr.bf16.mxu0 %v4851_v50  ;;  %7159 = vst [vmem:[#allocation89_spill] sm:$0xff] %v4866_v62  ;;  %v4870_v53 = vld [vmem:[#allocation9 + $0x148] ss:$16 sps:$4 sm:$0xff]   ;;  %v4875_v50 = vld [vmem:[#allocation9 + $0x12c] ss:$16 sps:$4 sm:$0xff]  }
  0xcb   :  { %1156 = vmatprep.subr.bf16.mxu1 %v4855_v59  ;;  %7160 = vst [vmem:[#allocation90_spill] sm:$0xff] %v4870_v53  ;;  %7162 = vst [vmem:[#allocation92_spill] sm:$0xff] %v4875_v50 }
  0xcd   :  { %1116 = vmatpush2.bf16.msra.mxu0 %v4853_v57  ;;  %v4882_v57 = vld [vmem:[#allocation9 + $0x128] ss:$16 sps:$4 sm:$0xff]  }
  0xce   :  { %1157 = vmatpush2.bf16.msra.mxu1 %v4857_v54  ;;  %1117 = vmatprep.subr.bf16.mxu0 %v4860_v47  ;;  %7164 = vst [vmem:[#allocation94_spill] sm:$0xff] %v4882_v57  ;;  %v4884_v54 = vld [vmem:[#allocation9 + $0x104] ss:$16 sps:$4 sm:$0xff]   ;;  %v4887_v47 = vld [vmem:[#allocation9 + $0x10c] ss:$16 sps:$4 sm:$0xff]  }
  0xcf   :  { %1158 = vmatprep.subr.bf16.mxu1 %v4862_v51  ;;  %7165 = vst [vmem:[#allocation95_spill] sm:$0xff] %v4884_v54  ;;  %7166 = vst [vmem:[#allocation96_spill] sm:$0xff] %v4887_v47  ;;  %v4890_v51 = vld [vmem:[#allocation9 + $0x100] ss:$16 sps:$4 sm:$0xff]  }
  0xd0   :  { %7167 = vst [vmem:[#allocation97_spill] sm:$0xff] %v4890_v51 }
  0xd1   :  { %1118 = vmatpush2.bf16.msra.mxu0 %v4866_v62  ;;  %v4894_v62 = vld [vmem:[#allocation9 + $0x108] ss:$16 sps:$4 sm:$0xff]  }
  0xd2   :  { %1159 = vmatpush2.bf16.msra.mxu1 %v4870_v53  ;;  %1119 = vmatprep.subr.bf16.mxu0 %v4872_v0  ;;  %7168 = vst [vmem:[#allocation98_spill] sm:$0xff] %v4894_v62 }
  0xd3   :  { %1160 = vmatprep.subr.bf16.mxu1 %v4875_v50  ;;  %v238_v50 = vlaneseq }
  0xd5   :  { %1120 = vmatpush2.bf16.msra.mxu0 %v4878_v55  ;;  %v4901_v55 = vshrl.u32 %v238_v50, 7 }
  0xd6   :  { %1161 = vmatpush2.bf16.msra.mxu1 %v4882_v57  ;;  %1121 = vmatprep.subr.bf16.mxu0 %v4884_v54  ;;  %v236_v57 = vld [vmem:[#allocation8] sm:$0xf] }
  0xd7   :  { %1162 = vmatprep.subr.bf16.mxu1 %v4887_v47  ;;  %7169 = vst [vmem:[#allocation99_spill] sm:$0xff] %v4901_v55  ;;  %v6679_v53 = vsub.s32 0, %v4901_v55  ;;  %v6680_v54 = vsub.s32 1, %v4901_v55  ;;  %v6684_v59 = vsub.s32 2, %v4901_v55  ;;  %v252_v60 = vsub.s32 3, %v4901_v55 }
  0xd9   :  { %1122 = vmatpush2.bf16.msra.mxu0 %v4890_v51  ;;  %v4907_v0 = vrot.slane %v236_v57, %v6679_v53  ;;  %v4911_v51 = vrot.slane %v236_v57, %v6680_v54  ;;  %v4918_v53 = vrot.slane %v236_v57, %v6684_v59 }
  0xda   :  { %1163 = vmatpush2.bf16.msra.mxu1 %v4894_v62  ;;  %1251 = vmatprep.subr.bf16.mxu0 %v4482_v1 }
  0xdb   :  { %1292 = vmatprep.subr.bf16.mxu1 %v4495_v6  ;;  %7170 = vst [vmem:[#allocation100_spill] sm:$0xff] %v4907_v0  ;;  %7171 = vst [vmem:[#allocation101_spill] sm:$0xff] %v4911_v51 }
  0xdc   :  { %7172 = vst [vmem:[#allocation102_spill] sm:$0xff] %v4918_v53 }
 0x15c   :  { %v612_v62 = vpop.f32.mrf.mxu0  ;;  %v653_v49 = vpop.f32.mrf.mxu1 }
 0x15d   :  { %v613_v1 = vadd.f32 %v612_v62, %v4907_v0 }
 0x15e   :  { %v614_v6 = vpop.f32.mrf.mxu0  ;;  %v655_v54 = vpop.f32.mrf.mxu1 }
 0x15f   :  { %v3322_v47 = vmul.f32 -1.442695, %v613_v1  ;;  %v615_v50 = vadd.f32 %v614_v6, %v4911_v51  ;;  %v654_v1 = vadd.f32 %v653_v49, %v4918_v53  ;;  %v4924_v6 = vrot.slane %v236_v57, %v252_v60 }
 0x160   :  { %v616_v63 = vpop.f32.mrf.mxu0  ;;  %v657_v62 = vpop.f32.mrf.mxu1 }
 0x161   :  { %3744 = vpow2.f32 %v3322_v47  ;;  %v3323_v44 = vmul.f32 -1.442695, %v615_v50  ;;  %v3324_v63 = vmul.f32 -1.442695, %v654_v1  ;;  %v656_v47 = vadd.f32 %v655_v54, %v4924_v6 }
 0x162   :  { %v617_v61 = vpop.f32.mrf.mxu0  ;;  %v658_v0 = vpop.f32.mrf.mxu1 }
 0x163   :  { %3746 = vpow2.f32 %v3323_v44 }
 0x164   :  { %3748 = vpow2.f32 %v3324_v63 }
 0x165   :  { %3750 = vtanh.f32 %v656_v47  ;;  %v7201_v47 = vld [vmem:[#allocation46_spill] sm:$0xff] }
 0x16e   :  { %v3745_v61 = vpop.eup %3744 }
 0x16f   :  { %v669_v44 = vadd.f32 1.0, %v3745_v61 }
 0x170   :  { %v3747_v50 = vpop.eup %3746 }
 0x171   :  { %3752 = vrcp.f32 %v669_v44  ;;  %v670_v59 = vadd.f32 1.0, %v3747_v50  ;;  %v3749_v51 = vpop.eup %3748  ;;  %v7202_v44 = vld [vmem:[#allocation49_spill] sm:$0xff]  ;;  %v7203_v50 = vld [vmem:[#allocation48_spill] sm:$0xff] }
 0x172   :  { %v3751_v62 = vpop.eup %3750  ;;  %v671_v0 = vadd.f32 1.0, %v3749_v51  ;;  %v7200_v51 = vld [vmem:[#allocation47_spill] sm:$0xff] }
 0x173   :  { %3754 = vrcp.f32 %v670_v59  ;;  %v7199_v59 = vld [vmem:[#allocation44_spill] sm:$0xff] }
 0x174   :  { %3756 = vrcp.f32 %v671_v0  ;;  %v7206_v0 = vld [vmem:[#allocation53_spill] sm:$0xff] }
 0x17e   :  { %v3753_v52 = vpop.eup %3752 }
 0x17f   :  { %v680_v55 = vmul.f32 %v3753_v52, %v3751_v62  ;;  %v7197_v52 = vld [vmem:[#allocation42_spill] sm:$0xff]  ;;  %v7204_v62 = vld [vmem:[#allocation51_spill] sm:$0xff] }
 0x180   :  { %v3755_v49 = vpop.eup %3754 }
 0x181   :  { %v679_v53 = vmul.f32 0.0, %v3755_v49  ;;  %v3757_v54 = vpop.eup %3756  ;;  %v7205_v49 = vld [vmem:[#allocation50_spill] sm:$0xff] }
 0x183   :  { %v4927_v57 = vadd.f32 %v680_v55, %v679_v53  ;;  %v7192_v55 = vld [vmem:[#allocation37_spill] sm:$0xff] }
 0x184   :  { %v7198_v53 = vld [vmem:[#allocation45_spill] sm:$0xff] }
 0x185   :  { %3758 = vtanh.f32 %v4927_v57 }
 0x192   :  { %v3759_v1 = vpop.eup %3758 }
 0x193   :  { %v683_v63 = vmul.f32 %v3759_v1, %v3757_v54  ;;  %v7207_v54 = vld [vmem:[#allocation52_spill] sm:$0xff]  ;;  %v7208_v1 = vld [vmem:[#allocation55_spill] sm:$0xff] }
 0x195   :  { %v684_v61 = vpack.c.bf16 %v683_v63, %v683_v63  ;;  %v7209_v63 = vld [vmem:[#allocation54_spill] sm:$0xff] }
 0x197   :  { %1124 = vmatmul.mubr.bf16.vlgmr.msra.gmra.mxu0 %v684_v61  ;;  %1165 = vmatmul.mubr.bf16.vlgmr.msra.gmra.mxu1 %v684_v61 }
 0x198   :  { %1252 = vmatpush1.bf16.msra.mxu0 %v4484_v2  ;;  %1283 = vmatprep.mubr.bf16.mxu0 %v684_v61  ;;  %v1203_v2 = vld [vmem:[%s1202_s0] sm:$0x1]  ;;  %s3420_s0 = sld [smem:[#allocation3 + $0x3]] }
 0x199   :  { %1324 = vmatprep.mubr.bf16.mxu1 %v684_v61  ;;  %1253 = vmatprep.subr.bf16.mxu0 %v4487_v3  ;;  %v1206_v3 = vld [vmem:[%s1205_s13] sm:$0x1]  ;;  %v7210_v61 = vld [vmem:[#allocation57_spill] sm:$0xff]  ;;  %s3424_s13 = sld [smem:[#allocation3 + $0x203]] }
 0x19a   :  { %1293 = vmatpush1.bf16.msra.mxu1 %v4497_v7  ;;  %v1209_v7 = vld [vmem:[%s1208_s15] sm:$0x1]  ;;  %s1739_s15 = scalar_lea.vmem [#allocation4], %s3422_s1 }
 0x19b   :  { %1294 = vmatprep.subr.bf16.mxu1 %v4507_v10  ;;  %v1212_v10 = vld [vmem:[%s1211_s17] sm:$0x1]  ;;  %s3426_s17 = sld [smem:[#allocation3 + $0x303]] }
 0x19c   :  { %1254 = vmatpush1.bf16.msra.mxu0 %v4490_v4  ;;  %v1223_v4 = vrot.slane %v1203_v2, 7  ;;  %v7211_v2 = vld [vmem:[#allocation56_spill] sm:$0xff] }
 0x19d   :  { %1255 = vmatprep.subr.bf16.mxu0 %v4493_v5  ;;  %v1200_v5 = vld [vmem:[%s1199_s14] sm:$0x1]  ;;  %s1736_s14 = scalar_lea.vmem [#allocation4], %s3421_s11  ;;  %s2015_s11 = scalar_lea.vmem [#allocation4], %s3439_s27 }
 0x19e   :  { %1295 = vmatpush1.bf16.msra.mxu1 %v4509_v11  ;;  %v1229_v11 = vrot.slane %v1209_v7, 5  ;;  %v7215_v7 = vld [vmem:[#allocation60_spill] sm:$0xff]  ;;  %s1733_s16 = scalar_lea.vmem [#allocation4], %s3420_s0  ;;  %s3465_s27 = sld [smem:[#allocation3 + $0x186]] }
 0x19f   :  { %1296 = vmatprep.subr.bf16.mxu1 %v4517_v14  ;;  %v1232_v14 = vrot.slane %v1212_v10, 4  ;;  %v7218_v10 = vld [vmem:[#allocation65_spill] sm:$0xff] }
 0x1a0   :  { %1256 = vmatpush1.bf16.msra.mxu0 %v4500_v8  ;;  %v1226_v8 = vrot.slane %v1206_v3, 6  ;;  %v7212_v3 = vld [vmem:[#allocation59_spill] sm:$0xff] }
 0x1a1   :  { %1257 = vmatprep.subr.bf16.mxu0 %v4504_v9  ;;  %v1243_v9 = vsel %vm157_vm0, %v1200_v5, %v1223_v4  ;;  %v7213_v4 = vld [vmem:[#allocation58_spill] sm:$0xff]  ;;  %v7214_v5 = vld [vmem:[#allocation61_spill] sm:$0xff]  ;;  %s1751_s20 = scalar_lea.vmem [#allocation4], %s3426_s17  ;;  %s5937_s17 = sld [smem:[#allocation3 + $0x285]] }
 0x1a2   :  { %1297 = vmatpush1.bf16.msra.mxu1 %v4521_v15  ;;  %v7173_v15 = vld [vmem:[#allocation19_spill] sm:$0xff] }
 0x1a3   :  { %1298 = vmatprep.subr.bf16.mxu1 %v4524_v16 }
 0x1a4   :  { %1258 = vmatpush1.bf16.msra.mxu0 %v4513_v12  ;;  %v1244_v12 = vsel %vm159_vm1, %v1243_v9, %v1226_v8  ;;  %v7216_v8 = vld [vmem:[#allocation63_spill] sm:$0xff]  ;;  %v7217_v9 = vld [vmem:[#allocation62_spill] sm:$0xff] }
 0x1a5   :  { %1259 = vmatprep.subr.bf16.mxu0 %v4515_v13  ;;  %v1215_v13 = vld [vmem:[%s1214_s5] sm:$0x1]  ;;  %v1245_v16 = vsel %vm161_vm2, %v1244_v12, %v1229_v11  ;;  %v7219_v11 = vld [vmem:[#allocation64_spill] sm:$0xff]  ;;  %v7220_v12 = vld [vmem:[#allocation67_spill] sm:$0xff]  ;;  %s1742_s5 = scalar_lea.vmem [#allocation4], %s3423_s12  ;;  %s3449_s12 = sld [smem:[#allocation3 + $0x85]] }
 0x1a6   :  { %1299 = vmatpush1.bf16.msra.mxu1 %v4533_v19  ;;  %v1235_v19 = vrot.slane %v1215_v13, 3  ;;  %v7221_v13 = vld [vmem:[#allocation66_spill] sm:$0xff] }
 0x1a7   :  { %1300 = vmatprep.subr.bf16.mxu1 %v4536_v20  ;;  %v1246_v20 = vsel %vm163_vm3, %v1245_v16, %v1232_v14  ;;  %v7222_v14 = vld [vmem:[#allocation69_spill] sm:$0xff]  ;;  %v7224_v16 = vld [vmem:[#allocation71_spill] sm:$0xff] }
 0x1a8   :  { %1260 = vmatpush1.bf16.msra.mxu0 %v4527_v17  ;;  %v7174_v17 = vld [vmem:[#allocation20_spill] sm:$0xff] }
 0x1a9   :  { %1261 = vmatprep.subr.bf16.mxu0 %v4530_v18  ;;  %v1218_v18 = vld [vmem:[%s1217_s6] sm:$0x1]  ;;  %s3427_s6 = sld [smem:[#allocation3 + $0x383]] }
 0x1aa   :  { %1301 = vmatpush1.bf16.msra.mxu1 %v4545_v23  ;;  %v1221_v23 = vld [vmem:[%s1220_s18] sm:$0x1]  ;;  %s1745_s18 = scalar_lea.vmem [#allocation4], %s3424_s13  ;;  %s5902_s13 = sld [smem:[#allocation3 + $0x105]] }
 0x1ab   :  { %1302 = vmatprep.subr.bf16.mxu1 %v4548_v24  ;;  %v1238_v24 = vrot.slane %v1218_v18, 2  ;;  %v7226_v18 = vld [vmem:[#allocation73_spill] sm:$0xff] }
 0x1ac   :  { %1262 = vmatpush1.bf16.msra.mxu0 %v4539_v21  ;;  %v7175_v21 = vld [vmem:[#allocation21_spill] sm:$0xff] }
 0x1ad   :  { %1263 = vmatprep.subr.bf16.mxu0 %v4541_v22  ;;  %v7176_v22 = vld [vmem:[#allocation22_spill] sm:$0xff] }
 0x1ae   :  { %1303 = vmatpush1.bf16.msra.mxu1 %v4557_v27  ;;  %v7178_v27 = vld [vmem:[#allocation26_spill] sm:$0xff] }
 0x1af   :  { %1304 = vmatprep.subr.bf16.mxu1 %v4560_v28  ;;  %v7179_v28 = vld [vmem:[#allocation23_spill] sm:$0xff]  ;;  %s1754_s21 = scalar_lea.vmem [#allocation4], %s3427_s6 }
 0x1b0   :  { %1264 = vmatpush1.bf16.msra.mxu0 %v4551_v25  ;;  %v7177_v25 = vld [vmem:[#allocation25_spill] sm:$0xff] }
 0x1b1   :  { %1265 = vmatprep.subr.bf16.mxu0 %v4554_v26  ;;  %v1247_v26 = vsel %vm165_vm4, %v1246_v20, %v1235_v19  ;;  %v7227_v19 = vld [vmem:[#allocation72_spill] sm:$0xff]  ;;  %v7228_v20 = vld [vmem:[#allocation75_spill] sm:$0xff] }
 0x1b2   :  { %1305 = vmatpush1.bf16.msra.mxu1 %v4575_v31  ;;  %v1248_v31 = vsel %vm167_vm5, %v1247_v26, %v1238_v24  ;;  %v7232_v24 = vld [vmem:[#allocation79_spill] sm:$0xff]  ;;  %v7234_v26 = vld [vmem:[#allocation81_spill] sm:$0xff] }
 0x1b3   :  { %1306 = vmatprep.subr.bf16.mxu1 %v4580_v32  ;;  %v7181_v32 = vld [vmem:[#allocation29_spill] sm:$0xff] }
 0x1b4   :  { %1266 = vmatpush1.bf16.msra.mxu0 %v4567_v29  ;;  %v1241_v29 = vrot.slane %v1221_v23, 1  ;;  %v7231_v23 = vld [vmem:[#allocation76_spill] sm:$0xff] }
 0x1b5   :  { %1267 = vmatprep.subr.bf16.mxu0 %v4569_v30  ;;  %v7180_v30 = vld [vmem:[#allocation24_spill] sm:$0xff] }
 0x1b6   :  { %1307 = vmatpush1.bf16.msra.mxu1 %v4591_v35  ;;  %v1249_v35 = vsel %vm169_vm6, %v1248_v31, %v1241_v29  ;;  %v7237_v29 = vld [vmem:[#allocation82_spill] sm:$0xff]  ;;  %v7239_v31 = vld [vmem:[#allocation84_spill] sm:$0xff] }
 0x1b7   :  { %1308 = vmatprep.subr.bf16.mxu1 %v4594_v36  ;;  %v7184_v36 = vld [vmem:[#allocation28_spill] sm:$0xff] }
 0x1b8   :  { %1268 = vmatpush2.bf16.msra.mxu0 %v4585_v33  ;;  %v7182_v33 = vld [vmem:[#allocation30_spill] sm:$0xff] }
 0x1b9   :  { %1269 = vmatprep.subr.bf16.mxu0 %v4588_v34  ;;  %v7183_v34 = vld [vmem:[#allocation27_spill] sm:$0xff] }
 0x1ba   :  { %1309 = vmatpush2.bf16.msra.mxu1 %v4605_v39  ;;  %v7186_v39 = vld [vmem:[#allocation34_spill] sm:$0xff] }
 0x1bb   :  { %1310 = vmatprep.subr.bf16.mxu1 %v4608_v40  ;;  %v7187_v40 = vld [vmem:[#allocation31_spill] sm:$0xff] }
 0x1bc   :  { %1270 = vmatpush2.bf16.msra.mxu0 %v4599_v37  ;;  %v7185_v37 = vld [vmem:[#allocation32_spill] sm:$0xff] }
 0x1bd   :  { %1271 = vmatprep.subr.bf16.mxu0 %v4601_v38  ;;  %v1250_v38 = vpack.c.bf16 %v1249_v35, %v1249_v35  ;;  %v7243_v35 = vld [vmem:[#allocation89_spill] sm:$0xff] }
 0x1be   :  { %1311 = vmatpush2.bf16.msra.mxu1 %v4623_v45  ;;  %v7190_v45 = vld [vmem:[#allocation38_spill] sm:$0xff] }
 0x1bf   :  { %1312 = vmatprep.subr.bf16.mxu1 %v4628_v48  ;;  %v7191_v48 = vld [vmem:[#allocation35_spill] sm:$0xff] }
 0x1c0   :  { %1272 = vmatpush2.bf16.msra.mxu0 %v4612_v41  ;;  %v7188_v41 = vld [vmem:[#allocation33_spill] sm:$0xff] }
 0x1c1   :  { %1273 = vmatprep.subr.bf16.mxu0 %v4617_v42  ;;  %v7189_v42 = vld [vmem:[#allocation36_spill] sm:$0xff] }
 0x1c2   :  { %1313 = vmatpush2.bf16.msra.mxu1 %v4639_v56  ;;  %v7193_v56 = vld [vmem:[#allocation40_spill] sm:$0xff] }
 0x1c3   :  { %1314 = vmatprep.subr.bf16.mxu1 %v4643_v58  ;;  %v7194_v58 = vld [vmem:[#allocation41_spill] sm:$0xff] }
 0x1c4   :  { %1274 = vmatpush2.bf16.msra.mxu0 %v7173_v15  ;;  %v7223_v15 = vld [vmem:[#allocation68_spill] sm:$0xff] }
 0x1c5   :  { %1275 = vmatprep.subr.bf16.mxu0 %v7174_v17  ;;  %v7225_v17 = vld [vmem:[#allocation70_spill] sm:$0xff] }
 0x1c6   :  { %1315 = vmatpush2.bf16.msra.mxu1 %v4654_v43  ;;  %v7195_v43 = vld [vmem:[#allocation39_spill] sm:$0xff] }
 0x1c7   :  { %1316 = vmatprep.subr.bf16.mxu1 %v4659_v46  ;;  %v7196_v46 = vld [vmem:[#allocation43_spill] sm:$0xff] }
 0x1c8   :  { %1276 = vmatpush2.bf16.msra.mxu0 %v7175_v21  ;;  %v7229_v21 = vld [vmem:[#allocation74_spill] sm:$0xff] }
 0x1c9   :  { %1277 = vmatprep.subr.bf16.mxu0 %v7176_v22  ;;  %v7230_v22 = vld [vmem:[#allocation77_spill] sm:$0xff] }
 0x1ca   :  { %1317 = vmatpush2.bf16.msra.mxu1 %v7177_v25  ;;  %v7233_v25 = vld [vmem:[#allocation78_spill] sm:$0xff] }
 0x1cb   :  { %1318 = vmatprep.subr.bf16.mxu1 %v7178_v27  ;;  %v7235_v27 = vld [vmem:[#allocation80_spill] sm:$0xff] }
 0x1cc   :  { %1278 = vmatpush2.bf16.msra.mxu0 %v7179_v28  ;;  %v7236_v28 = vld [vmem:[#allocation83_spill] sm:$0xff] }
 0x1cd   :  { %1279 = vmatprep.subr.bf16.mxu0 %v7180_v30  ;;  %v7238_v30 = vld [vmem:[#allocation85_spill] sm:$0xff] }
 0x1ce   :  { %1319 = vmatpush2.bf16.msra.mxu1 %v7181_v32  ;;  %v7240_v32 = vld [vmem:[#allocation87_spill] sm:$0xff] }
 0x1cf   :  { %1320 = vmatprep.subr.bf16.mxu1 %v7182_v33  ;;  %v7241_v33 = vld [vmem:[#allocation86_spill] sm:$0xff] }
 0x1d0   :  { %1280 = vmatpush2.bf16.msra.mxu0 %v7183_v34  ;;  %v7242_v34 = vld [vmem:[#allocation88_spill] sm:$0xff] }
 0x1d1   :  { %1281 = vmatprep.subr.bf16.mxu0 %v7184_v36  ;;  %v7244_v36 = vld [vmem:[#allocation91_spill] sm:$0xff] }
 0x1d2   :  { %1321 = vmatpush2.bf16.msra.mxu1 %v7185_v37  ;;  %v7245_v37 = vld [vmem:[#allocation90_spill] sm:$0xff] }
 0x1d3   :  { %1322 = vmatprep.subr.bf16.mxu1 %v7186_v39  ;;  %v7247_v39 = vld [vmem:[#allocation93_spill] sm:$0xff] }
 0x1d4   :  { %1282 = vmatpush2.bf16.msra.mxu0 %v7187_v40  ;;  %v7248_v40 = vld [vmem:[#allocation95_spill] sm:$0xff] }
 0x1d5   :  { %1358 = vmatprep.subr.bf16.mxu0 %v7188_v41  ;;  %v7249_v41 = vld [vmem:[#allocation94_spill] sm:$0xff] }
 0x1d6   :  { %1323 = vmatpush2.bf16.msra.mxu1 %v7189_v42  ;;  %v7250_v42 = vld [vmem:[#allocation96_spill] sm:$0xff] }
 0x1d7   :  { %1284 = vmatmul.mubr.bf16.vlgmr.msra.gmra.mxu0 %v1250_v38  ;;  %1399 = vmatprep.subr.bf16.mxu1 %v7190_v45  ;;  %v7251_v45 = vld [vmem:[#allocation97_spill] sm:$0xff] }
 0x1d8   :  { %1359 = vmatpush1.bf16.msra.mxu0 %v7191_v48  ;;  %v5062_v48 = vld [vmem:[#allocation6 + $0xe4] ss:$16 sps:$4 sm:$0xff]  }
 0x1d9   :  { %1325 = vmatmul.mubr.bf16.vlgmr.msra.gmra.mxu1 %v1250_v38  ;;  %1360 = vmatprep.subr.bf16.mxu0 %v7192_v55  ;;  %v7246_v38 = vld [vmem:[#allocation92_spill] sm:$0xff]  ;;  %v7252_v55 = vld [vmem:[#allocation98_spill] sm:$0xff] }
 0x1da   :  { %1400 = vmatpush1.bf16.msra.mxu1 %v7193_v56  ;;  %v5066_v56 = vld [vmem:[#allocation6 + $0xec] ss:$16 sps:$4 sm:$0xff]  }
 0x1db   :  { %1401 = vmatprep.subr.bf16.mxu1 %v7194_v58  ;;  %v749_v58 = vld [vmem:[#allocation11] sm:$0xf] }
 0x1dc   :  { %1361 = vmatpush1.bf16.msra.mxu0 %v7195_v43  ;;  %v7253_v43 = vld [vmem:[#allocation99_spill] sm:$0xff] }
 0x1dd   :  { %1362 = vmatprep.subr.bf16.mxu0 %v7196_v46  ;;  %v7254_v46 = vsub.s32 0, %v7253_v43 }
 0x1de   :  { %1402 = vmatpush1.bf16.msra.mxu1 %v7197_v52 }
 0x1df   :  { %1403 = vmatprep.subr.bf16.mxu1 %v7198_v53  ;;  %v5071_v52 = vrot.slane %v749_v58, %v7254_v46  ;;  %v7255_v53 = vsub.s32 1, %v7253_v43 }
 0x1e0   :  { %1363 = vmatpush1.bf16.msra.mxu0 %v7199_v59 }
 0x1e1   :  { %1364 = vmatprep.subr.bf16.mxu0 %v7200_v51  ;;  %v5075_v59 = vrot.slane %v749_v58, %v7255_v53 }
 0x1e2   :  { %1404 = vmatpush1.bf16.msra.mxu1 %v7201_v47 }
 0x1e3   :  { %1405 = vmatprep.subr.bf16.mxu1 %v7202_v44 }
 0x1e4   :  { %1365 = vmatpush1.bf16.msra.mxu0 %v7203_v50 }
 0x1e5   :  { %1366 = vmatprep.subr.bf16.mxu0 %v7204_v62 }
 0x1e6   :  { %1406 = vmatpush1.bf16.msra.mxu1 %v7205_v49 }
 0x1e7   :  { %1407 = vmatprep.subr.bf16.mxu1 %v7206_v0 }
 0x1e8   :  { %1367 = vmatpush1.bf16.msra.mxu0 %v7207_v54 }
 0x1e9   :  { %1368 = vmatprep.subr.bf16.mxu0 %v7208_v1 }
 0x1ea   :  { %1408 = vmatpush1.bf16.msra.mxu1 %v7209_v63 }
 0x1eb   :  { %1409 = vmatprep.subr.bf16.mxu1 %v7210_v61 }
 0x1ec   :  { %1369 = vmatpush1.bf16.msra.mxu0 %v7211_v2 }
 0x1ed   :  { %1370 = vmatprep.subr.bf16.mxu0 %v7212_v3  ;;  %v7256_v3 = vsub.s32 2, %v7253_v43 }
 0x1ee   :  { %1410 = vmatpush1.bf16.msra.mxu1 %v7213_v4 }
 0x1ef   :  { %1411 = vmatprep.subr.bf16.mxu1 %v7214_v5  ;;  %v5081_v4 = vrot.slane %v749_v58, %v7256_v3 }
 0x1f0   :  { %1371 = vmatpush1.bf16.msra.mxu0 %v7215_v7  ;;  %v5086_v7 = vrot.slane %v749_v58, %v252_v60 }
 0x1f1   :  { %1372 = vmatprep.subr.bf16.mxu0 %v7216_v8 }
 0x1f2   :  { %1412 = vmatpush1.bf16.msra.mxu1 %v7217_v9 }
 0x1f3   :  { %1413 = vmatprep.subr.bf16.mxu1 %v7218_v10 }
 0x1f4   :  { %1373 = vmatpush1.bf16.msra.mxu0 %v7219_v11 }
 0x1f5   :  { %1374 = vmatprep.subr.bf16.mxu0 %v7220_v12 }
 0x1f6   :  { %1414 = vmatpush1.bf16.msra.mxu1 %v7221_v13 }
 0x1f7   :  { %1415 = vmatprep.subr.bf16.mxu1 %v7222_v14 }
 0x1f8   :  { %1375 = vmatpush2.bf16.msra.mxu0 %v7223_v15 }
 0x1f9   :  { %1376 = vmatprep.subr.bf16.mxu0 %v7224_v16 }
 0x1fa   :  { %1416 = vmatpush2.bf16.msra.mxu1 %v7225_v17 }
 0x1fb   :  { %1417 = vmatprep.subr.bf16.mxu1 %v7226_v18 }
 0x1fc   :  { %1377 = vmatpush2.bf16.msra.mxu0 %v7227_v19 }
 0x1fd   :  { %1378 = vmatprep.subr.bf16.mxu0 %v7228_v20 }
 0x1fe   :  { %1418 = vmatpush2.bf16.msra.mxu1 %v7229_v21 }
 0x1ff   :  { %1419 = vmatprep.subr.bf16.mxu1 %v7230_v22 }
 0x200   :  { %1379 = vmatpush2.bf16.msra.mxu0 %v7231_v23 }
 0x201   :  { %1380 = vmatprep.subr.bf16.mxu0 %v7232_v24 }
 0x202   :  { %1420 = vmatpush2.bf16.msra.mxu1 %v7233_v25 }
 0x203   :  { %1421 = vmatprep.subr.bf16.mxu1 %v7234_v26 }
 0x204   :  { %1381 = vmatpush2.bf16.msra.mxu0 %v7235_v27 }
 0x205   :  { %1382 = vmatprep.subr.bf16.mxu0 %v7236_v28 }
 0x206   :  { %1422 = vmatpush2.bf16.msra.mxu1 %v7237_v29 }
 0x207   :  { %1423 = vmatprep.subr.bf16.mxu1 %v7238_v30 }
 0x208   :  { %1383 = vmatpush2.bf16.msra.mxu0 %v7239_v31 }
 0x209   :  { %1384 = vmatprep.subr.bf16.mxu0 %v7240_v32 }
 0x20a   :  { %1424 = vmatpush2.bf16.msra.mxu1 %v7241_v33 }
 0x20b   :  { %1425 = vmatprep.subr.bf16.mxu1 %v7242_v34 }
 0x20c   :  { %1385 = vmatpush2.bf16.msra.mxu0 %v7243_v35 }
 0x20d   :  { %1386 = vmatprep.subr.bf16.mxu0 %v7244_v36 }
 0x20e   :  { %1426 = vmatpush2.bf16.msra.mxu1 %v7245_v37 }
 0x20f   :  { %1427 = vmatprep.subr.bf16.mxu1 %v7246_v38 }
 0x210   :  { %1387 = vmatpush2.bf16.msra.mxu0 %v7247_v39 }
 0x211   :  { %1388 = vmatprep.subr.bf16.mxu0 %v7248_v40 }
 0x212   :  { %1428 = vmatpush2.bf16.msra.mxu1 %v7249_v41 }
 0x213   :  { %1429 = vmatprep.subr.bf16.mxu1 %v7250_v42 }
 0x214   :  { %1389 = vmatpush2.bf16.msra.mxu0 %v7251_v45 }
 0x215   :  { %1518 = vmatprep.subr.bf16.mxu0 %v5062_v48 }
 0x216   :  { %1430 = vmatpush2.bf16.msra.mxu1 %v7252_v55 }
 0x217   :  { %1559 = vmatprep.subr.bf16.mxu1 %v5066_v56 }
 0x257   :  { %v1125_v51 = vpop.f32.mrf.mxu0  ;;  %v1166_v47 = vpop.f32.mrf.mxu1 }
 0x258   :  { %v1126_v44 = vadd.f32 %v1125_v51, %v5071_v52  ;;  %v1167_v5 = vadd.f32 %v1166_v47, %v5081_v4 }
 0x259   :  { %v1127_v50 = vpop.f32.mrf.mxu0  ;;  %v1168_v62 = vpop.f32.mrf.mxu1 }
 0x25a   :  { %v3389_v49 = vmul.f32 -1.442695, %v1126_v44  ;;  %v1128_v0 = vadd.f32 %v1127_v50, %v5075_v59  ;;  %v3391_v8 = vmul.f32 -1.442695, %v1167_v5  ;;  %v1169_v10 = vadd.f32 %v1168_v62, %v5086_v7 }
 0x25b   :  { %v1129_v54 = vpop.f32.mrf.mxu0  ;;  %v1170_v1 = vpop.f32.mrf.mxu1 }
 0x25c   :  { %3760 = vpow2.f32 %v3389_v49  ;;  %v3390_v63 = vmul.f32 -1.442695, %v1128_v0  ;;  %v7257_v49 = vld [vmem:[#allocation100_spill] sm:$0xff] }
 0x25d   :  { %v1130_v61 = vpop.f32.mrf.mxu0  ;;  %v1171_v2 = vpop.f32.mrf.mxu1 }
 0x25e   :  { %3762 = vpow2.f32 %v3390_v63  ;;  %v7258_v61 = vld [vmem:[#allocation101_spill] sm:$0xff] }
 0x25f   :  { %3764 = vpow2.f32 %v3391_v8 }
 0x269   :  { %v3761_v9 = vpop.eup %3760 }
 0x26a   :  { %v1182_v11 = vadd.f32 1.0, %v3761_v9 }
 0x26b   :  { %v3763_v12 = vpop.eup %3762 }
 0x26c   :  { %3766 = vrcp.f32 %v1182_v11  ;;  %v1183_v13 = vadd.f32 1.0, %v3763_v12  ;;  %v3765_v14 = vpop.eup %3764  ;;  %v7259_v12 = vld [vmem:[#allocation102_spill] sm:$0xff] }
 0x26d   :  { %3768 = vtanh.f32 %v1169_v10  ;;  %v1184_v53 = vadd.f32 1.0, %v3765_v14 }
 0x26e   :  { %3770 = vrcp.f32 %v1183_v13 }
 0x26f   :  { %3772 = vrcp.f32 %v1184_v53 }
 0x279   :  { %v3767_v15 = vpop.eup %3766 }
 0x27a   :  { %v3769_v17 = vpop.eup %3768 }
 0x27b   :  { %v3771_v46 = vpop.eup %3770  ;;  %v1193_v43 = vmul.f32 %v3769_v17, %v3767_v15 }
 0x27c   :  { %v1192_v51 = vmul.f32 0.0, %v3771_v46  ;;  %v3773_v58 = vpop.eup %3772 }
 0x27e   :  { %v5089_v60 = vadd.f32 %v1193_v43, %v1192_v51 }
 0x280   :  { %3774 = vtanh.f32 %v5089_v60 }
 0x28d   :  { %v3775_v47 = vpop.eup %3774 }
 0x28e   :  { %v1196_v44 = vmul.f32 %v3775_v47, %v3773_v58 }
 0x290   :  { %v1197_v50 = vpack.c.bf16 %v1196_v44, %v1196_v44 }
 0x292   :  { %1390 = vmatprep.mubr.bf16.mxu0 %v1197_v50  ;;  %1431 = vmatprep.mubr.bf16.mxu1 %v1197_v50 }
 0x297   :  { %v1285_v62 = vpop.f32.mrf.mxu0 }
 0x298   :  { %v1286_v0 = vadd.f32 %v1285_v62, %v7257_v49 }
 0x299   :  { %v1287_v54 = vpop.f32.mrf.mxu0  ;;  %v1326_v1 = vpop.f32.mrf.mxu1 }
 0x29a   :  { %v3400_v63 = vmul.f32 -1.442695, %v1286_v0  ;;  %v1288_v2 = vadd.f32 %v1287_v54, %v7258_v61  ;;  %v1327_v13 = vadd.f32 %v1326_v1, %v7259_v12 }
 0x29b   :  { %v1289_v3 = vpop.f32.mrf.mxu0  ;;  %v1328_v5 = vpop.f32.mrf.mxu1 }
 0x29c   :  { %3776 = vpow2.f32 %v3400_v63  ;;  %v3401_v8 = vmul.f32 -1.442695, %v1288_v2  ;;  %v3402_v14 = vmul.f32 -1.442695, %v1327_v13  ;;  %v1329_v15 = vadd.f32 %v1328_v5, %v4924_v6  ;;  %v5100_v5 = vld [vmem:[#allocation6 + $0xe0] ss:$16 sps:$4 sm:$0xff]  }
 0x29d   :  { %v1290_v9 = vpop.f32.mrf.mxu0  ;;  %v1330_v10 = vpop.f32.mrf.mxu1  ;;  %v5118_v13 = vld [vmem:[#allocation6 + $0xc8] ss:$16 sps:$4 sm:$0xff]  }
 0x29e   :  { %3778 = vpow2.f32 %v3401_v8  ;;  %v5103_v8 = vld [vmem:[#allocation6 + $0xc4] ss:$16 sps:$4 sm:$0xff]   ;;  %v5109_v9 = vld [vmem:[#allocation6 + $0xcc] ss:$16 sps:$4 sm:$0xff]   ;;  %v5112_v10 = vld [vmem:[#allocation6 + $0xc0] ss:$16 sps:$4 sm:$0xff]  }
 0x29f   :  { %v1331_v11 = vpop.f32.mrf.mxu1  ;;  %3780 = vpow2.f32 %v3402_v14  ;;  %v5121_v14 = vld [vmem:[#allocation6 + $0xac] ss:$16 sps:$4 sm:$0xff]  }
 0x2a0   :  { %3782 = vtanh.f32 %v1329_v15  ;;  %v5115_v11 = vld [vmem:[#allocation6 + $0xa4] ss:$16 sps:$4 sm:$0xff]   ;;  %v5124_v15 = vld [vmem:[#allocation6 + $0xa0] ss:$16 sps:$4 sm:$0xff]  }
 0x2a9   :  { %v3777_v17 = vpop.eup %3776 }
 0x2aa   :  { %v1342_v46 = vadd.f32 1.0, %v3777_v17  ;;  %v5127_v17 = vld [vmem:[#allocation6 + $0x84] ss:$16 sps:$4 sm:$0xff]  }
 0x2ab   :  { %v3779_v53 = vpop.eup %3778 }
 0x2ac   :  { %3784 = vrcp.f32 %v1342_v46  ;;  %v1343_v51 = vadd.f32 1.0, %v3779_v53  ;;  %v3781_v43 = vpop.eup %3780  ;;  %v5130_v46 = vld [vmem:[#allocation6 + $0xa8] ss:$16 sps:$4 sm:$0xff]   ;;  %v5133_v53 = vld [vmem:[#allocation6 + $0x8c] ss:$16 sps:$4 sm:$0xff]  }
 0x2ad   :  { %v3783_v58 = vpop.eup %3782  ;;  %v1344_v50 = vadd.f32 1.0, %v3781_v43  ;;  %v5139_v43 = vld [vmem:[#allocation6 + $0x64] ss:$16 sps:$4 sm:$0xff]  }
 0x2ae   :  { %3786 = vrcp.f32 %v1343_v51  ;;  %v5136_v51 = vld [vmem:[#allocation6 + $0x80] ss:$16 sps:$4 sm:$0xff]   ;;  %7261 = vst [vmem:[#allocation20_spill] sm:$0xff] %v5139_v43 }
 0x2af   :  { %3788 = vrcp.f32 %v1344_v50  ;;  %7260 = vst [vmem:[#allocation19_spill] sm:$0xff] %v5136_v51  ;;  %v5151_v50 = vld [vmem:[#allocation6 + $0x44] ss:$16 sps:$4 sm:$0xff]  }
 0x2b0   :  { %7265 = vst [vmem:[#allocation26_spill] sm:$0xff] %v5151_v50 }
 0x2b9   :  { %v3785_v47 = vpop.eup %3784 }
 0x2ba   :  { %v1353_v0 = vmul.f32 %v3785_v47, %v3783_v58  ;;  %v5142_v58 = vld [vmem:[#allocation6 + $0x88] ss:$16 sps:$4 sm:$0xff]   ;;  %v5145_v47 = vld [vmem:[#allocation6 + $0x6c] ss:$16 sps:$4 sm:$0xff]  }
 0x2bb   :  { %v3787_v44 = vpop.eup %3786  ;;  %7262 = vst [vmem:[#allocation21_spill] sm:$0xff] %v5142_v58  ;;  %7263 = vst [vmem:[#allocation22_spill] sm:$0xff] %v5145_v47 }
 0x2bc   :  { %v1352_v62 = vmul.f32 %v3787_v44, %v4927_v57  ;;  %v3789_v1 = vpop.eup %3788  ;;  %v5106_v57 = vld [vmem:[#allocation6 + $0xe8] ss:$16 sps:$4 sm:$0xff]   ;;  %v5148_v44 = vld [vmem:[#allocation6 + $0x60] ss:$16 sps:$4 sm:$0xff]  }
 0x2bd   :  { %7264 = vst [vmem:[#allocation25_spill] sm:$0xff] %v5148_v44 }
 0x2be   :  { %v5097_v54 = vadd.f32 %v1353_v0, %v1352_v62  ;;  %v5154_v62 = vld [vmem:[#allocation6 + $0x68] ss:$16 sps:$4 sm:$0xff]   ;;  %v5157_v0 = vld [vmem:[#allocation6 + $0x4c] ss:$16 sps:$4 sm:$0xff]  }
 0x2bf   :  { %7266 = vst [vmem:[#allocation23_spill] sm:$0xff] %v5154_v62  ;;  %7267 = vst [vmem:[#allocation24_spill] sm:$0xff] %v5157_v0 }
 0x2c0   :  { %3790 = vtanh.f32 %v5097_v54 }
 0x2cd   :  { %v3791_v63 = vpop.eup %3790 }
 0x2ce   :  { %v1356_v2 = vmul.f32 %v3791_v63, %v3789_v1  ;;  %v5160_v1 = vld [vmem:[#allocation6 + $0x40] ss:$16 sps:$4 sm:$0xff]   ;;  %v5163_v63 = vld [vmem:[#allocation6 + $0x24] ss:$16 sps:$4 sm:$0xff]  }
 0x2cf   :  { %7268 = vst [vmem:[#allocation29_spill] sm:$0xff] %v5160_v1  ;;  %7269 = vst [vmem:[#allocation30_spill] sm:$0xff] %v5163_v63 }
 0x2d0   :  { %v1357_v3 = vpack.c.bf16 %v1356_v2, %v1356_v2  ;;  %v5166_v2 = vld [vmem:[#allocation6 + $0x48] ss:$16 sps:$4 sm:$0xff]  }
 0x2d1   :  { %7270 = vst [vmem:[#allocation27_spill] sm:$0xff] %v5166_v2 }
 0x2d2   :  { %1391 = vmatmul.mubr.bf16.vlgmr.msra.gmra.mxu0 %v1357_v3  ;;  %1432 = vmatmul.mubr.bf16.vlgmr.msra.gmra.mxu1 %v1357_v3 }
 0x2d3   :  { %1519 = vmatpush1.bf16.msra.mxu0 %v5100_v5  ;;  %1550 = vmatprep.mubr.bf16.mxu0 %v1357_v3 }
 0x2d4   :  { %1591 = vmatprep.mubr.bf16.mxu1 %v1357_v3  ;;  %1520 = vmatprep.subr.bf16.mxu0 %v5103_v8  ;;  %v5169_v3 = vld [vmem:[#allocation6 + $0x2c] ss:$16 sps:$4 sm:$0xff]  }
 0x2d5   :  { %1560 = vmatpush1.bf16.msra.mxu1 %v5106_v57  ;;  %7271 = vst [vmem:[#allocation28_spill] sm:$0xff] %v5169_v3 }
 0x2d6   :  { %1561 = vmatprep.subr.bf16.mxu1 %v5109_v9 }
 0x2d7   :  { %1521 = vmatpush1.bf16.msra.mxu0 %v5112_v10 }
 0x2d8   :  { %1522 = vmatprep.subr.bf16.mxu0 %v5115_v11 }
 0x2d9   :  { %1562 = vmatpush1.bf16.msra.mxu1 %v5118_v13 }
 0x2da   :  { %1563 = vmatprep.subr.bf16.mxu1 %v5121_v14 }
 0x2db   :  { %1523 = vmatpush1.bf16.msra.mxu0 %v5124_v15 }
 0x2dc   :  { %1524 = vmatprep.subr.bf16.mxu0 %v5127_v17 }
 0x2dd   :  { %1564 = vmatpush1.bf16.msra.mxu1 %v5130_v46 }
 0x2de   :  { %1565 = vmatprep.subr.bf16.mxu1 %v5133_v53 }
 0x2df   :  { %1525 = vmatpush1.bf16.msra.mxu0 %v5136_v51  ;;  %v5246_v51 = vld [vmem:[#allocation6 + $0x1a8] ss:$16 sps:$4 sm:$0xff]  }
 0x2e0   :  { %1526 = vmatprep.subr.bf16.mxu0 %v5139_v43  ;;  %v5242_v43 = vld [vmem:[#allocation6 + $0x184] ss:$16 sps:$4 sm:$0xff]   ;;  %7290 = vst [vmem:[#allocation48_spill] sm:$0xff] %v5246_v51 }
 0x2e1   :  { %1566 = vmatpush1.bf16.msra.mxu1 %v5142_v58  ;;  %v5235_v58 = vld [vmem:[#allocation6 + $0x1ac] ss:$16 sps:$4 sm:$0xff]   ;;  %7289 = vst [vmem:[#allocation49_spill] sm:$0xff] %v5242_v43 }
 0x2e2   :  { %1567 = vmatprep.subr.bf16.mxu1 %v5145_v47  ;;  %v5229_v47 = vld [vmem:[#allocation6 + $0x1c8] ss:$16 sps:$4 sm:$0xff]   ;;  %7287 = vst [vmem:[#allocation47_spill] sm:$0xff] %v5235_v58 }
 0x2e3   :  { %1527 = vmatpush1.bf16.msra.mxu0 %v5148_v44  ;;  %v5222_v44 = vld [vmem:[#allocation6 + $0x1c0] ss:$16 sps:$4 sm:$0xff]   ;;  %7286 = vst [vmem:[#allocation44_spill] sm:$0xff] %v5229_v47 }
 0x2e4   :  { %1528 = vmatprep.subr.bf16.mxu0 %v5151_v50  ;;  %v5216_v50 = vld [vmem:[#allocation6 + $0x1cc] ss:$16 sps:$4 sm:$0xff]   ;;  %7284 = vst [vmem:[#allocation42_spill] sm:$0xff] %v5222_v44 }
 0x2e5   :  { %1568 = vmatpush1.bf16.msra.mxu1 %v5154_v62  ;;  %v5204_v62 = vld [vmem:[#allocation6 + $0x1e0] ss:$16 sps:$4 sm:$0xff]   ;;  %7283 = vst [vmem:[#allocation43_spill] sm:$0xff] %v5216_v50 }
 0x2e6   :  { %1569 = vmatprep.subr.bf16.mxu1 %v5157_v0  ;;  %v5174_v0 = vld [vmem:[#allocation6 + $0x20] ss:$16 sps:$4 sm:$0xff]   ;;  %7280 = vst [vmem:[#allocation40_spill] sm:$0xff] %v5204_v62 }
 0x2e7   :  { %1529 = vmatpush1.bf16.msra.mxu0 %v5160_v1  ;;  %7272 = vst [vmem:[#allocation32_spill] sm:$0xff] %v5174_v0  ;;  %v5179_v1 = vld [vmem:[#allocation6 + $0x4] ss:$16 sps:$4 sm:$0xff]  }
 0x2e8   :  { %1530 = vmatprep.subr.bf16.mxu0 %v5163_v63  ;;  %7273 = vst [vmem:[#allocation34_spill] sm:$0xff] %v5179_v1  ;;  %v5182_v63 = vld [vmem:[#allocation6 + $0x28] ss:$16 sps:$4 sm:$0xff]  }
 0x2e9   :  { %1570 = vmatpush1.bf16.msra.mxu1 %v5166_v2  ;;  %7274 = vst [vmem:[#allocation31_spill] sm:$0xff] %v5182_v63  ;;  %v5187_v2 = vld [vmem:[#allocation6 + $0xc] ss:$16 sps:$4 sm:$0xff]  }
 0x2ea   :  { %1571 = vmatprep.subr.bf16.mxu1 %v5169_v3  ;;  %7275 = vst [vmem:[#allocation33_spill] sm:$0xff] %v5187_v2  ;;  %v5190_v3 = vld [vmem:[#allocation6] ss:$16 sps:$4 sm:$0xff]  }
 0x2eb   :  { %1531 = vmatpush1.bf16.msra.mxu0 %v5174_v0  ;;  %7276 = vst [vmem:[#allocation36_spill] sm:$0xff] %v5190_v3  ;;  %v5193_v0 = vld [vmem:[#allocation6 + $0x1e4] ss:$16 sps:$4 sm:$0xff]  }
 0x2ec   :  { %1532 = vmatprep.subr.bf16.mxu0 %v5179_v1  ;;  %7277 = vst [vmem:[#allocation38_spill] sm:$0xff] %v5193_v0  ;;  %v5198_v1 = vld [vmem:[#allocation6 + $0x8] ss:$16 sps:$4 sm:$0xff]  }
 0x2ed   :  { %1572 = vmatpush1.bf16.msra.mxu1 %v5182_v63  ;;  %7278 = vst [vmem:[#allocation35_spill] sm:$0xff] %v5198_v1  ;;  %v5201_v63 = vld [vmem:[#allocation6 + $0x1ec] ss:$16 sps:$4 sm:$0xff]  }
 0x2ee   :  { %1573 = vmatprep.subr.bf16.mxu1 %v5187_v2  ;;  %7279 = vst [vmem:[#allocation37_spill] sm:$0xff] %v5201_v63  ;;  %v1470_v2 = vld [vmem:[%s1469_s2] sm:$0x1]  ;;  %s3434_s2 = sld [smem:[#allocation3 + $0x4]] }
 0x2ef   :  { %1533 = vmatpush1.bf16.msra.mxu0 %v5190_v3  ;;  %v5212_v3 = vld [vmem:[#allocation6 + $0x1e8] ss:$16 sps:$4 sm:$0xff]  }
 0x2f0   :  { %1534 = vmatprep.subr.bf16.mxu0 %v5193_v0  ;;  %v5209_v0 = vld [vmem:[#allocation6 + $0x1c4] ss:$16 sps:$4 sm:$0xff]   ;;  %7282 = vst [vmem:[#allocation39_spill] sm:$0xff] %v5212_v3 }
 0x2f1   :  { %1574 = vmatpush1.bf16.msra.mxu1 %v5198_v1  ;;  %7281 = vst [vmem:[#allocation41_spill] sm:$0xff] %v5209_v0  ;;  %v1473_v1 = vld [vmem:[%s1472_s25] sm:$0x1]  ;;  %s3438_s25 = sld [smem:[#allocation3 + $0x204]] }
 0x2f2   :  { %1575 = vmatprep.subr.bf16.mxu1 %v5201_v63  ;;  %v1490_v63 = vrot.slane %v1470_v2, 7  ;;  %v1493_v2 = vrot.slane %v1473_v1, 6 }
 0x2f3   :  { %1535 = vmatpush2.bf16.msra.mxu0 %v5204_v62  ;;  %v1467_v62 = vld [vmem:[%s1466_s26] sm:$0x1]  ;;  %s2003_s26 = scalar_lea.vmem [#allocation4], %s3435_s22  ;;  %s2282_s22 = scalar_lea.vmem [#allocation4], %s5937_s17 }
 0x2f4   :  { %1536 = vmatprep.subr.bf16.mxu0 %v5209_v0  ;;  %v5225_v0 = vld [vmem:[#allocation6 + $0x1a4] ss:$16 sps:$4 sm:$0xff]   ;;  %s2000_s29 = scalar_lea.vmem [#allocation4], %s3434_s2  ;;  %s3479_s17 = sld [smem:[#allocation3 + $0x187]] }
 0x2f5   :  { %1576 = vmatpush2.bf16.msra.mxu1 %v5212_v3  ;;  %7285 = vst [vmem:[#allocation45_spill] sm:$0xff] %v5225_v0  ;;  %v1476_v3 = vld [vmem:[%s1475_s28] sm:$0x1]  ;;  %s2006_s28 = scalar_lea.vmem [#allocation4], %s3436_s23 }
 0x2f6   :  { %1577 = vmatprep.subr.bf16.mxu1 %v5216_v50  ;;  %v1510_v50 = vsel %vm157_vm0, %v1467_v62, %v1490_v63  ;;  %v1496_v1 = vrot.slane %v1476_v3, 5  ;;  %v5249_v62 = vld [vmem:[#allocation6 + $0x18c] ss:$16 sps:$4 sm:$0xff]   ;;  %v1482_v63 = vld [vmem:[%s1481_s4] sm:$0x1]  ;;  %s2009_s4 = scalar_lea.vmem [#allocation4], %s3437_s24 }
 0x2f7   :  { %1537 = vmatpush2.bf16.msra.mxu0 %v5222_v44  ;;  %v5238_v44 = vld [vmem:[#allocation6 + $0x1a0] ss:$16 sps:$4 sm:$0xff]   ;;  %7291 = vst [vmem:[#allocation51_spill] sm:$0xff] %v5249_v62  ;;  %s3463_s24 = sld [smem:[#allocation3 + $0x86]] }
 0x2f8   :  { %1538 = vmatprep.subr.bf16.mxu0 %v5225_v0  ;;  %7288 = vst [vmem:[#allocation46_spill] sm:$0xff] %v5238_v44  ;;  %v1479_v0 = vld [vmem:[%s1478_s30] sm:$0x1]  ;;  %s3440_s30 = sld [smem:[#allocation3 + $0x304]] }
 0x2f9   :  { %1578 = vmatpush2.bf16.msra.mxu1 %v5229_v47  ;;  %v1511_v47 = vsel %vm159_vm1, %v1510_v50, %v1493_v2  ;;  %v5260_v50 = vld [vmem:[#allocation6 + $0x188] ss:$16 sps:$4 sm:$0xff]   ;;  %v1485_v2 = vld [vmem:[%s1484_s9] sm:$0x1]  ;;  %s3441_s9 = sld [smem:[#allocation3 + $0x384]] }
 0x2fa   :  { %1579 = vmatprep.subr.bf16.mxu1 %v5235_v58  ;;  %v5253_v58 = vld [vmem:[#allocation6 + $0x180] ss:$16 sps:$4 sm:$0xff]   ;;  %v1512_v3 = vsel %vm161_vm2, %v1511_v47, %v1496_v1  ;;  %7294 = vst [vmem:[#allocation52_spill] sm:$0xff] %v5260_v50  ;;  %v5271_v47 = vld [vmem:[#allocation6 + $0x144] ss:$16 sps:$4 sm:$0xff]  }
 0x2fb   :  { %1539 = vmatpush2.bf16.msra.mxu0 %v5238_v44  ;;  %v1499_v44 = vrot.slane %v1479_v0, 4  ;;  %7292 = vst [vmem:[#allocation50_spill] sm:$0xff] %v5253_v58  ;;  %7297 = vst [vmem:[#allocation57_spill] sm:$0xff] %v5271_v47  ;;  %v1488_v1 = vld [vmem:[%s1487_s10] sm:$0x1]  ;;  %s2012_s10 = scalar_lea.vmem [#allocation4], %s3438_s25 }
 0x2fc   :  { %1540 = vmatprep.subr.bf16.mxu0 %v5242_v43  ;;  %v5257_v43 = vld [vmem:[#allocation6 + $0x164] ss:$16 sps:$4 sm:$0xff]   ;;  %s3464_s25 = sld [smem:[#allocation3 + $0x106]] }
 0x2fd   :  { %1580 = vmatpush2.bf16.msra.mxu1 %v5246_v51  ;;  %7293 = vst [vmem:[#allocation53_spill] sm:$0xff] %v5257_v43  ;;  %v5264_v51 = vld [vmem:[#allocation6 + $0x16c] ss:$16 sps:$4 sm:$0xff]   ;;  %v1513_v0 = vsel %vm163_vm3, %v1512_v3, %v1499_v44  ;;  %v5282_v44 = vld [vmem:[#allocation6 + $0x140] ss:$16 sps:$4 sm:$0xff]   ;;  %v1508_v3 = vrot.slane %v1488_v1, 1 }
 0x2fe   :  { %1581 = vmatprep.subr.bf16.mxu1 %v5249_v62  ;;  %v1502_v62 = vrot.slane %v1482_v63, 3  ;;  %7295 = vst [vmem:[#allocation55_spill] sm:$0xff] %v5264_v51  ;;  %7298 = vst [vmem:[#allocation56_spill] sm:$0xff] %v5282_v44  ;;  %s2018_s1 = scalar_lea.vmem [#allocation4], %s3440_s30  ;;  %s3467_s30 = sld [smem:[#allocation3 + $0x286]] }
 0x2ff   :  { %1541 = vmatpush2.bf16.msra.mxu0 %v5253_v58  ;;  %v5268_v58 = vld [vmem:[#allocation6 + $0x160] ss:$16 sps:$4 sm:$0xff]   ;;  %s2021_s0 = scalar_lea.vmem [#allocation4], %s3441_s9 }
 0x300   :  { %1542 = vmatprep.subr.bf16.mxu0 %v5257_v43  ;;  %7296 = vst [vmem:[#allocation54_spill] sm:$0xff] %v5268_v58  ;;  %v5275_v43 = vld [vmem:[#allocation6 + $0x168] ss:$16 sps:$4 sm:$0xff]   ;;  %v1514_v63 = vsel %vm165_vm4, %v1513_v0, %v1502_v62  ;;  %v5292_v62 = vld [vmem:[#allocation6 + $0x12c] ss:$16 sps:$4 sm:$0xff]  }
 0x301   :  { %1582 = vmatpush2.bf16.msra.mxu1 %v5260_v50  ;;  %v1505_v50 = vrot.slane %v1485_v2, 2  ;;  %7300 = vst [vmem:[#allocation58_spill] sm:$0xff] %v5292_v62  ;;  %v5295_v0 = vld [vmem:[#allocation6 + $0x120] ss:$16 sps:$4 sm:$0xff]  }
 0x302   :  { %1583 = vmatprep.subr.bf16.mxu1 %v5264_v51  ;;  %v5279_v51 = vld [vmem:[#allocation6 + $0x14c] ss:$16 sps:$4 sm:$0xff]   ;;  %7301 = vst [vmem:[#allocation61_spill] sm:$0xff] %v5295_v0 }
 0x303   :  { %1543 = vmatpush2.bf16.msra.mxu0 %v5268_v58  ;;  %v5285_v58 = vld [vmem:[#allocation6 + $0x124] ss:$16 sps:$4 sm:$0xff]   ;;  %v1515_v2 = vsel %vm167_vm5, %v1514_v63, %v1505_v50  ;;  %v5305_v63 = vld [vmem:[#allocation6 + $0x10c] ss:$16 sps:$4 sm:$0xff]  }
 0x304   :  { %1544 = vmatprep.subr.bf16.mxu0 %v5271_v47  ;;  %7299 = vst [vmem:[#allocation59_spill] sm:$0xff] %v5285_v58  ;;  %v5289_v47 = vld [vmem:[#allocation6 + $0x148] ss:$16 sps:$4 sm:$0xff]   ;;  %v1516_v1 = vsel %vm169_vm6, %v1515_v2, %v1508_v3  ;;  %7303 = vst [vmem:[#allocation63_spill] sm:$0xff] %v5305_v63  ;;  %v5317_v2 = vld [vmem:[#allocation9 + $0xec] ss:$16 sps:$4 sm:$0xff]  }
 0x305   :  { %1584 = vmatpush2.bf16.msra.mxu1 %v5275_v43  ;;  %v1517_v50 = vpack.c.bf16 %v1516_v1, %v1516_v1  ;;  %v5314_v3 = vld [vmem:[#allocation6 + $0x108] ss:$16 sps:$4 sm:$0xff]   ;;  %7307 = vst [vmem:[#allocation67_spill] sm:$0xff] %v5317_v2  ;;  %v5320_v1 = vld [vmem:[#allocation9 + $0xe0] ss:$16 sps:$4 sm:$0xff]  }
 0x306   :  { %1585 = vmatprep.subr.bf16.mxu1 %v5279_v51  ;;  %7306 = vst [vmem:[#allocation64_spill] sm:$0xff] %v5314_v3  ;;  %7308 = vst [vmem:[#allocation66_spill] sm:$0xff] %v5320_v1 }
 0x307   :  { %1545 = vmatpush2.bf16.msra.mxu0 %v5282_v44  ;;  %v5299_v44 = vld [vmem:[#allocation6 + $0x104] ss:$16 sps:$4 sm:$0xff]  }
 0x308   :  { %1546 = vmatprep.subr.bf16.mxu0 %v5285_v58  ;;  %v5302_v58 = vld [vmem:[#allocation6 + $0x128] ss:$16 sps:$4 sm:$0xff]  }
 0x309   :  { %1586 = vmatpush2.bf16.msra.mxu1 %v5289_v47  ;;  %7302 = vst [vmem:[#allocation60_spill] sm:$0xff] %v5302_v58 }
 0x30a   :  { %1587 = vmatprep.subr.bf16.mxu1 %v5292_v62  ;;  %v5308_v62 = vld [vmem:[#allocation6 + $0x100] ss:$16 sps:$4 sm:$0xff]  }
 0x30b   :  { %1547 = vmatpush2.bf16.msra.mxu0 %v5295_v0  ;;  %7304 = vst [vmem:[#allocation62_spill] sm:$0xff] %v5308_v62  ;;  %v5311_v0 = vld [vmem:[#allocation9 + $0xe4] ss:$16 sps:$4 sm:$0xff]  }
 0x30c   :  { %1548 = vmatprep.subr.bf16.mxu0 %v5299_v44  ;;  %7305 = vst [vmem:[#allocation65_spill] sm:$0xff] %v5311_v0 }
 0x30d   :  { %1588 = vmatpush2.bf16.msra.mxu1 %v5302_v58 }
 0x30e   :  { %1589 = vmatprep.subr.bf16.mxu1 %v5305_v63  ;;  %v5323_v63 = vld [vmem:[#allocation9 + $0xc4] ss:$16 sps:$4 sm:$0xff]  }
 0x30f   :  { %1549 = vmatpush2.bf16.msra.mxu0 %v5308_v62  ;;  %7309 = vst [vmem:[#allocation69_spill] sm:$0xff] %v5323_v63  ;;  %v5326_v62 = vld [vmem:[#allocation9 + $0xe8] ss:$16 sps:$4 sm:$0xff]  }
 0x310   :  { %1625 = vmatprep.subr.bf16.mxu0 %v5311_v0  ;;  %7310 = vst [vmem:[#allocation68_spill] sm:$0xff] %v5326_v62  ;;  %v5329_v0 = vld [vmem:[#allocation9 + $0xcc] ss:$16 sps:$4 sm:$0xff]  }
 0x311   :  { %1590 = vmatpush2.bf16.msra.mxu1 %v5314_v3  ;;  %7311 = vst [vmem:[#allocation71_spill] sm:$0xff] %v5329_v0  ;;  %v5332_v3 = vld [vmem:[#allocation9 + $0xc0] ss:$16 sps:$4 sm:$0xff]  }
 0x312   :  { %1551 = vmatmul.mubr.bf16.vlgmr.msra.gmra.mxu0 %v1517_v50  ;;  %1666 = vmatprep.subr.bf16.mxu1 %v5317_v2  ;;  %7312 = vst [vmem:[#allocation70_spill] sm:$0xff] %v5332_v3  ;;  %v5335_v2 = vld [vmem:[#allocation9 + $0xa4] ss:$16 sps:$4 sm:$0xff]  }
 0x313   :  { %1626 = vmatpush1.bf16.msra.mxu0 %v5320_v1  ;;  %7313 = vst [vmem:[#allocation73_spill] sm:$0xff] %v5335_v2 }
 0x314   :  { %1592 = vmatmul.mubr.bf16.vlgmr.msra.gmra.mxu1 %v1517_v50  ;;  %1627 = vmatprep.subr.bf16.mxu0 %v5323_v63  ;;  %v5338_v50 = vld [vmem:[#allocation9 + $0xc8] ss:$16 sps:$4 sm:$0xff]   ;;  %v5341_v63 = vld [vmem:[#allocation9 + $0xac] ss:$16 sps:$4 sm:$0xff]  }
 0x315   :  { %1667 = vmatpush1.bf16.msra.mxu1 %v5326_v62  ;;  %7314 = vst [vmem:[#allocation72_spill] sm:$0xff] %v5338_v50  ;;  %7315 = vst [vmem:[#allocation75_spill] sm:$0xff] %v5341_v63  ;;  %v5344_v62 = vld [vmem:[#allocation9 + $0xa0] ss:$16 sps:$4 sm:$0xff]  }
 0x316   :  { %1668 = vmatprep.subr.bf16.mxu1 %v5329_v0  ;;  %7316 = vst [vmem:[#allocation74_spill] sm:$0xff] %v5344_v62  ;;  %v5347_v0 = vld [vmem:[#allocation9 + $0x84] ss:$16 sps:$4 sm:$0xff]  }
 0x317   :  { %1628 = vmatpush1.bf16.msra.mxu0 %v5332_v3  ;;  %7317 = vst [vmem:[#allocation77_spill] sm:$0xff] %v5347_v0  ;;  %v5350_v3 = vld [vmem:[#allocation9 + $0xa8] ss:$16 sps:$4 sm:$0xff]  }
 0x318   :  { %1629 = vmatprep.subr.bf16.mxu0 %v5335_v2  ;;  %7318 = vst [vmem:[#allocation76_spill] sm:$0xff] %v5350_v3  ;;  %v5353_v2 = vld [vmem:[#allocation9 + $0x8c] ss:$16 sps:$4 sm:$0xff]  }
 0x319   :  { %1669 = vmatpush1.bf16.msra.mxu1 %v5338_v50  ;;  %7319 = vst [vmem:[#allocation79_spill] sm:$0xff] %v5353_v2  ;;  %v5356_v50 = vld [vmem:[#allocation9 + $0x80] ss:$16 sps:$4 sm:$0xff]  }
 0x31a   :  { %1670 = vmatprep.subr.bf16.mxu1 %v5341_v63  ;;  %7320 = vst [vmem:[#allocation78_spill] sm:$0xff] %v5356_v50  ;;  %v5359_v63 = vld [vmem:[#allocation9 + $0x64] ss:$16 sps:$4 sm:$0xff]  }
 0x31b   :  { %1630 = vmatpush1.bf16.msra.mxu0 %v5344_v62  ;;  %7321 = vst [vmem:[#allocation81_spill] sm:$0xff] %v5359_v63  ;;  %v5362_v62 = vld [vmem:[#allocation9 + $0x88] ss:$16 sps:$4 sm:$0xff]  }
 0x31c   :  { %1631 = vmatprep.subr.bf16.mxu0 %v5347_v0  ;;  %7322 = vst [vmem:[#allocation80_spill] sm:$0xff] %v5362_v62  ;;  %v5365_v0 = vld [vmem:[#allocation9 + $0x6c] ss:$16 sps:$4 sm:$0xff]  }
 0x31d   :  { %1671 = vmatpush1.bf16.msra.mxu1 %v5350_v3  ;;  %7323 = vst [vmem:[#allocation83_spill] sm:$0xff] %v5365_v0  ;;  %v5368_v3 = vld [vmem:[#allocation9 + $0x60] ss:$16 sps:$4 sm:$0xff]  }
 0x31e   :  { %1672 = vmatprep.subr.bf16.mxu1 %v5353_v2  ;;  %7324 = vst [vmem:[#allocation82_spill] sm:$0xff] %v5368_v3  ;;  %v5371_v2 = vld [vmem:[#allocation9 + $0x44] ss:$16 sps:$4 sm:$0xff]  }
 0x31f   :  { %1632 = vmatpush1.bf16.msra.mxu0 %v5356_v50  ;;  %7325 = vst [vmem:[#allocation85_spill] sm:$0xff] %v5371_v2  ;;  %v5374_v50 = vld [vmem:[#allocation9 + $0x68] ss:$16 sps:$4 sm:$0xff]  }
 0x320   :  { %1633 = vmatprep.subr.bf16.mxu0 %v5359_v63  ;;  %7326 = vst [vmem:[#allocation84_spill] sm:$0xff] %v5374_v50  ;;  %v5377_v63 = vld [vmem:[#allocation9 + $0x4c] ss:$16 sps:$4 sm:$0xff]  }
 0x321   :  { %1673 = vmatpush1.bf16.msra.mxu1 %v5362_v62  ;;  %7327 = vst [vmem:[#allocation87_spill] sm:$0xff] %v5377_v63  ;;  %v5380_v62 = vld [vmem:[#allocation9 + $0x40] ss:$16 sps:$4 sm:$0xff]  }
 0x322   :  { %1674 = vmatprep.subr.bf16.mxu1 %v5365_v0  ;;  %7328 = vst [vmem:[#allocation86_spill] sm:$0xff] %v5380_v62  ;;  %v5383_v0 = vld [vmem:[#allocation9 + $0x24] ss:$16 sps:$4 sm:$0xff]  }
 0x323   :  { %1634 = vmatpush1.bf16.msra.mxu0 %v5368_v3  ;;  %7329 = vst [vmem:[#allocation88_spill] sm:$0xff] %v5383_v0  ;;  %v5386_v3 = vld [vmem:[#allocation9 + $0x48] ss:$16 sps:$4 sm:$0xff]  }
 0x324   :  { %1635 = vmatprep.subr.bf16.mxu0 %v5371_v2  ;;  %7330 = vst [vmem:[#allocation89_spill] sm:$0xff] %v5386_v3  ;;  %v5389_v2 = vld [vmem:[#allocation9 + $0x2c] ss:$16 sps:$4 sm:$0xff]  }
 0x325   :  { %1675 = vmatpush1.bf16.msra.mxu1 %v5374_v50  ;;  %7331 = vst [vmem:[#allocation91_spill] sm:$0xff] %v5389_v2  ;;  %v5392_v50 = vld [vmem:[#allocation9 + $0x20] ss:$16 sps:$4 sm:$0xff]  }
 0x326   :  { %1676 = vmatprep.subr.bf16.mxu1 %v5377_v63  ;;  %7332 = vst [vmem:[#allocation90_spill] sm:$0xff] %v5392_v50  ;;  %v5395_v63 = vld [vmem:[#allocation9 + $0x4] ss:$16 sps:$4 sm:$0xff]  }
 0x327   :  { %1636 = vmatpush1.bf16.msra.mxu0 %v5380_v62  ;;  %7333 = vst [vmem:[#allocation92_spill] sm:$0xff] %v5395_v63  ;;  %v5398_v62 = vld [vmem:[#allocation9 + $0x28] ss:$16 sps:$4 sm:$0xff]  }
 0x328   :  { %1637 = vmatprep.subr.bf16.mxu0 %v5383_v0  ;;  %7334 = vst [vmem:[#allocation93_spill] sm:$0xff] %v5398_v62  ;;  %v5401_v0 = vld [vmem:[#allocation9 + $0xc] ss:$16 sps:$4 sm:$0xff]  }
 0x329   :  { %1677 = vmatpush1.bf16.msra.mxu1 %v5386_v3  ;;  %7335 = vst [vmem:[#allocation95_spill] sm:$0xff] %v5401_v0  ;;  %v5404_v3 = vld [vmem:[#allocation9] ss:$16 sps:$4 sm:$0xff]  }
 0x32a   :  { %1678 = vmatprep.subr.bf16.mxu1 %v5389_v2  ;;  %7336 = vst [vmem:[#allocation94_spill] sm:$0xff] %v5404_v3  ;;  %v5407_v2 = vld [vmem:[#allocation9 + $0x1e4] ss:$16 sps:$4 sm:$0xff]  }
 0x32b   :  { %1638 = vmatpush1.bf16.msra.mxu0 %v5392_v50  ;;  %7337 = vst [vmem:[#allocation96_spill] sm:$0xff] %v5407_v2  ;;  %v5410_v50 = vld [vmem:[#allocation9 + $0x8] ss:$16 sps:$4 sm:$0xff]  }
 0x32c   :  { %1639 = vmatprep.subr.bf16.mxu0 %v5395_v63  ;;  %7338 = vst [vmem:[#allocation97_spill] sm:$0xff] %v5410_v50  ;;  %v5413_v63 = vld [vmem:[#allocation9 + $0x1ec] ss:$16 sps:$4 sm:$0xff]  }
 0x32d   :  { %1679 = vmatpush1.bf16.msra.mxu1 %v5398_v62  ;;  %7339 = vst [vmem:[#allocation98_spill] sm:$0xff] %v5413_v63  ;;  %v5416_v62 = vld [vmem:[#allocation9 + $0x1e0] ss:$16 sps:$4 sm:$0xff]  }
 0x32e   :  { %1680 = vmatprep.subr.bf16.mxu1 %v5401_v0  ;;  %7340 = vst [vmem:[#allocation99_spill] sm:$0xff] %v5416_v62  ;;  %v5420_v0 = vld [vmem:[#allocation9 + $0x1e8] ss:$16 sps:$4 sm:$0xff]  }
 0x32f   :  { %1640 = vmatpush1.bf16.msra.mxu0 %v5404_v3  ;;  %7341 = vst [vmem:[#allocation100_spill] sm:$0xff] %v5420_v0 }
 0x330   :  { %1641 = vmatprep.subr.bf16.mxu0 %v5407_v2 }
 0x331   :  { %1681 = vmatpush1.bf16.msra.mxu1 %v5410_v50 }
 0x332   :  { %1682 = vmatprep.subr.bf16.mxu1 %v5413_v63 }
 0x333   :  { %1642 = vmatpush2.bf16.msra.mxu0 %v5416_v62 }
 0x334   :  { %1643 = vmatprep.subr.bf16.mxu0 %v7224_v16 }
 0x335   :  { %1683 = vmatpush2.bf16.msra.mxu1 %v5420_v0 }
 0x336   :  { %1684 = vmatprep.subr.bf16.mxu1 %v7226_v18 }
 0x337   :  { %1644 = vmatpush2.bf16.msra.mxu0 %v7227_v19 }
 0x338   :  { %1645 = vmatprep.subr.bf16.mxu0 %v7228_v20 }
 0x339   :  { %1685 = vmatpush2.bf16.msra.mxu1 %v7229_v21 }
 0x33a   :  { %1686 = vmatprep.subr.bf16.mxu1 %v7230_v22 }
 0x33b   :  { %1646 = vmatpush2.bf16.msra.mxu0 %v7231_v23 }
 0x33c   :  { %1647 = vmatprep.subr.bf16.mxu0 %v7232_v24 }
 0x33d   :  { %1687 = vmatpush2.bf16.msra.mxu1 %v7233_v25 }
 0x33e   :  { %1688 = vmatprep.subr.bf16.mxu1 %v7234_v26 }
 0x33f   :  { %1648 = vmatpush2.bf16.msra.mxu0 %v7235_v27 }
 0x340   :  { %1649 = vmatprep.subr.bf16.mxu0 %v7236_v28 }
 0x341   :  { %1689 = vmatpush2.bf16.msra.mxu1 %v7237_v29 }
 0x342   :  { %1690 = vmatprep.subr.bf16.mxu1 %v7238_v30 }
 0x343   :  { %1650 = vmatpush2.bf16.msra.mxu0 %v7239_v31 }
 0x344   :  { %1651 = vmatprep.subr.bf16.mxu0 %v7240_v32 }
 0x345   :  { %1691 = vmatpush2.bf16.msra.mxu1 %v7241_v33 }
 0x346   :  { %1692 = vmatprep.subr.bf16.mxu1 %v7242_v34 }
 0x347   :  { %1652 = vmatpush2.bf16.msra.mxu0 %v7243_v35 }
 0x348   :  { %1653 = vmatprep.subr.bf16.mxu0 %v7244_v36 }
 0x349   :  { %1693 = vmatpush2.bf16.msra.mxu1 %v7245_v37 }
 0x34a   :  { %1694 = vmatprep.subr.bf16.mxu1 %v7246_v38 }
 0x34b   :  { %1654 = vmatpush2.bf16.msra.mxu0 %v7247_v39 }
 0x34c   :  { %1655 = vmatprep.subr.bf16.mxu0 %v7248_v40 }
 0x34d   :  { %1695 = vmatpush2.bf16.msra.mxu1 %v7249_v41 }
 0x34e   :  { %1696 = vmatprep.subr.bf16.mxu1 %v7250_v42 }
 0x34f   :  { %1656 = vmatpush2.bf16.msra.mxu0 %v7251_v45 }
 0x350   :  { %1785 = vmatprep.subr.bf16.mxu0 %v5062_v48 }
 0x351   :  { %1697 = vmatpush2.bf16.msra.mxu1 %v7252_v55 }
 0x352   :  { %1826 = vmatprep.subr.bf16.mxu1 %v5066_v56 }
 0x392   :  { %v1392_v16 = vpop.f32.mrf.mxu0  ;;  %v1433_v18 = vpop.f32.mrf.mxu1 }
 0x393   :  { %v1393_v19 = vadd.f32 %v1392_v16, %v5071_v52  ;;  %v1434_v29 = vadd.f32 %v1433_v18, %v5081_v4 }
 0x394   :  { %v1394_v20 = vpop.f32.mrf.mxu0  ;;  %v1435_v21 = vpop.f32.mrf.mxu1 }
 0x395   :  { %v3403_v22 = vmul.f32 -1.442695, %v1393_v19  ;;  %v1395_v23 = vadd.f32 %v1394_v20, %v5075_v59  ;;  %v3405_v30 = vmul.f32 -1.442695, %v1434_v29  ;;  %v1436_v32 = vadd.f32 %v1435_v21, %v5086_v7 }
 0x396   :  { %v1396_v24 = vpop.f32.mrf.mxu0  ;;  %v1437_v25 = vpop.f32.mrf.mxu1 }
 0x397   :  { %3792 = vpow2.f32 %v3403_v22  ;;  %v3404_v26 = vmul.f32 -1.442695, %v1395_v23 }
 0x398   :  { %v1397_v27 = vpop.f32.mrf.mxu0  ;;  %v1438_v28 = vpop.f32.mrf.mxu1 }
 0x399   :  { %3794 = vpow2.f32 %v3404_v26 }
 0x39a   :  { %3796 = vpow2.f32 %v3405_v30 }
 0x3a4   :  { %v3793_v31 = vpop.eup %3792 }
 0x3a5   :  { %v1449_v33 = vadd.f32 1.0, %v3793_v31 }
 0x3a6   :  { %v3795_v34 = vpop.eup %3794 }
 0x3a7   :  { %3798 = vrcp.f32 %v1449_v33  ;;  %v1450_v35 = vadd.f32 1.0, %v3795_v34  ;;  %v3797_v36 = vpop.eup %3796 }
 0x3a8   :  { %3800 = vtanh.f32 %v1436_v32  ;;  %v1451_v40 = vadd.f32 1.0, %v3797_v36 }
 0x3a9   :  { %3802 = vrcp.f32 %v1450_v35 }
 0x3aa   :  { %3804 = vrcp.f32 %v1451_v40 }
 0x3b4   :  { %v3799_v37 = vpop.eup %3798 }
 0x3b5   :  { %v3801_v38 = vpop.eup %3800 }
 0x3b6   :  { %v3803_v39 = vpop.eup %3802  ;;  %v1460_v42 = vmul.f32 %v3801_v38, %v3799_v37 }
 0x3b7   :  { %v1459_v41 = vmul.f32 %v3803_v39, %v5089_v60  ;;  %v3805_v55 = vpop.eup %3804 }
 0x3b9   :  { %v5457_v45 = vadd.f32 %v1460_v42, %v1459_v41 }
 0x3bb   :  { %3806 = vtanh.f32 %v5457_v45 }
 0x3c8   :  { %v3807_v16 = vpop.eup %3806 }
 0x3c9   :  { %v1463_v18 = vmul.f32 %v3807_v16, %v3805_v55 }
 0x3cb   :  { %v1464_v19 = vpack.c.bf16 %v1463_v18, %v1463_v18 }
 0x3cd   :  { %1657 = vmatprep.mubr.bf16.mxu0 %v1464_v19  ;;  %1698 = vmatprep.mubr.bf16.mxu1 %v1464_v19 }
 0x3d2   :  { %v1552_v20 = vpop.f32.mrf.mxu0 }
 0x3d3   :  { %v1553_v21 = vadd.f32 %v1552_v20, %v7257_v49 }
 0x3d4   :  { %v1554_v22 = vpop.f32.mrf.mxu0  ;;  %v1593_v23 = vpop.f32.mrf.mxu1 }
 0x3d5   :  { %v3414_v24 = vmul.f32 -1.442695, %v1553_v21  ;;  %v1555_v60 = vadd.f32 %v1554_v22, %v7258_v61  ;;  %v1594_v31 = vadd.f32 %v1593_v23, %v7259_v12  ;;  %v7343_v23 = vld [vmem:[#allocation20_spill] sm:$0xff] }
 0x3d6   :  { %v1556_v25 = vpop.f32.mrf.mxu0  ;;  %v1595_v26 = vpop.f32.mrf.mxu1 }
 0x3d7   :  { %3808 = vpow2.f32 %v3414_v24  ;;  %v3415_v27 = vmul.f32 -1.442695, %v1555_v60  ;;  %v3416_v32 = vmul.f32 -1.442695, %v1594_v31  ;;  %v1596_v33 = vadd.f32 %v1595_v26, %v4924_v6  ;;  %v7344_v24 = vld [vmem:[#allocation21_spill] sm:$0xff]  ;;  %v7345_v60 = vld [vmem:[#allocation22_spill] sm:$0xff] }
 0x3d8   :  { %v1557_v28 = vpop.f32.mrf.mxu0  ;;  %v1597_v29 = vpop.f32.mrf.mxu1  ;;  %v7346_v25 = vld [vmem:[#allocation25_spill] sm:$0xff]  ;;  %v7347_v26 = vld [vmem:[#allocation26_spill] sm:$0xff]  ;;  %v7352_v31 = vld [vmem:[#allocation27_spill] sm:$0xff] }
 0x3d9   :  { %3810 = vpow2.f32 %v3415_v27  ;;  %v7348_v27 = vld [vmem:[#allocation23_spill] sm:$0xff]  ;;  %v7349_v28 = vld [vmem:[#allocation24_spill] sm:$0xff]  ;;  %v7350_v29 = vld [vmem:[#allocation29_spill] sm:$0xff] }
 0x3da   :  { %v1598_v30 = vpop.f32.mrf.mxu1  ;;  %3812 = vpow2.f32 %v3416_v32  ;;  %v7353_v32 = vld [vmem:[#allocation28_spill] sm:$0xff] }
 0x3db   :  { %3814 = vtanh.f32 %v1596_v33  ;;  %v7351_v30 = vld [vmem:[#allocation30_spill] sm:$0xff]  ;;  %v7354_v33 = vld [vmem:[#allocation32_spill] sm:$0xff] }
 0x3e4   :  { %v3809_v34 = vpop.eup %3808 }
 0x3e5   :  { %v1609_v35 = vadd.f32 1.0, %v3809_v34  ;;  %v7355_v34 = vld [vmem:[#allocation34_spill] sm:$0xff] }
 0x3e6   :  { %v3811_v36 = vpop.eup %3810 }
 0x3e7   :  { %3816 = vrcp.f32 %v1609_v35  ;;  %v1610_v37 = vadd.f32 1.0, %v3811_v36  ;;  %v3813_v38 = vpop.eup %3812  ;;  %v7356_v35 = vld [vmem:[#allocation31_spill] sm:$0xff]  ;;  %v7357_v36 = vld [vmem:[#allocation33_spill] sm:$0xff] }
 0x3e8   :  { %v3815_v39 = vpop.eup %3814  ;;  %v1611_v42 = vadd.f32 1.0, %v3813_v38  ;;  %v7359_v38 = vld [vmem:[#allocation38_spill] sm:$0xff] }
 0x3e9   :  { %3818 = vrcp.f32 %v1610_v37  ;;  %v7358_v37 = vld [vmem:[#allocation36_spill] sm:$0xff] }
 0x3ea   :  { %3820 = vrcp.f32 %v1611_v42  ;;  %v7362_v42 = vld [vmem:[#allocation40_spill] sm:$0xff] }
 0x3f4   :  { %v3817_v40 = vpop.eup %3816 }
 0x3f5   :  { %v1620_v16 = vmul.f32 %v3817_v40, %v3815_v39  ;;  %v7360_v39 = vld [vmem:[#allocation35_spill] sm:$0xff]  ;;  %v7361_v40 = vld [vmem:[#allocation37_spill] sm:$0xff] }
 0x3f6   :  { %v3819_v41 = vpop.eup %3818 }
 0x3f7   :  { %v1619_v55 = vmul.f32 %v3819_v41, %v5097_v54  ;;  %v3821_v19 = vpop.eup %3820  ;;  %v7342_v54 = vld [vmem:[#allocation19_spill] sm:$0xff]  ;;  %v1737_v41 = vld [vmem:[%s1736_s14] sm:$0x1]  ;;  %s5907_s14 = sld [smem:[#allocation3 + $0x5]] }
 0x3f9   :  { %v5465_v18 = vadd.f32 %v1620_v16, %v1619_v55  ;;  %v7363_v55 = vld [vmem:[#allocation41_spill] sm:$0xff]  ;;  %v7364_v16 = vld [vmem:[#allocation39_spill] sm:$0xff] }
 0x3fb   :  { %3822 = vtanh.f32 %v5465_v18 }
 0x3fd   :  { %s2267_s6 = scalar_lea.vmem [#allocation4], %s5907_s14 }
 0x408   :  { %v3823_v20 = vpop.eup %3822 }
 0x409   :  { %v1623_v21 = vmul.f32 %v3823_v20, %v3821_v19  ;;  %v1740_v19 = vld [vmem:[%s1739_s15] sm:$0x1]  ;;  %v1757_v20 = vrot.slane %v1737_v41, 7  ;;  %s5926_s15 = sld [smem:[#allocation3 + $0x205]] }
 0x40a   :  { %v7370_v41 = vld [vmem:[#allocation46_spill] sm:$0xff] }
 0x40b   :  { %v1624_v22 = vpack.c.bf16 %v1623_v21, %v1623_v21  ;;  %v7365_v21 = vld [vmem:[#allocation43_spill] sm:$0xff] }
 0x40d   :  { %1658 = vmatmul.mubr.bf16.vlgmr.msra.gmra.mxu0 %v1624_v22  ;;  %1699 = vmatmul.mubr.bf16.vlgmr.msra.gmra.mxu1 %v1624_v22 }
 0x40e   :  { %1786 = vmatpush1.bf16.msra.mxu0 %v5100_v5  ;;  %1817 = vmatprep.mubr.bf16.mxu0 %v1624_v22 }
 0x40f   :  { %1858 = vmatprep.mubr.bf16.mxu1 %v1624_v22  ;;  %1787 = vmatprep.subr.bf16.mxu0 %v5103_v8  ;;  %v1734_v22 = vld [vmem:[%s1733_s16] sm:$0x1]  ;;  %s2270_s16 = scalar_lea.vmem [#allocation4], %s3449_s12  ;;  %s2549_s12 = scalar_lea.vmem [#allocation4], %s3467_s30 }
 0x410   :  { %1827 = vmatpush1.bf16.msra.mxu1 %v5106_v57 }
 0x411   :  { %1828 = vmatprep.subr.bf16.mxu1 %v5109_v9 }
 0x412   :  { %1788 = vmatpush1.bf16.msra.mxu0 %v5112_v10 }
 0x413   :  { %1789 = vmatprep.subr.bf16.mxu0 %v5115_v11 }
 0x414   :  { %1829 = vmatpush1.bf16.msra.mxu1 %v5118_v13 }
 0x415   :  { %1830 = vmatprep.subr.bf16.mxu1 %v5121_v14 }
 0x416   :  { %1790 = vmatpush1.bf16.msra.mxu0 %v5124_v15 }
 0x417   :  { %1791 = vmatprep.subr.bf16.mxu0 %v5127_v17 }
 0x418   :  { %1831 = vmatpush1.bf16.msra.mxu1 %v5130_v46 }
 0x419   :  { %1832 = vmatprep.subr.bf16.mxu1 %v5133_v53 }
 0x41a   :  { %1792 = vmatpush1.bf16.msra.mxu0 %v7342_v54 }
 0x41b   :  { %1793 = vmatprep.subr.bf16.mxu0 %v7343_v23 }
 0x41c   :  { %1833 = vmatpush1.bf16.msra.mxu1 %v7344_v24 }
 0x41d   :  { %1834 = vmatprep.subr.bf16.mxu1 %v7345_v60 }
 0x41e   :  { %1794 = vmatpush1.bf16.msra.mxu0 %v7346_v25 }
 0x41f   :  { %1795 = vmatprep.subr.bf16.mxu0 %v7347_v26 }
 0x420   :  { %1835 = vmatpush1.bf16.msra.mxu1 %v7348_v27 }
 0x421   :  { %1836 = vmatprep.subr.bf16.mxu1 %v7349_v28 }
 0x422   :  { %1796 = vmatpush1.bf16.msra.mxu0 %v7350_v29 }
 0x423   :  { %1797 = vmatprep.subr.bf16.mxu0 %v7351_v30 }
 0x424   :  { %1837 = vmatpush1.bf16.msra.mxu1 %v7352_v31 }
 0x425   :  { %1838 = vmatprep.subr.bf16.mxu1 %v7353_v32 }
 0x426   :  { %1798 = vmatpush1.bf16.msra.mxu0 %v7354_v33  ;;  %v7374_v33 = vld [vmem:[#allocation50_spill] sm:$0xff] }
 0x427   :  { %1799 = vmatprep.subr.bf16.mxu0 %v7355_v34  ;;  %v7373_v34 = vld [vmem:[#allocation51_spill] sm:$0xff] }
 0x428   :  { %1839 = vmatpush1.bf16.msra.mxu1 %v7356_v35  ;;  %v7371_v35 = vld [vmem:[#allocation49_spill] sm:$0xff] }
 0x429   :  { %1840 = vmatprep.subr.bf16.mxu1 %v7357_v36 }
 0x42a   :  { %1800 = vmatpush1.bf16.msra.mxu0 %v7358_v37  ;;  %v7368_v37 = vld [vmem:[#allocation44_spill] sm:$0xff] }
 0x42b   :  { %1801 = vmatprep.subr.bf16.mxu0 %v7359_v38  ;;  %v1743_v38 = vld [vmem:[%s1742_s5] sm:$0x1]  ;;  %s2273_s5 = scalar_lea.vmem [#allocation4], %s5902_s13 }
 0x42c   :  { %1841 = vmatpush1.bf16.msra.mxu1 %v7360_v39  ;;  %v7366_v39 = vld [vmem:[#allocation42_spill] sm:$0xff]  ;;  %v1763_v36 = vrot.slane %v1743_v38, 5 }
 0x42d   :  { %1842 = vmatprep.subr.bf16.mxu1 %v7361_v40  ;;  %v7367_v40 = vld [vmem:[#allocation45_spill] sm:$0xff]  ;;  %v1752_v38 = vld [vmem:[%s1751_s20] sm:$0x1]  ;;  %s5962_s20 = sld [smem:[#allocation3 + $0x385]] }
 0x42e   :  { %1802 = vmatpush2.bf16.msra.mxu0 %v7362_v42  ;;  %v1760_v42 = vrot.slane %v1740_v19, 6  ;;  %v1749_v19 = vld [vmem:[%s1748_s19] sm:$0x1]  ;;  %s2276_s19 = scalar_lea.vmem [#allocation4], %s5915_s3  ;;  %s3477_s3 = sld [smem:[#allocation3 + $0x87]] }
 0x42f   :  { %1803 = vmatprep.subr.bf16.mxu0 %v7363_v55  ;;  %v7369_v55 = vld [vmem:[#allocation47_spill] sm:$0xff] }
 0x430   :  { %1843 = vmatpush2.bf16.msra.mxu1 %v7364_v16  ;;  %v1777_v16 = vsel %vm157_vm0, %v1734_v22, %v1757_v20  ;;  %v7375_v22 = vld [vmem:[#allocation53_spill] sm:$0xff] }
 0x431   :  { %1844 = vmatprep.subr.bf16.mxu1 %v7365_v21  ;;  %v1746_v21 = vld [vmem:[%s1745_s18] sm:$0x1]  ;;  %s5950_s18 = sld [smem:[#allocation3 + $0x305]] }
 0x432   :  { %1804 = vmatpush2.bf16.msra.mxu0 %v7366_v39  ;;  %v1778_v39 = vsel %vm159_vm1, %v1777_v16, %v1760_v42  ;;  %v7378_v16 = vld [vmem:[#allocation54_spill] sm:$0xff] }
 0x433   :  { %1805 = vmatprep.subr.bf16.mxu0 %v7367_v40  ;;  %v7372_v40 = vld [vmem:[#allocation48_spill] sm:$0xff]  ;;  %v1779_v20 = vsel %vm161_vm2, %v1778_v39, %v1763_v36  ;;  %s2288_s2 = scalar_lea.vmem [#allocation4], %s5962_s20 }
 0x434   :  { %1845 = vmatpush2.bf16.msra.mxu1 %v7368_v37  ;;  %v1766_v37 = vrot.slane %v1746_v21, 4  ;;  %v1755_v21 = vld [vmem:[%s1754_s21] sm:$0x1]  ;;  %v7380_v39 = vld [vmem:[#allocation56_spill] sm:$0xff]  ;;  %s2279_s21 = scalar_lea.vmem [#allocation4], %s5926_s15  ;;  %s3478_s15 = sld [smem:[#allocation3 + $0x107]] }
 0x435   :  { %1846 = vmatprep.subr.bf16.mxu1 %v7369_v55  ;;  %v7377_v55 = vld [vmem:[#allocation55_spill] sm:$0xff] }
 0x436   :  { %1806 = vmatpush2.bf16.msra.mxu0 %v7370_v41  ;;  %v7376_v41 = vld [vmem:[#allocation52_spill] sm:$0xff]  ;;  %v1780_v42 = vsel %vm163_vm3, %v1779_v20, %v1766_v37  ;;  %v7382_v20 = vld [vmem:[#allocation58_spill] sm:$0xff] }
 0x437   :  { %1807 = vmatprep.subr.bf16.mxu0 %v7371_v35  ;;  %v1769_v35 = vrot.slane %v1749_v19, 3  ;;  %v1775_v19 = vrot.slane %v1755_v21, 1  ;;  %v7385_v21 = vld [vmem:[#allocation62_spill] sm:$0xff]  ;;  %s2285_s23 = scalar_lea.vmem [#allocation4], %s5950_s18  ;;  %s3481_s18 = sld [smem:[#allocation3 + $0x287]] }
 0x438   :  { %1847 = vmatpush2.bf16.msra.mxu1 %v7372_v40 }
 0x439   :  { %1848 = vmatprep.subr.bf16.mxu1 %v7373_v34  ;;  %v7379_v34 = vld [vmem:[#allocation57_spill] sm:$0xff]  ;;  %v1781_v36 = vsel %vm165_vm4, %v1780_v42, %v1769_v35  ;;  %v7384_v42 = vld [vmem:[#allocation63_spill] sm:$0xff] }
 0x43a   :  { %1808 = vmatpush2.bf16.msra.mxu0 %v7374_v33  ;;  %v1772_v33 = vrot.slane %v1752_v38, 2 }
 0x43b   :  { %1809 = vmatprep.subr.bf16.mxu0 %v7375_v22 }
 0x43c   :  { %1849 = vmatpush2.bf16.msra.mxu1 %v7376_v41  ;;  %v7381_v41 = vld [vmem:[#allocation59_spill] sm:$0xff]  ;;  %v1782_v37 = vsel %vm167_vm5, %v1781_v36, %v1772_v33  ;;  %v7387_v33 = vld [vmem:[#allocation64_spill] sm:$0xff] }
 0x43d   :  { %1850 = vmatprep.subr.bf16.mxu1 %v7377_v55  ;;  %v1783_v38 = vsel %vm169_vm6, %v1782_v37, %v1775_v19  ;;  %v7388_v36 = vld [vmem:[#allocation67_spill] sm:$0xff]  ;;  %v7389_v19 = vld [vmem:[#allocation69_spill] sm:$0xff]  ;;  %v7390_v37 = vld [vmem:[#allocation68_spill] sm:$0xff] }
 0x43e   :  { %1810 = vmatpush2.bf16.msra.mxu0 %v7378_v16  ;;  %v1784_v35 = vpack.c.bf16 %v1783_v38, %v1783_v38  ;;  %v7392_v38 = vld [vmem:[#allocation70_spill] sm:$0xff] }
 0x43f   :  { %1811 = vmatprep.subr.bf16.mxu0 %v7379_v34  ;;  %v7383_v34 = vld [vmem:[#allocation61_spill] sm:$0xff] }
 0x440   :  { %1851 = vmatpush2.bf16.msra.mxu1 %v5275_v43 }
 0x441   :  { %1852 = vmatprep.subr.bf16.mxu1 %v5279_v51 }
 0x442   :  { %1812 = vmatpush2.bf16.msra.mxu0 %v7380_v39 }
 0x443   :  { %1813 = vmatprep.subr.bf16.mxu0 %v7381_v41  ;;  %v7386_v41 = vld [vmem:[#allocation65_spill] sm:$0xff] }
 0x444   :  { %1853 = vmatpush2.bf16.msra.mxu1 %v5289_v47 }
 0x445   :  { %1854 = vmatprep.subr.bf16.mxu1 %v7382_v20 }
 0x446   :  { %1814 = vmatpush2.bf16.msra.mxu0 %v7383_v34 }
 0x447   :  { %1815 = vmatprep.subr.bf16.mxu0 %v5299_v44 }
 0x448   :  { %1855 = vmatpush2.bf16.msra.mxu1 %v5302_v58  ;;  %v7391_v58 = vld [vmem:[#allocation71_spill] sm:$0xff] }
 0x449   :  { %1856 = vmatprep.subr.bf16.mxu1 %v7384_v42  ;;  %v7393_v42 = vld [vmem:[#allocation73_spill] sm:$0xff] }
 0x44a   :  { %1816 = vmatpush2.bf16.msra.mxu0 %v7385_v21  ;;  %v7394_v21 = vld [vmem:[#allocation72_spill] sm:$0xff] }
 0x44b   :  { %1892 = vmatprep.subr.bf16.mxu0 %v7386_v41  ;;  %v7395_v41 = vld [vmem:[#allocation75_spill] sm:$0xff] }
 0x44c   :  { %1857 = vmatpush2.bf16.msra.mxu1 %v7387_v33  ;;  %v7396_v33 = vld [vmem:[#allocation74_spill] sm:$0xff] }
 0x44d   :  { %1818 = vmatmul.mubr.bf16.vlgmr.msra.gmra.mxu0 %v1784_v35  ;;  %1933 = vmatprep.subr.bf16.mxu1 %v7388_v36  ;;  %v7397_v36 = vld [vmem:[#allocation77_spill] sm:$0xff] }
 0x44e   :  { %1893 = vmatpush1.bf16.msra.mxu0 %v5320_v1  ;;  %v7398_v1 = vld [vmem:[#allocation76_spill] sm:$0xff] }
 0x44f   :  { %1859 = vmatmul.mubr.bf16.vlgmr.msra.gmra.mxu1 %v1784_v35  ;;  %1894 = vmatprep.subr.bf16.mxu0 %v7389_v19  ;;  %v7399_v35 = vld [vmem:[#allocation79_spill] sm:$0xff]  ;;  %v7400_v19 = vld [vmem:[#allocation78_spill] sm:$0xff] }
 0x450   :  { %1934 = vmatpush1.bf16.msra.mxu1 %v7390_v37  ;;  %v7401_v37 = vld [vmem:[#allocation81_spill] sm:$0xff] }
 0x451   :  { %1935 = vmatprep.subr.bf16.mxu1 %v7391_v58  ;;  %v7402_v58 = vld [vmem:[#allocation80_spill] sm:$0xff] }
 0x452   :  { %1895 = vmatpush1.bf16.msra.mxu0 %v7392_v38  ;;  %v7403_v38 = vld [vmem:[#allocation83_spill] sm:$0xff] }
 0x453   :  { %1896 = vmatprep.subr.bf16.mxu0 %v7393_v42  ;;  %v7404_v42 = vld [vmem:[#allocation82_spill] sm:$0xff] }
 0x454   :  { %1936 = vmatpush1.bf16.msra.mxu1 %v7394_v21  ;;  %v7405_v21 = vld [vmem:[#allocation85_spill] sm:$0xff] }
 0x455   :  { %1937 = vmatprep.subr.bf16.mxu1 %v7395_v41  ;;  %v7406_v41 = vld [vmem:[#allocation84_spill] sm:$0xff] }
 0x456   :  { %1897 = vmatpush1.bf16.msra.mxu0 %v7396_v33  ;;  %v7407_v33 = vld [vmem:[#allocation87_spill] sm:$0xff] }
 0x457   :  { %1898 = vmatprep.subr.bf16.mxu0 %v7397_v36  ;;  %v7408_v36 = vld [vmem:[#allocation86_spill] sm:$0xff] }
 0x458   :  { %1938 = vmatpush1.bf16.msra.mxu1 %v7398_v1  ;;  %v7409_v1 = vld [vmem:[#allocation88_spill] sm:$0xff] }
 0x459   :  { %1939 = vmatprep.subr.bf16.mxu1 %v7399_v35  ;;  %v7410_v35 = vld [vmem:[#allocation89_spill] sm:$0xff] }
 0x45a   :  { %1899 = vmatpush1.bf16.msra.mxu0 %v7400_v19  ;;  %v7411_v19 = vld [vmem:[#allocation91_spill] sm:$0xff] }
 0x45b   :  { %1900 = vmatprep.subr.bf16.mxu0 %v7401_v37  ;;  %v7412_v37 = vld [vmem:[#allocation90_spill] sm:$0xff] }
 0x45c   :  { %1940 = vmatpush1.bf16.msra.mxu1 %v7402_v58  ;;  %v7413_v58 = vld [vmem:[#allocation92_spill] sm:$0xff] }
 0x45d   :  { %1941 = vmatprep.subr.bf16.mxu1 %v7403_v38  ;;  %v7414_v38 = vld [vmem:[#allocation93_spill] sm:$0xff] }
 0x45e   :  { %1901 = vmatpush1.bf16.msra.mxu0 %v7404_v42  ;;  %v7415_v42 = vld [vmem:[#allocation95_spill] sm:$0xff] }
 0x45f   :  { %1902 = vmatprep.subr.bf16.mxu0 %v7405_v21 }
 0x460   :  { %1942 = vmatpush1.bf16.msra.mxu1 %v7406_v41 }
 0x461   :  { %1943 = vmatprep.subr.bf16.mxu1 %v7407_v33 }
 0x462   :  { %1903 = vmatpush1.bf16.msra.mxu0 %v7408_v36 }
 0x463   :  { %1904 = vmatprep.subr.bf16.mxu0 %v7409_v1 }
 0x464   :  { %1944 = vmatpush1.bf16.msra.mxu1 %v7410_v35  ;;  %v5572_v35 = vld [vmem:[#allocation9 + $0x1c4] ss:$16 sps:$4 sm:$0xff]  }
 0x465   :  { %1945 = vmatprep.subr.bf16.mxu1 %v7411_v19  ;;  %7416 = vst [vmem:[#allocation101_spill] sm:$0xff] %v5572_v35 }
 0x466   :  { %1905 = vmatpush1.bf16.msra.mxu0 %v7412_v37 }
 0x467   :  { %1906 = vmatprep.subr.bf16.mxu0 %v7413_v58  ;;  %v5576_v58 = vld [vmem:[#allocation9 + $0x1cc] ss:$16 sps:$4 sm:$0xff]  }
 0x468   :  { %1946 = vmatpush1.bf16.msra.mxu1 %v7414_v38  ;;  %7417 = vst [vmem:[#allocation102_spill] sm:$0xff] %v5576_v58 }
 0x469   :  { %1947 = vmatprep.subr.bf16.mxu1 %v7415_v42  ;;  %v5579_v42 = vld [vmem:[#allocation9 + $0x1c0] ss:$16 sps:$4 sm:$0xff]  }
 0x46a   :  { %1907 = vmatpush1.bf16.msra.mxu0 %v5404_v3  ;;  %7418 = vst [vmem:[#allocation19_spill] sm:$0xff] %v5579_v42 }
 0x46b   :  { %1908 = vmatprep.subr.bf16.mxu0 %v5407_v2  ;;  %v5582_v2 = vld [vmem:[#allocation9 + $0x1a4] ss:$16 sps:$4 sm:$0xff]  }
 0x46c   :  { %1948 = vmatpush1.bf16.msra.mxu1 %v5410_v50  ;;  %7419 = vst [vmem:[#allocation20_spill] sm:$0xff] %v5582_v2 }
 0x46d   :  { %1949 = vmatprep.subr.bf16.mxu1 %v5413_v63  ;;  %v5585_v63 = vld [vmem:[#allocation9 + $0x1c8] ss:$16 sps:$4 sm:$0xff]  }
 0x46e   :  { %1909 = vmatpush2.bf16.msra.mxu0 %v5416_v62  ;;  %7420 = vst [vmem:[#allocation21_spill] sm:$0xff] %v5585_v63  ;;  %v5588_v62 = vld [vmem:[#allocation9 + $0x1ac] ss:$16 sps:$4 sm:$0xff]  }
 0x46f   :  { %1910 = vmatprep.subr.bf16.mxu0 %v5572_v35  ;;  %7421 = vst [vmem:[#allocation22_spill] sm:$0xff] %v5588_v62 }
 0x470   :  { %1950 = vmatpush2.bf16.msra.mxu1 %v5420_v0  ;;  %v5591_v0 = vld [vmem:[#allocation9 + $0x1a0] ss:$16 sps:$4 sm:$0xff]  }
 0x471   :  { %1951 = vmatprep.subr.bf16.mxu1 %v5576_v58  ;;  %7422 = vst [vmem:[#allocation25_spill] sm:$0xff] %v5591_v0  ;;  %v5594_v58 = vld [vmem:[#allocation9 + $0x184] ss:$16 sps:$4 sm:$0xff]  }
 0x472   :  { %1911 = vmatpush2.bf16.msra.mxu0 %v5579_v42  ;;  %7423 = vst [vmem:[#allocation26_spill] sm:$0xff] %v5594_v58  ;;  %v5597_v42 = vld [vmem:[#allocation9 + $0x1a8] ss:$16 sps:$4 sm:$0xff]  }
 0x473   :  { %1912 = vmatprep.subr.bf16.mxu0 %v5582_v2  ;;  %7424 = vst [vmem:[#allocation23_spill] sm:$0xff] %v5597_v42  ;;  %v5600_v2 = vld [vmem:[#allocation9 + $0x18c] ss:$16 sps:$4 sm:$0xff]  }
 0x474   :  { %1952 = vmatpush2.bf16.msra.mxu1 %v5585_v63  ;;  %7425 = vst [vmem:[#allocation24_spill] sm:$0xff] %v5600_v2  ;;  %v5603_v63 = vld [vmem:[#allocation9 + $0x180] ss:$16 sps:$4 sm:$0xff]  }
 0x475   :  { %1953 = vmatprep.subr.bf16.mxu1 %v5588_v62  ;;  %7426 = vst [vmem:[#allocation29_spill] sm:$0xff] %v5603_v63  ;;  %v5606_v62 = vld [vmem:[#allocation9 + $0x164] ss:$16 sps:$4 sm:$0xff]  }
 0x476   :  { %1913 = vmatpush2.bf16.msra.mxu0 %v5591_v0  ;;  %7427 = vst [vmem:[#allocation30_spill] sm:$0xff] %v5606_v62  ;;  %v5609_v0 = vld [vmem:[#allocation9 + $0x188] ss:$16 sps:$4 sm:$0xff]  }
 0x477   :  { %1914 = vmatprep.subr.bf16.mxu0 %v5594_v58  ;;  %7428 = vst [vmem:[#allocation27_spill] sm:$0xff] %v5609_v0  ;;  %v5612_v58 = vld [vmem:[#allocation9 + $0x16c] ss:$16 sps:$4 sm:$0xff]  }
 0x478   :  { %1954 = vmatpush2.bf16.msra.mxu1 %v5597_v42  ;;  %7429 = vst [vmem:[#allocation28_spill] sm:$0xff] %v5612_v58  ;;  %v5615_v42 = vld [vmem:[#allocation9 + $0x160] ss:$16 sps:$4 sm:$0xff]  }
 0x479   :  { %1955 = vmatprep.subr.bf16.mxu1 %v5600_v2  ;;  %7430 = vst [vmem:[#allocation48_spill] sm:$0xff] %v5615_v42  ;;  %v5618_v2 = vld [vmem:[#allocation9 + $0x144] ss:$16 sps:$4 sm:$0xff]  }
 0x47a   :  { %1915 = vmatpush2.bf16.msra.mxu0 %v5603_v63  ;;  %7431 = vst [vmem:[#allocation53_spill] sm:$0xff] %v5618_v2  ;;  %v5621_v63 = vld [vmem:[#allocation9 + $0x168] ss:$16 sps:$4 sm:$0xff]  }
 0x47b   :  { %1916 = vmatprep.subr.bf16.mxu0 %v5606_v62  ;;  %7432 = vst [vmem:[#allocation55_spill] sm:$0xff] %v5621_v63  ;;  %v5624_v62 = vld [vmem:[#allocation9 + $0x14c] ss:$16 sps:$4 sm:$0xff]  }
 0x47c   :  { %1956 = vmatpush2.bf16.msra.mxu1 %v5609_v0  ;;  %7433 = vst [vmem:[#allocation54_spill] sm:$0xff] %v5624_v62  ;;  %v5627_v0 = vld [vmem:[#allocation9 + $0x140] ss:$16 sps:$4 sm:$0xff]  }
 0x47d   :  { %1957 = vmatprep.subr.bf16.mxu1 %v5612_v58  ;;  %7434 = vst [vmem:[#allocation56_spill] sm:$0xff] %v5627_v0  ;;  %v5630_v58 = vld [vmem:[#allocation9 + $0x124] ss:$16 sps:$4 sm:$0xff]  }
 0x47e   :  { %1917 = vmatpush2.bf16.msra.mxu0 %v5615_v42  ;;  %7435 = vst [vmem:[#allocation58_spill] sm:$0xff] %v5630_v58  ;;  %v5633_v42 = vld [vmem:[#allocation9 + $0x148] ss:$16 sps:$4 sm:$0xff]  }
 0x47f   :  { %1918 = vmatprep.subr.bf16.mxu0 %v5618_v2  ;;  %7436 = vst [vmem:[#allocation61_spill] sm:$0xff] %v5633_v42  ;;  %v5636_v2 = vld [vmem:[#allocation9 + $0x12c] ss:$16 sps:$4 sm:$0xff]  }
 0x480   :  { %1958 = vmatpush2.bf16.msra.mxu1 %v5621_v63  ;;  %7437 = vst [vmem:[#allocation85_spill] sm:$0xff] %v5636_v2  ;;  %v5639_v63 = vld [vmem:[#allocation9 + $0x120] ss:$16 sps:$4 sm:$0xff]  }
 0x481   :  { %1959 = vmatprep.subr.bf16.mxu1 %v5624_v62  ;;  %7438 = vst [vmem:[#allocation84_spill] sm:$0xff] %v5639_v63  ;;  %v5642_v62 = vld [vmem:[#allocation9 + $0x104] ss:$16 sps:$4 sm:$0xff]  }
 0x482   :  { %1919 = vmatpush2.bf16.msra.mxu0 %v5627_v0  ;;  %7439 = vst [vmem:[#allocation103_spill] sm:$0xff] %v5642_v62  ;;  %v5645_v0 = vld [vmem:[#allocation9 + $0x128] ss:$16 sps:$4 sm:$0xff]  }
 0x483   :  { %1920 = vmatprep.subr.bf16.mxu0 %v5630_v58  ;;  %7440 = vst [vmem:[#allocation104_spill] sm:$0xff] %v5645_v0  ;;  %v5648_v58 = vld [vmem:[#allocation9 + $0x10c] ss:$16 sps:$4 sm:$0xff]  }
 0x484   :  { %1960 = vmatpush2.bf16.msra.mxu1 %v5633_v42  ;;  %7441 = vst [vmem:[#allocation105_spill] sm:$0xff] %v5648_v58  ;;  %v5651_v42 = vld [vmem:[#allocation9 + $0x100] ss:$16 sps:$4 sm:$0xff]  }
 0x485   :  { %1961 = vmatprep.subr.bf16.mxu1 %v5636_v2  ;;  %7442 = vst [vmem:[#allocation106_spill] sm:$0xff] %v5651_v42  ;;  %v5655_v2 = vld [vmem:[#allocation9 + $0x108] ss:$16 sps:$4 sm:$0xff]  }
 0x486   :  { %1921 = vmatpush2.bf16.msra.mxu0 %v5639_v63  ;;  %7443 = vst [vmem:[#allocation107_spill] sm:$0xff] %v5655_v2 }
 0x487   :  { %1922 = vmatprep.subr.bf16.mxu0 %v5642_v62 }
 0x488   :  { %1962 = vmatpush2.bf16.msra.mxu1 %v5645_v0 }
 0x489   :  { %1963 = vmatprep.subr.bf16.mxu1 %v5648_v58 }
 0x48a   :  { %1923 = vmatpush2.bf16.msra.mxu0 %v5651_v42 }
 0x48b   :  { %2052 = vmatprep.subr.bf16.mxu0 %v5062_v48 }
 0x48c   :  { %1964 = vmatpush2.bf16.msra.mxu1 %v5655_v2 }
 0x48d   :  { %2093 = vmatprep.subr.bf16.mxu1 %v5066_v56 }
 0x4cd   :  { %v1659_v62 = vpop.f32.mrf.mxu0  ;;  %v1700_v63 = vpop.f32.mrf.mxu1 }
 0x4ce   :  { %v1660_v0 = vadd.f32 %v1659_v62, %v5071_v52  ;;  %v1701_v2 = vadd.f32 %v1700_v63, %v5081_v4 }
 0x4cf   :  { %v1661_v35 = vpop.f32.mrf.mxu0  ;;  %v1702_v50 = vpop.f32.mrf.mxu1 }
 0x4d0   :  { %v3417_v3 = vmul.f32 -1.442695, %v1660_v0  ;;  %v1662_v58 = vadd.f32 %v1661_v35, %v5075_v59  ;;  %v3419_v1 = vmul.f32 -1.442695, %v1701_v2  ;;  %v1703_v36 = vadd.f32 %v1702_v50, %v5086_v7 }
 0x4d1   :  { %v1663_v38 = vpop.f32.mrf.mxu0  ;;  %v1704_v37 = vpop.f32.mrf.mxu1 }
 0x4d2   :  { %3824 = vpow2.f32 %v3417_v3  ;;  %v3418_v42 = vmul.f32 -1.442695, %v1662_v58 }
 0x4d3   :  { %v1664_v48 = vpop.f32.mrf.mxu0  ;;  %v1705_v19 = vpop.f32.mrf.mxu1 }
 0x4d4   :  { %3826 = vpow2.f32 %v3418_v42 }
 0x4d5   :  { %3828 = vpow2.f32 %v3419_v1 }
 0x4df   :  { %v3825_v56 = vpop.eup %3824 }
 0x4e0   :  { %v1716_v33 = vadd.f32 1.0, %v3825_v56 }
 0x4e1   :  { %v3827_v62 = vpop.eup %3826 }
 0x4e2   :  { %3830 = vrcp.f32 %v1716_v33  ;;  %v1717_v0 = vadd.f32 1.0, %v3827_v62  ;;  %v3829_v38 = vpop.eup %3828 }
 0x4e3   :  { %3832 = vtanh.f32 %v1703_v36  ;;  %v1718_v35 = vadd.f32 1.0, %v3829_v38 }
 0x4e4   :  { %3834 = vrcp.f32 %v1717_v0 }
 0x4e5   :  { %3836 = vrcp.f32 %v1718_v35 }
 0x4ef   :  { %v3831_v37 = vpop.eup %3830 }
 0x4f0   :  { %v3833_v3 = vpop.eup %3832 }
 0x4f1   :  { %v3835_v58 = vpop.eup %3834  ;;  %v1727_v19 = vmul.f32 %v3833_v3, %v3831_v37 }
 0x4f2   :  { %v1726_v42 = vmul.f32 %v3835_v58, %v5457_v45  ;;  %v3837_v2 = vpop.eup %3836 }
 0x4f4   :  { %v5664_v63 = vadd.f32 %v1727_v19, %v1726_v42 }
 0x4f6   :  { %3838 = vtanh.f32 %v5664_v63 }
 0x503   :  { %v3839_v50 = vpop.eup %3838 }
 0x504   :  { %v1730_v1 = vmul.f32 %v3839_v50, %v3837_v2 }
 0x506   :  { %v1731_v33 = vpack.c.bf16 %v1730_v1, %v1730_v1 }
 0x508   :  { %1924 = vmatprep.mubr.bf16.mxu0 %v1731_v33  ;;  %1965 = vmatprep.mubr.bf16.mxu1 %v1731_v33 }
 0x50d   :  { %v1819_v36 = vpop.f32.mrf.mxu0 }
 0x50e   :  { %v1820_v48 = vadd.f32 %v1819_v36, %v7257_v49 }
 0x50f   :  { %v1821_v56 = vpop.f32.mrf.mxu0  ;;  %v1860_v62 = vpop.f32.mrf.mxu1 }
 0x510   :  { %v3428_v0 = vmul.f32 -1.442695, %v1820_v48  ;;  %v1822_v45 = vadd.f32 %v1821_v56, %v7258_v61  ;;  %v1861_v19 = vadd.f32 %v1860_v62, %v7259_v12 }
 0x511   :  { %v1823_v38 = vpop.f32.mrf.mxu0  ;;  %v1862_v37 = vpop.f32.mrf.mxu1 }
 0x512   :  { %3840 = vpow2.f32 %v3428_v0  ;;  %v3429_v3 = vmul.f32 -1.442695, %v1822_v45  ;;  %v3430_v2 = vmul.f32 -1.442695, %v1861_v19  ;;  %v1863_v50 = vadd.f32 %v1862_v37, %v4924_v6 }
 0x513   :  { %v1824_v58 = vpop.f32.mrf.mxu0  ;;  %v1864_v35 = vpop.f32.mrf.mxu1 }
 0x514   :  { %3842 = vpow2.f32 %v3429_v3 }
 0x515   :  { %v1865_v42 = vpop.f32.mrf.mxu1  ;;  %3844 = vpow2.f32 %v3430_v2 }
 0x516   :  { %3846 = vtanh.f32 %v1863_v50 }
 0x51f   :  { %v3841_v1 = vpop.eup %3840 }
 0x520   :  { %v1876_v33 = vadd.f32 1.0, %v3841_v1  ;;  %v7461_v1 = vld [vmem:[#allocation49_spill] sm:$0xff] }
 0x521   :  { %v3843_v36 = vpop.eup %3842 }
 0x522   :  { %3848 = vrcp.f32 %v1876_v33  ;;  %v1877_v48 = vadd.f32 1.0, %v3843_v36  ;;  %v3845_v56 = vpop.eup %3844  ;;  %v7462_v36 = vld [vmem:[#allocation51_spill] sm:$0xff] }
 0x523   :  { %v3847_v0 = vpop.eup %3846  ;;  %v1878_v58 = vadd.f32 1.0, %v3845_v56 }
 0x524   :  { %3850 = vrcp.f32 %v1877_v48  ;;  %v2016_v48 = vld [vmem:[%s2015_s11] sm:$0x1]  ;;  %s2543_s11 = scalar_lea.vmem [#allocation4], %s3465_s27 }
 0x525   :  { %3852 = vrcp.f32 %v1878_v58  ;;  %v2019_v58 = vld [vmem:[%s2018_s1] sm:$0x1]  ;;  %s3469_s1 = sld [smem:[#allocation3 + $0x386]] }
 0x52b   :  { %s2555_s14 = scalar_lea.vmem [#allocation4], %s3469_s1 }
 0x52f   :  { %v3849_v45 = vpop.eup %3848 }
 0x530   :  { %v1887_v35 = vmul.f32 %v3849_v45, %v3847_v0  ;;  %v7463_v0 = vld [vmem:[#allocation50_spill] sm:$0xff] }
 0x531   :  { %v3851_v38 = vpop.eup %3850 }
 0x532   :  { %v1886_v3 = vmul.f32 %v3851_v38, %v5465_v18  ;;  %v3853_v37 = vpop.eup %3852  ;;  %v2007_v18 = vld [vmem:[%s2006_s28] sm:$0x1]  ;;  %v7464_v38 = vld [vmem:[#allocation52_spill] sm:$0xff]  ;;  %s3466_s28 = sld [smem:[#allocation3 + $0x206]] }
 0x534   :  { %v5672_v62 = vadd.f32 %v1887_v35, %v1886_v3  ;;  %v2036_v3 = vrot.slane %v2016_v48, 3  ;;  %v7465_v35 = vld [vmem:[#allocation57_spill] sm:$0xff] }
 0x535   :  { %v7504_v48 = vld [vmem:[#allocation101_spill] sm:$0xff] }
 0x536   :  { %3854 = vtanh.f32 %v5672_v62 }
 0x543   :  { %v3855_v42 = vpop.eup %3854 }
 0x544   :  { %v1890_v19 = vmul.f32 %v3855_v42, %v3853_v37  ;;  %v2022_v37 = vld [vmem:[%s2021_s0] sm:$0x1]  ;;  %v2039_v42 = vrot.slane %v2019_v58, 2  ;;  %v7509_v58 = vld [vmem:[#allocation21_spill] sm:$0xff]  ;;  %s2546_s0 = scalar_lea.vmem [#allocation4], %s3466_s28 }
 0x546   :  { %v1891_v2 = vpack.c.bf16 %v1890_v19, %v1890_v19  ;;  %v2042_v19 = vrot.slane %v2022_v37, 1  ;;  %v7513_v37 = vld [vmem:[#allocation23_spill] sm:$0xff] }
 0x548   :  { %1925 = vmatmul.mubr.bf16.vlgmr.msra.gmra.mxu0 %v1891_v2  ;;  %1966 = vmatmul.mubr.bf16.vlgmr.msra.gmra.mxu1 %v1891_v2 }
 0x549   :  { %2053 = vmatpush1.bf16.msra.mxu0 %v5100_v5  ;;  %2084 = vmatprep.mubr.bf16.mxu0 %v1891_v2  ;;  %v7444_v5 = vld [vmem:[#allocation32_spill] sm:$0xff] }
 0x54a   :  { %2125 = vmatprep.mubr.bf16.mxu1 %v1891_v2  ;;  %2054 = vmatprep.subr.bf16.mxu0 %v5103_v8  ;;  %v7445_v8 = vld [vmem:[#allocation34_spill] sm:$0xff]  ;;  %v7466_v2 = vld [vmem:[#allocation59_spill] sm:$0xff] }
 0x54b   :  { %2094 = vmatpush1.bf16.msra.mxu1 %v5106_v57  ;;  %v7446_v57 = vld [vmem:[#allocation31_spill] sm:$0xff] }
 0x54c   :  { %2095 = vmatprep.subr.bf16.mxu1 %v5109_v9  ;;  %v7447_v9 = vld [vmem:[#allocation33_spill] sm:$0xff] }
 0x54d   :  { %2055 = vmatpush1.bf16.msra.mxu0 %v5112_v10  ;;  %v7448_v10 = vld [vmem:[#allocation36_spill] sm:$0xff] }
 0x54e   :  { %2056 = vmatprep.subr.bf16.mxu0 %v5115_v11  ;;  %v7449_v11 = vld [vmem:[#allocation38_spill] sm:$0xff] }
 0x54f   :  { %2096 = vmatpush1.bf16.msra.mxu1 %v5118_v13  ;;  %v7450_v13 = vld [vmem:[#allocation35_spill] sm:$0xff] }
 0x550   :  { %2097 = vmatprep.subr.bf16.mxu1 %v5121_v14  ;;  %v7451_v14 = vld [vmem:[#allocation37_spill] sm:$0xff] }
 0x551   :  { %2057 = vmatpush1.bf16.msra.mxu0 %v5124_v15  ;;  %v2004_v15 = vld [vmem:[%s2003_s26] sm:$0x1]  ;;  %s3462_s26 = sld [smem:[#allocation3 + $0x6]] }
 0x552   :  { %2058 = vmatprep.subr.bf16.mxu0 %v5127_v17  ;;  %v7452_v17 = vld [vmem:[#allocation40_spill] sm:$0xff] }
 0x553   :  { %2098 = vmatpush1.bf16.msra.mxu1 %v5130_v46  ;;  %v7453_v46 = vld [vmem:[#allocation41_spill] sm:$0xff] }
 0x554   :  { %2099 = vmatprep.subr.bf16.mxu1 %v5133_v53  ;;  %v7454_v53 = vld [vmem:[#allocation39_spill] sm:$0xff] }
 0x555   :  { %2059 = vmatpush1.bf16.msra.mxu0 %v7342_v54  ;;  %v2024_v54 = vrot.slane %v2004_v15, 7  ;;  %v7481_v15 = vld [vmem:[#allocation74_spill] sm:$0xff] }
 0x556   :  { %2060 = vmatprep.subr.bf16.mxu0 %v7343_v23  ;;  %v7455_v23 = vld [vmem:[#allocation43_spill] sm:$0xff] }
 0x557   :  { %2100 = vmatpush1.bf16.msra.mxu1 %v7344_v24  ;;  %v2001_v24 = vld [vmem:[%s2000_s29] sm:$0x1]  ;;  %s2537_s29 = scalar_lea.vmem [#allocation4], %s3463_s24  ;;  %s2534_s9 = scalar_lea.vmem [#allocation4], %s3462_s26 }
 0x558   :  { %2101 = vmatprep.subr.bf16.mxu1 %v7345_v60  ;;  %v7456_v60 = vld [vmem:[#allocation42_spill] sm:$0xff]  ;;  %s2816_s24 = scalar_lea.vmem [#allocation4], %s3481_s18 }
 0x559   :  { %2061 = vmatpush1.bf16.msra.mxu0 %v7346_v25  ;;  %v7457_v25 = vld [vmem:[#allocation45_spill] sm:$0xff] }
 0x55a   :  { %2062 = vmatprep.subr.bf16.mxu0 %v7347_v26  ;;  %v2010_v26 = vld [vmem:[%s2009_s4] sm:$0x1]  ;;  %s2540_s4 = scalar_lea.vmem [#allocation4], %s3464_s25 }
 0x55b   :  { %2102 = vmatpush1.bf16.msra.mxu1 %v7348_v27  ;;  %v2027_v27 = vrot.slane %v2007_v18, 6  ;;  %v2030_v50 = vrot.slane %v2010_v26, 5  ;;  %v7485_v18 = vld [vmem:[#allocation78_spill] sm:$0xff] }
 0x55c   :  { %2103 = vmatprep.subr.bf16.mxu1 %v7349_v28  ;;  %v7458_v28 = vld [vmem:[#allocation44_spill] sm:$0xff]  ;;  %v7491_v26 = vld [vmem:[#allocation86_spill] sm:$0xff] }
 0x55d   :  { %2063 = vmatpush1.bf16.msra.mxu0 %v7350_v29  ;;  %v2044_v29 = vsel %vm157_vm0, %v2001_v24, %v2024_v54  ;;  %v7486_v54 = vld [vmem:[#allocation81_spill] sm:$0xff]  ;;  %v7488_v24 = vld [vmem:[#allocation83_spill] sm:$0xff] }
 0x55e   :  { %2064 = vmatprep.subr.bf16.mxu0 %v7351_v30  ;;  %v7459_v30 = vld [vmem:[#allocation47_spill] sm:$0xff]  ;;  %v2045_v33 = vsel %vm159_vm1, %v2044_v29, %v2027_v27  ;;  %v7492_v27 = vld [vmem:[#allocation88_spill] sm:$0xff] }
 0x55f   :  { %2104 = vmatpush1.bf16.msra.mxu1 %v7352_v31  ;;  %v7460_v31 = vld [vmem:[#allocation46_spill] sm:$0xff]  ;;  %v2046_v45 = vsel %vm161_vm2, %v2045_v33, %v2030_v50  ;;  %v7494_v29 = vld [vmem:[#allocation91_spill] sm:$0xff] }
 0x560   :  { %2105 = vmatprep.subr.bf16.mxu1 %v7353_v32  ;;  %v2013_v32 = vld [vmem:[%s2012_s10] sm:$0x1]  ;;  %v7498_v50 = vld [vmem:[#allocation95_spill] sm:$0xff]  ;;  %s3468_s10 = sld [smem:[#allocation3 + $0x306]] }
 0x561   :  { %2065 = vmatpush1.bf16.msra.mxu0 %v7444_v5  ;;  %v2033_v56 = vrot.slane %v2013_v32, 4  ;;  %v7468_v5 = vld [vmem:[#allocation63_spill] sm:$0xff]  ;;  %v7497_v32 = vld [vmem:[#allocation93_spill] sm:$0xff]  ;;  %v7502_v33 = vld [vmem:[#allocation98_spill] sm:$0xff] }
 0x562   :  { %2066 = vmatprep.subr.bf16.mxu0 %v7445_v8  ;;  %v7470_v8 = vld [vmem:[#allocation65_spill] sm:$0xff] }
 0x563   :  { %2106 = vmatpush1.bf16.msra.mxu1 %v7446_v57  ;;  %v7471_v57 = vld [vmem:[#allocation64_spill] sm:$0xff] }
 0x564   :  { %2107 = vmatprep.subr.bf16.mxu1 %v7447_v9  ;;  %v7476_v9 = vld [vmem:[#allocation71_spill] sm:$0xff] }
 0x565   :  { %2067 = vmatpush1.bf16.msra.mxu0 %v7448_v10  ;;  %v7477_v10 = vld [vmem:[#allocation70_spill] sm:$0xff] }
 0x566   :  { %2068 = vmatprep.subr.bf16.mxu0 %v7449_v11  ;;  %v7478_v11 = vld [vmem:[#allocation73_spill] sm:$0xff]  ;;  %s2552_s13 = scalar_lea.vmem [#allocation4], %s3468_s10 }
 0x567   :  { %2108 = vmatpush1.bf16.msra.mxu1 %v7450_v13  ;;  %v7479_v13 = vld [vmem:[#allocation72_spill] sm:$0xff] }
 0x568   :  { %2109 = vmatprep.subr.bf16.mxu1 %v7451_v14  ;;  %v7480_v14 = vld [vmem:[#allocation75_spill] sm:$0xff] }
 0x569   :  { %2069 = vmatpush2.bf16.msra.mxu0 %v7452_v17  ;;  %v7482_v17 = vld [vmem:[#allocation77_spill] sm:$0xff] }
 0x56a   :  { %2070 = vmatprep.subr.bf16.mxu0 %v7453_v46  ;;  %v7483_v46 = vld [vmem:[#allocation76_spill] sm:$0xff] }
 0x56b   :  { %2110 = vmatpush2.bf16.msra.mxu1 %v7454_v53  ;;  %v7484_v53 = vld [vmem:[#allocation79_spill] sm:$0xff] }
 0x56c   :  { %2111 = vmatprep.subr.bf16.mxu1 %v7455_v23  ;;  %v7487_v23 = vld [vmem:[#allocation80_spill] sm:$0xff] }
 0x56d   :  { %2071 = vmatpush2.bf16.msra.mxu0 %v7456_v60  ;;  %v7489_v60 = vld [vmem:[#allocation82_spill] sm:$0xff] }
 0x56e   :  { %2072 = vmatprep.subr.bf16.mxu0 %v7457_v25  ;;  %v7490_v25 = vld [vmem:[#allocation87_spill] sm:$0xff] }
 0x56f   :  { %2112 = vmatpush2.bf16.msra.mxu1 %v7458_v28  ;;  %v7493_v28 = vld [vmem:[#allocation89_spill] sm:$0xff] }
 0x570   :  { %2113 = vmatprep.subr.bf16.mxu1 %v7459_v30  ;;  %v7495_v30 = vld [vmem:[#allocation90_spill] sm:$0xff] }
 0x571   :  { %2073 = vmatpush2.bf16.msra.mxu0 %v7460_v31  ;;  %v7496_v31 = vld [vmem:[#allocation92_spill] sm:$0xff] }
 0x572   :  { %2074 = vmatprep.subr.bf16.mxu0 %v7461_v1  ;;  %v7501_v1 = vld [vmem:[#allocation97_spill] sm:$0xff] }
 0x573   :  { %2114 = vmatpush2.bf16.msra.mxu1 %v7372_v40  ;;  %v2047_v40 = vsel %vm163_vm3, %v2046_v45, %v2033_v56  ;;  %v7505_v56 = vld [vmem:[#allocation100_spill] sm:$0xff]  ;;  %v7507_v45 = vld [vmem:[#allocation19_spill] sm:$0xff] }
 0x574   :  { %2115 = vmatprep.subr.bf16.mxu1 %v7462_v36  ;;  %v7503_v36 = vld [vmem:[#allocation99_spill] sm:$0xff] }
 0x575   :  { %2075 = vmatpush2.bf16.msra.mxu0 %v7463_v0  ;;  %v7506_v0 = vld [vmem:[#allocation102_spill] sm:$0xff] }
 0x576   :  { %2076 = vmatprep.subr.bf16.mxu0 %v7375_v22  ;;  %v2048_v22 = vsel %vm165_vm4, %v2047_v40, %v2036_v3  ;;  %v7510_v3 = vld [vmem:[#allocation22_spill] sm:$0xff]  ;;  %v7511_v40 = vld [vmem:[#allocation25_spill] sm:$0xff] }
 0x577   :  { %2116 = vmatpush2.bf16.msra.mxu1 %v7464_v38  ;;  %v7508_v38 = vld [vmem:[#allocation20_spill] sm:$0xff] }
 0x578   :  { %2117 = vmatprep.subr.bf16.mxu1 %v7377_v55  ;;  %v2049_v55 = vsel %vm167_vm5, %v2048_v22, %v2039_v42  ;;  %v7514_v42 = vld [vmem:[#allocation24_spill] sm:$0xff]  ;;  %v7515_v22 = vld [vmem:[#allocation29_spill] sm:$0xff] }
 0x579   :  { %2077 = vmatpush2.bf16.msra.mxu0 %v7378_v16  ;;  %v2050_v16 = vsel %vm169_vm6, %v2049_v55, %v2042_v19  ;;  %v7516_v19 = vld [vmem:[#allocation30_spill] sm:$0xff]  ;;  %v7518_v55 = vld [vmem:[#allocation28_spill] sm:$0xff] }
 0x57a   :  { %2078 = vmatprep.subr.bf16.mxu0 %v7465_v35  ;;  %v7512_v35 = vld [vmem:[#allocation26_spill] sm:$0xff] }
 0x57b   :  { %2118 = vmatpush2.bf16.msra.mxu1 %v5275_v43  ;;  %v7467_v43 = vld [vmem:[#allocation60_spill] sm:$0xff] }
 0x57c   :  { %2119 = vmatprep.subr.bf16.mxu1 %v5279_v51  ;;  %v2051_v51 = vpack.c.bf16 %v2050_v16, %v2050_v16  ;;  %v7519_v16 = vld [vmem:[#allocation48_spill] sm:$0xff] }
 0x57d   :  { %2079 = vmatpush2.bf16.msra.mxu0 %v7380_v39  ;;  %v7469_v39 = vld [vmem:[#allocation62_spill] sm:$0xff] }
 0x57e   :  { %2080 = vmatprep.subr.bf16.mxu0 %v7466_v2  ;;  %v7517_v2 = vld [vmem:[#allocation27_spill] sm:$0xff] }
 0x57f   :  { %2120 = vmatpush2.bf16.msra.mxu1 %v5289_v47  ;;  %v7472_v47 = vld [vmem:[#allocation67_spill] sm:$0xff] }
 0x580   :  { %2121 = vmatprep.subr.bf16.mxu1 %v7382_v20  ;;  %v7473_v20 = vld [vmem:[#allocation66_spill] sm:$0xff] }
 0x581   :  { %2081 = vmatpush2.bf16.msra.mxu0 %v7383_v34  ;;  %v7474_v34 = vld [vmem:[#allocation69_spill] sm:$0xff] }
 0x582   :  { %2082 = vmatprep.subr.bf16.mxu0 %v5299_v44  ;;  %v7475_v44 = vld [vmem:[#allocation68_spill] sm:$0xff] }
 0x583   :  { %2122 = vmatpush2.bf16.msra.mxu1 %v7467_v43  ;;  %v7520_v43 = vld [vmem:[#allocation53_spill] sm:$0xff] }
 0x584   :  { %2123 = vmatprep.subr.bf16.mxu1 %v7468_v5  ;;  %v7522_v5 = vld [vmem:[#allocation54_spill] sm:$0xff] }
 0x585   :  { %2083 = vmatpush2.bf16.msra.mxu0 %v7469_v39  ;;  %v7523_v39 = vld [vmem:[#allocation56_spill] sm:$0xff] }
 0x586   :  { %2159 = vmatprep.subr.bf16.mxu0 %v7470_v8  ;;  %v7524_v8 = vld [vmem:[#allocation58_spill] sm:$0xff] }
 0x587   :  { %2124 = vmatpush2.bf16.msra.mxu1 %v7471_v57  ;;  %v7525_v57 = vld [vmem:[#allocation61_spill] sm:$0xff] }
 0x588   :  { %2085 = vmatmul.mubr.bf16.vlgmr.msra.gmra.mxu0 %v2051_v51  ;;  %2200 = vmatprep.subr.bf16.mxu1 %v7472_v47  ;;  %v7526_v47 = vld [vmem:[#allocation85_spill] sm:$0xff] }
 0x589   :  { %2160 = vmatpush1.bf16.msra.mxu0 %v7473_v20  ;;  %v7527_v20 = vld [vmem:[#allocation84_spill] sm:$0xff] }
 0x58a   :  { %2126 = vmatmul.mubr.bf16.vlgmr.msra.gmra.mxu1 %v2051_v51  ;;  %2161 = vmatprep.subr.bf16.mxu0 %v7474_v34  ;;  %v7521_v51 = vld [vmem:[#allocation55_spill] sm:$0xff] }
 0x58b   :  { %2201 = vmatpush1.bf16.msra.mxu1 %v7475_v44  ;;  %v7528_v34 = vld [vmem:[#allocation103_spill] sm:$0xff]  ;;  %v7529_v44 = vld [vmem:[#allocation104_spill] sm:$0xff] }
 0x58c   :  { %2202 = vmatprep.subr.bf16.mxu1 %v7476_v9  ;;  %v7530_v9 = vld [vmem:[#allocation105_spill] sm:$0xff] }
 0x58d   :  { %2162 = vmatpush1.bf16.msra.mxu0 %v7477_v10  ;;  %v7531_v10 = vld [vmem:[#allocation106_spill] sm:$0xff] }
 0x58e   :  { %2163 = vmatprep.subr.bf16.mxu0 %v7478_v11  ;;  %v5807_v11 = vld [vmem:[#allocation6 + $0xe4] ss:$16 sps:$4 sm:$0xff]  }
 0x58f   :  { %2203 = vmatpush1.bf16.msra.mxu1 %v7479_v13  ;;  %v7532_v13 = vld [vmem:[#allocation107_spill] sm:$0xff] }
 0x590   :  { %2204 = vmatprep.subr.bf16.mxu1 %v7480_v14  ;;  %v5811_v14 = vld [vmem:[#allocation6 + $0xec] ss:$16 sps:$4 sm:$0xff]  }
 0x591   :  { %2164 = vmatpush1.bf16.msra.mxu0 %v7481_v15 }
 0x592   :  { %2165 = vmatprep.subr.bf16.mxu0 %v7482_v17 }
 0x593   :  { %2205 = vmatpush1.bf16.msra.mxu1 %v7483_v46 }
 0x594   :  { %2206 = vmatprep.subr.bf16.mxu1 %v7484_v53 }
 0x595   :  { %2166 = vmatpush1.bf16.msra.mxu0 %v7485_v18 }
 0x596   :  { %2167 = vmatprep.subr.bf16.mxu0 %v7486_v54 }
 0x597   :  { %2207 = vmatpush1.bf16.msra.mxu1 %v7487_v23 }
 0x598   :  { %2208 = vmatprep.subr.bf16.mxu1 %v7488_v24 }
 0x599   :  { %2168 = vmatpush1.bf16.msra.mxu0 %v7489_v60 }
 0x59a   :  { %2169 = vmatprep.subr.bf16.mxu0 %v7405_v21  ;;  %v7499_v21 = vld [vmem:[#allocation94_spill] sm:$0xff] }
 0x59b   :  { %2209 = vmatpush1.bf16.msra.mxu1 %v7406_v41  ;;  %v7500_v41 = vld [vmem:[#allocation96_spill] sm:$0xff] }
 0x59c   :  { %2210 = vmatprep.subr.bf16.mxu1 %v7490_v25 }
 0x59d   :  { %2170 = vmatpush1.bf16.msra.mxu0 %v7491_v26 }
 0x59e   :  { %2171 = vmatprep.subr.bf16.mxu0 %v7492_v27 }
 0x59f   :  { %2211 = vmatpush1.bf16.msra.mxu1 %v7493_v28 }
 0x5a0   :  { %2212 = vmatprep.subr.bf16.mxu1 %v7494_v29 }
 0x5a1   :  { %2172 = vmatpush1.bf16.msra.mxu0 %v7495_v30 }
 0x5a2   :  { %2173 = vmatprep.subr.bf16.mxu0 %v7496_v31 }
 0x5a3   :  { %2213 = vmatpush1.bf16.msra.mxu1 %v7497_v32 }
 0x5a4   :  { %2214 = vmatprep.subr.bf16.mxu1 %v7498_v50 }
 0x5a5   :  { %2174 = vmatpush1.bf16.msra.mxu0 %v7499_v21 }
 0x5a6   :  { %2175 = vmatprep.subr.bf16.mxu0 %v7500_v41 }
 0x5a7   :  { %2215 = vmatpush1.bf16.msra.mxu1 %v7501_v1 }
 0x5a8   :  { %2216 = vmatprep.subr.bf16.mxu1 %v7502_v33 }
 0x5a9   :  { %2176 = vmatpush2.bf16.msra.mxu0 %v7503_v36 }
 0x5aa   :  { %2177 = vmatprep.subr.bf16.mxu0 %v7504_v48 }
 0x5ab   :  { %2217 = vmatpush2.bf16.msra.mxu1 %v7505_v56 }
 0x5ac   :  { %2218 = vmatprep.subr.bf16.mxu1 %v7506_v0 }
 0x5ad   :  { %2178 = vmatpush2.bf16.msra.mxu0 %v7507_v45 }
 0x5ae   :  { %2179 = vmatprep.subr.bf16.mxu0 %v7508_v38 }
 0x5af   :  { %2219 = vmatpush2.bf16.msra.mxu1 %v7509_v58 }
 0x5b0   :  { %2220 = vmatprep.subr.bf16.mxu1 %v7510_v3 }
 0x5b1   :  { %2180 = vmatpush2.bf16.msra.mxu0 %v7511_v40 }
 0x5b2   :  { %2181 = vmatprep.subr.bf16.mxu0 %v7512_v35 }
 0x5b3   :  { %2221 = vmatpush2.bf16.msra.mxu1 %v7513_v37 }
 0x5b4   :  { %2222 = vmatprep.subr.bf16.mxu1 %v7514_v42 }
 0x5b5   :  { %2182 = vmatpush2.bf16.msra.mxu0 %v7515_v22 }
 0x5b6   :  { %2183 = vmatprep.subr.bf16.mxu0 %v7516_v19 }
 0x5b7   :  { %2223 = vmatpush2.bf16.msra.mxu1 %v7517_v2 }
 0x5b8   :  { %2224 = vmatprep.subr.bf16.mxu1 %v7518_v55 }
 0x5b9   :  { %2184 = vmatpush2.bf16.msra.mxu0 %v7519_v16 }
 0x5ba   :  { %2185 = vmatprep.subr.bf16.mxu0 %v7520_v43 }
 0x5bb   :  { %2225 = vmatpush2.bf16.msra.mxu1 %v7521_v51 }
 0x5bc   :  { %2226 = vmatprep.subr.bf16.mxu1 %v7522_v5 }
 0x5bd   :  { %2186 = vmatpush2.bf16.msra.mxu0 %v7523_v39 }
 0x5be   :  { %2187 = vmatprep.subr.bf16.mxu0 %v7524_v8 }
 0x5bf   :  { %2227 = vmatpush2.bf16.msra.mxu1 %v7525_v57 }
 0x5c0   :  { %2228 = vmatprep.subr.bf16.mxu1 %v7526_v47 }
 0x5c1   :  { %2188 = vmatpush2.bf16.msra.mxu0 %v7527_v20 }
 0x5c2   :  { %2189 = vmatprep.subr.bf16.mxu0 %v7528_v34 }
 0x5c3   :  { %2229 = vmatpush2.bf16.msra.mxu1 %v7529_v44 }
 0x5c4   :  { %2230 = vmatprep.subr.bf16.mxu1 %v7530_v9 }
 0x5c5   :  { %2190 = vmatpush2.bf16.msra.mxu0 %v7531_v10 }
 0x5c6   :  { %2319 = vmatprep.subr.bf16.mxu0 %v5807_v11 }
 0x5c7   :  { %2231 = vmatpush2.bf16.msra.mxu1 %v7532_v13 }
 0x5c8   :  { %2360 = vmatprep.subr.bf16.mxu1 %v5811_v14 }
 0x608   :  { %v1926_v15 = vpop.f32.mrf.mxu0  ;;  %v1967_v17 = vpop.f32.mrf.mxu1 }
 0x609   :  { %v1927_v46 = vadd.f32 %v1926_v15, %v5071_v52  ;;  %v1968_v28 = vadd.f32 %v1967_v17, %v5081_v4 }
 0x60a   :  { %v1928_v53 = vpop.f32.mrf.mxu0  ;;  %v1969_v18 = vpop.f32.mrf.mxu1 }
 0x60b   :  { %v3431_v54 = vmul.f32 -1.442695, %v1927_v46  ;;  %v1929_v23 = vadd.f32 %v1928_v53, %v5075_v59  ;;  %v3433_v29 = vmul.f32 -1.442695, %v1968_v28  ;;  %v1970_v31 = vadd.f32 %v1969_v18, %v5086_v7 }
 0x60c   :  { %v1930_v24 = vpop.f32.mrf.mxu0  ;;  %v1971_v60 = vpop.f32.mrf.mxu1 }
 0x60d   :  { %3856 = vpow2.f32 %v3431_v54  ;;  %v3432_v25 = vmul.f32 -1.442695, %v1929_v23 }
 0x60e   :  { %v1931_v26 = vpop.f32.mrf.mxu0  ;;  %v1972_v27 = vpop.f32.mrf.mxu1 }
 0x60f   :  { %3858 = vpow2.f32 %v3432_v25 }
 0x610   :  { %3860 = vpow2.f32 %v3433_v29 }
 0x61a   :  { %v3857_v30 = vpop.eup %3856 }
 0x61b   :  { %v1983_v32 = vadd.f32 1.0, %v3857_v30 }
 0x61c   :  { %v3859_v50 = vpop.eup %3858 }
 0x61d   :  { %3862 = vrcp.f32 %v1983_v32  ;;  %v1984_v21 = vadd.f32 1.0, %v3859_v50  ;;  %v3861_v41 = vpop.eup %3860 }
 0x61e   :  { %3864 = vtanh.f32 %v1970_v31  ;;  %v1985_v56 = vadd.f32 1.0, %v3861_v41 }
 0x61f   :  { %3866 = vrcp.f32 %v1984_v21 }
 0x620   :  { %3868 = vrcp.f32 %v1985_v56 }
 0x62a   :  { %v3863_v1 = vpop.eup %3862 }
 0x62b   :  { %v3865_v33 = vpop.eup %3864 }
 0x62c   :  { %v3867_v36 = vpop.eup %3866  ;;  %v1994_v46 = vmul.f32 %v3865_v33, %v3863_v1 }
 0x62d   :  { %v1993_v15 = vmul.f32 %v3867_v36, %v5664_v63  ;;  %v3869_v53 = vpop.eup %3868 }
 0x62f   :  { %v5819_v17 = vadd.f32 %v1994_v46, %v1993_v15 }
 0x631   :  { %3870 = vtanh.f32 %v5819_v17 }
 0x63e   :  { %v3871_v18 = vpop.eup %3870 }
 0x63f   :  { %v1997_v54 = vmul.f32 %v3871_v18, %v3869_v53 }
 0x641   :  { %v1998_v23 = vpack.c.bf16 %v1997_v54, %v1997_v54 }
 0x643   :  { %2191 = vmatprep.mubr.bf16.mxu0 %v1998_v23  ;;  %2232 = vmatprep.mubr.bf16.mxu1 %v1998_v23 }
 0x648   :  { %v2086_v24 = vpop.f32.mrf.mxu0 }
 0x649   :  { %v2087_v60 = vadd.f32 %v2086_v24, %v7257_v49 }
 0x64a   :  { %v2088_v25 = vpop.f32.mrf.mxu0  ;;  %v2127_v26 = vpop.f32.mrf.mxu1 }
 0x64b   :  { %v3442_v27 = vmul.f32 -1.442695, %v2087_v60  ;;  %v2089_v63 = vadd.f32 %v2088_v25, %v7258_v61  ;;  %v2128_v21 = vadd.f32 %v2127_v26, %v7259_v12 }
 0x64c   :  { %v2090_v28 = vpop.f32.mrf.mxu0  ;;  %v2129_v29 = vpop.f32.mrf.mxu1 }
 0x64d   :  { %3872 = vpow2.f32 %v3442_v27  ;;  %v3443_v30 = vmul.f32 -1.442695, %v2089_v63  ;;  %v3444_v41 = vmul.f32 -1.442695, %v2128_v21  ;;  %v2130_v1 = vadd.f32 %v2129_v29, %v4924_v6  ;;  %v5830_v29 = vld [vmem:[#allocation6 + $0xe0] ss:$16 sps:$4 sm:$0xff]  }
 0x64e   :  { %v2091_v31 = vpop.f32.mrf.mxu0  ;;  %v2131_v32 = vpop.f32.mrf.mxu1  ;;  %v5848_v21 = vld [vmem:[#allocation6 + $0xc8] ss:$16 sps:$4 sm:$0xff]  }
 0x64f   :  { %3874 = vpow2.f32 %v3443_v30  ;;  %v5833_v30 = vld [vmem:[#allocation6 + $0xc4] ss:$16 sps:$4 sm:$0xff]   ;;  %v5839_v31 = vld [vmem:[#allocation6 + $0xcc] ss:$16 sps:$4 sm:$0xff]   ;;  %v5842_v32 = vld [vmem:[#allocation6 + $0xc0] ss:$16 sps:$4 sm:$0xff]  }
 0x650   :  { %v2132_v50 = vpop.f32.mrf.mxu1  ;;  %3876 = vpow2.f32 %v3444_v41  ;;  %v5851_v41 = vld [vmem:[#allocation6 + $0xac] ss:$16 sps:$4 sm:$0xff]  }
 0x651   :  { %3878 = vtanh.f32 %v2130_v1  ;;  %v5845_v50 = vld [vmem:[#allocation6 + $0xa4] ss:$16 sps:$4 sm:$0xff]   ;;  %v5854_v1 = vld [vmem:[#allocation6 + $0xa0] ss:$16 sps:$4 sm:$0xff]  }
 0x65a   :  { %v3873_v33 = vpop.eup %3872 }
 0x65b   :  { %v2143_v36 = vadd.f32 1.0, %v3873_v33  ;;  %v5857_v33 = vld [vmem:[#allocation6 + $0x84] ss:$16 sps:$4 sm:$0xff]  }
 0x65c   :  { %v3875_v56 = vpop.eup %3874 }
 0x65d   :  { %3880 = vrcp.f32 %v2143_v36  ;;  %v2144_v15 = vadd.f32 1.0, %v3875_v56  ;;  %v3877_v46 = vpop.eup %3876  ;;  %v5860_v36 = vld [vmem:[#allocation6 + $0xa8] ss:$16 sps:$4 sm:$0xff]   ;;  %v5863_v56 = vld [vmem:[#allocation6 + $0x8c] ss:$16 sps:$4 sm:$0xff]  }
 0x65e   :  { %v3879_v53 = vpop.eup %3878  ;;  %v2145_v23 = vadd.f32 1.0, %v3877_v46  ;;  %v5869_v46 = vld [vmem:[#allocation6 + $0x64] ss:$16 sps:$4 sm:$0xff]  }
 0x65f   :  { %3882 = vrcp.f32 %v2144_v15  ;;  %v5866_v15 = vld [vmem:[#allocation6 + $0x80] ss:$16 sps:$4 sm:$0xff]   ;;  %7534 = vst [vmem:[#allocation34_spill] sm:$0xff] %v5869_v46 }
 0x660   :  { %3884 = vrcp.f32 %v2145_v23  ;;  %7533 = vst [vmem:[#allocation32_spill] sm:$0xff] %v5866_v15  ;;  %v5881_v23 = vld [vmem:[#allocation6 + $0x44] ss:$16 sps:$4 sm:$0xff]  }
 0x661   :  { %7538 = vst [vmem:[#allocation38_spill] sm:$0xff] %v5881_v23 }
 0x66a   :  { %v3881_v18 = vpop.eup %3880 }
 0x66b   :  { %v2154_v60 = vmul.f32 %v3881_v18, %v3879_v53  ;;  %v5872_v53 = vld [vmem:[#allocation6 + $0x88] ss:$16 sps:$4 sm:$0xff]   ;;  %v5875_v18 = vld [vmem:[#allocation6 + $0x6c] ss:$16 sps:$4 sm:$0xff]  }
 0x66c   :  { %v3883_v54 = vpop.eup %3882  ;;  %7535 = vst [vmem:[#allocation31_spill] sm:$0xff] %v5872_v53  ;;  %7536 = vst [vmem:[#allocation33_spill] sm:$0xff] %v5875_v18 }
 0x66d   :  { %v2153_v24 = vmul.f32 %v3883_v54, %v5672_v62  ;;  %v3885_v26 = vpop.eup %3884  ;;  %v5836_v62 = vld [vmem:[#allocation6 + $0xe8] ss:$16 sps:$4 sm:$0xff]   ;;  %v5878_v54 = vld [vmem:[#allocation6 + $0x60] ss:$16 sps:$4 sm:$0xff]  }
 0x66e   :  { %7537 = vst [vmem:[#allocation36_spill] sm:$0xff] %v5878_v54 }
 0x66f   :  { %v5827_v25 = vadd.f32 %v2154_v60, %v2153_v24  ;;  %v5884_v24 = vld [vmem:[#allocation6 + $0x68] ss:$16 sps:$4 sm:$0xff]   ;;  %v5887_v60 = vld [vmem:[#allocation6 + $0x4c] ss:$16 sps:$4 sm:$0xff]  }
 0x670   :  { %7539 = vst [vmem:[#allocation35_spill] sm:$0xff] %v5884_v24  ;;  %7540 = vst [vmem:[#allocation37_spill] sm:$0xff] %v5887_v60 }
 0x671   :  { %3886 = vtanh.f32 %v5827_v25 }
 0x67e   :  { %v3887_v27 = vpop.eup %3886 }
 0x67f   :  { %v2157_v63 = vmul.f32 %v3887_v27, %v3885_v26  ;;  %v5890_v26 = vld [vmem:[#allocation6 + $0x40] ss:$16 sps:$4 sm:$0xff]   ;;  %v5893_v27 = vld [vmem:[#allocation6 + $0x24] ss:$16 sps:$4 sm:$0xff]  }
 0x680   :  { %7541 = vst [vmem:[#allocation40_spill] sm:$0xff] %v5890_v26  ;;  %7542 = vst [vmem:[#allocation41_spill] sm:$0xff] %v5893_v27 }
 0x681   :  { %v2158_v28 = vpack.c.bf16 %v2157_v63, %v2157_v63  ;;  %v5896_v63 = vld [vmem:[#allocation6 + $0x48] ss:$16 sps:$4 sm:$0xff]  }
 0x682   :  { %7543 = vst [vmem:[#allocation39_spill] sm:$0xff] %v5896_v63 }
 0x683   :  { %2192 = vmatmul.mubr.bf16.vlgmr.msra.gmra.mxu0 %v2158_v28  ;;  %2233 = vmatmul.mubr.bf16.vlgmr.msra.gmra.mxu1 %v2158_v28 }
 0x684   :  { %2320 = vmatpush1.bf16.msra.mxu0 %v5830_v29  ;;  %2351 = vmatprep.mubr.bf16.mxu0 %v2158_v28 }
 0x685   :  { %2392 = vmatprep.mubr.bf16.mxu1 %v2158_v28  ;;  %2321 = vmatprep.subr.bf16.mxu0 %v5833_v30  ;;  %v5899_v28 = vld [vmem:[#allocation6 + $0x2c] ss:$16 sps:$4 sm:$0xff]  }
 0x686   :  { %2361 = vmatpush1.bf16.msra.mxu1 %v5836_v62  ;;  %7544 = vst [vmem:[#allocation43_spill] sm:$0xff] %v5899_v28 }
 0x687   :  { %2362 = vmatprep.subr.bf16.mxu1 %v5839_v31 }
 0x688   :  { %2322 = vmatpush1.bf16.msra.mxu0 %v5842_v32 }
 0x689   :  { %2323 = vmatprep.subr.bf16.mxu0 %v5845_v50 }
 0x68a   :  { %2363 = vmatpush1.bf16.msra.mxu1 %v5848_v21 }
 0x68b   :  { %2364 = vmatprep.subr.bf16.mxu1 %v5851_v41 }
 0x68c   :  { %2324 = vmatpush1.bf16.msra.mxu0 %v5854_v1 }
 0x68d   :  { %2325 = vmatprep.subr.bf16.mxu0 %v5857_v33 }
 0x68e   :  { %2365 = vmatpush1.bf16.msra.mxu1 %v5860_v36 }
 0x68f   :  { %2366 = vmatprep.subr.bf16.mxu1 %v5863_v56 }
 0x690   :  { %2326 = vmatpush1.bf16.msra.mxu0 %v5866_v15  ;;  %v5976_v15 = vld [vmem:[#allocation6 + $0x1a8] ss:$16 sps:$4 sm:$0xff]  }
 0x691   :  { %2327 = vmatprep.subr.bf16.mxu0 %v5869_v46  ;;  %v5972_v46 = vld [vmem:[#allocation6 + $0x184] ss:$16 sps:$4 sm:$0xff]   ;;  %7563 = vst [vmem:[#allocation69_spill] sm:$0xff] %v5976_v15 }
 0x692   :  { %2367 = vmatpush1.bf16.msra.mxu1 %v5872_v53  ;;  %v5965_v53 = vld [vmem:[#allocation6 + $0x1ac] ss:$16 sps:$4 sm:$0xff]   ;;  %7562 = vst [vmem:[#allocation66_spill] sm:$0xff] %v5972_v46 }
 0x693   :  { %2368 = vmatprep.subr.bf16.mxu1 %v5875_v18  ;;  %v5959_v18 = vld [vmem:[#allocation6 + $0x1c8] ss:$16 sps:$4 sm:$0xff]   ;;  %7560 = vst [vmem:[#allocation64_spill] sm:$0xff] %v5965_v53 }
 0x694   :  { %2328 = vmatpush1.bf16.msra.mxu0 %v5878_v54  ;;  %v5952_v54 = vld [vmem:[#allocation6 + $0x1c0] ss:$16 sps:$4 sm:$0xff]   ;;  %7559 = vst [vmem:[#allocation65_spill] sm:$0xff] %v5959_v18 }
 0x695   :  { %2329 = vmatprep.subr.bf16.mxu0 %v5881_v23  ;;  %v5946_v23 = vld [vmem:[#allocation6 + $0x1cc] ss:$16 sps:$4 sm:$0xff]   ;;  %7557 = vst [vmem:[#allocation63_spill] sm:$0xff] %v5952_v54 }
 0x696   :  { %2369 = vmatpush1.bf16.msra.mxu1 %v5884_v24  ;;  %v5934_v24 = vld [vmem:[#allocation6 + $0x1e0] ss:$16 sps:$4 sm:$0xff]   ;;  %7556 = vst [vmem:[#allocation60_spill] sm:$0xff] %v5946_v23 }
 0x697   :  { %2370 = vmatprep.subr.bf16.mxu1 %v5887_v60  ;;  %v5904_v60 = vld [vmem:[#allocation6 + $0x20] ss:$16 sps:$4 sm:$0xff]   ;;  %7553 = vst [vmem:[#allocation52_spill] sm:$0xff] %v5934_v24 }
 0x698   :  { %2330 = vmatpush1.bf16.msra.mxu0 %v5890_v26  ;;  %7545 = vst [vmem:[#allocation42_spill] sm:$0xff] %v5904_v60  ;;  %v5909_v26 = vld [vmem:[#allocation6 + $0x4] ss:$16 sps:$4 sm:$0xff]  }
 0x699   :  { %2331 = vmatprep.subr.bf16.mxu0 %v5893_v27  ;;  %7546 = vst [vmem:[#allocation45_spill] sm:$0xff] %v5909_v26  ;;  %v5912_v27 = vld [vmem:[#allocation6 + $0x28] ss:$16 sps:$4 sm:$0xff]  }
 0x69a   :  { %2371 = vmatpush1.bf16.msra.mxu1 %v5896_v63  ;;  %7547 = vst [vmem:[#allocation44_spill] sm:$0xff] %v5912_v27  ;;  %v5917_v63 = vld [vmem:[#allocation6 + $0xc] ss:$16 sps:$4 sm:$0xff]  }
 0x69b   :  { %2372 = vmatprep.subr.bf16.mxu1 %v5899_v28  ;;  %7548 = vst [vmem:[#allocation47_spill] sm:$0xff] %v5917_v63  ;;  %v5920_v28 = vld [vmem:[#allocation6] ss:$16 sps:$4 sm:$0xff]  }
 0x69c   :  { %2332 = vmatpush1.bf16.msra.mxu0 %v5904_v60  ;;  %7549 = vst [vmem:[#allocation46_spill] sm:$0xff] %v5920_v28  ;;  %v5923_v60 = vld [vmem:[#allocation6 + $0x1e4] ss:$16 sps:$4 sm:$0xff]  }
 0x69d   :  { %2333 = vmatprep.subr.bf16.mxu0 %v5909_v26  ;;  %7550 = vst [vmem:[#allocation49_spill] sm:$0xff] %v5923_v60  ;;  %v5928_v26 = vld [vmem:[#allocation6 + $0x8] ss:$16 sps:$4 sm:$0xff]  }
 0x69e   :  { %2373 = vmatpush1.bf16.msra.mxu1 %v5912_v27  ;;  %7551 = vst [vmem:[#allocation51_spill] sm:$0xff] %v5928_v26  ;;  %v5931_v27 = vld [vmem:[#allocation6 + $0x1ec] ss:$16 sps:$4 sm:$0xff]  }
 0x69f   :  { %2374 = vmatprep.subr.bf16.mxu1 %v5917_v63  ;;  %7552 = vst [vmem:[#allocation50_spill] sm:$0xff] %v5931_v27  ;;  %v2271_v63 = vld [vmem:[%s2270_s16] sm:$0x1]  ;;  %s3476_s16 = sld [smem:[#allocation3 + $0x7]] }
 0x6a0   :  { %2334 = vmatpush1.bf16.msra.mxu0 %v5920_v28  ;;  %v5942_v28 = vld [vmem:[#allocation6 + $0x1e8] ss:$16 sps:$4 sm:$0xff]  }
 0x6a1   :  { %2335 = vmatprep.subr.bf16.mxu0 %v5923_v60  ;;  %v5939_v60 = vld [vmem:[#allocation6 + $0x1c4] ss:$16 sps:$4 sm:$0xff]   ;;  %7555 = vst [vmem:[#allocation59_spill] sm:$0xff] %v5942_v28 }
 0x6a2   :  { %2375 = vmatpush1.bf16.msra.mxu1 %v5928_v26  ;;  %7554 = vst [vmem:[#allocation57_spill] sm:$0xff] %v5939_v60  ;;  %v2274_v26 = vld [vmem:[%s2273_s5] sm:$0x1]  ;;  %s3480_s5 = sld [smem:[#allocation3 + $0x207]] }
 0x6a3   :  { %2376 = vmatprep.subr.bf16.mxu1 %v5931_v27  ;;  %v2291_v27 = vrot.slane %v2271_v63, 7  ;;  %v2294_v63 = vrot.slane %v2274_v26, 6 }
 0x6a4   :  { %2336 = vmatpush2.bf16.msra.mxu0 %v5934_v24  ;;  %v2268_v24 = vld [vmem:[%s2267_s6] sm:$0x1]  ;;  %s2804_s6 = scalar_lea.vmem [#allocation4], %s3477_s3 }
 0x6a5   :  { %2337 = vmatprep.subr.bf16.mxu0 %v5939_v60  ;;  %v5955_v60 = vld [vmem:[#allocation6 + $0x1a4] ss:$16 sps:$4 sm:$0xff]   ;;  %s2801_s20 = scalar_lea.vmem [#allocation4], %s3476_s16 }
 0x6a6   :  { %2377 = vmatpush2.bf16.msra.mxu1 %v5942_v28  ;;  %7558 = vst [vmem:[#allocation62_spill] sm:$0xff] %v5955_v60  ;;  %v2277_v28 = vld [vmem:[%s2276_s19] sm:$0x1]  ;;  %s2807_s19 = scalar_lea.vmem [#allocation4], %s3478_s15 }
 0x6a7   :  { %2378 = vmatprep.subr.bf16.mxu1 %v5946_v23  ;;  %v2311_v23 = vsel %vm157_vm0, %v2268_v24, %v2291_v27  ;;  %v2297_v26 = vrot.slane %v2277_v28, 5  ;;  %v5979_v24 = vld [vmem:[#allocation6 + $0x18c] ss:$16 sps:$4 sm:$0xff]   ;;  %v2283_v27 = vld [vmem:[%s2282_s22] sm:$0x1]  ;;  %s2810_s22 = scalar_lea.vmem [#allocation4], %s3479_s17 }
 0x6a8   :  { %2338 = vmatpush2.bf16.msra.mxu0 %v5952_v54  ;;  %v5968_v54 = vld [vmem:[#allocation6 + $0x1a0] ss:$16 sps:$4 sm:$0xff]   ;;  %7564 = vst [vmem:[#allocation68_spill] sm:$0xff] %v5979_v24 }
 0x6a9   :  { %2339 = vmatprep.subr.bf16.mxu0 %v5955_v60  ;;  %7561 = vst [vmem:[#allocation67_spill] sm:$0xff] %v5968_v54  ;;  %v2280_v60 = vld [vmem:[%s2279_s21] sm:$0x1]  ;;  %s3482_s21 = sld [smem:[#allocation3 + $0x307]] }
 0x6aa   :  { %2379 = vmatpush2.bf16.msra.mxu1 %v5959_v18  ;;  %v2312_v18 = vsel %vm159_vm1, %v2311_v23, %v2294_v63  ;;  %v5990_v23 = vld [vmem:[#allocation6 + $0x188] ss:$16 sps:$4 sm:$0xff]   ;;  %v2286_v63 = vld [vmem:[%s2285_s23] sm:$0x1]  ;;  %s3483_s23 = sld [smem:[#allocation3 + $0x387]] }
 0x6ab   :  { %2380 = vmatprep.subr.bf16.mxu1 %v5965_v53  ;;  %v5983_v53 = vld [vmem:[#allocation6 + $0x180] ss:$16 sps:$4 sm:$0xff]   ;;  %v2313_v28 = vsel %vm161_vm2, %v2312_v18, %v2297_v26  ;;  %7567 = vst [vmem:[#allocation73_spill] sm:$0xff] %v5990_v23  ;;  %v6001_v18 = vld [vmem:[#allocation6 + $0x144] ss:$16 sps:$4 sm:$0xff]  }
 0x6ac   :  { %2340 = vmatpush2.bf16.msra.mxu0 %v5968_v54  ;;  %v2300_v54 = vrot.slane %v2280_v60, 4  ;;  %7565 = vst [vmem:[#allocation71_spill] sm:$0xff] %v5983_v53  ;;  %7570 = vst [vmem:[#allocation74_spill] sm:$0xff] %v6001_v18  ;;  %v2289_v26 = vld [vmem:[%s2288_s2] sm:$0x1]  ;;  %s2813_s2 = scalar_lea.vmem [#allocation4], %s3480_s5 }
 0x6ad   :  { %2341 = vmatprep.subr.bf16.mxu0 %v5972_v46  ;;  %v5987_v46 = vld [vmem:[#allocation6 + $0x164] ss:$16 sps:$4 sm:$0xff]  }
 0x6ae   :  { %2381 = vmatpush2.bf16.msra.mxu1 %v5976_v15  ;;  %7566 = vst [vmem:[#allocation70_spill] sm:$0xff] %v5987_v46  ;;  %v5994_v15 = vld [vmem:[#allocation6 + $0x16c] ss:$16 sps:$4 sm:$0xff]   ;;  %v2314_v60 = vsel %vm163_vm3, %v2313_v28, %v2300_v54  ;;  %v6012_v54 = vld [vmem:[#allocation6 + $0x140] ss:$16 sps:$4 sm:$0xff]   ;;  %v2309_v28 = vrot.slane %v2289_v26, 1 }
 0x6af   :  { %2382 = vmatprep.subr.bf16.mxu1 %v5979_v24  ;;  %v2303_v24 = vrot.slane %v2283_v27, 3  ;;  %7568 = vst [vmem:[#allocation72_spill] sm:$0xff] %v5994_v15  ;;  %7571 = vst [vmem:[#allocation77_spill] sm:$0xff] %v6012_v54  ;;  %s2819_s25 = scalar_lea.vmem [#allocation4], %s3482_s21 }
 0x6b0   :  { %2342 = vmatpush2.bf16.msra.mxu0 %v5983_v53  ;;  %v5998_v53 = vld [vmem:[#allocation6 + $0x160] ss:$16 sps:$4 sm:$0xff]   ;;  %s2822_s26 = scalar_lea.vmem [#allocation4], %s3483_s23 }
 0x6b1   :  { %2343 = vmatprep.subr.bf16.mxu0 %v5987_v46  ;;  %7569 = vst [vmem:[#allocation75_spill] sm:$0xff] %v5998_v53  ;;  %v6005_v46 = vld [vmem:[#allocation6 + $0x168] ss:$16 sps:$4 sm:$0xff]   ;;  %v2315_v27 = vsel %vm165_vm4, %v2314_v60, %v2303_v24  ;;  %v6022_v24 = vld [vmem:[#allocation6 + $0x12c] ss:$16 sps:$4 sm:$0xff]  }
 0x6b2   :  { %2383 = vmatpush2.bf16.msra.mxu1 %v5990_v23  ;;  %v2306_v23 = vrot.slane %v2286_v63, 2  ;;  %7573 = vst [vmem:[#allocation79_spill] sm:$0xff] %v6022_v24  ;;  %v6025_v60 = vld [vmem:[#allocation6 + $0x120] ss:$16 sps:$4 sm:$0xff]  }
 0x6b3   :  { %2384 = vmatprep.subr.bf16.mxu1 %v5994_v15  ;;  %v6009_v15 = vld [vmem:[#allocation6 + $0x14c] ss:$16 sps:$4 sm:$0xff]   ;;  %7574 = vst [vmem:[#allocation78_spill] sm:$0xff] %v6025_v60 }
 0x6b4   :  { %2344 = vmatpush2.bf16.msra.mxu0 %v5998_v53  ;;  %v6015_v53 = vld [vmem:[#allocation6 + $0x124] ss:$16 sps:$4 sm:$0xff]   ;;  %v2316_v63 = vsel %vm167_vm5, %v2315_v27, %v2306_v23  ;;  %v6035_v27 = vld [vmem:[#allocation6 + $0x10c] ss:$16 sps:$4 sm:$0xff]  }
 0x6b5   :  { %2345 = vmatprep.subr.bf16.mxu0 %v6001_v18  ;;  %7572 = vst [vmem:[#allocation76_spill] sm:$0xff] %v6015_v53  ;;  %v6019_v18 = vld [vmem:[#allocation6 + $0x148] ss:$16 sps:$4 sm:$0xff]   ;;  %v2317_v26 = vsel %vm169_vm6, %v2316_v63, %v2309_v28  ;;  %7576 = vst [vmem:[#allocation80_spill] sm:$0xff] %v6035_v27  ;;  %v6047_v63 = vld [vmem:[#allocation9 + $0xec] ss:$16 sps:$4 sm:$0xff]  }
 0x6b6   :  { %2385 = vmatpush2.bf16.msra.mxu1 %v6005_v46  ;;  %v2318_v23 = vpack.c.bf16 %v2317_v26, %v2317_v26  ;;  %v6044_v28 = vld [vmem:[#allocation6 + $0x108] ss:$16 sps:$4 sm:$0xff]   ;;  %7580 = vst [vmem:[#allocation86_spill] sm:$0xff] %v6047_v63  ;;  %v6050_v26 = vld [vmem:[#allocation9 + $0xe0] ss:$16 sps:$4 sm:$0xff]  }
 0x6b7   :  { %2386 = vmatprep.subr.bf16.mxu1 %v6009_v15  ;;  %7579 = vst [vmem:[#allocation87_spill] sm:$0xff] %v6044_v28  ;;  %7581 = vst [vmem:[#allocation88_spill] sm:$0xff] %v6050_v26 }
 0x6b8   :  { %2346 = vmatpush2.bf16.msra.mxu0 %v6012_v54  ;;  %v6029_v54 = vld [vmem:[#allocation6 + $0x104] ss:$16 sps:$4 sm:$0xff]  }
 0x6b9   :  { %2347 = vmatprep.subr.bf16.mxu0 %v6015_v53  ;;  %v6032_v53 = vld [vmem:[#allocation6 + $0x128] ss:$16 sps:$4 sm:$0xff]  }
 0x6ba   :  { %2387 = vmatpush2.bf16.msra.mxu1 %v6019_v18  ;;  %7575 = vst [vmem:[#allocation81_spill] sm:$0xff] %v6032_v53 }
 0x6bb   :  { %2388 = vmatprep.subr.bf16.mxu1 %v6022_v24  ;;  %v6038_v24 = vld [vmem:[#allocation6 + $0x100] ss:$16 sps:$4 sm:$0xff]  }
 0x6bc   :  { %2348 = vmatpush2.bf16.msra.mxu0 %v6025_v60  ;;  %7577 = vst [vmem:[#allocation83_spill] sm:$0xff] %v6038_v24  ;;  %v6041_v60 = vld [vmem:[#allocation9 + $0xe4] ss:$16 sps:$4 sm:$0xff]  }
 0x6bd   :  { %2349 = vmatprep.subr.bf16.mxu0 %v6029_v54  ;;  %7578 = vst [vmem:[#allocation82_spill] sm:$0xff] %v6041_v60 }
 0x6be   :  { %2389 = vmatpush2.bf16.msra.mxu1 %v6032_v53 }
 0x6bf   :  { %2390 = vmatprep.subr.bf16.mxu1 %v6035_v27  ;;  %v6053_v27 = vld [vmem:[#allocation9 + $0xc4] ss:$16 sps:$4 sm:$0xff]  }
 0x6c0   :  { %2350 = vmatpush2.bf16.msra.mxu0 %v6038_v24  ;;  %7582 = vst [vmem:[#allocation89_spill] sm:$0xff] %v6053_v27  ;;  %v6056_v24 = vld [vmem:[#allocation9 + $0xe8] ss:$16 sps:$4 sm:$0xff]  }
 0x6c1   :  { %2426 = vmatprep.subr.bf16.mxu0 %v6041_v60  ;;  %7583 = vst [vmem:[#allocation91_spill] sm:$0xff] %v6056_v24  ;;  %v6059_v60 = vld [vmem:[#allocation9 + $0xcc] ss:$16 sps:$4 sm:$0xff]  }
 0x6c2   :  { %2391 = vmatpush2.bf16.msra.mxu1 %v6044_v28  ;;  %7584 = vst [vmem:[#allocation90_spill] sm:$0xff] %v6059_v60  ;;  %v6062_v28 = vld [vmem:[#allocation9 + $0xc0] ss:$16 sps:$4 sm:$0xff]  }
 0x6c3   :  { %2352 = vmatmul.mubr.bf16.vlgmr.msra.gmra.mxu0 %v2318_v23  ;;  %2467 = vmatprep.subr.bf16.mxu1 %v6047_v63  ;;  %7585 = vst [vmem:[#allocation92_spill] sm:$0xff] %v6062_v28  ;;  %v6065_v63 = vld [vmem:[#allocation9 + $0xa4] ss:$16 sps:$4 sm:$0xff]  }
 0x6c4   :  { %2427 = vmatpush1.bf16.msra.mxu0 %v6050_v26  ;;  %7586 = vst [vmem:[#allocation93_spill] sm:$0xff] %v6065_v63 }
 0x6c5   :  { %2393 = vmatmul.mubr.bf16.vlgmr.msra.gmra.mxu1 %v2318_v23  ;;  %2428 = vmatprep.subr.bf16.mxu0 %v6053_v27  ;;  %v6068_v23 = vld [vmem:[#allocation9 + $0xc8] ss:$16 sps:$4 sm:$0xff]   ;;  %v6071_v27 = vld [vmem:[#allocation9 + $0xac] ss:$16 sps:$4 sm:$0xff]  }
 0x6c6   :  { %2468 = vmatpush1.bf16.msra.mxu1 %v6056_v24  ;;  %7587 = vst [vmem:[#allocation95_spill] sm:$0xff] %v6068_v23  ;;  %7588 = vst [vmem:[#allocation94_spill] sm:$0xff] %v6071_v27  ;;  %v6074_v24 = vld [vmem:[#allocation9 + $0xa0] ss:$16 sps:$4 sm:$0xff]  }
 0x6c7   :  { %2469 = vmatprep.subr.bf16.mxu1 %v6059_v60  ;;  %7589 = vst [vmem:[#allocation96_spill] sm:$0xff] %v6074_v24  ;;  %v6077_v60 = vld [vmem:[#allocation9 + $0x84] ss:$16 sps:$4 sm:$0xff]  }
 0x6c8   :  { %2429 = vmatpush1.bf16.msra.mxu0 %v6062_v28  ;;  %7590 = vst [vmem:[#allocation97_spill] sm:$0xff] %v6077_v60  ;;  %v6080_v28 = vld [vmem:[#allocation9 + $0xa8] ss:$16 sps:$4 sm:$0xff]  }
 0x6c9   :  { %2430 = vmatprep.subr.bf16.mxu0 %v6065_v63  ;;  %7591 = vst [vmem:[#allocation98_spill] sm:$0xff] %v6080_v28  ;;  %v6083_v63 = vld [vmem:[#allocation9 + $0x8c] ss:$16 sps:$4 sm:$0xff]  }
 0x6ca   :  { %2470 = vmatpush1.bf16.msra.mxu1 %v6068_v23  ;;  %7592 = vst [vmem:[#allocation99_spill] sm:$0xff] %v6083_v63  ;;  %v6086_v23 = vld [vmem:[#allocation9 + $0x80] ss:$16 sps:$4 sm:$0xff]  }
 0x6cb   :  { %2471 = vmatprep.subr.bf16.mxu1 %v6071_v27  ;;  %7593 = vst [vmem:[#allocation101_spill] sm:$0xff] %v6086_v23  ;;  %v6089_v27 = vld [vmem:[#allocation9 + $0x64] ss:$16 sps:$4 sm:$0xff]  }
 0x6cc   :  { %2431 = vmatpush1.bf16.msra.mxu0 %v6074_v24  ;;  %7594 = vst [vmem:[#allocation100_spill] sm:$0xff] %v6089_v27  ;;  %v6092_v24 = vld [vmem:[#allocation9 + $0x88] ss:$16 sps:$4 sm:$0xff]  }
 0x6cd   :  { %2432 = vmatprep.subr.bf16.mxu0 %v6077_v60  ;;  %7595 = vst [vmem:[#allocation102_spill] sm:$0xff] %v6092_v24  ;;  %v6095_v60 = vld [vmem:[#allocation9 + $0x6c] ss:$16 sps:$4 sm:$0xff]  }
 0x6ce   :  { %2472 = vmatpush1.bf16.msra.mxu1 %v6080_v28  ;;  %7596 = vst [vmem:[#allocation19_spill] sm:$0xff] %v6095_v60  ;;  %v6098_v28 = vld [vmem:[#allocation9 + $0x60] ss:$16 sps:$4 sm:$0xff]  }
 0x6cf   :  { %2473 = vmatprep.subr.bf16.mxu1 %v6083_v63  ;;  %7597 = vst [vmem:[#allocation20_spill] sm:$0xff] %v6098_v28  ;;  %v6101_v63 = vld [vmem:[#allocation9 + $0x44] ss:$16 sps:$4 sm:$0xff]  }
 0x6d0   :  { %2433 = vmatpush1.bf16.msra.mxu0 %v6086_v23  ;;  %7598 = vst [vmem:[#allocation21_spill] sm:$0xff] %v6101_v63  ;;  %v6104_v23 = vld [vmem:[#allocation9 + $0x68] ss:$16 sps:$4 sm:$0xff]  }
 0x6d1   :  { %2434 = vmatprep.subr.bf16.mxu0 %v6089_v27  ;;  %7599 = vst [vmem:[#allocation22_spill] sm:$0xff] %v6104_v23  ;;  %v6107_v27 = vld [vmem:[#allocation9 + $0x4c] ss:$16 sps:$4 sm:$0xff]  }
 0x6d2   :  { %2474 = vmatpush1.bf16.msra.mxu1 %v6092_v24  ;;  %7600 = vst [vmem:[#allocation25_spill] sm:$0xff] %v6107_v27  ;;  %v6110_v24 = vld [vmem:[#allocation9 + $0x40] ss:$16 sps:$4 sm:$0xff]  }
 0x6d3   :  { %2475 = vmatprep.subr.bf16.mxu1 %v6095_v60  ;;  %7601 = vst [vmem:[#allocation26_spill] sm:$0xff] %v6110_v24  ;;  %v6113_v60 = vld [vmem:[#allocation9 + $0x24] ss:$16 sps:$4 sm:$0xff]  }
 0x6d4   :  { %2435 = vmatpush1.bf16.msra.mxu0 %v6098_v28  ;;  %7602 = vst [vmem:[#allocation23_spill] sm:$0xff] %v6113_v60  ;;  %v6116_v28 = vld [vmem:[#allocation9 + $0x48] ss:$16 sps:$4 sm:$0xff]  }
 0x6d5   :  { %2436 = vmatprep.subr.bf16.mxu0 %v6101_v63  ;;  %7603 = vst [vmem:[#allocation24_spill] sm:$0xff] %v6116_v28  ;;  %v6119_v63 = vld [vmem:[#allocation9 + $0x2c] ss:$16 sps:$4 sm:$0xff]  }
 0x6d6   :  { %2476 = vmatpush1.bf16.msra.mxu1 %v6104_v23  ;;  %7604 = vst [vmem:[#allocation29_spill] sm:$0xff] %v6119_v63  ;;  %v6122_v23 = vld [vmem:[#allocation9 + $0x20] ss:$16 sps:$4 sm:$0xff]  }
 0x6d7   :  { %2477 = vmatprep.subr.bf16.mxu1 %v6107_v27  ;;  %7605 = vst [vmem:[#allocation30_spill] sm:$0xff] %v6122_v23  ;;  %v6125_v27 = vld [vmem:[#allocation9 + $0x4] ss:$16 sps:$4 sm:$0xff]  }
 0x6d8   :  { %2437 = vmatpush1.bf16.msra.mxu0 %v6110_v24  ;;  %7606 = vst [vmem:[#allocation27_spill] sm:$0xff] %v6125_v27  ;;  %v6128_v24 = vld [vmem:[#allocation9 + $0x28] ss:$16 sps:$4 sm:$0xff]  }
 0x6d9   :  { %2438 = vmatprep.subr.bf16.mxu0 %v6113_v60  ;;  %7607 = vst [vmem:[#allocation28_spill] sm:$0xff] %v6128_v24  ;;  %v6131_v60 = vld [vmem:[#allocation9 + $0xc] ss:$16 sps:$4 sm:$0xff]  }
 0x6da   :  { %2478 = vmatpush1.bf16.msra.mxu1 %v6116_v28  ;;  %7608 = vst [vmem:[#allocation48_spill] sm:$0xff] %v6131_v60  ;;  %v6134_v28 = vld [vmem:[#allocation9] ss:$16 sps:$4 sm:$0xff]  }
 0x6db   :  { %2479 = vmatprep.subr.bf16.mxu1 %v6119_v63  ;;  %7609 = vst [vmem:[#allocation53_spill] sm:$0xff] %v6134_v28  ;;  %v6137_v63 = vld [vmem:[#allocation9 + $0x1e4] ss:$16 sps:$4 sm:$0xff]  }
 0x6dc   :  { %2439 = vmatpush1.bf16.msra.mxu0 %v6122_v23  ;;  %7610 = vst [vmem:[#allocation55_spill] sm:$0xff] %v6137_v63  ;;  %v6140_v23 = vld [vmem:[#allocation9 + $0x8] ss:$16 sps:$4 sm:$0xff]  }
 0x6dd   :  { %2440 = vmatprep.subr.bf16.mxu0 %v6125_v27  ;;  %7611 = vst [vmem:[#allocation54_spill] sm:$0xff] %v6140_v23  ;;  %v6143_v27 = vld [vmem:[#allocation9 + $0x1ec] ss:$16 sps:$4 sm:$0xff]  }
 0x6de   :  { %2480 = vmatpush1.bf16.msra.mxu1 %v6128_v24  ;;  %7612 = vst [vmem:[#allocation56_spill] sm:$0xff] %v6143_v27  ;;  %v6146_v24 = vld [vmem:[#allocation9 + $0x1e0] ss:$16 sps:$4 sm:$0xff]  }
 0x6df   :  { %2481 = vmatprep.subr.bf16.mxu1 %v6131_v60  ;;  %7613 = vst [vmem:[#allocation58_spill] sm:$0xff] %v6146_v24  ;;  %v6150_v60 = vld [vmem:[#allocation9 + $0x1e8] ss:$16 sps:$4 sm:$0xff]  }
 0x6e0   :  { %2441 = vmatpush1.bf16.msra.mxu0 %v6134_v28  ;;  %7614 = vst [vmem:[#allocation61_spill] sm:$0xff] %v6150_v60 }
 0x6e1   :  { %2442 = vmatprep.subr.bf16.mxu0 %v6137_v63 }
 0x6e2   :  { %2482 = vmatpush1.bf16.msra.mxu1 %v6140_v23 }
 0x6e3   :  { %2483 = vmatprep.subr.bf16.mxu1 %v6143_v27 }
 0x6e4   :  { %2443 = vmatpush2.bf16.msra.mxu0 %v6146_v24 }
 0x6e5   :  { %2444 = vmatprep.subr.bf16.mxu0 %v7504_v48 }
 0x6e6   :  { %2484 = vmatpush2.bf16.msra.mxu1 %v6150_v60 }
 0x6e7   :  { %2485 = vmatprep.subr.bf16.mxu1 %v7506_v0 }
 0x6e8   :  { %2445 = vmatpush2.bf16.msra.mxu0 %v7507_v45 }
 0x6e9   :  { %2446 = vmatprep.subr.bf16.mxu0 %v7508_v38 }
 0x6ea   :  { %2486 = vmatpush2.bf16.msra.mxu1 %v7509_v58 }
 0x6eb   :  { %2487 = vmatprep.subr.bf16.mxu1 %v7510_v3 }
 0x6ec   :  { %2447 = vmatpush2.bf16.msra.mxu0 %v7511_v40 }
 0x6ed   :  { %2448 = vmatprep.subr.bf16.mxu0 %v7512_v35 }
 0x6ee   :  { %2488 = vmatpush2.bf16.msra.mxu1 %v7513_v37 }
 0x6ef   :  { %2489 = vmatprep.subr.bf16.mxu1 %v7514_v42 }
 0x6f0   :  { %2449 = vmatpush2.bf16.msra.mxu0 %v7515_v22 }
 0x6f1   :  { %2450 = vmatprep.subr.bf16.mxu0 %v7516_v19 }
 0x6f2   :  { %2490 = vmatpush2.bf16.msra.mxu1 %v7517_v2 }
 0x6f3   :  { %2491 = vmatprep.subr.bf16.mxu1 %v7518_v55 }
 0x6f4   :  { %2451 = vmatpush2.bf16.msra.mxu0 %v7519_v16 }
 0x6f5   :  { %2452 = vmatprep.subr.bf16.mxu0 %v7520_v43 }
 0x6f6   :  { %2492 = vmatpush2.bf16.msra.mxu1 %v7521_v51 }
 0x6f7   :  { %2493 = vmatprep.subr.bf16.mxu1 %v7522_v5 }
 0x6f8   :  { %2453 = vmatpush2.bf16.msra.mxu0 %v7523_v39 }
 0x6f9   :  { %2454 = vmatprep.subr.bf16.mxu0 %v7524_v8 }
 0x6fa   :  { %2494 = vmatpush2.bf16.msra.mxu1 %v7525_v57 }
 0x6fb   :  { %2495 = vmatprep.subr.bf16.mxu1 %v7526_v47 }
 0x6fc   :  { %2455 = vmatpush2.bf16.msra.mxu0 %v7527_v20 }
 0x6fd   :  { %2456 = vmatprep.subr.bf16.mxu0 %v7528_v34 }
 0x6fe   :  { %2496 = vmatpush2.bf16.msra.mxu1 %v7529_v44 }
 0x6ff   :  { %2497 = vmatprep.subr.bf16.mxu1 %v7530_v9 }
 0x700   :  { %2457 = vmatpush2.bf16.msra.mxu0 %v7531_v10 }
 0x701   :  { %2586 = vmatprep.subr.bf16.mxu0 %v5807_v11 }
 0x702   :  { %2498 = vmatpush2.bf16.msra.mxu1 %v7532_v13 }
 0x703   :  { %2627 = vmatprep.subr.bf16.mxu1 %v5811_v14 }
 0x743   :  { %v2193_v48 = vpop.f32.mrf.mxu0  ;;  %v2234_v0 = vpop.f32.mrf.mxu1 }
 0x744   :  { %v2194_v45 = vadd.f32 %v2193_v48, %v5071_v52  ;;  %v2235_v2 = vadd.f32 %v2234_v0, %v5081_v4 }
 0x745   :  { %v2195_v38 = vpop.f32.mrf.mxu0  ;;  %v2236_v58 = vpop.f32.mrf.mxu1 }
 0x746   :  { %v3445_v3 = vmul.f32 -1.442695, %v2194_v45  ;;  %v2196_v40 = vadd.f32 %v2195_v38, %v5075_v59  ;;  %v3447_v55 = vmul.f32 -1.442695, %v2235_v2  ;;  %v2237_v43 = vadd.f32 %v2236_v58, %v5086_v7 }
 0x747   :  { %v2197_v35 = vpop.f32.mrf.mxu0  ;;  %v2238_v37 = vpop.f32.mrf.mxu1 }
 0x748   :  { %3888 = vpow2.f32 %v3445_v3  ;;  %v3446_v42 = vmul.f32 -1.442695, %v2196_v40 }
 0x749   :  { %v2198_v22 = vpop.f32.mrf.mxu0  ;;  %v2239_v19 = vpop.f32.mrf.mxu1 }
 0x74a   :  { %3890 = vpow2.f32 %v3446_v42 }
 0x74b   :  { %3892 = vpow2.f32 %v3447_v55 }
 0x755   :  { %v3889_v16 = vpop.eup %3888 }
 0x756   :  { %v2250_v51 = vadd.f32 1.0, %v3889_v16 }
 0x757   :  { %v3891_v5 = vpop.eup %3890 }
 0x758   :  { %3894 = vrcp.f32 %v2250_v51  ;;  %v2251_v39 = vadd.f32 1.0, %v3891_v5  ;;  %v3893_v8 = vpop.eup %3892 }
 0x759   :  { %3896 = vtanh.f32 %v2237_v43  ;;  %v2252_v34 = vadd.f32 1.0, %v3893_v8 }
 0x75a   :  { %3898 = vrcp.f32 %v2251_v39 }
 0x75b   :  { %3900 = vrcp.f32 %v2252_v34 }
 0x765   :  { %v3895_v57 = vpop.eup %3894 }
 0x766   :  { %v3897_v47 = vpop.eup %3896 }
 0x767   :  { %v3899_v20 = vpop.eup %3898  ;;  %v2261_v9 = vmul.f32 %v3897_v47, %v3895_v57 }
 0x768   :  { %v2260_v44 = vmul.f32 %v3899_v20, %v5819_v17  ;;  %v3901_v13 = vpop.eup %3900 }
 0x76a   :  { %v6187_v10 = vadd.f32 %v2261_v9, %v2260_v44 }
 0x76c   :  { %3902 = vtanh.f32 %v6187_v10 }
 0x779   :  { %v3903_v48 = vpop.eup %3902 }
 0x77a   :  { %v2264_v0 = vmul.f32 %v3903_v48, %v3901_v13 }
 0x77c   :  { %v2265_v45 = vpack.c.bf16 %v2264_v0, %v2264_v0 }
 0x77e   :  { %2458 = vmatprep.mubr.bf16.mxu0 %v2265_v45  ;;  %2499 = vmatprep.mubr.bf16.mxu1 %v2265_v45 }
 0x783   :  { %v2353_v38 = vpop.f32.mrf.mxu0 }
 0x784   :  { %v2354_v58 = vadd.f32 %v2353_v38, %v7257_v49 }
 0x785   :  { %v2355_v3 = vpop.f32.mrf.mxu0  ;;  %v2394_v40 = vpop.f32.mrf.mxu1 }
 0x786   :  { %v3456_v35 = vmul.f32 -1.442695, %v2354_v58  ;;  %v2356_v17 = vadd.f32 %v2355_v3, %v7258_v61  ;;  %v2395_v16 = vadd.f32 %v2394_v40, %v7259_v12  ;;  %v7616_v40 = vld [vmem:[#allocation34_spill] sm:$0xff] }
 0x787   :  { %v2357_v37 = vpop.f32.mrf.mxu0  ;;  %v2396_v42 = vpop.f32.mrf.mxu1 }
 0x788   :  { %3904 = vpow2.f32 %v3456_v35  ;;  %v3457_v22 = vmul.f32 -1.442695, %v2356_v17  ;;  %v3458_v43 = vmul.f32 -1.442695, %v2395_v16  ;;  %v2397_v51 = vadd.f32 %v2396_v42, %v4924_v6  ;;  %v7617_v35 = vld [vmem:[#allocation31_spill] sm:$0xff]  ;;  %v7618_v17 = vld [vmem:[#allocation33_spill] sm:$0xff] }
 0x789   :  { %v2358_v19 = vpop.f32.mrf.mxu0  ;;  %v2398_v2 = vpop.f32.mrf.mxu1  ;;  %v7619_v37 = vld [vmem:[#allocation36_spill] sm:$0xff]  ;;  %v7620_v42 = vld [vmem:[#allocation38_spill] sm:$0xff]  ;;  %v7625_v16 = vld [vmem:[#allocation39_spill] sm:$0xff] }
 0x78a   :  { %3906 = vpow2.f32 %v3457_v22  ;;  %v7621_v22 = vld [vmem:[#allocation35_spill] sm:$0xff]  ;;  %v7622_v19 = vld [vmem:[#allocation37_spill] sm:$0xff]  ;;  %v7623_v2 = vld [vmem:[#allocation40_spill] sm:$0xff] }
 0x78b   :  { %v2399_v55 = vpop.f32.mrf.mxu1  ;;  %3908 = vpow2.f32 %v3458_v43  ;;  %v7626_v43 = vld [vmem:[#allocation43_spill] sm:$0xff] }
 0x78c   :  { %3910 = vtanh.f32 %v2397_v51  ;;  %v7624_v55 = vld [vmem:[#allocation41_spill] sm:$0xff]  ;;  %v7627_v51 = vld [vmem:[#allocation42_spill] sm:$0xff] }
 0x795   :  { %v3905_v5 = vpop.eup %3904 }
 0x796   :  { %v2410_v39 = vadd.f32 1.0, %v3905_v5  ;;  %v7628_v5 = vld [vmem:[#allocation45_spill] sm:$0xff] }
 0x797   :  { %v3907_v8 = vpop.eup %3906 }
 0x798   :  { %3912 = vrcp.f32 %v2410_v39  ;;  %v2411_v57 = vadd.f32 1.0, %v3907_v8  ;;  %v3909_v47 = vpop.eup %3908  ;;  %v7629_v39 = vld [vmem:[#allocation44_spill] sm:$0xff]  ;;  %v7630_v8 = vld [vmem:[#allocation47_spill] sm:$0xff] }
 0x799   :  { %v3911_v20 = vpop.eup %3910  ;;  %v2412_v9 = vadd.f32 1.0, %v3909_v47  ;;  %v7632_v47 = vld [vmem:[#allocation49_spill] sm:$0xff] }
 0x79a   :  { %3914 = vrcp.f32 %v2411_v57  ;;  %v7631_v57 = vld [vmem:[#allocation46_spill] sm:$0xff] }
 0x79b   :  { %3916 = vrcp.f32 %v2412_v9  ;;  %v7635_v9 = vld [vmem:[#allocation52_spill] sm:$0xff] }
 0x7a5   :  { %v3913_v34 = vpop.eup %3912 }
 0x7a6   :  { %v2421_v48 = vmul.f32 %v3913_v34, %v3911_v20  ;;  %v7633_v20 = vld [vmem:[#allocation51_spill] sm:$0xff]  ;;  %v7634_v34 = vld [vmem:[#allocation50_spill] sm:$0xff] }
 0x7a7   :  { %v3915_v44 = vpop.eup %3914 }
 0x7a8   :  { %v2420_v13 = vmul.f32 %v3915_v44, %v5827_v25  ;;  %v3917_v45 = vpop.eup %3916  ;;  %v7615_v25 = vld [vmem:[#allocation32_spill] sm:$0xff]  ;;  %v2538_v44 = vld [vmem:[%s2537_s29] sm:$0x1] }
 0x7aa   :  { %v6195_v0 = vadd.f32 %v2421_v48, %v2420_v13  ;;  %v7636_v13 = vld [vmem:[#allocation57_spill] sm:$0xff]  ;;  %v7637_v48 = vld [vmem:[#allocation59_spill] sm:$0xff] }
 0x7ac   :  { %3918 = vtanh.f32 %v6195_v0 }
 0x7b9   :  { %v3919_v38 = vpop.eup %3918 }
 0x7ba   :  { %v2424_v58 = vmul.f32 %v3919_v38, %v3917_v45  ;;  %v2541_v45 = vld [vmem:[%s2540_s4] sm:$0x1]  ;;  %v2558_v38 = vrot.slane %v2538_v44, 7  ;;  %v7643_v44 = vld [vmem:[#allocation67_spill] sm:$0xff] }
 0x7bc   :  { %v2425_v3 = vpack.c.bf16 %v2424_v58, %v2424_v58  ;;  %v7638_v58 = vld [vmem:[#allocation60_spill] sm:$0xff] }
 0x7be   :  { %2459 = vmatmul.mubr.bf16.vlgmr.msra.gmra.mxu0 %v2425_v3  ;;  %2500 = vmatmul.mubr.bf16.vlgmr.msra.gmra.mxu1 %v2425_v3 }
 0x7bf   :  { %2587 = vmatpush1.bf16.msra.mxu0 %v5830_v29  ;;  %2618 = vmatprep.mubr.bf16.mxu0 %v2425_v3 }
 0x7c0   :  { %2659 = vmatprep.mubr.bf16.mxu1 %v2425_v3  ;;  %2588 = vmatprep.subr.bf16.mxu0 %v5833_v30  ;;  %v2535_v3 = vld [vmem:[%s2534_s9] sm:$0x1] }
 0x7c1   :  { %2628 = vmatpush1.bf16.msra.mxu1 %v5836_v62 }
 0x7c2   :  { %2629 = vmatprep.subr.bf16.mxu1 %v5839_v31 }
 0x7c3   :  { %2589 = vmatpush1.bf16.msra.mxu0 %v5842_v32 }
 0x7c4   :  { %2590 = vmatprep.subr.bf16.mxu0 %v5845_v50 }
 0x7c5   :  { %2630 = vmatpush1.bf16.msra.mxu1 %v5848_v21 }
 0x7c6   :  { %2631 = vmatprep.subr.bf16.mxu1 %v5851_v41 }
 0x7c7   :  { %2591 = vmatpush1.bf16.msra.mxu0 %v5854_v1 }
 0x7c8   :  { %2592 = vmatprep.subr.bf16.mxu0 %v5857_v33 }
 0x7c9   :  { %2632 = vmatpush1.bf16.msra.mxu1 %v5860_v36 }
 0x7ca   :  { %2633 = vmatprep.subr.bf16.mxu1 %v5863_v56 }
 0x7cb   :  { %2593 = vmatpush1.bf16.msra.mxu0 %v7615_v25 }
 0x7cc   :  { %2594 = vmatprep.subr.bf16.mxu0 %v7616_v40 }
 0x7cd   :  { %2634 = vmatpush1.bf16.msra.mxu1 %v7617_v35 }
 0x7ce   :  { %2635 = vmatprep.subr.bf16.mxu1 %v7618_v17 }
 0x7cf   :  { %2595 = vmatpush1.bf16.msra.mxu0 %v7619_v37 }
 0x7d0   :  { %2596 = vmatprep.subr.bf16.mxu0 %v7620_v42 }
 0x7d1   :  { %2636 = vmatpush1.bf16.msra.mxu1 %v7621_v22 }
 0x7d2   :  { %2637 = vmatprep.subr.bf16.mxu1 %v7622_v19 }
 0x7d3   :  { %2597 = vmatpush1.bf16.msra.mxu0 %v7623_v2 }
 0x7d4   :  { %2598 = vmatprep.subr.bf16.mxu0 %v7624_v55 }
 0x7d5   :  { %2638 = vmatpush1.bf16.msra.mxu1 %v7625_v16 }
 0x7d6   :  { %2639 = vmatprep.subr.bf16.mxu1 %v7626_v43 }
 0x7d7   :  { %2599 = vmatpush1.bf16.msra.mxu0 %v7627_v51  ;;  %v7647_v51 = vld [vmem:[#allocation71_spill] sm:$0xff] }
 0x7d8   :  { %2600 = vmatprep.subr.bf16.mxu0 %v7628_v5  ;;  %v7646_v5 = vld [vmem:[#allocation68_spill] sm:$0xff] }
 0x7d9   :  { %2640 = vmatpush1.bf16.msra.mxu1 %v7629_v39  ;;  %v7644_v39 = vld [vmem:[#allocation66_spill] sm:$0xff] }
 0x7da   :  { %2641 = vmatprep.subr.bf16.mxu1 %v7630_v8 }
 0x7db   :  { %2601 = vmatpush1.bf16.msra.mxu0 %v7631_v57  ;;  %v7641_v57 = vld [vmem:[#allocation65_spill] sm:$0xff] }
 0x7dc   :  { %2602 = vmatprep.subr.bf16.mxu0 %v7632_v47  ;;  %v2544_v47 = vld [vmem:[%s2543_s11] sm:$0x1] }
 0x7dd   :  { %2642 = vmatpush1.bf16.msra.mxu1 %v7633_v20  ;;  %v7639_v20 = vld [vmem:[#allocation63_spill] sm:$0xff]  ;;  %v2564_v8 = vrot.slane %v2544_v47, 5  ;;  %v2553_v47 = vld [vmem:[%s2552_s13] sm:$0x1] }
 0x7de   :  { %2643 = vmatprep.subr.bf16.mxu1 %v7634_v34  ;;  %v7640_v34 = vld [vmem:[#allocation62_spill] sm:$0xff] }
 0x7df   :  { %2603 = vmatpush2.bf16.msra.mxu0 %v7635_v9  ;;  %v2561_v9 = vrot.slane %v2541_v45, 6  ;;  %v2550_v45 = vld [vmem:[%s2549_s12] sm:$0x1] }
 0x7e0   :  { %2604 = vmatprep.subr.bf16.mxu0 %v7636_v13  ;;  %v7642_v13 = vld [vmem:[#allocation64_spill] sm:$0xff] }
 0x7e1   :  { %2644 = vmatpush2.bf16.msra.mxu1 %v7637_v48  ;;  %v2578_v48 = vsel %vm157_vm0, %v2535_v3, %v2558_v38  ;;  %v7648_v3 = vld [vmem:[#allocation70_spill] sm:$0xff] }
 0x7e2   :  { %2645 = vmatprep.subr.bf16.mxu1 %v7638_v58  ;;  %v2547_v58 = vld [vmem:[%s2546_s0] sm:$0x1] }
 0x7e3   :  { %2605 = vmatpush2.bf16.msra.mxu0 %v7639_v20  ;;  %v2579_v20 = vsel %vm159_vm1, %v2578_v48, %v2561_v9  ;;  %v7651_v48 = vld [vmem:[#allocation75_spill] sm:$0xff] }
 0x7e4   :  { %2606 = vmatprep.subr.bf16.mxu0 %v7640_v34  ;;  %v7645_v34 = vld [vmem:[#allocation69_spill] sm:$0xff]  ;;  %v2580_v38 = vsel %vm161_vm2, %v2579_v20, %v2564_v8 }
 0x7e5   :  { %2646 = vmatpush2.bf16.msra.mxu1 %v7641_v57  ;;  %v2567_v57 = vrot.slane %v2547_v58, 4  ;;  %v2556_v58 = vld [vmem:[%s2555_s14] sm:$0x1]  ;;  %v7653_v20 = vld [vmem:[#allocation77_spill] sm:$0xff] }
 0x7e6   :  { %2647 = vmatprep.subr.bf16.mxu1 %v7642_v13  ;;  %v7650_v13 = vld [vmem:[#allocation72_spill] sm:$0xff] }
 0x7e7   :  { %2607 = vmatpush2.bf16.msra.mxu0 %v7643_v44  ;;  %v7649_v44 = vld [vmem:[#allocation73_spill] sm:$0xff]  ;;  %v2581_v9 = vsel %vm163_vm3, %v2580_v38, %v2567_v57  ;;  %v7655_v38 = vld [vmem:[#allocation79_spill] sm:$0xff] }
 0x7e8   :  { %2608 = vmatprep.subr.bf16.mxu0 %v7644_v39  ;;  %v2570_v39 = vrot.slane %v2550_v45, 3  ;;  %v2576_v45 = vrot.slane %v2556_v58, 1  ;;  %v7658_v58 = vld [vmem:[#allocation83_spill] sm:$0xff] }
 0x7e9   :  { %2648 = vmatpush2.bf16.msra.mxu1 %v7645_v34 }
 0x7ea   :  { %2649 = vmatprep.subr.bf16.mxu1 %v7646_v5  ;;  %v7652_v5 = vld [vmem:[#allocation74_spill] sm:$0xff]  ;;  %v2582_v8 = vsel %vm165_vm4, %v2581_v9, %v2570_v39  ;;  %v7657_v9 = vld [vmem:[#allocation80_spill] sm:$0xff] }
 0x7eb   :  { %2609 = vmatpush2.bf16.msra.mxu0 %v7647_v51  ;;  %v2573_v51 = vrot.slane %v2553_v47, 2 }
 0x7ec   :  { %2610 = vmatprep.subr.bf16.mxu0 %v7648_v3 }
 0x7ed   :  { %2650 = vmatpush2.bf16.msra.mxu1 %v7649_v44  ;;  %v7654_v44 = vld [vmem:[#allocation76_spill] sm:$0xff]  ;;  %v2583_v57 = vsel %vm167_vm5, %v2582_v8, %v2573_v51  ;;  %v7660_v51 = vld [vmem:[#allocation87_spill] sm:$0xff]  ;;  %v7661_v8 = vld [vmem:[#allocation86_spill] sm:$0xff] }
 0x7ee   :  { %2651 = vmatprep.subr.bf16.mxu1 %v7650_v13  ;;  %v2584_v47 = vsel %vm169_vm6, %v2583_v57, %v2576_v45  ;;  %v7662_v45 = vld [vmem:[#allocation89_spill] sm:$0xff]  ;;  %v7663_v57 = vld [vmem:[#allocation91_spill] sm:$0xff] }
 0x7ef   :  { %2611 = vmatpush2.bf16.msra.mxu0 %v7651_v48  ;;  %v2585_v39 = vpack.c.bf16 %v2584_v47, %v2584_v47  ;;  %v7665_v47 = vld [vmem:[#allocation92_spill] sm:$0xff] }
 0x7f0   :  { %2612 = vmatprep.subr.bf16.mxu0 %v7652_v5  ;;  %v7656_v5 = vld [vmem:[#allocation78_spill] sm:$0xff] }
 0x7f1   :  { %2652 = vmatpush2.bf16.msra.mxu1 %v6005_v46 }
 0x7f2   :  { %2653 = vmatprep.subr.bf16.mxu1 %v6009_v15 }
 0x7f3   :  { %2613 = vmatpush2.bf16.msra.mxu0 %v7653_v20 }
 0x7f4   :  { %2614 = vmatprep.subr.bf16.mxu0 %v7654_v44  ;;  %v7659_v44 = vld [vmem:[#allocation82_spill] sm:$0xff] }
 0x7f5   :  { %2654 = vmatpush2.bf16.msra.mxu1 %v6019_v18 }
 0x7f6   :  { %2655 = vmatprep.subr.bf16.mxu1 %v7655_v38 }
 0x7f7   :  { %2615 = vmatpush2.bf16.msra.mxu0 %v7656_v5 }
 0x7f8   :  { %2616 = vmatprep.subr.bf16.mxu0 %v6029_v54 }
 0x7f9   :  { %2656 = vmatpush2.bf16.msra.mxu1 %v6032_v53  ;;  %v7664_v53 = vld [vmem:[#allocation90_spill] sm:$0xff] }
 0x7fa   :  { %2657 = vmatprep.subr.bf16.mxu1 %v7657_v9  ;;  %v7666_v9 = vld [vmem:[#allocation93_spill] sm:$0xff] }
 0x7fb   :  { %2617 = vmatpush2.bf16.msra.mxu0 %v7658_v58  ;;  %v7667_v58 = vld [vmem:[#allocation95_spill] sm:$0xff] }
 0x7fc   :  { %2693 = vmatprep.subr.bf16.mxu0 %v7659_v44  ;;  %v7668_v44 = vld [vmem:[#allocation94_spill] sm:$0xff] }
 0x7fd   :  { %2658 = vmatpush2.bf16.msra.mxu1 %v7660_v51  ;;  %v7669_v51 = vld [vmem:[#allocation96_spill] sm:$0xff] }
 0x7fe   :  { %2619 = vmatmul.mubr.bf16.vlgmr.msra.gmra.mxu0 %v2585_v39  ;;  %2734 = vmatprep.subr.bf16.mxu1 %v7661_v8  ;;  %v7670_v8 = vld [vmem:[#allocation97_spill] sm:$0xff] }
 0x7ff   :  { %2694 = vmatpush1.bf16.msra.mxu0 %v6050_v26  ;;  %v7671_v26 = vld [vmem:[#allocation98_spill] sm:$0xff] }
 0x800   :  { %2660 = vmatmul.mubr.bf16.vlgmr.msra.gmra.mxu1 %v2585_v39  ;;  %2695 = vmatprep.subr.bf16.mxu0 %v7662_v45  ;;  %v7672_v39 = vld [vmem:[#allocation99_spill] sm:$0xff]  ;;  %v7673_v45 = vld [vmem:[#allocation101_spill] sm:$0xff] }
 0x801   :  { %2735 = vmatpush1.bf16.msra.mxu1 %v7663_v57  ;;  %v7674_v57 = vld [vmem:[#allocation100_spill] sm:$0xff] }
 0x802   :  { %2736 = vmatprep.subr.bf16.mxu1 %v7664_v53  ;;  %v7675_v53 = vld [vmem:[#allocation102_spill] sm:$0xff] }
 0x803   :  { %2696 = vmatpush1.bf16.msra.mxu0 %v7665_v47  ;;  %v7676_v47 = vld [vmem:[#allocation19_spill] sm:$0xff] }
 0x804   :  { %2697 = vmatprep.subr.bf16.mxu0 %v7666_v9  ;;  %v7677_v9 = vld [vmem:[#allocation20_spill] sm:$0xff] }
 0x805   :  { %2737 = vmatpush1.bf16.msra.mxu1 %v7667_v58  ;;  %v7678_v58 = vld [vmem:[#allocation21_spill] sm:$0xff] }
 0x806   :  { %2738 = vmatprep.subr.bf16.mxu1 %v7668_v44  ;;  %v7679_v44 = vld [vmem:[#allocation22_spill] sm:$0xff] }
 0x807   :  { %2698 = vmatpush1.bf16.msra.mxu0 %v7669_v51  ;;  %v7680_v51 = vld [vmem:[#allocation25_spill] sm:$0xff] }
 0x808   :  { %2699 = vmatprep.subr.bf16.mxu0 %v7670_v8  ;;  %v7681_v8 = vld [vmem:[#allocation26_spill] sm:$0xff] }
 0x809   :  { %2739 = vmatpush1.bf16.msra.mxu1 %v7671_v26  ;;  %v7682_v26 = vld [vmem:[#allocation23_spill] sm:$0xff] }
 0x80a   :  { %2740 = vmatprep.subr.bf16.mxu1 %v7672_v39  ;;  %v7683_v39 = vld [vmem:[#allocation24_spill] sm:$0xff] }
 0x80b   :  { %2700 = vmatpush1.bf16.msra.mxu0 %v7673_v45  ;;  %v7684_v45 = vld [vmem:[#allocation29_spill] sm:$0xff] }
 0x80c   :  { %2701 = vmatprep.subr.bf16.mxu0 %v7674_v57  ;;  %v7685_v57 = vld [vmem:[#allocation30_spill] sm:$0xff] }
 0x80d   :  { %2741 = vmatpush1.bf16.msra.mxu1 %v7675_v53  ;;  %v7686_v53 = vld [vmem:[#allocation27_spill] sm:$0xff] }
 0x80e   :  { %2742 = vmatprep.subr.bf16.mxu1 %v7676_v47  ;;  %v7687_v47 = vld [vmem:[#allocation28_spill] sm:$0xff] }
 0x80f   :  { %2702 = vmatpush1.bf16.msra.mxu0 %v7677_v9  ;;  %v7688_v9 = vld [vmem:[#allocation48_spill] sm:$0xff] }
 0x810   :  { %2703 = vmatprep.subr.bf16.mxu0 %v7678_v58 }
 0x811   :  { %2743 = vmatpush1.bf16.msra.mxu1 %v7679_v44 }
 0x812   :  { %2744 = vmatprep.subr.bf16.mxu1 %v7680_v51 }
 0x813   :  { %2704 = vmatpush1.bf16.msra.mxu0 %v7681_v8 }
 0x814   :  { %2705 = vmatprep.subr.bf16.mxu0 %v7682_v26 }
 0x815   :  { %2745 = vmatpush1.bf16.msra.mxu1 %v7683_v39  ;;  %v6302_v39 = vld [vmem:[#allocation9 + $0x1c4] ss:$16 sps:$4 sm:$0xff]  }
 0x816   :  { %2746 = vmatprep.subr.bf16.mxu1 %v7684_v45  ;;  %7689 = vst [vmem:[#allocation85_spill] sm:$0xff] %v6302_v39 }
 0x817   :  { %2706 = vmatpush1.bf16.msra.mxu0 %v7685_v57 }
 0x818   :  { %2707 = vmatprep.subr.bf16.mxu0 %v7686_v53  ;;  %v6306_v53 = vld [vmem:[#allocation9 + $0x1cc] ss:$16 sps:$4 sm:$0xff]  }
 0x819   :  { %2747 = vmatpush1.bf16.msra.mxu1 %v7687_v47  ;;  %7690 = vst [vmem:[#allocation84_spill] sm:$0xff] %v6306_v53 }
 0x81a   :  { %2748 = vmatprep.subr.bf16.mxu1 %v7688_v9  ;;  %v6309_v9 = vld [vmem:[#allocation9 + $0x1c0] ss:$16 sps:$4 sm:$0xff]  }
 0x81b   :  { %2708 = vmatpush1.bf16.msra.mxu0 %v6134_v28  ;;  %7691 = vst [vmem:[#allocation103_spill] sm:$0xff] %v6309_v9 }
 0x81c   :  { %2709 = vmatprep.subr.bf16.mxu0 %v6137_v63  ;;  %v6312_v63 = vld [vmem:[#allocation9 + $0x1a4] ss:$16 sps:$4 sm:$0xff]  }
 0x81d   :  { %2749 = vmatpush1.bf16.msra.mxu1 %v6140_v23  ;;  %7692 = vst [vmem:[#allocation104_spill] sm:$0xff] %v6312_v63 }
 0x81e   :  { %2750 = vmatprep.subr.bf16.mxu1 %v6143_v27  ;;  %v6315_v27 = vld [vmem:[#allocation9 + $0x1c8] ss:$16 sps:$4 sm:$0xff]  }
 0x81f   :  { %2710 = vmatpush2.bf16.msra.mxu0 %v6146_v24  ;;  %7693 = vst [vmem:[#allocation105_spill] sm:$0xff] %v6315_v27  ;;  %v6318_v24 = vld [vmem:[#allocation9 + $0x1ac] ss:$16 sps:$4 sm:$0xff]  }
 0x820   :  { %2711 = vmatprep.subr.bf16.mxu0 %v6302_v39  ;;  %7694 = vst [vmem:[#allocation106_spill] sm:$0xff] %v6318_v24 }
 0x821   :  { %2751 = vmatpush2.bf16.msra.mxu1 %v6150_v60  ;;  %v6321_v60 = vld [vmem:[#allocation9 + $0x1a0] ss:$16 sps:$4 sm:$0xff]  }
 0x822   :  { %2752 = vmatprep.subr.bf16.mxu1 %v6306_v53  ;;  %7695 = vst [vmem:[#allocation107_spill] sm:$0xff] %v6321_v60  ;;  %v6324_v53 = vld [vmem:[#allocation9 + $0x184] ss:$16 sps:$4 sm:$0xff]  }
 0x823   :  { %2712 = vmatpush2.bf16.msra.mxu0 %v6309_v9  ;;  %7696 = vst [vmem:[#allocation32_spill] sm:$0xff] %v6324_v53  ;;  %v6327_v9 = vld [vmem:[#allocation9 + $0x1a8] ss:$16 sps:$4 sm:$0xff]  }
 0x824   :  { %2713 = vmatprep.subr.bf16.mxu0 %v6312_v63  ;;  %7697 = vst [vmem:[#allocation34_spill] sm:$0xff] %v6327_v9  ;;  %v6330_v63 = vld [vmem:[#allocation9 + $0x18c] ss:$16 sps:$4 sm:$0xff]  }
 0x825   :  { %2753 = vmatpush2.bf16.msra.mxu1 %v6315_v27  ;;  %7698 = vst [vmem:[#allocation31_spill] sm:$0xff] %v6330_v63  ;;  %v6333_v27 = vld [vmem:[#allocation9 + $0x180] ss:$16 sps:$4 sm:$0xff]  }
 0x826   :  { %2754 = vmatprep.subr.bf16.mxu1 %v6318_v24  ;;  %7699 = vst [vmem:[#allocation33_spill] sm:$0xff] %v6333_v27  ;;  %v6336_v24 = vld [vmem:[#allocation9 + $0x164] ss:$16 sps:$4 sm:$0xff]  }
 0x827   :  { %2714 = vmatpush2.bf16.msra.mxu0 %v6321_v60  ;;  %7700 = vst [vmem:[#allocation36_spill] sm:$0xff] %v6336_v24  ;;  %v6339_v60 = vld [vmem:[#allocation9 + $0x188] ss:$16 sps:$4 sm:$0xff]  }
 0x828   :  { %2715 = vmatprep.subr.bf16.mxu0 %v6324_v53  ;;  %7701 = vst [vmem:[#allocation38_spill] sm:$0xff] %v6339_v60  ;;  %v6342_v53 = vld [vmem:[#allocation9 + $0x16c] ss:$16 sps:$4 sm:$0xff]  }
 0x829   :  { %2755 = vmatpush2.bf16.msra.mxu1 %v6327_v9  ;;  %7702 = vst [vmem:[#allocation35_spill] sm:$0xff] %v6342_v53  ;;  %v6345_v9 = vld [vmem:[#allocation9 + $0x160] ss:$16 sps:$4 sm:$0xff]  }
 0x82a   :  { %2756 = vmatprep.subr.bf16.mxu1 %v6330_v63  ;;  %7703 = vst [vmem:[#allocation37_spill] sm:$0xff] %v6345_v9  ;;  %v6348_v63 = vld [vmem:[#allocation9 + $0x144] ss:$16 sps:$4 sm:$0xff]  }
 0x82b   :  { %2716 = vmatpush2.bf16.msra.mxu0 %v6333_v27  ;;  %7704 = vst [vmem:[#allocation40_spill] sm:$0xff] %v6348_v63  ;;  %v6351_v27 = vld [vmem:[#allocation9 + $0x168] ss:$16 sps:$4 sm:$0xff]  }
 0x82c   :  { %2717 = vmatprep.subr.bf16.mxu0 %v6336_v24  ;;  %7705 = vst [vmem:[#allocation41_spill] sm:$0xff] %v6351_v27  ;;  %v6354_v24 = vld [vmem:[#allocation9 + $0x14c] ss:$16 sps:$4 sm:$0xff]  }
 0x82d   :  { %2757 = vmatpush2.bf16.msra.mxu1 %v6339_v60  ;;  %7706 = vst [vmem:[#allocation39_spill] sm:$0xff] %v6354_v24  ;;  %v6357_v60 = vld [vmem:[#allocation9 + $0x140] ss:$16 sps:$4 sm:$0xff]  }
 0x82e   :  { %2758 = vmatprep.subr.bf16.mxu1 %v6342_v53  ;;  %7707 = vst [vmem:[#allocation43_spill] sm:$0xff] %v6357_v60  ;;  %v6360_v53 = vld [vmem:[#allocation9 + $0x124] ss:$16 sps:$4 sm:$0xff]  }
 0x82f   :  { %2718 = vmatpush2.bf16.msra.mxu0 %v6345_v9  ;;  %7708 = vst [vmem:[#allocation69_spill] sm:$0xff] %v6360_v53  ;;  %v6363_v9 = vld [vmem:[#allocation9 + $0x148] ss:$16 sps:$4 sm:$0xff]  }
 0x830   :  { %2719 = vmatprep.subr.bf16.mxu0 %v6348_v63  ;;  %7709 = vst [vmem:[#allocation70_spill] sm:$0xff] %v6363_v9  ;;  %v6366_v63 = vld [vmem:[#allocation9 + $0x12c] ss:$16 sps:$4 sm:$0xff]  }
 0x831   :  { %2759 = vmatpush2.bf16.msra.mxu1 %v6351_v27  ;;  %7710 = vst [vmem:[#allocation72_spill] sm:$0xff] %v6366_v63  ;;  %v6369_v27 = vld [vmem:[#allocation9 + $0x120] ss:$16 sps:$4 sm:$0xff]  }
 0x832   :  { %2760 = vmatprep.subr.bf16.mxu1 %v6354_v24  ;;  %7711 = vst [vmem:[#allocation75_spill] sm:$0xff] %v6369_v27  ;;  %v6372_v24 = vld [vmem:[#allocation9 + $0x104] ss:$16 sps:$4 sm:$0xff]  }
 0x833   :  { %2720 = vmatpush2.bf16.msra.mxu0 %v6357_v60  ;;  %7712 = vst [vmem:[#allocation77_spill] sm:$0xff] %v6372_v24  ;;  %v6375_v60 = vld [vmem:[#allocation9 + $0x128] ss:$16 sps:$4 sm:$0xff]  }
 0x834   :  { %2721 = vmatprep.subr.bf16.mxu0 %v6360_v53  ;;  %7713 = vst [vmem:[#allocation79_spill] sm:$0xff] %v6375_v60  ;;  %v6378_v53 = vld [vmem:[#allocation9 + $0x10c] ss:$16 sps:$4 sm:$0xff]  }
 0x835   :  { %2761 = vmatpush2.bf16.msra.mxu1 %v6363_v9  ;;  %7714 = vst [vmem:[#allocation78_spill] sm:$0xff] %v6378_v53  ;;  %v6381_v9 = vld [vmem:[#allocation9 + $0x100] ss:$16 sps:$4 sm:$0xff]  }
 0x836   :  { %2762 = vmatprep.subr.bf16.mxu1 %v6366_v63  ;;  %7715 = vst [vmem:[#allocation21_spill] sm:$0xff] %v6381_v9  ;;  %v6385_v63 = vld [vmem:[#allocation9 + $0x108] ss:$16 sps:$4 sm:$0xff]  }
 0x837   :  { %2722 = vmatpush2.bf16.msra.mxu0 %v6369_v27  ;;  %7716 = vst [vmem:[#allocation22_spill] sm:$0xff] %v6385_v63 }
 0x838   :  { %2723 = vmatprep.subr.bf16.mxu0 %v6372_v24 }
 0x839   :  { %2763 = vmatpush2.bf16.msra.mxu1 %v6375_v60 }
 0x83a   :  { %2764 = vmatprep.subr.bf16.mxu1 %v6378_v53 }
 0x83b   :  { %2724 = vmatpush2.bf16.msra.mxu0 %v6381_v9 }
 0x83c   :  { %2853 = vmatprep.subr.bf16.mxu0 %v5807_v11 }
 0x83d   :  { %2765 = vmatpush2.bf16.msra.mxu1 %v6385_v63 }
 0x83e   :  { %2894 = vmatprep.subr.bf16.mxu1 %v5811_v14 }
 0x87e   :  { %v2460_v24 = vpop.f32.mrf.mxu0  ;;  %v2501_v27 = vpop.f32.mrf.mxu1 }
 0x87f   :  { %v2461_v60 = vadd.f32 %v2460_v24, %v5071_v52  ;;  %v2502_v63 = vadd.f32 %v2501_v27, %v5081_v4 }
 0x880   :  { %v2462_v39 = vpop.f32.mrf.mxu0  ;;  %v2503_v23 = vpop.f32.mrf.mxu1 }
 0x881   :  { %v3459_v28 = vmul.f32 -1.442695, %v2461_v60  ;;  %v2463_v53 = vadd.f32 %v2462_v39, %v5075_v59  ;;  %v3461_v26 = vmul.f32 -1.442695, %v2502_v63  ;;  %v2504_v8 = vadd.f32 %v2503_v23, %v5086_v7 }
 0x882   :  { %v2464_v47 = vpop.f32.mrf.mxu0  ;;  %v2505_v57 = vpop.f32.mrf.mxu1 }
 0x883   :  { %3920 = vpow2.f32 %v3459_v28  ;;  %v3460_v9 = vmul.f32 -1.442695, %v2463_v53 }
 0x884   :  { %v2465_v11 = vpop.f32.mrf.mxu0  ;;  %v2506_v45 = vpop.f32.mrf.mxu1 }
 0x885   :  { %3922 = vpow2.f32 %v3460_v9 }
 0x886   :  { %3924 = vpow2.f32 %v3461_v26 }
 0x890   :  { %v3921_v14 = vpop.eup %3920 }
 0x891   :  { %v2517_v51 = vadd.f32 1.0, %v3921_v14 }
 0x892   :  { %v3923_v24 = vpop.eup %3922 }
 0x893   :  { %3926 = vrcp.f32 %v2517_v51  ;;  %v2518_v60 = vadd.f32 1.0, %v3923_v24  ;;  %v3925_v47 = vpop.eup %3924 }
 0x894   :  { %3928 = vtanh.f32 %v2504_v8  ;;  %v2519_v39 = vadd.f32 1.0, %v3925_v47 }
 0x895   :  { %3930 = vrcp.f32 %v2518_v60 }
 0x896   :  { %3932 = vrcp.f32 %v2519_v39 }
 0x8a0   :  { %v3927_v57 = vpop.eup %3926 }
 0x8a1   :  { %v3929_v28 = vpop.eup %3928 }
 0x8a2   :  { %v3931_v53 = vpop.eup %3930  ;;  %v2528_v45 = vmul.f32 %v3929_v28, %v3927_v57 }
 0x8a3   :  { %v2527_v9 = vmul.f32 %v3931_v53, %v6187_v10  ;;  %v3933_v63 = vpop.eup %3932 }
 0x8a5   :  { %v6394_v27 = vadd.f32 %v2528_v45, %v2527_v9 }
 0x8a7   :  { %3934 = vtanh.f32 %v6394_v27 }
 0x8b4   :  { %v3935_v23 = vpop.eup %3934 }
 0x8b5   :  { %v2531_v26 = vmul.f32 %v3935_v23, %v3933_v63 }
 0x8b7   :  { %v2532_v51 = vpack.c.bf16 %v2531_v26, %v2531_v26 }
 0x8b9   :  { %2725 = vmatprep.mubr.bf16.mxu0 %v2532_v51  ;;  %2766 = vmatprep.mubr.bf16.mxu1 %v2532_v51 }
 0x8be   :  { %v2620_v8 = vpop.f32.mrf.mxu0 }
 0x8bf   :  { %v2621_v11 = vadd.f32 %v2620_v8, %v7257_v49 }
 0x8c0   :  { %v2622_v14 = vpop.f32.mrf.mxu0  ;;  %v2661_v24 = vpop.f32.mrf.mxu1 }
 0x8c1   :  { %v3470_v60 = vmul.f32 -1.442695, %v2621_v11  ;;  %v2623_v10 = vadd.f32 %v2622_v14, %v7258_v61  ;;  %v2662_v45 = vadd.f32 %v2661_v24, %v7259_v12 }
 0x8c2   :  { %v2624_v47 = vpop.f32.mrf.mxu0  ;;  %v2663_v57 = vpop.f32.mrf.mxu1 }
 0x8c3   :  { %3936 = vpow2.f32 %v3470_v60  ;;  %v3471_v28 = vmul.f32 -1.442695, %v2623_v10  ;;  %v3472_v63 = vmul.f32 -1.442695, %v2662_v45  ;;  %v2664_v23 = vadd.f32 %v2663_v57, %v4924_v6 }
 0x8c4   :  { %v2625_v53 = vpop.f32.mrf.mxu0  ;;  %v2665_v39 = vpop.f32.mrf.mxu1 }
 0x8c5   :  { %3938 = vpow2.f32 %v3471_v28 }
 0x8c6   :  { %v2666_v9 = vpop.f32.mrf.mxu1  ;;  %3940 = vpow2.f32 %v3472_v63 }
 0x8c7   :  { %3942 = vtanh.f32 %v2664_v23 }
 0x8d0   :  { %v3937_v26 = vpop.eup %3936 }
 0x8d1   :  { %v2677_v51 = vadd.f32 1.0, %v3937_v26  ;;  %v7734_v26 = vld [vmem:[#allocation66_spill] sm:$0xff] }
 0x8d2   :  { %v3939_v8 = vpop.eup %3938 }
 0x8d3   :  { %3944 = vrcp.f32 %v2677_v51  ;;  %v2678_v11 = vadd.f32 1.0, %v3939_v8  ;;  %v3941_v14 = vpop.eup %3940  ;;  %v7735_v8 = vld [vmem:[#allocation68_spill] sm:$0xff] }
 0x8d4   :  { %v3943_v60 = vpop.eup %3942  ;;  %v2679_v53 = vadd.f32 1.0, %v3941_v14 }
 0x8d5   :  { %3946 = vrcp.f32 %v2678_v11  ;;  %v2817_v11 = vld [vmem:[%s2816_s24] sm:$0x1] }
 0x8d6   :  { %3948 = vrcp.f32 %v2679_v53  ;;  %v2820_v53 = vld [vmem:[%s2819_s25] sm:$0x1] }
 0x8e0   :  { %v3945_v10 = vpop.eup %3944 }
 0x8e1   :  { %v2688_v39 = vmul.f32 %v3945_v10, %v3943_v60  ;;  %v7736_v60 = vld [vmem:[#allocation71_spill] sm:$0xff] }
 0x8e2   :  { %v3947_v47 = vpop.eup %3946 }
 0x8e3   :  { %v2687_v28 = vmul.f32 %v3947_v47, %v6195_v0  ;;  %v3949_v57 = vpop.eup %3948  ;;  %v2808_v0 = vld [vmem:[%s2807_s19] sm:$0x1]  ;;  %v7737_v47 = vld [vmem:[#allocation73_spill] sm:$0xff] }
 0x8e5   :  { %v6402_v24 = vadd.f32 %v2688_v39, %v2687_v28  ;;  %v2837_v28 = vrot.slane %v2817_v11, 3  ;;  %v7738_v39 = vld [vmem:[#allocation74_spill] sm:$0xff]  ;;  %v7777_v11 = vld [vmem:[#allocation85_spill] sm:$0xff] }
 0x8e7   :  { %3950 = vtanh.f32 %v6402_v24 }
 0x8f4   :  { %v3951_v9 = vpop.eup %3950 }
 0x8f5   :  { %v2691_v45 = vmul.f32 %v3951_v9, %v3949_v57  ;;  %v2823_v57 = vld [vmem:[%s2822_s26] sm:$0x1]  ;;  %v2840_v9 = vrot.slane %v2820_v53, 2  ;;  %v7782_v53 = vld [vmem:[#allocation105_spill] sm:$0xff] }
 0x8f7   :  { %v2692_v63 = vpack.c.bf16 %v2691_v45, %v2691_v45  ;;  %v2843_v45 = vrot.slane %v2823_v57, 1  ;;  %v7786_v57 = vld [vmem:[#allocation34_spill] sm:$0xff] }
 0x8f9   :  { %2726 = vmatmul.mubr.bf16.vlgmr.msra.gmra.mxu0 %v2692_v63  ;;  %2767 = vmatmul.mubr.bf16.vlgmr.msra.gmra.mxu1 %v2692_v63 }
 0x8fa   :  { %2854 = vmatpush1.bf16.msra.mxu0 %v5830_v29  ;;  %2885 = vmatprep.mubr.bf16.mxu0 %v2692_v63  ;;  %v7717_v29 = vld [vmem:[#allocation42_spill] sm:$0xff] }
 0x8fb   :  { %2926 = vmatprep.mubr.bf16.mxu1 %v2692_v63  ;;  %2855 = vmatprep.subr.bf16.mxu0 %v5833_v30  ;;  %v7718_v30 = vld [vmem:[#allocation45_spill] sm:$0xff]  ;;  %v7739_v63 = vld [vmem:[#allocation76_spill] sm:$0xff] }
 0x8fc   :  { %2895 = vmatpush1.bf16.msra.mxu1 %v5836_v62  ;;  %v7719_v62 = vld [vmem:[#allocation44_spill] sm:$0xff] }
 0x8fd   :  { %2896 = vmatprep.subr.bf16.mxu1 %v5839_v31  ;;  %v7720_v31 = vld [vmem:[#allocation47_spill] sm:$0xff] }
 0x8fe   :  { %2856 = vmatpush1.bf16.msra.mxu0 %v5842_v32  ;;  %v7721_v32 = vld [vmem:[#allocation46_spill] sm:$0xff] }
 0x8ff   :  { %2857 = vmatprep.subr.bf16.mxu0 %v5845_v50  ;;  %v7722_v50 = vld [vmem:[#allocation49_spill] sm:$0xff] }
 0x900   :  { %2897 = vmatpush1.bf16.msra.mxu1 %v5848_v21  ;;  %v7723_v21 = vld [vmem:[#allocation51_spill] sm:$0xff] }
 0x901   :  { %2898 = vmatprep.subr.bf16.mxu1 %v5851_v41  ;;  %v7724_v41 = vld [vmem:[#allocation50_spill] sm:$0xff] }
 0x902   :  { %2858 = vmatpush1.bf16.msra.mxu0 %v5854_v1  ;;  %v2805_v1 = vld [vmem:[%s2804_s6] sm:$0x1] }
 0x903   :  { %2859 = vmatprep.subr.bf16.mxu0 %v5857_v33  ;;  %v7725_v33 = vld [vmem:[#allocation52_spill] sm:$0xff] }
 0x904   :  { %2899 = vmatpush1.bf16.msra.mxu1 %v5860_v36  ;;  %v7726_v36 = vld [vmem:[#allocation57_spill] sm:$0xff] }
 0x905   :  { %2900 = vmatprep.subr.bf16.mxu1 %v5863_v56  ;;  %v7727_v56 = vld [vmem:[#allocation59_spill] sm:$0xff] }
 0x906   :  { %2860 = vmatpush1.bf16.msra.mxu0 %v7615_v25  ;;  %v2825_v25 = vrot.slane %v2805_v1, 7  ;;  %v7754_v1 = vld [vmem:[#allocation96_spill] sm:$0xff] }
 0x907   :  { %2861 = vmatprep.subr.bf16.mxu0 %v7616_v40  ;;  %v7728_v40 = vld [vmem:[#allocation60_spill] sm:$0xff] }
 0x908   :  { %2901 = vmatpush1.bf16.msra.mxu1 %v7617_v35  ;;  %v2802_v35 = vld [vmem:[%s2801_s20] sm:$0x1] }
 0x909   :  { %2902 = vmatprep.subr.bf16.mxu1 %v7618_v17  ;;  %v7729_v17 = vld [vmem:[#allocation63_spill] sm:$0xff] }
 0x90a   :  { %2862 = vmatpush1.bf16.msra.mxu0 %v7619_v37  ;;  %v7730_v37 = vld [vmem:[#allocation62_spill] sm:$0xff] }
 0x90b   :  { %2863 = vmatprep.subr.bf16.mxu0 %v7620_v42  ;;  %v2811_v42 = vld [vmem:[%s2810_s22] sm:$0x1] }
 0x90c   :  { %2903 = vmatpush1.bf16.msra.mxu1 %v7621_v22  ;;  %v2828_v22 = vrot.slane %v2808_v0, 6  ;;  %v2831_v23 = vrot.slane %v2811_v42, 5  ;;  %v7758_v0 = vld [vmem:[#allocation101_spill] sm:$0xff]  ;;  %v7764_v42 = vld [vmem:[#allocation26_spill] sm:$0xff] }
 0x90d   :  { %2904 = vmatprep.subr.bf16.mxu1 %v7622_v19  ;;  %v7731_v19 = vld [vmem:[#allocation65_spill] sm:$0xff] }
 0x90e   :  { %2864 = vmatpush1.bf16.msra.mxu0 %v7623_v2  ;;  %v2845_v2 = vsel %vm157_vm0, %v2802_v35, %v2825_v25  ;;  %v7759_v25 = vld [vmem:[#allocation100_spill] sm:$0xff]  ;;  %v7761_v35 = vld [vmem:[#allocation19_spill] sm:$0xff] }
 0x90f   :  { %2865 = vmatprep.subr.bf16.mxu0 %v7624_v55  ;;  %v7732_v55 = vld [vmem:[#allocation64_spill] sm:$0xff]  ;;  %v2846_v51 = vsel %vm159_vm1, %v2845_v2, %v2828_v22  ;;  %v7765_v22 = vld [vmem:[#allocation23_spill] sm:$0xff]  ;;  %v7767_v2 = vld [vmem:[#allocation29_spill] sm:$0xff] }
 0x910   :  { %2905 = vmatpush1.bf16.msra.mxu1 %v7625_v16  ;;  %v7733_v16 = vld [vmem:[#allocation67_spill] sm:$0xff]  ;;  %v2847_v10 = vsel %vm161_vm2, %v2846_v51, %v2831_v23  ;;  %v7771_v23 = vld [vmem:[#allocation48_spill] sm:$0xff] }
 0x911   :  { %2906 = vmatprep.subr.bf16.mxu1 %v7626_v43  ;;  %v2814_v43 = vld [vmem:[%s2813_s2] sm:$0x1]  ;;  %v7775_v51 = vld [vmem:[#allocation56_spill] sm:$0xff] }
 0x912   :  { %2866 = vmatpush1.bf16.msra.mxu0 %v7717_v29  ;;  %v2834_v14 = vrot.slane %v2814_v43, 4  ;;  %v7741_v29 = vld [vmem:[#allocation80_spill] sm:$0xff] }
 0x913   :  { %2867 = vmatprep.subr.bf16.mxu0 %v7718_v30  ;;  %v7743_v30 = vld [vmem:[#allocation82_spill] sm:$0xff]  ;;  %v7770_v43 = vld [vmem:[#allocation28_spill] sm:$0xff] }
 0x914   :  { %2907 = vmatpush1.bf16.msra.mxu1 %v7719_v62  ;;  %v7744_v62 = vld [vmem:[#allocation87_spill] sm:$0xff] }
 0x915   :  { %2908 = vmatprep.subr.bf16.mxu1 %v7720_v31  ;;  %v7749_v31 = vld [vmem:[#allocation90_spill] sm:$0xff] }
 0x916   :  { %2868 = vmatpush1.bf16.msra.mxu0 %v7721_v32  ;;  %v7750_v32 = vld [vmem:[#allocation92_spill] sm:$0xff] }
 0x917   :  { %2869 = vmatprep.subr.bf16.mxu0 %v7722_v50  ;;  %v7751_v50 = vld [vmem:[#allocation93_spill] sm:$0xff] }
 0x918   :  { %2909 = vmatpush1.bf16.msra.mxu1 %v7723_v21  ;;  %v7752_v21 = vld [vmem:[#allocation95_spill] sm:$0xff] }
 0x919   :  { %2910 = vmatprep.subr.bf16.mxu1 %v7724_v41  ;;  %v7753_v41 = vld [vmem:[#allocation94_spill] sm:$0xff] }
 0x91a   :  { %2870 = vmatpush2.bf16.msra.mxu0 %v7725_v33  ;;  %v7755_v33 = vld [vmem:[#allocation97_spill] sm:$0xff] }
 0x91b   :  { %2871 = vmatprep.subr.bf16.mxu0 %v7726_v36  ;;  %v7756_v36 = vld [vmem:[#allocation98_spill] sm:$0xff] }
 0x91c   :  { %2911 = vmatpush2.bf16.msra.mxu1 %v7727_v56  ;;  %v7757_v56 = vld [vmem:[#allocation99_spill] sm:$0xff] }
 0x91d   :  { %2912 = vmatprep.subr.bf16.mxu1 %v7728_v40  ;;  %v7760_v40 = vld [vmem:[#allocation102_spill] sm:$0xff] }
 0x91e   :  { %2872 = vmatpush2.bf16.msra.mxu0 %v7729_v17  ;;  %v7762_v17 = vld [vmem:[#allocation20_spill] sm:$0xff] }
 0x91f   :  { %2873 = vmatprep.subr.bf16.mxu0 %v7730_v37  ;;  %v7763_v37 = vld [vmem:[#allocation25_spill] sm:$0xff] }
 0x920   :  { %2913 = vmatpush2.bf16.msra.mxu1 %v7731_v19  ;;  %v7766_v19 = vld [vmem:[#allocation24_spill] sm:$0xff] }
 0x921   :  { %2914 = vmatprep.subr.bf16.mxu1 %v7732_v55  ;;  %v7768_v55 = vld [vmem:[#allocation30_spill] sm:$0xff] }
 0x922   :  { %2874 = vmatpush2.bf16.msra.mxu0 %v7733_v16  ;;  %v7769_v16 = vld [vmem:[#allocation27_spill] sm:$0xff] }
 0x923   :  { %2875 = vmatprep.subr.bf16.mxu0 %v7734_v26  ;;  %v7774_v26 = vld [vmem:[#allocation54_spill] sm:$0xff] }
 0x924   :  { %2915 = vmatpush2.bf16.msra.mxu1 %v7645_v34  ;;  %v2848_v34 = vsel %vm163_vm3, %v2847_v10, %v2834_v14  ;;  %v7778_v14 = vld [vmem:[#allocation61_spill] sm:$0xff]  ;;  %v7780_v10 = vld [vmem:[#allocation103_spill] sm:$0xff] }
 0x925   :  { %2916 = vmatprep.subr.bf16.mxu1 %v7735_v8  ;;  %v7776_v8 = vld [vmem:[#allocation58_spill] sm:$0xff] }
 0x926   :  { %2876 = vmatpush2.bf16.msra.mxu0 %v7736_v60  ;;  %v7779_v60 = vld [vmem:[#allocation84_spill] sm:$0xff] }
 0x927   :  { %2877 = vmatprep.subr.bf16.mxu0 %v7648_v3  ;;  %v2849_v3 = vsel %vm165_vm4, %v2848_v34, %v2837_v28  ;;  %v7783_v28 = vld [vmem:[#allocation106_spill] sm:$0xff]  ;;  %v7784_v34 = vld [vmem:[#allocation107_spill] sm:$0xff] }
 0x928   :  { %2917 = vmatpush2.bf16.msra.mxu1 %v7737_v47  ;;  %v7781_v47 = vld [vmem:[#allocation104_spill] sm:$0xff] }
 0x929   :  { %2918 = vmatprep.subr.bf16.mxu1 %v7650_v13  ;;  %v2850_v13 = vsel %vm167_vm5, %v2849_v3, %v2840_v9  ;;  %v7787_v9 = vld [vmem:[#allocation31_spill] sm:$0xff]  ;;  %v7788_v3 = vld [vmem:[#allocation33_spill] sm:$0xff] }
 0x92a   :  { %2878 = vmatpush2.bf16.msra.mxu0 %v7651_v48  ;;  %v2851_v48 = vsel %vm169_vm6, %v2850_v13, %v2843_v45  ;;  %v7789_v45 = vld [vmem:[#allocation36_spill] sm:$0xff]  ;;  %v7791_v13 = vld [vmem:[#allocation35_spill] sm:$0xff] }
 0x92b   :  { %2879 = vmatprep.subr.bf16.mxu0 %v7738_v39  ;;  %v7785_v39 = vld [vmem:[#allocation32_spill] sm:$0xff] }
 0x92c   :  { %2919 = vmatpush2.bf16.msra.mxu1 %v6005_v46  ;;  %v7740_v46 = vld [vmem:[#allocation81_spill] sm:$0xff] }
 0x92d   :  { %2920 = vmatprep.subr.bf16.mxu1 %v6009_v15  ;;  %v2852_v15 = vpack.c.bf16 %v2851_v48, %v2851_v48  ;;  %v7792_v48 = vld [vmem:[#allocation37_spill] sm:$0xff] }
 0x92e   :  { %2880 = vmatpush2.bf16.msra.mxu0 %v7653_v20  ;;  %v7742_v20 = vld [vmem:[#allocation83_spill] sm:$0xff] }
 0x92f   :  { %2881 = vmatprep.subr.bf16.mxu0 %v7739_v63  ;;  %v7790_v63 = vld [vmem:[#allocation38_spill] sm:$0xff] }
 0x930   :  { %2921 = vmatpush2.bf16.msra.mxu1 %v6019_v18  ;;  %v7745_v18 = vld [vmem:[#allocation86_spill] sm:$0xff] }
 0x931   :  { %2922 = vmatprep.subr.bf16.mxu1 %v7655_v38  ;;  %v7746_v38 = vld [vmem:[#allocation88_spill] sm:$0xff] }
 0x932   :  { %2882 = vmatpush2.bf16.msra.mxu0 %v7656_v5  ;;  %v7747_v5 = vld [vmem:[#allocation89_spill] sm:$0xff] }
 0x933   :  { %2883 = vmatprep.subr.bf16.mxu0 %v6029_v54  ;;  %v7748_v54 = vld [vmem:[#allocation91_spill] sm:$0xff] }
 0x934   :  { %2923 = vmatpush2.bf16.msra.mxu1 %v7740_v46  ;;  %v7793_v46 = vld [vmem:[#allocation40_spill] sm:$0xff] }
 0x935   :  { %2924 = vmatprep.subr.bf16.mxu1 %v7741_v29  ;;  %v7795_v29 = vld [vmem:[#allocation39_spill] sm:$0xff] }
 0x936   :  { %2884 = vmatpush2.bf16.msra.mxu0 %v7742_v20  ;;  %v7796_v20 = vld [vmem:[#allocation43_spill] sm:$0xff] }
 0x937   :  { %2960 = vmatprep.subr.bf16.mxu0 %v7743_v30  ;;  %v7797_v30 = vld [vmem:[#allocation69_spill] sm:$0xff] }
 0x938   :  { %2925 = vmatpush2.bf16.msra.mxu1 %v7744_v62  ;;  %v7798_v62 = vld [vmem:[#allocation70_spill] sm:$0xff] }
 0x939   :  { %2886 = vmatmul.mubr.bf16.vlgmr.msra.gmra.mxu0 %v2852_v15  ;;  %3001 = vmatprep.subr.bf16.mxu1 %v7745_v18  ;;  %v7799_v18 = vld [vmem:[#allocation72_spill] sm:$0xff] }
 0x93a   :  { %2961 = vmatpush1.bf16.msra.mxu0 %v7746_v38  ;;  %v7800_v38 = vld [vmem:[#allocation75_spill] sm:$0xff] }
 0x93b   :  { %2927 = vmatmul.mubr.bf16.vlgmr.msra.gmra.mxu1 %v2852_v15  ;;  %2962 = vmatprep.subr.bf16.mxu0 %v7747_v5  ;;  %v7794_v15 = vld [vmem:[#allocation41_spill] sm:$0xff] }
 0x93c   :  { %3002 = vmatpush1.bf16.msra.mxu1 %v7748_v54  ;;  %v7801_v5 = vld [vmem:[#allocation77_spill] sm:$0xff]  ;;  %v7802_v54 = vld [vmem:[#allocation79_spill] sm:$0xff] }
 0x93d   :  { %3003 = vmatprep.subr.bf16.mxu1 %v7749_v31  ;;  %v7803_v31 = vld [vmem:[#allocation78_spill] sm:$0xff] }
 0x93e   :  { %2963 = vmatpush1.bf16.msra.mxu0 %v7750_v32  ;;  %v7804_v32 = vld [vmem:[#allocation21_spill] sm:$0xff] }
 0x93f   :  { %2964 = vmatprep.subr.bf16.mxu0 %v7751_v50  ;;  %v7805_v50 = vld [vmem:[#allocation22_spill] sm:$0xff] }
 0x940   :  { %3004 = vmatpush1.bf16.msra.mxu1 %v7752_v21 }
 0x941   :  { %3005 = vmatprep.subr.bf16.mxu1 %v7753_v41 }
 0x942   :  { %2965 = vmatpush1.bf16.msra.mxu0 %v7754_v1 }
 0x943   :  { %2966 = vmatprep.subr.bf16.mxu0 %v7755_v33 }
 0x944   :  { %3006 = vmatpush1.bf16.msra.mxu1 %v7756_v36 }
 0x945   :  { %3007 = vmatprep.subr.bf16.mxu1 %v7757_v56 }
 0x946   :  { %2967 = vmatpush1.bf16.msra.mxu0 %v7758_v0 }
 0x947   :  { %2968 = vmatprep.subr.bf16.mxu0 %v7759_v25 }
 0x948   :  { %3008 = vmatpush1.bf16.msra.mxu1 %v7760_v40 }
 0x949   :  { %3009 = vmatprep.subr.bf16.mxu1 %v7761_v35 }
 0x94a   :  { %2969 = vmatpush1.bf16.msra.mxu0 %v7762_v17 }
 0x94b   :  { %2970 = vmatprep.subr.bf16.mxu0 %v7678_v58  ;;  %v7772_v58 = vld [vmem:[#allocation53_spill] sm:$0xff] }
 0x94c   :  { %3010 = vmatpush1.bf16.msra.mxu1 %v7679_v44  ;;  %v7773_v44 = vld [vmem:[#allocation55_spill] sm:$0xff] }
 0x94d   :  { %3011 = vmatprep.subr.bf16.mxu1 %v7763_v37 }
 0x94e   :  { %2971 = vmatpush1.bf16.msra.mxu0 %v7764_v42 }
 0x94f   :  { %2972 = vmatprep.subr.bf16.mxu0 %v7765_v22 }
 0x950   :  { %3012 = vmatpush1.bf16.msra.mxu1 %v7766_v19 }
 0x951   :  { %3013 = vmatprep.subr.bf16.mxu1 %v7767_v2 }
 0x952   :  { %2973 = vmatpush1.bf16.msra.mxu0 %v7768_v55 }
 0x953   :  { %2974 = vmatprep.subr.bf16.mxu0 %v7769_v16 }
 0x954   :  { %3014 = vmatpush1.bf16.msra.mxu1 %v7770_v43 }
 0x955   :  { %3015 = vmatprep.subr.bf16.mxu1 %v7771_v23 }
 0x956   :  { %2975 = vmatpush1.bf16.msra.mxu0 %v7772_v58 }
 0x957   :  { %2976 = vmatprep.subr.bf16.mxu0 %v7773_v44 }
 0x958   :  { %3016 = vmatpush1.bf16.msra.mxu1 %v7774_v26 }
 0x959   :  { %3017 = vmatprep.subr.bf16.mxu1 %v7775_v51 }
 0x95a   :  { %2977 = vmatpush2.bf16.msra.mxu0 %v7776_v8 }
 0x95b   :  { %2978 = vmatprep.subr.bf16.mxu0 %v7777_v11 }
 0x95c   :  { %3018 = vmatpush2.bf16.msra.mxu1 %v7778_v14 }
 0x95d   :  { %3019 = vmatprep.subr.bf16.mxu1 %v7779_v60 }
 0x95e   :  { %2979 = vmatpush2.bf16.msra.mxu0 %v7780_v10 }
 0x95f   :  { %2980 = vmatprep.subr.bf16.mxu0 %v7781_v47 }
 0x960   :  { %3020 = vmatpush2.bf16.msra.mxu1 %v7782_v53 }
 0x961   :  { %3021 = vmatprep.subr.bf16.mxu1 %v7783_v28 }
 0x962   :  { %2981 = vmatpush2.bf16.msra.mxu0 %v7784_v34 }
 0x963   :  { %2982 = vmatprep.subr.bf16.mxu0 %v7785_v39 }
 0x964   :  { %3022 = vmatpush2.bf16.msra.mxu1 %v7786_v57 }
 0x965   :  { %3023 = vmatprep.subr.bf16.mxu1 %v7787_v9 }
 0x966   :  { %2983 = vmatpush2.bf16.msra.mxu0 %v7788_v3 }
 0x967   :  { %2984 = vmatprep.subr.bf16.mxu0 %v7789_v45 }
 0x968   :  { %3024 = vmatpush2.bf16.msra.mxu1 %v7790_v63 }
 0x969   :  { %3025 = vmatprep.subr.bf16.mxu1 %v7791_v13 }
 0x96a   :  { %2985 = vmatpush2.bf16.msra.mxu0 %v7792_v48 }
 0x96b   :  { %2986 = vmatprep.subr.bf16.mxu0 %v7793_v46 }
 0x96c   :  { %3026 = vmatpush2.bf16.msra.mxu1 %v7794_v15 }
 0x96d   :  { %3027 = vmatprep.subr.bf16.mxu1 %v7795_v29 }
 0x96e   :  { %2987 = vmatpush2.bf16.msra.mxu0 %v7796_v20 }
 0x96f   :  { %2988 = vmatprep.subr.bf16.mxu0 %v7797_v30 }
 0x970   :  { %3028 = vmatpush2.bf16.msra.mxu1 %v7798_v62 }
 0x971   :  { %3029 = vmatprep.subr.bf16.mxu1 %v7799_v18 }
 0x972   :  { %2989 = vmatpush2.bf16.msra.mxu0 %v7800_v38 }
 0x973   :  { %2990 = vmatprep.subr.bf16.mxu0 %v7801_v5 }
 0x974   :  { %3030 = vmatpush2.bf16.msra.mxu1 %v7802_v54 }
 0x975   :  { %3031 = vmatprep.subr.bf16.mxu1 %v7803_v31 }
 0x976   :  { %2991 = vmatpush2.bf16.msra.mxu0 %v7804_v32 }
 0x978   :  { %3032 = vmatpush2.bf16.msra.mxu1 %v7805_v50 }
 0x9b9   :  { %v2727_v21 = vpop.f32.mrf.mxu0  ;;  %v2768_v41 = vpop.f32.mrf.mxu1 }
 0x9ba   :  { %v2728_v1 = vadd.f32 %v2727_v21, %v5071_v52  ;;  %v2769_v42 = vadd.f32 %v2768_v41, %v5081_v4 }
 0x9bb   :  { %v2729_v33 = vpop.f32.mrf.mxu0  ;;  %v2770_v36 = vpop.f32.mrf.mxu1 }
 0x9bc   :  { %v3473_v56 = vmul.f32 -1.442695, %v2728_v1  ;;  %v2730_v0 = vadd.f32 %v2729_v33, %v5075_v59  ;;  %v3475_v22 = vmul.f32 -1.442695, %v2769_v42  ;;  %v2771_v2 = vadd.f32 %v2770_v36, %v5086_v7  ;;  %v3736_v33 = vld [vmem:[#allocation12 + $0x38] sm:$0xff]  }
 0x9bd   :  { %v2731_v25 = vpop.f32.mrf.mxu0  ;;  %v2772_v40 = vpop.f32.mrf.mxu1  ;;  %v4412_v36 = vmov 0.0  }
 0x9be   :  { %3952 = vpow2.f32 %v3473_v56  ;;  %v3474_v35 = vmul.f32 -1.442695, %v2730_v0  ;;  %3508 = vmatprep.subr.bf16.mxu0 %v4412_v36  ;;  %v3737_v56 = vld [vmem:[#allocation12 + $0x30] sm:$0xff]   ;;  %v3738_v0 = vld [vmem:[#allocation12 + $0x28] sm:$0xff]   ;;  %v3740_v25 = vld [vmem:[#allocation12 + $0x18] sm:$0xff]  }
 0x9bf   :  { %v2732_v17 = vpop.f32.mrf.mxu0  ;;  %v2773_v37 = vpop.f32.mrf.mxu1  ;;  %v3741_v40 = vld [vmem:[#allocation12 + $0x10] sm:$0xff]  }
 0x9c0   :  { %3954 = vpow2.f32 %v3474_v35  ;;  %v3742_v35 = vld [vmem:[#allocation12 + $0x8] sm:$0xff]   ;;  %v3743_v17 = vld [vmem:[#allocation12] sm:$0xff]  }
 0x9c1   :  { %3956 = vpow2.f32 %v3475_v22 }
 0x9cb   :  { %v3953_v19 = vpop.eup %3952 }
 0x9cc   :  { %v2784_v55 = vadd.f32 1.0, %v3953_v19 }
 0x9cd   :  { %v3955_v16 = vpop.eup %3954 }
 0x9ce   :  { %3958 = vrcp.f32 %v2784_v55  ;;  %v2785_v43 = vadd.f32 1.0, %v3955_v16  ;;  %v3957_v23 = vpop.eup %3956 }
 0x9cf   :  { %3960 = vtanh.f32 %v2771_v2  ;;  %v2786_v51 = vadd.f32 1.0, %v3957_v23 }
 0x9d0   :  { %3962 = vrcp.f32 %v2785_v43 }
 0x9d1   :  { %3964 = vrcp.f32 %v2786_v51 }
 0x9db   :  { %v3959_v58 = vpop.eup %3958 }
 0x9dc   :  { %v3961_v44 = vpop.eup %3960 }
 0x9dd   :  { %v3963_v26 = vpop.eup %3962  ;;  %v2795_v11 = vmul.f32 %v3961_v44, %v3959_v58 }
 0x9de   :  { %v2794_v8 = vmul.f32 %v3963_v26, %v6394_v27  ;;  %v3965_v60 = vpop.eup %3964 }
 0x9e0   :  { %v6543_v14 = vadd.f32 %v2795_v11, %v2794_v8 }
 0x9e2   :  { %3966 = vtanh.f32 %v6543_v14 }
 0x9ef   :  { %v3967_v10 = vpop.eup %3966 }
 0x9f0   :  { %v2798_v47 = vmul.f32 %v3967_v10, %v3965_v60 }
 0x9f2   :  { %v2799_v53 = vpack.c.bf16 %v2798_v47, %v2798_v47 }
 0x9f4   :  { %2992 = vmatprep.mubr.bf16.mxu0 %v2799_v53  ;;  %3033 = vmatprep.mubr.bf16.mxu1 %v2799_v53 }
 0x9f9   :  { %v2887_v28 = vpop.f32.mrf.mxu0 }
 0x9fa   :  { %v2888_v34 = vadd.f32 %v2887_v28, %v7257_v49 }
 0x9fb   :  { %v2889_v39 = vpop.f32.mrf.mxu0  ;;  %v2928_v57 = vpop.f32.mrf.mxu1 }
 0x9fc   :  { %v3484_v9 = vmul.f32 -1.442695, %v2888_v34  ;;  %v2890_v27 = vadd.f32 %v2889_v39, %v7258_v61  ;;  %v2929_v15 = vadd.f32 %v2928_v57, %v7259_v12 }
 0x9fd   :  { %v2891_v3 = vpop.f32.mrf.mxu0  ;;  %v2930_v45 = vpop.f32.mrf.mxu1 }
 0x9fe   :  { %3968 = vpow2.f32 %v3484_v9  ;;  %v3485_v63 = vmul.f32 -1.442695, %v2890_v27  ;;  %v3486_v29 = vmul.f32 -1.442695, %v2929_v15  ;;  %v2931_v20 = vadd.f32 %v2930_v45, %v4924_v6 }
 0x9ff   :  { %v2892_v13 = vpop.f32.mrf.mxu0  ;;  %v2932_v48 = vpop.f32.mrf.mxu1 }
 0xa00   :  { %3970 = vpow2.f32 %v3485_v63  ;;  %v3490_v63 = vld [vmem:[%s6569_s7] ss:$0 sm:$0xff] }
 0xa01   :  { %v2933_v46 = vpop.f32.mrf.mxu1  ;;  %3972 = vpow2.f32 %v3486_v29 }
 0xa02   :  { %3974 = vtanh.f32 %v2931_v20 }
 0xa0b   :  { %v3969_v30 = vpop.eup %3968 }
 0xa0c   :  { %v2944_v49 = vadd.f32 1.0, %v3969_v30 }
 0xa0d   :  { %v3971_v62 = vpop.eup %3970 }
 0xa0e   :  { %3976 = vrcp.f32 %v2944_v49  ;;  %v2945_v61 = vadd.f32 1.0, %v3971_v62  ;;  %v3973_v18 = vpop.eup %3972 }
 0xa0f   :  { %v3975_v38 = vpop.eup %3974  ;;  %v2946_v31 = vadd.f32 1.0, %v3973_v18 }
 0xa10   :  { %3978 = vrcp.f32 %v2945_v61 }
 0xa11   :  { %3980 = vrcp.f32 %v2946_v31 }
 0xa1b   :  { %v3977_v5 = vpop.eup %3976 }
 0xa1c   :  { %v2955_v50 = vmul.f32 %v3977_v5, %v3975_v38 }
 0xa1d   :  { %v3979_v54 = vpop.eup %3978 }
 0xa1e   :  { %v2954_v32 = vmul.f32 %v3979_v54, %v6402_v24  ;;  %v3981_v6 = vpop.eup %3980  ;;  %v3739_v24 = vld [vmem:[#allocation12 + $0x20] sm:$0xff]  }
 0xa20   :  { %v2956_v12 = vadd.f32 %v2955_v50, %v2954_v32 }
 0xa22   :  { %3982 = vtanh.f32 %v2956_v12 }
 0xa2f   :  { %v3983_v21 = vpop.eup %3982 }
 0xa30   :  { %v2958_v41 = vmul.f32 %v3983_v21, %v3981_v6 }
 0xa32   :  { %v2959_v1 = vpack.c.bf16 %v2958_v41, %v2958_v41 }
 0xa34   :  { %2993 = vmatmul.mubr.bf16.vlgmr.msra.gmra.mxu0 %v2959_v1  ;;  %3034 = vmatmul.mubr.bf16.vlgmr.msra.gmra.mxu1 %v2959_v1 }
 0xa35   :  { %3509 = vmatpush3.bf16.msra.mxu0 %v3736_v33  ;;  %3524 = vmatprep.mubr.msk.bf16.mxu0 %vm4413_vm7, %v4412_v36 }
 0xa36   :  { %3510 = vmatprep.subr.bf16.mxu0 %v4412_v36 }
 0xa39   :  { %3511 = vmatpush3.bf16.msra.mxu0 %v3737_v56 }
 0xa3a   :  { %3512 = vmatprep.subr.bf16.mxu0 %v4412_v36 }
 0xa3d   :  { %3513 = vmatpush3.bf16.msra.mxu0 %v3738_v0 }
 0xa3e   :  { %3514 = vmatprep.subr.bf16.mxu0 %v4412_v36 }
 0xa41   :  { %3515 = vmatpush3.bf16.msra.mxu0 %v3739_v24 }
 0xa42   :  { %3516 = vmatprep.subr.bf16.mxu0 %v4412_v36 }
 0xa45   :  { %3517 = vmatpush3.bf16.msra.mxu0 %v3740_v25 }
 0xa46   :  { %3518 = vmatprep.subr.bf16.mxu0 %v4412_v36 }
 0xa49   :  { %3519 = vmatpush3.bf16.msra.mxu0 %v3741_v40 }
 0xa4a   :  { %3520 = vmatprep.subr.bf16.mxu0 %v4412_v36 }
 0xa4d   :  { %3521 = vmatpush3.bf16.msra.mxu0 %v3742_v35 }
 0xa4e   :  { %3522 = vmatprep.subr.bf16.mxu0 %v4412_v36 }
 0xa51   :  { %3523 = vmatpush3.bf16.msra.mxu0 %v3743_v17 }
 0xaf4   :  { %v2994_v37 = vpop.f32.mrf.mxu0  ;;  %v3035_v42 = vpop.f32.mrf.mxu1 }
 0xaf5   :  { %v2995_v22 = vadd.f32 %v2994_v37, %v5071_v52  ;;  %v3036_v51 = vadd.f32 %v3035_v42, %v5081_v4 }
 0xaf6   :  { %v2996_v19 = vpop.f32.mrf.mxu0  ;;  %v3037_v2 = vpop.f32.mrf.mxu1 }
 0xaf7   :  { %v3487_v55 = vmul.f32 -1.442695, %v2995_v22  ;;  %v2997_v16 = vadd.f32 %v2996_v19, %v5075_v59  ;;  %v3489_v8 = vmul.f32 -1.442695, %v3036_v51  ;;  %v3038_v60 = vadd.f32 %v3037_v2, %v5086_v7 }
 0xaf8   :  { %v2998_v43 = vpop.f32.mrf.mxu0  ;;  %v3039_v23 = vpop.f32.mrf.mxu1 }
 0xaf9   :  { %3984 = vpow2.f32 %v3487_v55  ;;  %v3488_v58 = vmul.f32 -1.442695, %v2997_v16 }
 0xafa   :  { %v2999_v44 = vpop.f32.mrf.mxu0  ;;  %v3040_v26 = vpop.f32.mrf.mxu1 }
 0xafb   :  { %3986 = vpow2.f32 %v3488_v58 }
 0xafc   :  { %3988 = vpow2.f32 %v3489_v8 }
 0xb06   :  { %v3985_v11 = vpop.eup %3984 }
 0xb07   :  { %v3051_v10 = vadd.f32 1.0, %v3985_v11 }
 0xb08   :  { %v3987_v52 = vpop.eup %3986 }
 0xb09   :  { %3990 = vrcp.f32 %v3051_v10  ;;  %v3052_v47 = vadd.f32 1.0, %v3987_v52  ;;  %v3989_v59 = vpop.eup %3988 }
 0xb0a   :  { %3992 = vtanh.f32 %v3038_v60  ;;  %v3053_v39 = vadd.f32 1.0, %v3989_v59 }
 0xb0b   :  { %3994 = vrcp.f32 %v3052_v47 }
 0xb0c   :  { %3996 = vrcp.f32 %v3053_v39 }
 0xb16   :  { %v3991_v53 = vpop.eup %3990 }
 0xb17   :  { %v3993_v28 = vpop.eup %3992 }
 0xb18   :  { %v3995_v34 = vpop.eup %3994  ;;  %v3062_v9 = vmul.f32 %v3993_v28, %v3991_v53 }
 0xb19   :  { %v3061_v57 = vmul.f32 %v3995_v34, %v6543_v14  ;;  %v3997_v27 = vpop.eup %3996 }
 0xb1b   :  { %v3063_v4 = vadd.f32 %v3062_v9, %v3061_v57 }
 0xb1d   :  { %3998 = vtanh.f32 %v3063_v4 }
 0xb2a   :  { %v3999_v7 = vpop.eup %3998 }
 0xb2b   :  { %v3065_v3 = vmul.f32 %v3999_v7, %v3997_v27 }
 0xb2d   :  { %v3066_v45 = vpack.c.bf16 %v3065_v3, %v3065_v3 }
 0xb2f   :  { %3525 = vmatmul.mubr.bf16.vlgmr.msra.gmra.mxu0 %v3066_v45 }
 0xbef   :  { %v3172_v13 = vpop.f32.mrf.mxu0 }
 0xbf0   :  { %v3173_v48 = vadd.f32 %v3490_v63, %v3172_v13 }
 0xbf1   :  { %v3526_v46 = vpop.f32.mrf.mxu0 }
 0xbf2   :  { %3178 = vst [vmem:[%s6570_s8] sm:$0xff] %v3173_v48 }
 0xbf3   :  { %v3175_v14 = vpop.f32.mrf.mxu0 }
 0xbf5   :  { %v3527_v15 = vpop.f32.mrf.mxu0 }
 0xbf6   :  { %3183 = vsyncpa [#allocation5], 1 }
 0xbf7   :  { %3184 = vsyncpa [#allocation7], 1 }
 0xbf8   :  { %3185 = vsyncpa [#allocation10], 1 }
 0xbf9   :  { %3186 = vsyncpa [#allocation13], 1 }

</bundles_post_ra>
